<compile_context>
chip_gen: v5e
topology: v5e:2x2
jax: 0.10.0
libtpu: 0.0.40
codegen_flags: <defaults>
</compile_context>

<pallas_src>
import functools

import jax
import jax.numpy as jnp
from jax.experimental import pallas as pl
from jax.experimental.pallas import tpu as pltpu


# -----------------------------------------------------------------------------
# Fused kernel: one grid step == B_TILE samples.
# Feature-map layout: rows = (channel, out_row), lanes = (out_col, sample).
# -----------------------------------------------------------------------------
def _lenet_fused_kernel(
    x_ref,        # (1, 32, 32*B)   rows = h, lanes = (w, sample)
    a1_ref,       # (5, 168, 32)    conv1 banded weights, one per kernel col j
    b1_ref,       # (168, 1)
    rr1_ref,      # (2, 84, 168)    pool1 row-selection (even / odd rows)
    a2_ref,       # (5, 160, 84)    conv2 banded weights
    b2_ref,       # (160, 1)
    rr2_ref,      # (2, 80, 160)    pool2 row-selection
    wf1_ref,      # (5, 120, 80)    fc1 weights, pre-split by pooled col index
    bf1_ref,      # (120, 1)
    w2t_ref,      # (84, 120)
    bf2_ref,      # (84, 1)
    w3t_ref,      # (10, 84)
    bf3_ref,      # (10, 1)
    o_ref,        # (1, 10, B)
    *, bt,
):
    f32 = jnp.float32
    B = bt
    x = x_ref[0]                                           # (32, 32*B)

    # ---- conv1 (5x5, valid): 5 banded matmuls over lane-sliced input --------
    # y1[oc*28+oh, ow*B+b] = sum_{i,j} W1[oc,i,j] * x[b, oh+i, ow+j]
    y1 = jnp.dot(a1_ref[0], x[:, 0:28 * B], preferred_element_type=f32)
    for j in range(1, 5):
        y1 = y1 + jnp.dot(a1_ref[j], x[:, j * B:(j + 28) * B],
                          preferred_element_type=f32)
    y1 = jnp.maximum(y1 + b1_ref[...], 0.0)                # (168, 28*B), ReLU

    # ---- pool1 (2x2/2): rows via 0/1 selection matmuls, cols via lane max ----
    ph1 = jnp.maximum(
        jnp.dot(rr1_ref[0], y1, preferred_element_type=f32),
        jnp.dot(rr1_ref[1], y1, preferred_element_type=f32))          # (84, 28*B)
    p1 = jnp.maximum(ph1[:, 0:27 * B], ph1[:, B:28 * B])              # (84, 27*B)
    # valid: pool1[c, hp, wp] at row c*14+hp, lane 2*wp*B + b (odd blocks junk)

    # ---- conv2: 5 banded matmuls; output keeps the stride-2*B lane spacing ---
    y2 = jnp.dot(a2_ref[0], p1[:, 0:19 * B], preferred_element_type=f32)
    for j in range(1, 5):
        y2 = y2 + jnp.dot(a2_ref[j], p1[:, 2 * j * B:(2 * j + 19) * B],
                          preferred_element_type=f32)
    y2 = jnp.maximum(y2 + b2_ref[...], 0.0)                # (160, 19*B), ReLU
    # valid: conv2[oc, oh, ow] at row oc*10+oh, lane 2*ow*B + b

    # ---- pool2 ---------------------------------------------------------------
    ph2 = jnp.maximum(
        jnp.dot(rr2_ref[0], y2, preferred_element_type=f32),
        jnp.dot(rr2_ref[1], y2, preferred_element_type=f32))          # (80, 19*B)
    p2 = jnp.maximum(ph2[:, 0:17 * B], ph2[:, 2 * B:19 * B])          # (80, 17*B)
    # valid: pool2[oc, hp, wp] at row oc*5+hp, lane 4*wp*B + b  (wp = 0..4)
    # flat feature index = (oc*5+hp)*5 + wp  == PyTorch (C,H,W) flatten order.

    # ---- fc1/fc2/fc3 on the MXU, samples stay in lanes ----------------------
    z1 = jnp.dot(wf1_ref[0], p2[:, 0:B], preferred_element_type=f32)
    for w in range(1, 5):
        z1 = z1 + jnp.dot(wf1_ref[w], p2[:, 4 * w * B:4 * w * B + B],
                          preferred_element_type=f32)
    z1 = jnp.maximum(z1 + bf1_ref[...], 0.0)                           # (120, B)

    z2 = jnp.dot(w2t_ref[...], z1, preferred_element_type=f32) + bf2_ref[...]
    z2 = jnp.maximum(z2, 0.0)                                          # (84, B)

    logits = jnp.dot(w3t_ref[...], z2, preferred_element_type=f32) + bf3_ref[...]

    # ---- softmax over the 10 classes (rows), exact normalization ------------
    m = jnp.max(logits, axis=0, keepdims=True)
    e = jnp.exp(logits - m)
    s = jnp.sum(e, axis=0, keepdims=True)
    o_ref[0] = e / s                                                   # (10, B)


# -----------------------------------------------------------------------------
# One-time parameter preprocessing (outside the per-forward hot path).
# -----------------------------------------------------------------------------
def prepare_params(params):
    f32 = jnp.float32

    def banded(w, oc, cin, oh_n, h_n):
        # w: (oc, cin, 5, 5) -> (5, oc*oh_n, cin*h_n) with
        # A[j, oc*oh_n+oh, c*h_n+h] = w[oc, c, h-oh, j] for 0 <= h-oh <= 4.
        d = jnp.arange(h_n)[None, :] - jnp.arange(oh_n)[:, None]      # (oh_n, h_n)
        mask = ((d >= 0) & (d <= 4)).astype(f32)
        dc = jnp.clip(d, 0, 4)
        mats = []
        for j in range(5):
            wj = w[:, :, :, j]                                         # (oc, cin, 5)
            a = wj[:, :, dc] * mask[None, None]                        # (oc,cin,oh,h)
            a = a.transpose(0, 2, 1, 3).reshape(oc * oh_n, cin * h_n)
            mats.append(a)
        return jnp.stack(mats, axis=0)

    w1 = params["conv1_w"].astype(f32)            # (6, 1, 5, 5)
    w2 = params["conv2_w"].astype(f32)            # (16, 6, 5, 5)
    a1 = banded(w1, 6, 1, 28, 32)                 # (5, 168, 32)
    a2 = banded(w2, 16, 6, 10, 14)                # (5, 160, 84)
    b1 = jnp.repeat(params["conv1_b"].astype(f32), 28).reshape(168, 1)
    b2 = jnp.repeat(params["conv2_b"].astype(f32), 10).reshape(160, 1)

    # Constant 0/1 selection matrices implementing the row half of 2x2 pooling.
    def row_sel(channels, h):
        r = jnp.arange(channels * (h // 2))
        tgt = (r // (h // 2)) * h + 2 * (r % (h // 2))
        cols = jnp.arange(channels * h)[None, :]
        even = (cols == tgt[:, None]).astype(f32)
        odd = (cols == (tgt + 1)[:, None]).astype(f32)
        return jnp.stack([even, odd], axis=0)

    rr1 = row_sel(6, 28)                          # (2, 84, 168)
    rr2 = row_sel(16, 10)                         # (2, 80, 160)

    # fc1 weights pre-split by the pooled-map column index wp and transposed so
    # fc1 is 5 MXU matmuls with samples in lanes: wf1[w][:, r] = fc1_w[r*5+w, :].
    fc1 = params["fc1_w"].astype(f32)             # (400, 120)
    wf1 = jnp.stack([fc1[w::5, :].T for w in range(5)], axis=0)        # (5,120,80)
    bf1 = params["fc1_b"].astype(f32).reshape(120, 1)
    w2t = params["fc2_w"].astype(f32).T           # (84, 120)
    bf2 = params["fc2_b"].astype(f32).reshape(84, 1)
    w3t = params["fc3_w"].astype(f32).T           # (10, 84)
    bf3 = params["fc3_b"].astype(f32).reshape(10, 1)

    return (a1, b1, rr1, a2, b2, rr2, wf1, bf1, w2t, bf2, w3t, bf3)


def lenet_forward(prep, x, *, b_tile=8):
    """x: (B, 1, 32, 32) float32 NCHW -> (B, 10) softmax probabilities."""
    btot = x.shape[0]
    t = pl.cdiv(btot, b_tile)
    pad = t * b_tile - btot

    xf = x.reshape(btot, 32, 32).astype(jnp.float32)
    if pad:
        xf = jnp.concatenate([xf, jnp.zeros((pad, 32, 32), jnp.float32)], axis=0)
    # rows = h, lanes = (w, sample) sample-minor -> lane-dense matmul N dims.
    x2 = xf.reshape(t, b_tile, 32, 32).transpose(0, 2, 3, 1).reshape(t, 32, 32 * b_tile)

    def const_spec(shape):
        nd = len(shape)
        return pl.BlockSpec(shape, lambda i, n=nd: (0,) * n)

    in_specs = [pl.BlockSpec((1, 32, 32 * b_tile), lambda i: (i, 0, 0))]
    in_specs += [const_spec(p.shape) for p in prep]

    out = pl.pallas_call(
        functools.partial(_lenet_fused_kernel, bt=b_tile),
        out_shape=jax.ShapeDtypeStruct((t, 10, b_tile), jnp.float32),
        grid=(t,),
        in_specs=in_specs,
        out_specs=pl.BlockSpec((1, 10, b_tile), lambda i: (i, 0, 0)),
        compiler_params=pltpu.CompilerParams(
            dimension_semantics=("parallel",)),    # v7x: split tiles over 2 TCs
    )(x2, *prep)

    probs = out.transpose(0, 2, 1).reshape(t * b_tile, 10)
    return probs[:btot]


# -----------------------------------------------------------------------------
# Pure-JAX reference (same float LeNet semantics) for a correctness check.
# -----------------------------------------------------------------------------
def lenet_reference(params, x):
    hp = jax.lax.Precision.HIGHEST

    def conv(x, w, b):
        y = jax.lax.conv_general_dilated(
            x, w, (1, 1), "VALID",
            dimension_numbers=("NCHW", "OIHW", "NCHW"), precision=hp)
        return jnp.maximum(y + b[None, :, None, None], 0.0)

    def pool(y):
        b, c, h, w = y.shape
        return y.reshape(b, c, h // 2, 2, w // 2, 2).max(axis=(3, 5))

    y = pool(conv(x, params["conv1_w"], params["conv1_b"]))
    y = pool(conv(y, params["conv2_w"], params["conv2_b"]))
    y = y.reshape(y.shape[0], -1)
    y = jnp.maximum(jnp.dot(y, params["fc1_w"], precision=hp) + params["fc1_b"], 0.0)
    y = jnp.maximum(jnp.dot(y, params["fc2_w"], precision=hp) + params["fc2_b"], 0.0)
    logits = jnp.dot(y, params["fc3_w"], precision=hp) + params["fc3_b"]
    return jax.nn.softmax(logits, axis=1)


def init_params(key):
    ks = jax.random.split(key, 10)

    def uniform(k, shape, fan_in):
        bound = 1.0 / jnp.sqrt(jnp.float32(fan_in))
        return jax.random.uniform(k, shape, jnp.float32, -bound, bound)

    return {
        "conv1_w": uniform(ks[0], (6, 1, 5, 5), 1 * 5 * 5),
        "conv1_b": uniform(ks[1], (6,), 1 * 5 * 5),
        "conv2_w": uniform(ks[2], (16, 6, 5, 5), 6 * 5 * 5),
        "conv2_b": uniform(ks[3], (16,), 6 * 5 * 5),
        "fc1_w": uniform(ks[4], (400, 120), 400),
        "fc1_b": uniform(ks[5], (120,), 400),
        "fc2_w": uniform(ks[6], (120, 84), 120),
        "fc2_b": uniform(ks[7], (84,), 120),
        "fc3_w": uniform(ks[8], (84, 10), 84),
        "fc3_b": uniform(ks[9], (10,), 84),
    }


if __name__ == "__main__":
    key = jax.random.PRNGKey(0)
    pkey, xkey = jax.random.split(key)
    params = init_params(pkey)
    # batch=16, single channel, 32x32 (the module's fc1 implies 400 = 16*5*5).
    # B_TILE=8 -> grid of 2 lane-dense tiles; raise to 16-32 in production.
    x = jax.random.normal(xkey, (16, 1, 32, 32), dtype=jnp.float32)

    prep = prepare_params(params)          # one-time weight preprocessing
    fwd = jax.jit(functools.partial(lenet_forward, b_tile=8))
    out = jax.block_until_ready(fwd(prep, x))

    ref = jax.block_until_ready(lenet_reference(params, x))

    assert out.shape == (16, 10)
    assert bool(jnp.all(jnp.isfinite(out)))
    # exact softmax normalization -> rows sum to 1 up to f32 rounding
    assert bool(jnp.allclose(jnp.sum(out, axis=1), 1.0, atol=1e-3))
    # matches the float-LeNet reference
    assert bool(jnp.allclose(out, ref, atol=1e-2)), float(jnp.max(jnp.abs(out - ref)))
    print("KERNEL_OK")
</pallas_src>

<mosaic_0001>
module attributes {stable_mosaic.version = 11 : i64} {
  func.func @_lenet_fused_kernel(%arg0: i32, %arg1: memref<1x32x256xf32, #tpu.memory_space<vmem>>, %arg2: memref<5x168x32xf32, #tpu.memory_space<vmem>>, %arg3: memref<168x1xf32, #tpu.memory_space<vmem>>, %arg4: memref<2x84x168xf32, #tpu.memory_space<vmem>>, %arg5: memref<5x160x84xf32, #tpu.memory_space<vmem>>, %arg6: memref<160x1xf32, #tpu.memory_space<vmem>>, %arg7: memref<2x80x160xf32, #tpu.memory_space<vmem>>, %arg8: memref<5x120x80xf32, #tpu.memory_space<vmem>>, %arg9: memref<120x1xf32, #tpu.memory_space<vmem>>, %arg10: memref<84x120xf32, #tpu.memory_space<vmem>>, %arg11: memref<84x1xf32, #tpu.memory_space<vmem>>, %arg12: memref<10x84xf32, #tpu.memory_space<vmem>>, %arg13: memref<10x1xf32, #tpu.memory_space<vmem>>, %arg14: memref<1x10x8xf32, #tpu.memory_space<vmem>>) attributes {dimension_semantics = [#tpu.dimension_semantics<parallel>], iteration_bounds = array<i64: 2>, scalar_prefetch = 0 : i64, scratch_operands = 0 : i64, tpu.core_type = #tpu.core_type<tc>, window_params = [{transform_indices = @transform_0, window_bounds = array<i64: 1, 32, 256>}, {pipeline_mode = #tpu.pipeline_mode<synchronous>, transform_indices = @transform_1, window_bounds = array<i64: 5, 168, 32>}, {pipeline_mode = #tpu.pipeline_mode<synchronous>, transform_indices = @transform_2, window_bounds = array<i64: 168, 1>}, {pipeline_mode = #tpu.pipeline_mode<synchronous>, transform_indices = @transform_3, window_bounds = array<i64: 2, 84, 168>}, {pipeline_mode = #tpu.pipeline_mode<synchronous>, transform_indices = @transform_4, window_bounds = array<i64: 5, 160, 84>}, {pipeline_mode = #tpu.pipeline_mode<synchronous>, transform_indices = @transform_5, window_bounds = array<i64: 160, 1>}, {pipeline_mode = #tpu.pipeline_mode<synchronous>, transform_indices = @transform_6, window_bounds = array<i64: 2, 80, 160>}, {pipeline_mode = #tpu.pipeline_mode<synchronous>, transform_indices = @transform_7, window_bounds = array<i64: 5, 120, 80>}, {pipeline_mode = #tpu.pipeline_mode<synchronous>, transform_indices = @transform_8, window_bounds = array<i64: 120, 1>}, {pipeline_mode = #tpu.pipeline_mode<synchronous>, transform_indices = @transform_9, window_bounds = array<i64: 84, 120>}, {pipeline_mode = #tpu.pipeline_mode<synchronous>, transform_indices = @transform_10, window_bounds = array<i64: 84, 1>}, {pipeline_mode = #tpu.pipeline_mode<synchronous>, transform_indices = @transform_11, window_bounds = array<i64: 10, 84>}, {pipeline_mode = #tpu.pipeline_mode<synchronous>, transform_indices = @transform_12, window_bounds = array<i64: 10, 1>}, {transform_indices = @transform_13, window_bounds = array<i64: 1, 10, 8>}]} {
    %c0 = arith.constant 0 : index
    %c0_0 = arith.constant 0 : index
    %c0_1 = arith.constant 0 : index
    %0 = vector.load %arg1[%c0, %c0_0, %c0_1] : memref<1x32x256xf32, #tpu.memory_space<vmem>>, vector<1x32x256xf32>
    %1 = vector.shape_cast %0 : vector<1x32x256xf32> to vector<32x256xf32>
    %c0_2 = arith.constant 0 : index
    %c0_3 = arith.constant 0 : index
    %c0_4 = arith.constant 0 : index
    %2 = vector.load %arg2[%c0_2, %c0_3, %c0_4] : memref<5x168x32xf32, #tpu.memory_space<vmem>>, vector<1x168x32xf32>
    %3 = vector.shape_cast %2 : vector<1x168x32xf32> to vector<168x32xf32>
    %4 = vector.extract_strided_slice %1 {offsets = [0, 0], sizes = [32, 224], strides = [1, 1]} : vector<32x256xf32> to vector<32x224xf32>
    %cst = arith.constant dense<0.000000e+00> : vector<168x224xf32>
    %5 = tpu.matmul %3, %4, %cst {dimension_numbers = #tpu.dot_dimension_numbers<[1], [0], [0], [1], [0, 0, 1, 1], [], []>} : vector<168x32xf32>, vector<32x224xf32>, vector<168x224xf32> -> vector<168x224xf32>
    %c1 = arith.constant 1 : index
    %c0_5 = arith.constant 0 : index
    %c0_6 = arith.constant 0 : index
    %6 = vector.load %arg2[%c1, %c0_5, %c0_6] : memref<5x168x32xf32, #tpu.memory_space<vmem>>, vector<1x168x32xf32>
    %7 = vector.shape_cast %6 : vector<1x168x32xf32> to vector<168x32xf32>
    %8 = vector.extract_strided_slice %1 {offsets = [0, 8], sizes = [32, 224], strides = [1, 1]} : vector<32x256xf32> to vector<32x224xf32>
    %cst_7 = arith.constant dense<0.000000e+00> : vector<168x224xf32>
    %9 = tpu.matmul %7, %8, %cst_7 {dimension_numbers = #tpu.dot_dimension_numbers<[1], [0], [0], [1], [0, 0, 1, 1], [], []>} : vector<168x32xf32>, vector<32x224xf32>, vector<168x224xf32> -> vector<168x224xf32>
    %10 = arith.addf %5, %9 : vector<168x224xf32>
    %c2 = arith.constant 2 : index
    %c0_8 = arith.constant 0 : index
    %c0_9 = arith.constant 0 : index
    %11 = vector.load %arg2[%c2, %c0_8, %c0_9] : memref<5x168x32xf32, #tpu.memory_space<vmem>>, vector<1x168x32xf32>
    %12 = vector.shape_cast %11 : vector<1x168x32xf32> to vector<168x32xf32>
    %13 = vector.extract_strided_slice %1 {offsets = [0, 16], sizes = [32, 224], strides = [1, 1]} : vector<32x256xf32> to vector<32x224xf32>
    %cst_10 = arith.constant dense<0.000000e+00> : vector<168x224xf32>
    %14 = tpu.matmul %12, %13, %cst_10 {dimension_numbers = #tpu.dot_dimension_numbers<[1], [0], [0], [1], [0, 0, 1, 1], [], []>} : vector<168x32xf32>, vector<32x224xf32>, vector<168x224xf32> -> vector<168x224xf32>
    %15 = arith.addf %10, %14 : vector<168x224xf32>
    %c3 = arith.constant 3 : index
    %c0_11 = arith.constant 0 : index
    %c0_12 = arith.constant 0 : index
    %16 = vector.load %arg2[%c3, %c0_11, %c0_12] : memref<5x168x32xf32, #tpu.memory_space<vmem>>, vector<1x168x32xf32>
    %17 = vector.shape_cast %16 : vector<1x168x32xf32> to vector<168x32xf32>
    %18 = vector.extract_strided_slice %1 {offsets = [0, 24], sizes = [32, 224], strides = [1, 1]} : vector<32x256xf32> to vector<32x224xf32>
    %cst_13 = arith.constant dense<0.000000e+00> : vector<168x224xf32>
    %19 = tpu.matmul %17, %18, %cst_13 {dimension_numbers = #tpu.dot_dimension_numbers<[1], [0], [0], [1], [0, 0, 1, 1], [], []>} : vector<168x32xf32>, vector<32x224xf32>, vector<168x224xf32> -> vector<168x224xf32>
    %20 = arith.addf %15, %19 : vector<168x224xf32>
    %c4 = arith.constant 4 : index
    %c0_14 = arith.constant 0 : index
    %c0_15 = arith.constant 0 : index
    %21 = vector.load %arg2[%c4, %c0_14, %c0_15] : memref<5x168x32xf32, #tpu.memory_space<vmem>>, vector<1x168x32xf32>
    %22 = vector.shape_cast %21 : vector<1x168x32xf32> to vector<168x32xf32>
    %23 = vector.extract_strided_slice %1 {offsets = [0, 32], sizes = [32, 224], strides = [1, 1]} : vector<32x256xf32> to vector<32x224xf32>
    %cst_16 = arith.constant dense<0.000000e+00> : vector<168x224xf32>
    %24 = tpu.matmul %22, %23, %cst_16 {dimension_numbers = #tpu.dot_dimension_numbers<[1], [0], [0], [1], [0, 0, 1, 1], [], []>} : vector<168x32xf32>, vector<32x224xf32>, vector<168x224xf32> -> vector<168x224xf32>
    %25 = arith.addf %20, %24 : vector<168x224xf32>
    %c0_17 = arith.constant 0 : index
    %c0_18 = arith.constant 0 : index
    %26 = vector.load %arg3[%c0_17, %c0_18] : memref<168x1xf32, #tpu.memory_space<vmem>>, vector<168x1xf32>
    %27 = vector.broadcast %26 : vector<168x1xf32> to vector<168x224xf32>
    %28 = arith.addf %25, %27 : vector<168x224xf32>
    %cst_19 = arith.constant 0.000000e+00 : f32
    %29 = vector.broadcast %cst_19 : f32 to vector<168x224xf32>
    %30 = arith.maximumf %28, %29 : vector<168x224xf32>
    %c0_20 = arith.constant 0 : index
    %c0_21 = arith.constant 0 : index
    %c0_22 = arith.constant 0 : index
    %31 = vector.load %arg4[%c0_20, %c0_21, %c0_22] : memref<2x84x168xf32, #tpu.memory_space<vmem>>, vector<1x84x168xf32>
    %32 = vector.shape_cast %31 : vector<1x84x168xf32> to vector<84x168xf32>
    %cst_23 = arith.constant dense<0.000000e+00> : vector<84x224xf32>
    %33 = tpu.matmul %32, %30, %cst_23 {dimension_numbers = #tpu.dot_dimension_numbers<[1], [0], [0], [1], [0, 0, 1, 1], [], []>} : vector<84x168xf32>, vector<168x224xf32>, vector<84x224xf32> -> vector<84x224xf32>
    %c1_24 = arith.constant 1 : index
    %c0_25 = arith.constant 0 : index
    %c0_26 = arith.constant 0 : index
    %34 = vector.load %arg4[%c1_24, %c0_25, %c0_26] : memref<2x84x168xf32, #tpu.memory_space<vmem>>, vector<1x84x168xf32>
    %35 = vector.shape_cast %34 : vector<1x84x168xf32> to vector<84x168xf32>
    %cst_27 = arith.constant dense<0.000000e+00> : vector<84x224xf32>
    %36 = tpu.matmul %35, %30, %cst_27 {dimension_numbers = #tpu.dot_dimension_numbers<[1], [0], [0], [1], [0, 0, 1, 1], [], []>} : vector<84x168xf32>, vector<168x224xf32>, vector<84x224xf32> -> vector<84x224xf32>
    %37 = arith.maximumf %33, %36 : vector<84x224xf32>
    %38 = vector.extract_strided_slice %37 {offsets = [0, 0], sizes = [84, 216], strides = [1, 1]} : vector<84x224xf32> to vector<84x216xf32>
    %39 = vector.extract_strided_slice %37 {offsets = [0, 8], sizes = [84, 216], strides = [1, 1]} : vector<84x224xf32> to vector<84x216xf32>
    %40 = arith.maximumf %38, %39 : vector<84x216xf32>
    %c0_28 = arith.constant 0 : index
    %c0_29 = arith.constant 0 : index
    %c0_30 = arith.constant 0 : index
    %41 = vector.load %arg5[%c0_28, %c0_29, %c0_30] : memref<5x160x84xf32, #tpu.memory_space<vmem>>, vector<1x160x84xf32>
    %42 = vector.shape_cast %41 : vector<1x160x84xf32> to vector<160x84xf32>
    %43 = vector.extract_strided_slice %40 {offsets = [0, 0], sizes = [84, 152], strides = [1, 1]} : vector<84x216xf32> to vector<84x152xf32>
    %cst_31 = arith.constant dense<0.000000e+00> : vector<160x152xf32>
    %44 = tpu.matmul %42, %43, %cst_31 {dimension_numbers = #tpu.dot_dimension_numbers<[1], [0], [0], [1], [0, 0, 1, 1], [], []>} : vector<160x84xf32>, vector<84x152xf32>, vector<160x152xf32> -> vector<160x152xf32>
    %c1_32 = arith.constant 1 : index
    %c0_33 = arith.constant 0 : index
    %c0_34 = arith.constant 0 : index
    %45 = vector.load %arg5[%c1_32, %c0_33, %c0_34] : memref<5x160x84xf32, #tpu.memory_space<vmem>>, vector<1x160x84xf32>
    %46 = vector.shape_cast %45 : vector<1x160x84xf32> to vector<160x84xf32>
    %47 = vector.extract_strided_slice %40 {offsets = [0, 16], sizes = [84, 152], strides = [1, 1]} : vector<84x216xf32> to vector<84x152xf32>
    %cst_35 = arith.constant dense<0.000000e+00> : vector<160x152xf32>
    %48 = tpu.matmul %46, %47, %cst_35 {dimension_numbers = #tpu.dot_dimension_numbers<[1], [0], [0], [1], [0, 0, 1, 1], [], []>} : vector<160x84xf32>, vector<84x152xf32>, vector<160x152xf32> -> vector<160x152xf32>
    %49 = arith.addf %44, %48 : vector<160x152xf32>
    %c2_36 = arith.constant 2 : index
    %c0_37 = arith.constant 0 : index
    %c0_38 = arith.constant 0 : index
    %50 = vector.load %arg5[%c2_36, %c0_37, %c0_38] : memref<5x160x84xf32, #tpu.memory_space<vmem>>, vector<1x160x84xf32>
    %51 = vector.shape_cast %50 : vector<1x160x84xf32> to vector<160x84xf32>
    %52 = vector.extract_strided_slice %40 {offsets = [0, 32], sizes = [84, 152], strides = [1, 1]} : vector<84x216xf32> to vector<84x152xf32>
    %cst_39 = arith.constant dense<0.000000e+00> : vector<160x152xf32>
    %53 = tpu.matmul %51, %52, %cst_39 {dimension_numbers = #tpu.dot_dimension_numbers<[1], [0], [0], [1], [0, 0, 1, 1], [], []>} : vector<160x84xf32>, vector<84x152xf32>, vector<160x152xf32> -> vector<160x152xf32>
    %54 = arith.addf %49, %53 : vector<160x152xf32>
    %c3_40 = arith.constant 3 : index
    %c0_41 = arith.constant 0 : index
    %c0_42 = arith.constant 0 : index
    %55 = vector.load %arg5[%c3_40, %c0_41, %c0_42] : memref<5x160x84xf32, #tpu.memory_space<vmem>>, vector<1x160x84xf32>
    %56 = vector.shape_cast %55 : vector<1x160x84xf32> to vector<160x84xf32>
    %57 = vector.extract_strided_slice %40 {offsets = [0, 48], sizes = [84, 152], strides = [1, 1]} : vector<84x216xf32> to vector<84x152xf32>
    %cst_43 = arith.constant dense<0.000000e+00> : vector<160x152xf32>
    %58 = tpu.matmul %56, %57, %cst_43 {dimension_numbers = #tpu.dot_dimension_numbers<[1], [0], [0], [1], [0, 0, 1, 1], [], []>} : vector<160x84xf32>, vector<84x152xf32>, vector<160x152xf32> -> vector<160x152xf32>
    %59 = arith.addf %54, %58 : vector<160x152xf32>
    %c4_44 = arith.constant 4 : index
    %c0_45 = arith.constant 0 : index
    %c0_46 = arith.constant 0 : index
    %60 = vector.load %arg5[%c4_44, %c0_45, %c0_46] : memref<5x160x84xf32, #tpu.memory_space<vmem>>, vector<1x160x84xf32>
    %61 = vector.shape_cast %60 : vector<1x160x84xf32> to vector<160x84xf32>
    %62 = vector.extract_strided_slice %40 {offsets = [0, 64], sizes = [84, 152], strides = [1, 1]} : vector<84x216xf32> to vector<84x152xf32>
    %cst_47 = arith.constant dense<0.000000e+00> : vector<160x152xf32>
    %63 = tpu.matmul %61, %62, %cst_47 {dimension_numbers = #tpu.dot_dimension_numbers<[1], [0], [0], [1], [0, 0, 1, 1], [], []>} : vector<160x84xf32>, vector<84x152xf32>, vector<160x152xf32> -> vector<160x152xf32>
    %64 = arith.addf %59, %63 : vector<160x152xf32>
    %c0_48 = arith.constant 0 : index
    %c0_49 = arith.constant 0 : index
    %65 = vector.load %arg6[%c0_48, %c0_49] : memref<160x1xf32, #tpu.memory_space<vmem>>, vector<160x1xf32>
    %66 = vector.broadcast %65 : vector<160x1xf32> to vector<160x152xf32>
    %67 = arith.addf %64, %66 : vector<160x152xf32>
    %cst_50 = arith.constant 0.000000e+00 : f32
    %68 = vector.broadcast %cst_50 : f32 to vector<160x152xf32>
    %69 = arith.maximumf %67, %68 : vector<160x152xf32>
    %c0_51 = arith.constant 0 : index
    %c0_52 = arith.constant 0 : index
    %c0_53 = arith.constant 0 : index
    %70 = vector.load %arg7[%c0_51, %c0_52, %c0_53] : memref<2x80x160xf32, #tpu.memory_space<vmem>>, vector<1x80x160xf32>
    %71 = vector.shape_cast %70 : vector<1x80x160xf32> to vector<80x160xf32>
    %cst_54 = arith.constant dense<0.000000e+00> : vector<80x152xf32>
    %72 = tpu.matmul %71, %69, %cst_54 {dimension_numbers = #tpu.dot_dimension_numbers<[1], [0], [0], [1], [0, 0, 1, 1], [], []>} : vector<80x160xf32>, vector<160x152xf32>, vector<80x152xf32> -> vector<80x152xf32>
    %c1_55 = arith.constant 1 : index
    %c0_56 = arith.constant 0 : index
    %c0_57 = arith.constant 0 : index
    %73 = vector.load %arg7[%c1_55, %c0_56, %c0_57] : memref<2x80x160xf32, #tpu.memory_space<vmem>>, vector<1x80x160xf32>
    %74 = vector.shape_cast %73 : vector<1x80x160xf32> to vector<80x160xf32>
    %cst_58 = arith.constant dense<0.000000e+00> : vector<80x152xf32>
    %75 = tpu.matmul %74, %69, %cst_58 {dimension_numbers = #tpu.dot_dimension_numbers<[1], [0], [0], [1], [0, 0, 1, 1], [], []>} : vector<80x160xf32>, vector<160x152xf32>, vector<80x152xf32> -> vector<80x152xf32>
    %76 = arith.maximumf %72, %75 : vector<80x152xf32>
    %77 = vector.extract_strided_slice %76 {offsets = [0, 0], sizes = [80, 136], strides = [1, 1]} : vector<80x152xf32> to vector<80x136xf32>
    %78 = vector.extract_strided_slice %76 {offsets = [0, 16], sizes = [80, 136], strides = [1, 1]} : vector<80x152xf32> to vector<80x136xf32>
    %79 = arith.maximumf %77, %78 : vector<80x136xf32>
    %c0_59 = arith.constant 0 : index
    %c0_60 = arith.constant 0 : index
    %c0_61 = arith.constant 0 : index
    %80 = vector.load %arg8[%c0_59, %c0_60, %c0_61] : memref<5x120x80xf32, #tpu.memory_space<vmem>>, vector<1x120x80xf32>
    %81 = vector.shape_cast %80 : vector<1x120x80xf32> to vector<120x80xf32>
    %82 = vector.extract_strided_slice %79 {offsets = [0, 0], sizes = [80, 8], strides = [1, 1]} : vector<80x136xf32> to vector<80x8xf32>
    %cst_62 = arith.constant dense<0.000000e+00> : vector<120x8xf32>
    %83 = tpu.matmul %81, %82, %cst_62 {dimension_numbers = #tpu.dot_dimension_numbers<[1], [0], [0], [1], [0, 0, 1, 1], [], []>} : vector<120x80xf32>, vector<80x8xf32>, vector<120x8xf32> -> vector<120x8xf32>
    %c1_63 = arith.constant 1 : index
    %c0_64 = arith.constant 0 : index
    %c0_65 = arith.constant 0 : index
    %84 = vector.load %arg8[%c1_63, %c0_64, %c0_65] : memref<5x120x80xf32, #tpu.memory_space<vmem>>, vector<1x120x80xf32>
    %85 = vector.shape_cast %84 : vector<1x120x80xf32> to vector<120x80xf32>
    %86 = vector.extract_strided_slice %79 {offsets = [0, 32], sizes = [80, 8], strides = [1, 1]} : vector<80x136xf32> to vector<80x8xf32>
    %cst_66 = arith.constant dense<0.000000e+00> : vector<120x8xf32>
    %87 = tpu.matmul %85, %86, %cst_66 {dimension_numbers = #tpu.dot_dimension_numbers<[1], [0], [0], [1], [0, 0, 1, 1], [], []>} : vector<120x80xf32>, vector<80x8xf32>, vector<120x8xf32> -> vector<120x8xf32>
    %88 = arith.addf %83, %87 : vector<120x8xf32>
    %c2_67 = arith.constant 2 : index
    %c0_68 = arith.constant 0 : index
    %c0_69 = arith.constant 0 : index
    %89 = vector.load %arg8[%c2_67, %c0_68, %c0_69] : memref<5x120x80xf32, #tpu.memory_space<vmem>>, vector<1x120x80xf32>
    %90 = vector.shape_cast %89 : vector<1x120x80xf32> to vector<120x80xf32>
    %91 = vector.extract_strided_slice %79 {offsets = [0, 64], sizes = [80, 8], strides = [1, 1]} : vector<80x136xf32> to vector<80x8xf32>
    %cst_70 = arith.constant dense<0.000000e+00> : vector<120x8xf32>
    %92 = tpu.matmul %90, %91, %cst_70 {dimension_numbers = #tpu.dot_dimension_numbers<[1], [0], [0], [1], [0, 0, 1, 1], [], []>} : vector<120x80xf32>, vector<80x8xf32>, vector<120x8xf32> -> vector<120x8xf32>
    %93 = arith.addf %88, %92 : vector<120x8xf32>
    %c3_71 = arith.constant 3 : index
    %c0_72 = arith.constant 0 : index
    %c0_73 = arith.constant 0 : index
    %94 = vector.load %arg8[%c3_71, %c0_72, %c0_73] : memref<5x120x80xf32, #tpu.memory_space<vmem>>, vector<1x120x80xf32>
    %95 = vector.shape_cast %94 : vector<1x120x80xf32> to vector<120x80xf32>
    %96 = vector.extract_strided_slice %79 {offsets = [0, 96], sizes = [80, 8], strides = [1, 1]} : vector<80x136xf32> to vector<80x8xf32>
    %cst_74 = arith.constant dense<0.000000e+00> : vector<120x8xf32>
    %97 = tpu.matmul %95, %96, %cst_74 {dimension_numbers = #tpu.dot_dimension_numbers<[1], [0], [0], [1], [0, 0, 1, 1], [], []>} : vector<120x80xf32>, vector<80x8xf32>, vector<120x8xf32> -> vector<120x8xf32>
    %98 = arith.addf %93, %97 : vector<120x8xf32>
    %c4_75 = arith.constant 4 : index
    %c0_76 = arith.constant 0 : index
    %c0_77 = arith.constant 0 : index
    %99 = vector.load %arg8[%c4_75, %c0_76, %c0_77] : memref<5x120x80xf32, #tpu.memory_space<vmem>>, vector<1x120x80xf32>
    %100 = vector.shape_cast %99 : vector<1x120x80xf32> to vector<120x80xf32>
    %101 = vector.extract_strided_slice %79 {offsets = [0, 128], sizes = [80, 8], strides = [1, 1]} : vector<80x136xf32> to vector<80x8xf32>
    %cst_78 = arith.constant dense<0.000000e+00> : vector<120x8xf32>
    %102 = tpu.matmul %100, %101, %cst_78 {dimension_numbers = #tpu.dot_dimension_numbers<[1], [0], [0], [1], [0, 0, 1, 1], [], []>} : vector<120x80xf32>, vector<80x8xf32>, vector<120x8xf32> -> vector<120x8xf32>
    %103 = arith.addf %98, %102 : vector<120x8xf32>
    %c0_79 = arith.constant 0 : index
    %c0_80 = arith.constant 0 : index
    %104 = vector.load %arg9[%c0_79, %c0_80] : memref<120x1xf32, #tpu.memory_space<vmem>>, vector<120x1xf32>
    %105 = vector.broadcast %104 : vector<120x1xf32> to vector<120x8xf32>
    %106 = arith.addf %103, %105 : vector<120x8xf32>
    %cst_81 = arith.constant 0.000000e+00 : f32
    %107 = vector.broadcast %cst_81 : f32 to vector<120x8xf32>
    %108 = arith.maximumf %106, %107 : vector<120x8xf32>
    %c0_82 = arith.constant 0 : index
    %c0_83 = arith.constant 0 : index
    %109 = vector.load %arg10[%c0_82, %c0_83] : memref<84x120xf32, #tpu.memory_space<vmem>>, vector<84x120xf32>
    %cst_84 = arith.constant dense<0.000000e+00> : vector<84x8xf32>
    %110 = tpu.matmul %109, %108, %cst_84 {dimension_numbers = #tpu.dot_dimension_numbers<[1], [0], [0], [1], [0, 0, 1, 1], [], []>} : vector<84x120xf32>, vector<120x8xf32>, vector<84x8xf32> -> vector<84x8xf32>
    %c0_85 = arith.constant 0 : index
    %c0_86 = arith.constant 0 : index
    %111 = vector.load %arg11[%c0_85, %c0_86] : memref<84x1xf32, #tpu.memory_space<vmem>>, vector<84x1xf32>
    %112 = vector.broadcast %111 : vector<84x1xf32> to vector<84x8xf32>
    %113 = arith.addf %110, %112 : vector<84x8xf32>
    %cst_87 = arith.constant 0.000000e+00 : f32
    %114 = vector.broadcast %cst_87 : f32 to vector<84x8xf32>
    %115 = arith.maximumf %113, %114 : vector<84x8xf32>
    %c0_88 = arith.constant 0 : index
    %c0_89 = arith.constant 0 : index
    %116 = vector.load %arg12[%c0_88, %c0_89] : memref<10x84xf32, #tpu.memory_space<vmem>>, vector<10x84xf32>
    %cst_90 = arith.constant dense<0.000000e+00> : vector<10x8xf32>
    %117 = tpu.matmul %116, %115, %cst_90 {dimension_numbers = #tpu.dot_dimension_numbers<[1], [0], [0], [1], [0, 0, 1, 1], [], []>} : vector<10x84xf32>, vector<84x8xf32>, vector<10x8xf32> -> vector<10x8xf32>
    %c0_91 = arith.constant 0 : index
    %c0_92 = arith.constant 0 : index
    %118 = vector.load %arg13[%c0_91, %c0_92] : memref<10x1xf32, #tpu.memory_space<vmem>>, vector<10x1xf32>
    %119 = vector.broadcast %118 : vector<10x1xf32> to vector<10x8xf32>
    %120 = arith.addf %117, %119 : vector<10x8xf32>
    %cst_93 = arith.constant dense<0xFF800000> : vector<8xf32>
    %121 = vector.multi_reduction <maximumf>, %120, %cst_93 [0] : vector<10x8xf32> to vector<8xf32>
    %122 = vector.shape_cast %121 : vector<8xf32> to vector<1x8xf32>
    %123 = vector.broadcast %122 : vector<1x8xf32> to vector<10x8xf32>
    %124 = arith.subf %120, %123 : vector<10x8xf32>
    %125 = math.exp %124 : vector<10x8xf32>
    %cst_94 = arith.constant dense<0.000000e+00> : vector<8xf32>
    %126 = vector.multi_reduction <add>, %125, %cst_94 [0] : vector<10x8xf32> to vector<8xf32>
    %127 = vector.shape_cast %126 : vector<8xf32> to vector<1x8xf32>
    %128 = vector.broadcast %127 : vector<1x8xf32> to vector<10x8xf32>
    %129 = arith.divf %125, %128 : vector<10x8xf32>
    %c0_95 = arith.constant 0 : index
    %c0_96 = arith.constant 0 : index
    %c0_97 = arith.constant 0 : index
    %130 = vector.load %arg14[%c0_95, %c0_96, %c0_97] : memref<1x10x8xf32, #tpu.memory_space<vmem>>, vector<1x10x8xf32>
    %131 = vector.shape_cast %130 : vector<1x10x8xf32> to vector<10x8xf32>
    %132 = vector.shape_cast %129 : vector<10x8xf32> to vector<1x10x8xf32>
    tpu.vector_store %arg14[%c0_95, %c0_96, %c0_97], %132 {strides = array<i32>} : memref<1x10x8xf32, #tpu.memory_space<vmem>>, vector<1x10x8xf32>,
    return
  }
  func.func @transform_0(%arg0: i32) -> (i32, i32, i32) {
    %c0_i32 = arith.constant 0 : i32
    %c0_i32_0 = arith.constant 0 : i32
    %c0_i32_1 = arith.constant 0 : i32
    return %arg0, %c0_i32, %c0_i32_0 : i32, i32, i32
  }
  func.func @transform_1(%arg0: i32) -> (i32, i32, i32) {
    %c0_i32 = arith.constant 0 : i32
    %c0_i32_0 = arith.constant 0 : i32
    %c0_i32_1 = arith.constant 0 : i32
    %c0_i32_2 = arith.constant 0 : i32
    return %c0_i32, %c0_i32_0, %c0_i32_1 : i32, i32, i32
  }
  func.func @transform_2(%arg0: i32) -> (i32, i32) {
    %c0_i32 = arith.constant 0 : i32
    %c0_i32_0 = arith.constant 0 : i32
    %c0_i32_1 = arith.constant 0 : i32
    return %c0_i32, %c0_i32_0 : i32, i32
  }
  func.func @transform_3(%arg0: i32) -> (i32, i32, i32) {
    %c0_i32 = arith.constant 0 : i32
    %c0_i32_0 = arith.constant 0 : i32
    %c0_i32_1 = arith.constant 0 : i32
    %c0_i32_2 = arith.constant 0 : i32
    return %c0_i32, %c0_i32_0, %c0_i32_1 : i32, i32, i32
  }
  func.func @transform_4(%arg0: i32) -> (i32, i32, i32) {
    %c0_i32 = arith.constant 0 : i32
    %c0_i32_0 = arith.constant 0 : i32
    %c0_i32_1 = arith.constant 0 : i32
    %c0_i32_2 = arith.constant 0 : i32
    return %c0_i32, %c0_i32_0, %c0_i32_1 : i32, i32, i32
  }
  func.func @transform_5(%arg0: i32) -> (i32, i32) {
    %c0_i32 = arith.constant 0 : i32
    %c0_i32_0 = arith.constant 0 : i32
    %c0_i32_1 = arith.constant 0 : i32
    return %c0_i32, %c0_i32_0 : i32, i32
  }
  func.func @transform_6(%arg0: i32) -> (i32, i32, i32) {
    %c0_i32 = arith.constant 0 : i32
    %c0_i32_0 = arith.constant 0 : i32
    %c0_i32_1 = arith.constant 0 : i32
    %c0_i32_2 = arith.constant 0 : i32
    return %c0_i32, %c0_i32_0, %c0_i32_1 : i32, i32, i32
  }
  func.func @transform_7(%arg0: i32) -> (i32, i32, i32) {
    %c0_i32 = arith.constant 0 : i32
    %c0_i32_0 = arith.constant 0 : i32
    %c0_i32_1 = arith.constant 0 : i32
    %c0_i32_2 = arith.constant 0 : i32
    return %c0_i32, %c0_i32_0, %c0_i32_1 : i32, i32, i32
  }
  func.func @transform_8(%arg0: i32) -> (i32, i32) {
    %c0_i32 = arith.constant 0 : i32
    %c0_i32_0 = arith.constant 0 : i32
    %c0_i32_1 = arith.constant 0 : i32
    return %c0_i32, %c0_i32_0 : i32, i32
  }
  func.func @transform_9(%arg0: i32) -> (i32, i32) {
    %c0_i32 = arith.constant 0 : i32
    %c0_i32_0 = arith.constant 0 : i32
    %c0_i32_1 = arith.constant 0 : i32
    return %c0_i32, %c0_i32_0 : i32, i32
  }
  func.func @transform_10(%arg0: i32) -> (i32, i32) {
    %c0_i32 = arith.constant 0 : i32
    %c0_i32_0 = arith.constant 0 : i32
    %c0_i32_1 = arith.constant 0 : i32
    return %c0_i32, %c0_i32_0 : i32, i32
  }
  func.func @transform_11(%arg0: i32) -> (i32, i32) {
    %c0_i32 = arith.constant 0 : i32
    %c0_i32_0 = arith.constant 0 : i32
    %c0_i32_1 = arith.constant 0 : i32
    return %c0_i32, %c0_i32_0 : i32, i32
  }
  func.func @transform_12(%arg0: i32) -> (i32, i32) {
    %c0_i32 = arith.constant 0 : i32
    %c0_i32_0 = arith.constant 0 : i32
    %c0_i32_1 = arith.constant 0 : i32
    return %c0_i32, %c0_i32_0 : i32, i32
  }
  func.func @transform_13(%arg0: i32) -> (i32, i32, i32) {
    %c0_i32 = arith.constant 0 : i32
    %c0_i32_0 = arith.constant 0 : i32
    %c0_i32_1 = arith.constant 0 : i32
    return %arg0, %c0_i32, %c0_i32_0 : i32, i32, i32
  }
}

</mosaic_0001>

<bundles_post_ra>
// kernel: lenet_forward.1
= control target key start
LH: loop header
LB: loop body
LE: loop exit
PB: predicated region body
PF: predicated region fallthrough
CT: control target
= control target key end

     0   :  { %s7877_s25 = smov 0   ;;  %s12610_s0 = inlined_call_operand.vmem [shape: f32[2,32,256], index: 0, kind: input, shape index: {}]   ;;  %s12611_s1 = inlined_call_operand.vmem [shape: f32[5,168,32], index: 1, kind: input, shape index: {}]   ;;  %s12612_s2 = inlined_call_operand.vmem [shape: f32[168,1], index: 2, kind: input, shape index: {}]   ;;  %s12613_s3 = inlined_call_operand.vmem [shape: f32[2,84,168], index: 3, kind: input, shape index: {}]   ;;  %s12614_s4 = inlined_call_operand.vmem [shape: f32[5,160,84], index: 4, kind: input, shape index: {}]   ;;  %s12615_s5 = inlined_call_operand.vmem [shape: f32[160,1], index: 5, kind: input, shape index: {}]   ;;  %s12616_s6 = inlined_call_operand.vmem [shape: f32[2,80,160], index: 6, kind: input, shape index: {}]   ;;  %s12617_s7 = inlined_call_operand.vmem [shape: f32[5,120,80], index: 7, kind: input, shape index: {}]   ;;  %s12618_s8 = inlined_call_operand.vmem [shape: f32[120,1], index: 8, kind: input, shape index: {}]   ;;  %s12619_s9 = inlined_call_operand.vmem [shape: f32[84,120], index: 9, kind: input, shape index: {}]   ;;  %s12620_s10 = inlined_call_operand.vmem [shape: f32[84,1], index: 10, kind: input, shape index: {}]   ;;  %s12621_s11 = inlined_call_operand.vmem [shape: f32[10,84], index: 11, kind: input, shape index: {}]   ;;  %s12622_s12 = inlined_call_operand.vmem [shape: f32[10,1], index: 12, kind: input, shape index: {}]   ;;  %s12623_s13 = inlined_call_operand.vmem [shape: f32[2,10,8], index: 13, kind: output, shape index: {}]  }
   0x1 LB: > { %s6431_s26 = sadd.s32 4294967295, %s7797_s25   ;;  %p6435_p0 = scmp.ge.s32.totalorder %s7797_s25, 1  ;;  %s7797_s25 = sphi %s7877_s25, %s23_s25  }
   0x2   : > { %p387_p1 = scmp.lt.s32.totalorder %s7797_s25, 3 }
   0x4   : > { %p388_p2 = pnand %p6435_p0, %p387_p1 }
   0x6   : > { %391 = sbr.rel (%p388_p2) target bundleno = 3468 (0xd8c), region = 72 }
   0xb   : > { %p431_p3 = scmp.lt.s32.totalorder %s6431_s26, 1  ;;  %s7799_s14 = smov 120   ;;  %vm516_vm0 = vcmask 982016   ;;  %v6440_v28 = vld [vmem:[%s12611_s1 + $0xa8] sm:$0xff]  ;;  %vm529_vm1 = vcmask 261120   ;;  %v6458_v29 = vld [vmem:[%s12611_s1 + $0x138] sm:$0xff] }
   0xc   : > { %s7800_s15 = smov 112   ;;  %v7943_v30 = vld [vmem:[%s12611_s1 + $0x118] sm:$0xff]  ;;  %v6441_v31 = vld [vmem:[%s12611_s1 + $0xb0] sm:$0xff]  ;;  %v6459_v32 = vld [vmem:[%s12611_s1 + $0x140] sm:$0xff]  ;;  %s7801_s18 = smov 104   ;;  %vm1014_vm2 = vcmask 916480  }
   0xd   : > { %s13198_s26 = smov (!%p431_p3, %s6431_s26), 1  ;;  %v7960_v33 = vld [vmem:[%s12611_s1 + $0x120] sm:$0xff]  ;;  %v6442_v34 = vld [vmem:[%s12611_s1 + $0xb8] sm:$0xff]  ;;  %v6460_v35 = vld [vmem:[%s12611_s1 + $0x148] sm:$0xff]  ;;  %vm1330_vm3 = vcmask 850944   ;;  %vm1646_vm4 = vcmask 785408  }
   0xe   : > { %s7301_s27 = sshll.u32 %s13198_s26, 6  ;;  %v7980_v36 = vld [vmem:[%s12611_s1 + $0x128] sm:$0xff]  ;;  %v6443_v37 = vld [vmem:[%s12611_s1 + $0xc0] sm:$0xff]  ;;  %v7996_v39 = vld [vmem:[%s12611_s1 + $0x130] sm:$0xff]  ;;  %vm2156_vm5 = vcmask 326656   ;;  %vm2988_vm6 = vcmask 1043456  }
   0xf   : > { %s435_s30 = scalar_lea.vmem %s12610_s0, %s7301_s27  ;;  %v449_v38 = vld [vmem:[%s12611_s1] sm:$0xff]  ;;  %v6444_v40 = vld [vmem:[%s12611_s1 + $0xc8] sm:$0xff]  ;;  %v6445_v42 = vld [vmem:[%s12611_s1 + $0xd0] sm:$0xff]  ;;  %s7802_s27 = smov 96   ;;  %vm2927_vm7 = vcmask 687104   ;;  %vm3784_vm8 = vcmask 654336  }
  0x10   : > { %v7891_v0 = vld [vmem:[%s435_s30 + $0x30] sm:$0xff]  ;;  %v448_v1 = vld [vmem:[%s435_s30 + $0x38] sm:$0xff]  ;;  %v445_v6 = vld [vmem:[%s435_s30 + $0x20] sm:$0xff]  ;;  %s7805_s16 = smov 64   ;;  %vm4139_vm9 = vcmask 523264   ;;  %vm6332_vm10 = vcmask 64512  }
  0x11   : > { %v7893_v2 = vld [vmem:[%s435_s30 + $0x10] sm:$0xff]  ;;  %v7896_v3 = vpack.i.bf16 %v448_v1, %v7891_v0  ;;  %v7898_v4 = vld [vmem:[%s435_s30 + $0x18] sm:$0xff]  ;;  %v446_v7 = vld [vmem:[%s435_s30 + $0x28] sm:$0xff]  ;;  %vm6334_vm11 = vcmask 58368   ;;  %s7302_s20 = sshll.u32 %s13198_s26, 4 }
  0x12   : > { %v7902_v5 = vpack.i.bf16 %v7898_v4, %v7893_v2  ;;  %v7908_v8 = vld [vmem:[%s435_s30] sm:$0xff]  ;;  %v7910_v9 = vld [vmem:[%s435_s30 + $0x8] sm:$0xff]  ;;  %v7912_v10 = vpack.i.bf16 %v446_v7, %v445_v6  ;;  %v451_v43 = vld [vmem:[%s12611_s1 + $0x10] sm:$0xff]  ;;  %s440_s23 = scalar_lea.vmem %s12623_s13, %s7302_s20 }
  0x13   : > { %7328 = vrot.lane.b32.xlu0 %v7896_v3, %s7799_s14  ;;  %v7916_v11 = vpack.i.bf16 %v7910_v9, %v7908_v8  ;;  %7348 = vrot.lane.b32.xlu2 %v7896_v3, %s7800_s15  ;;  %v450_v41 = vld [vmem:[%s12611_s1 + $0x8] sm:$0xff]  ;;  %v6446_v44 = vld [vmem:[%s12611_s1 + $0xd8] sm:$0xff] }
  0x14   : > { %7338 = vrot.lane.b32.xlu1 %v7902_v5, %s7799_s14  ;;  %v452_v45 = vld [vmem:[%s12611_s1 + $0x18] sm:$0xff]  ;;  %v6447_v46 = vld [vmem:[%s12611_s1 + $0xe0] sm:$0xff]  ;;  %v6448_v48 = vld [vmem:[%s12611_s1 + $0xe8] sm:$0xff] }
  0x15   : > { %v453_v47 = vld [vmem:[%s12611_s1 + $0x20] sm:$0xff]  ;;  %v454_v49 = vld [vmem:[%s12611_s1 + $0x28] sm:$0xff]  ;;  %v6449_v54 = vld [vmem:[%s12611_s1 + $0xf0] sm:$0xff] }
  0x16   : > { %v455_v55 = vld [vmem:[%s12611_s1 + $0x30] sm:$0xff] }
  0x1b   : > { %7333 = vrot.lane.b32.xlu0 %v7912_v10, %s7799_s14  ;;  %7353 = vrot.lane.b32.xlu2 %v7912_v10, %s7800_s15 }
  0x1c   : > { %7343 = vrot.lane.b32.xlu1 %v7916_v11, %s7799_s14 }
  0x23   : > { %7358 = vrot.lane.b32.xlu0 %v7902_v5, %s7800_s15  ;;  %7368 = vrot.lane.b32.xlu2 %v7896_v3, %s7801_s18 }
  0x24   : > { %7363 = vrot.lane.b32.xlu1 %v7916_v11, %s7800_s15 }
  0x2b   : > { %7373 = vrot.lane.b32.xlu0 %v7912_v10, %s7801_s18  ;;  %7383 = vrot.lane.b32.xlu2 %v7916_v11, %s7801_s18 }
  0x2c   : > { %7378 = vrot.lane.b32.xlu1 %v7902_v5, %s7801_s18 }
  0x33   : > { %7388 = vrot.lane.b32.xlu0 %v7896_v3, %s7802_s27  ;;  %7398 = vrot.lane.b32.xlu2 %v7902_v5, %s7802_s27 }
  0x34   : > { %7393 = vrot.lane.b32.xlu1 %v7912_v10, %s7802_s27  ;;  %v8171_v10 = vld [vmem:[%s12611_s1 + $0x70] sm:$0xff] }
  0x3b   : > { %7403 = vrot.lane.b32.xlu0 %v7916_v11, %s7802_s27 }
  0x6d   : > { %v7349_v50 = vpop.permute.xlu2 %7348 }
  0x6e   : > { %v7350_v51 = vunpack.i.l.bf16 %v7349_v50  ;;  %v7351_v52 = vunpack.i.h.bf16 %v7349_v50 }
  0x70   : > { %v1018_v53 = vsel %vm1014_vm2, %v7350_v51, %v7351_v52 }
  0x75   : > { %v7354_v56 = vpop.permute.xlu2 %7353 }
  0x76   : > { %v7355_v57 = vunpack.i.l.bf16 %v7354_v56  ;;  %v7356_v59 = vunpack.i.h.bf16 %v7354_v56  ;;  %v466_v56 = vld [vmem:[%s12611_s1 + $0x88] sm:$0xff] }
  0x78   : > { %v1017_v63 = vsel %vm1014_vm2, %v7355_v57, %v7356_v59 }
  0x85   : > { %v7329_v12 = vpop.permute.xlu0 %7328 }
  0x86   : > { %v7331_v13 = vunpack.i.h.bf16 %v7329_v12  ;;  %v7330_v14 = vunpack.i.l.bf16 %v7329_v12  ;;  %v7339_v15 = vpop.permute.xlu1 %7338  ;;  %v6452_v12 = vld [vmem:[%s12611_s1 + $0x108] sm:$0xff] }
  0x87   : > { %v7341_v18 = vunpack.i.h.bf16 %v7339_v15  ;;  %v7340_v19 = vunpack.i.l.bf16 %v7339_v15  ;;  %v459_v15 = vld [vmem:[%s12611_s1 + $0x50] sm:$0xff] }
  0x88   : > { %685 = vmatpush.msra.mxu1 %v7331_v13  ;;  %7307 = vmatpush.msra.mxu2 %v7331_v13  ;;  %v520_v16 = vsel %vm516_vm0, %v7330_v14, %v7331_v13  ;;  %v458_v13 = vld [vmem:[%s12611_s1 + $0x48] sm:$0xff]  ;;  %v6453_v14 = vld [vmem:[%s12611_s1 + $0x110] sm:$0xff] }
  0x89   : > { %605 = vmatpush.msra.mxu0 %v520_v16  ;;  %7303 = vmatpush.msra.mxu3 %v520_v16  ;;  %v518_v26 = vsel %vm516_vm0, %v7340_v19, %v7341_v18  ;;  %v460_v16 = vld [vmem:[%s12611_s1 + $0x58] sm:$0xff] }
  0x8a   : > { %v6546_v19 = vld [vmem:[%s12611_s1 + $0x158] sm:$0xff] }
  0x8d   : > { %v7334_v17 = vpop.permute.xlu0 %7333 }
  0x8e   : > { %v7336_v20 = vunpack.i.h.bf16 %v7334_v17  ;;  %v7335_v21 = vunpack.i.l.bf16 %v7334_v17  ;;  %v7344_v22 = vpop.permute.xlu1 %7343  ;;  %v6545_v17 = vld [vmem:[%s12611_s1 + $0x150] sm:$0xff] }
  0x8f   : > { %v7346_v23 = vunpack.i.h.bf16 %v7344_v22  ;;  %v7345_v24 = vunpack.i.l.bf16 %v7344_v22 }
  0x90   : > { %686 = vmatpush.msra.mxu1 %v7336_v20  ;;  %7308 = vmatpush.msra.mxu2 %v7336_v20  ;;  %v519_v25 = vsel %vm516_vm0, %v7335_v21, %v7336_v20  ;;  %v8144_v21 = vld [vmem:[%s12611_s1 + $0x68] sm:$0xff] }
  0x91   : > { %606 = vmatpush.msra.mxu0 %v519_v25  ;;  %7304 = vmatpush.msra.mxu3 %v519_v25  ;;  %v517_v27 = vsel %vm516_vm0, %v7345_v24, %v7346_v23 }
  0x92   : > { %687 = vmatpush.msra.mxu1 %v7341_v18  ;;  %7309 = vmatpush.msra.mxu2 %v7341_v18  ;;  %v461_v18 = vld [vmem:[%s12611_s1 + $0x60] sm:$0xff] }
  0x93   : > { %607 = vmatpush.msra.mxu0 %v518_v26  ;;  %7305 = vmatpush.msra.mxu3 %v518_v26 }
  0x94   : > { %688 = vmatpush.msra.mxu1 %v7346_v23  ;;  %7310 = vmatpush.msra.mxu2 %v7346_v23  ;;  %v8149_v23 = vld [vmem:[%s12611_s1 + $0x160] sm:$0xff] }
  0x95   : > { %608 = vmatpush.msra.mxu0 %v517_v27  ;;  %7306 = vmatpush.msra.mxu3 %v517_v27  ;;  %v7359_v58 = vpop.permute.xlu0 %7358  ;;  %v8178_v27 = vld [vmem:[%s12611_s1 + $0x168] sm:$0xff] }
  0x96   : > { %6482 = vmatmul.msk.f32.vlgmr.msra.gmra.mxu1 %vm529_vm1, %v6440_v28  ;;  %6500 = vmatmul.msk.f32.vlgmr.msra.gmra.mxu2 %vm529_vm1, %v6458_v29  ;;  %v7360_v60 = vunpack.i.l.bf16 %v7359_v58  ;;  %v7361_v61 = vunpack.i.h.bf16 %v7359_v58  ;;  %v7364_v62 = vpop.permute.xlu1 %7363 }
  0x97   : > { %6461 = vmatmul.msk.f32.vlgmr.msra.gmra.mxu0 %vm529_vm1, %v6440_v28  ;;  %6475 = vmatmul.msk.f32.vlgmr.msra.gmra.mxu3 %vm529_vm1, %v7943_v30 }
  0x98   : > { %828 = vmatpush.msrb.mxu2 %v7891_v0  ;;  %908 = vmatpush.msrb.mxu3 %v448_v1  ;;  %v7365_v0 = vunpack.i.l.bf16 %v7364_v62  ;;  %v1016_v1 = vsel %vm1014_vm2, %v7360_v60, %v7361_v61 }
  0x99   : > { %1182 = vmatpush.msrb.mxu1 %v7351_v52  ;;  %1102 = vmatpush.msrb.mxu0 %v1018_v53 }
  0x9a   : > { %829 = vmatpush.msrb.mxu2 %v445_v6  ;;  %909 = vmatpush.msrb.mxu3 %v446_v7  ;;  %v456_v6 = vld [vmem:[%s12611_s1 + $0x38] sm:$0xff] }
  0x9b   : > { %1183 = vmatpush.msrb.mxu1 %v7356_v59  ;;  %1103 = vmatpush.msrb.mxu0 %v1017_v63  ;;  %v6551_v59 = vld [vmem:[%s12611_s1 + $0x180] sm:$0xff] }
  0x9c   : > { %830 = vmatpush.msrb.mxu2 %v7893_v2  ;;  %910 = vmatpush.msrb.mxu3 %v7898_v4  ;;  %v7366_v2 = vunpack.i.h.bf16 %v7364_v62  ;;  %v6450_v4 = vld [vmem:[%s12611_s1 + $0xf8] sm:$0xff] }
  0x9d   : > { %1184 = vmatpush.msrb.mxu1 %v7361_v61  ;;  %1104 = vmatpush.msrb.mxu0 %v1016_v1  ;;  %v467_v1 = vld [vmem:[%s12611_s1 + $0x90] sm:$0xff] }
  0x9e   : > { %6483 = vmatmul.msk.f32.gmra.mxu1 %vm529_vm1, %v6441_v31  ;;  %6501 = vmatmul.msk.f32.gmra.mxu2 %vm529_vm1, %v6459_v32  ;;  %v1015_v7 = vsel %vm1014_vm2, %v7365_v0, %v7366_v2 }
  0x9f   : > { %6462 = vmatmul.msk.f32.gmra.mxu0 %vm529_vm1, %v6441_v31  ;;  %6476 = vmatmul.msk.f32.gmra.mxu3 %vm529_vm1, %v7960_v33 }
  0xa0   : > { %831 = vmatpush.msrb.mxu2 %v7908_v8  ;;  %911 = vmatpush.msrb.mxu3 %v7910_v9  ;;  %v6451_v8 = vld [vmem:[%s12611_s1 + $0x100] sm:$0xff] }
  0xa1   : > { %1185 = vmatpush.msrb.mxu1 %v7366_v2  ;;  %1105 = vmatpush.msrb.mxu0 %v1015_v7  ;;  %v457_v9 = vld [vmem:[%s12611_s1 + $0x40] sm:$0xff] }
  0xa6   : > { %6484 = vmatmul.msk.f32.gmra.mxu1 %vm529_vm1, %v6442_v34  ;;  %6502 = vmatmul.msk.f32.gmra.mxu2 %vm529_vm1, %v6460_v35 }
  0xa7   : > { %6463 = vmatmul.msk.f32.gmra.mxu0 %vm529_vm1, %v6442_v34  ;;  %6477 = vmatmul.msk.f32.gmra.mxu3 %vm529_vm1, %v7980_v36 }
  0xae   : > { %6485 = vmatmul.msk.f32.gmra.mxu1 %vm529_vm1, %v6443_v37  ;;  %6503 = vmatmul.msk.f32.vlgmr.msrb.gmra.mxu2 %vm529_vm1, %v449_v38 }
  0xaf   : > { %6464 = vmatmul.msk.f32.gmra.mxu0 %vm529_vm1, %v6443_v37  ;;  %6478 = vmatmul.msk.f32.gmra.mxu3 %vm529_vm1, %v7996_v39  ;;  %v8220_v37 = vld [vmem:[%s12611_s1 + $0x80] sm:$0xff] }
  0xb6   : > { %6486 = vmatmul.msk.f32.gmra.mxu1 %vm529_vm1, %v6444_v40  ;;  %6504 = vmatmul.msk.f32.gmra.mxu2 %vm529_vm1, %v450_v41 }
  0xb7   : > { %6465 = vmatmul.msk.f32.gmra.mxu0 %vm529_vm1, %v6444_v40  ;;  %6479 = vmatmul.msk.f32.gmra.mxu3 %vm529_vm1, %v6458_v29 }
  0xbe   : > { %6487 = vmatmul.msk.f32.gmra.mxu1 %vm529_vm1, %v6445_v42  ;;  %6505 = vmatmul.msk.f32.gmra.mxu2 %vm529_vm1, %v451_v43 }
  0xbf   : > { %6466 = vmatmul.msk.f32.gmra.mxu0 %vm529_vm1, %v6445_v42  ;;  %6480 = vmatmul.msk.f32.gmra.mxu3 %vm529_vm1, %v6459_v32  ;;  %v8203_v32 = vld [vmem:[%s12611_s1 + $0x170] sm:$0xff]  ;;  %v7374_v42 = vpop.permute.xlu0 %7373 }
  0xc6   : > { %6488 = vmatmul.msk.f32.gmra.mxu1 %vm529_vm1, %v6446_v44  ;;  %6506 = vmatmul.msk.f32.gmra.mxu2 %vm529_vm1, %v452_v45 }
  0xc7   : > { %6467 = vmatmul.msk.f32.gmra.mxu0 %vm529_vm1, %v6446_v44  ;;  %6481 = vmatmul.msk.f32.gmra.mxu3 %vm529_vm1, %v6460_v35  ;;  %v7369_v35 = vpop.permute.xlu2 %7368  ;;  %v7375_v44 = vunpack.i.l.bf16 %v7374_v42 }
  0xce   : > { %6489 = vmatmul.msk.f32.gmra.mxu1 %vm529_vm1, %v6447_v46  ;;  %6507 = vmatmul.msk.f32.gmra.mxu2 %vm529_vm1, %v453_v47 }
  0xcf   : > { %6468 = vmatmul.msk.f32.gmra.mxu0 %vm529_vm1, %v6447_v46  ;;  %6524 = vmatmul.msk.f32.vlgmr.msrb.gmra.mxu3 %vm529_vm1, %v449_v38  ;;  %v7371_v38 = vunpack.i.h.bf16 %v7369_v35  ;;  %v7384_v53 = vpop.permute.xlu2 %7383 }
  0xd0   : > { %v7386_v5 = vunpack.i.h.bf16 %v7384_v53  ;;  %v7385_v57 = vunpack.i.l.bf16 %v7384_v53 }
  0xd1   : > { %1498 = vmatpush.msra.mxu3 %v7371_v38 }
  0xd2   : > { %v1331_v60 = vsel %vm1330_vm3, %v7385_v57, %v7386_v5  ;;  %v8386_v57 = vld [vmem:[%s12611_s1 + $0x210] sm:$0xff] }
  0xd6   : > { %6490 = vmatmul.msk.f32.gmra.mxu1 %vm529_vm1, %v6448_v48  ;;  %6508 = vmatmul.msk.f32.gmra.mxu2 %vm529_vm1, %v454_v49 }
  0xd7   : > { %6469 = vmatmul.msk.f32.gmra.mxu0 %vm529_vm1, %v6448_v48  ;;  %6525 = vmatmul.msk.f32.gmra.mxu3 %vm529_vm1, %v450_v41  ;;  %v8227_v41 = vld [vmem:[%s12611_s1 + $0x178] sm:$0xff] }
  0xde   : > { %6491 = vmatmul.msk.f32.gmra.mxu1 %vm529_vm1, %v6449_v54  ;;  %6509 = vmatmul.msk.f32.gmra.mxu2 %vm529_vm1, %v455_v55 }
  0xdf   : > { %6470 = vmatmul.msk.f32.gmra.mxu0 %vm529_vm1, %v6449_v54  ;;  %6526 = vmatmul.msk.f32.gmra.mxu3 %vm529_vm1, %v451_v43  ;;  %v7376_v43 = vunpack.i.h.bf16 %v7374_v42 }
  0xe1   : > { %1499 = vmatpush.msra.mxu3 %v7376_v43 }
  0xe6   : > { %6492 = vmatmul.msk.f32.gmra.mxu1 %vm529_vm1, %v6450_v4  ;;  %6510 = vmatmul.msk.f32.gmra.mxu2 %vm529_vm1, %v456_v6 }
  0xe7   : > { %6471 = vmatmul.msk.f32.gmra.mxu0 %vm529_vm1, %v6450_v4  ;;  %6527 = vmatmul.msk.f32.gmra.mxu3 %vm529_vm1, %v452_v45  ;;  %v7379_v45 = vpop.permute.xlu1 %7378  ;;  %v6552_v4 = vld [vmem:[%s12611_s1 + $0x188] sm:$0xff] }
  0xe8   : > { %v7380_v48 = vunpack.i.l.bf16 %v7379_v45 }
  0xee   : > { %6493 = vmatmul.msk.f32.gmra.mxu1 %vm529_vm1, %v6451_v8  ;;  %6511 = vmatmul.msk.f32.gmra.mxu2 %vm529_vm1, %v457_v9 }
  0xef   : > { %6472 = vmatmul.msk.f32.gmra.mxu0 %vm529_vm1, %v6451_v8  ;;  %6528 = vmatmul.msk.f32.gmra.mxu3 %vm529_vm1, %v453_v47  ;;  %v7381_v47 = vunpack.i.h.bf16 %v7379_v45 }
  0xf1   : > { %v1332_v54 = vsel %vm1330_vm3, %v7380_v48, %v7381_v47  ;;  %1500 = vmatpush.msra.mxu3 %v7381_v47  ;;  %v8363_v48 = vld [vmem:[%s12611_s1 + $0x208] sm:$0xff] }
  0xf3   : > { %1501 = vmatpush.msra.mxu3 %v7386_v5 }
  0xf6   : > { %6494 = vmatmul.msk.f32.gmra.mxu1 %vm529_vm1, %v6452_v12  ;;  %6512 = vmatmul.msk.f32.gmra.mxu2 %vm529_vm1, %v458_v13 }
  0xf7   : > { %6473 = vmatmul.msk.f32.gmra.mxu0 %vm529_vm1, %v6452_v12  ;;  %6529 = vmatmul.msk.f32.gmra.mxu3 %vm529_vm1, %v454_v49  ;;  %v1333_v49 = vsel %vm1330_vm3, %v7375_v44, %v7376_v43  ;;  %v468_v12 = vld [vmem:[%s12611_s1 + $0x98] sm:$0xff]  ;;  %v6556_v43 = vld [vmem:[%s12611_s1 + $0x1a8] sm:$0xff] }
  0xfe   : > { %6495 = vmatmul.msk.f32.gmra.mxu1 %vm529_vm1, %v6453_v14  ;;  %6513 = vmatmul.msk.f32.gmra.mxu2 %vm529_vm1, %v459_v15 }
  0xff   : > { %6474 = vmatmul.msk.f32.gmra.mxu0 %vm529_vm1, %v6453_v14  ;;  %6530 = vmatmul.msk.f32.gmra.mxu3 %vm529_vm1, %v455_v55  ;;  %v6553_v14 = vld [vmem:[%s12611_s1 + $0x190] sm:$0xff] }
 0x106   : > { %6496 = vmatmul.msk.f32.gmra.mxu1 %vm529_vm1, %v7943_v30  ;;  %6514 = vmatmul.msk.f32.gmra.mxu2 %vm529_vm1, %v460_v16  ;;  %v8196_v30 = vld [vmem:[%s12611_s1 + $0x78] sm:$0xff] }
 0x107   : > { %6531 = vmatmul.msk.f32.gmra.mxu3 %vm529_vm1, %v456_v6  ;;  %6566 = vmatmul.msk.f32.vlgmr.msrb.gmra.mxu0 %vm529_vm1, %v6545_v17 }
 0x10e   : > { %6497 = vmatmul.msk.f32.gmra.mxu1 %vm529_vm1, %v7960_v33  ;;  %6515 = vmatmul.msk.f32.gmra.mxu2 %vm529_vm1, %v461_v18 }
 0x10f   : > { %6532 = vmatmul.msk.f32.gmra.mxu3 %vm529_vm1, %v457_v9  ;;  %6567 = vmatmul.msk.f32.gmra.mxu0 %vm529_vm1, %v6546_v19 }
 0x113   : > { %v8139_v20 = vpop.f32.mrf.mxu1 }
 0x114   : > { %v610_v22 = vpop.f32.mrf.mxu0 }
 0x116   : > { %6498 = vmatmul.msk.f32.gmra.mxu1 %vm529_vm1, %v7980_v36  ;;  %6516 = vmatmul.msk.f32.gmra.mxu2 %vm529_vm1, %v8144_v21 }
 0x117   : > { %6533 = vmatmul.msk.f32.gmra.mxu3 %vm529_vm1, %v458_v13  ;;  %6568 = vmatmul.msk.f32.gmra.mxu0 %vm529_vm1, %v8149_v23 }
 0x119   : > { %v8162_v3 = vpop.f32.mrf.mxu2 }
 0x11a   : > { %12640 = vst [vmem:[#allocation2_spill] sm:$0xff] %v8162_v3  ;;  %v8164_v24 = vpop.f32.mrf.mxu3 }
 0x11b   : > { %v8166_v25 = vpop.f32.mrf.mxu1 }
 0x11c   : > { %v8173_v26 = vpop.f32.mrf.mxu0 }
 0x11e   : > { %6499 = vmatmul.msk.f32.gmra.mxu1 %vm529_vm1, %v7996_v39  ;;  %6517 = vmatmul.msk.f32.gmra.mxu2 %vm529_vm1, %v8171_v10  ;;  %v7370_v39 = vunpack.i.l.bf16 %v7369_v35  ;;  %v6555_v35 = vld [vmem:[%s12611_s1 + $0x1a0] sm:$0xff] }
 0x11f   : > { %6534 = vmatmul.msk.f32.gmra.mxu3 %vm529_vm1, %v459_v15  ;;  %6569 = vmatmul.msk.f32.gmra.mxu0 %vm529_vm1, %v8178_v27 }
 0x120   : > { %v1334_v46 = vsel %vm1330_vm3, %v7370_v39, %v7371_v38 }
 0x121   : > { %v8187_v11 = vpop.f32.mrf.mxu2  ;;  %1418 = vmatpush.msra.mxu2 %v1334_v46 }
 0x122   : > { %12641 = vst [vmem:[#allocation3_spill] sm:$0xff] %v8187_v11  ;;  %v8189_v28 = vpop.f32.mrf.mxu3 }
 0x123   : > { %v8191_v29 = vpop.f32.mrf.mxu1  ;;  %1419 = vmatpush.msra.mxu2 %v1333_v49 }
 0x124   : > { %v8198_v31 = vpop.f32.mrf.mxu0 }
 0x125   : > { %1420 = vmatpush.msra.mxu2 %v1332_v54 }
 0x126   : > { %6518 = vmatmul.msk.f32.gmra.mxu2 %vm529_vm1, %v8196_v30  ;;  %6587 = vmatmul.msk.f32.vlgmr.msrb.gmra.mxu1 %vm529_vm1, %v6545_v17 }
 0x127   : > { %6535 = vmatmul.msk.f32.gmra.mxu3 %vm529_vm1, %v460_v16  ;;  %6570 = vmatmul.msk.f32.gmra.mxu0 %vm529_vm1, %v8203_v32 }
 0x128   : > { %1421 = vmatpush.msra.mxu2 %v1331_v60 }
 0x129   : > { %v8211_v33 = vpop.f32.mrf.mxu2 }
 0x12a   : > { %12642 = vst [vmem:[#allocation4_spill] sm:$0xff] %v8211_v33  ;;  %v8213_v34 = vpop.f32.mrf.mxu3 }
 0x12b   : > { %12643 = vst [vmem:[#allocation5_spill] sm:$0xff] %v8213_v34  ;;  %v8215_v36 = vpop.f32.mrf.mxu1 }
 0x12c   : > { %v8222_v40 = vpop.f32.mrf.mxu0 }
 0x12e   : > { %6519 = vmatmul.msk.f32.gmra.mxu2 %vm529_vm1, %v8220_v37  ;;  %6588 = vmatmul.msk.f32.gmra.mxu1 %vm529_vm1, %v6546_v19  ;;  %v469_v19 = vld [vmem:[%s12611_s1 + $0xa0] sm:$0xff] }
 0x12f   : > { %6536 = vmatmul.msk.f32.gmra.mxu3 %vm529_vm1, %v461_v18  ;;  %6571 = vmatmul.msk.f32.gmra.mxu0 %vm529_vm1, %v8227_v41 }
 0x131   : > { %v833_v50 = vpop.f32.mrf.mxu2 }
 0x132   : > { %v8239_v51 = vadd.f32 %v833_v50, %v610_v22  ;;  %v8241_v52 = vpop.f32.mrf.mxu3  ;;  %v6554_v22 = vld [vmem:[%s12611_s1 + $0x198] sm:$0xff]  ;;  %v8368_v50 = vld [vmem:[%s12611_s1 + $0x1b0] sm:$0xff] }
 0x133   : > { %12645 = vst [vmem:[#allocation7_spill] sm:$0xff] %v8241_v52  ;;  %v8244_v55 = vpop.f32.mrf.mxu1 }
 0x134   : > { %12644 = vst [vmem:[#allocation6_spill] sm:$0xff] %v8239_v51  ;;  %v622_v58 = vpop.f32.mrf.mxu0 }
 0x136   : > { %6520 = vmatmul.msk.f32.gmra.mxu2 %vm529_vm1, %v466_v56  ;;  %6589 = vmatmul.msk.f32.gmra.mxu1 %vm529_vm1, %v8149_v23 }
 0x137   : > { %6537 = vmatmul.msk.f32.gmra.mxu3 %vm529_vm1, %v8144_v21  ;;  %6572 = vmatmul.msk.f32.gmra.mxu0 %vm529_vm1, %v6551_v59 }
 0x139   : > { %v836_v61 = vpop.f32.mrf.mxu2 }
 0x13a   : > { %v8260_v62 = vadd.f32 %v836_v61, %v8173_v26  ;;  %v8262_v63 = vpop.f32.mrf.mxu3 }
 0x13b   : > { %12647 = vst [vmem:[#allocation9_spill] sm:$0xff] %v8262_v63  ;;  %v8264_v0 = vpop.f32.mrf.mxu1 }
 0x13c   : > { %12646 = vst [vmem:[#allocation8_spill] sm:$0xff] %v8260_v62  ;;  %v625_v2 = vpop.f32.mrf.mxu0 }
 0x13e   : > { %6521 = vmatmul.msk.f32.gmra.mxu2 %vm529_vm1, %v467_v1  ;;  %6590 = vmatmul.msk.f32.gmra.mxu1 %vm529_vm1, %v8178_v27 }
 0x13f   : > { %6538 = vmatmul.msk.f32.gmra.mxu3 %vm529_vm1, %v8171_v10  ;;  %6573 = vmatmul.msk.f32.gmra.mxu0 %vm529_vm1, %v6552_v4 }
 0x141   : > { %v839_v6 = vpop.f32.mrf.mxu2 }
 0x142   : > { %v8279_v7 = vadd.f32 %v839_v6, %v8198_v31  ;;  %v8281_v8 = vpop.f32.mrf.mxu3  ;;  %v6608_v31 = vld [vmem:[%s12611_s1 + $0x1f8] sm:$0xff]  ;;  %v7803_v6 = vmov 0  }
 0x143   : > { %12649 = vst [vmem:[#allocation11_spill] sm:$0xff] %v8281_v8  ;;  %v8283_v9 = vpop.f32.mrf.mxu1  ;;  %7409 = vset.pattern.permute.xlu0 %v7803_v6  ;;  %7407 = vset.pattern.permute.xlu1 %v7803_v6 }
 0x144   : > { %12648 = vst [vmem:[#allocation10_spill] sm:$0xff] %v8279_v7  ;;  %v628_v13 = vpop.f32.mrf.mxu0  ;;  %7408 = vset.pattern.permute.xlu2 %v7803_v6 }
 0x146   : > { %6522 = vmatmul.msk.f32.gmra.mxu2 %vm529_vm1, %v468_v12  ;;  %6591 = vmatmul.msk.f32.gmra.mxu1 %vm529_vm1, %v8203_v32 }
 0x147   : > { %6539 = vmatmul.msk.f32.gmra.mxu3 %vm529_vm1, %v8196_v30  ;;  %6574 = vmatmul.msk.f32.gmra.mxu0 %vm529_vm1, %v6553_v14 }
 0x149   : > { %v842_v15 = vpop.f32.mrf.mxu2 }
 0x14a   : > { %v8298_v16 = vadd.f32 %v842_v15, %v8222_v40  ;;  %v8300_v17 = vpop.f32.mrf.mxu3 }
 0x14b   : > { %12650 = vst [vmem:[#allocation12_spill] sm:$0xff] %v8300_v17  ;;  %v8302_v18 = vpop.f32.mrf.mxu1 }
 0x14c   : > { %v631_v21 = vpop.f32.mrf.mxu0 }
 0x14e   : > { %6523 = vmatmul.msk.f32.gmra.mxu2 %vm529_vm1, %v469_v19  ;;  %6592 = vmatmul.msk.f32.gmra.mxu1 %vm529_vm1, %v8227_v41  ;;  %v8343_v41 = vld [vmem:[%s12611_s1 + $0x200] sm:$0xff] }
 0x14f   : > { %6540 = vmatmul.msk.f32.gmra.mxu3 %vm529_vm1, %v8220_v37  ;;  %6575 = vmatmul.msk.f32.gmra.mxu0 %vm529_vm1, %v6554_v22 }
 0x151   : > { %v845_v23 = vpop.f32.mrf.mxu2 }
 0x152   : > { %v8316_v10 = vadd.f32 %v845_v23, %v622_v58  ;;  %v913_v26 = vpop.f32.mrf.mxu3 }
 0x153   : > { %v8319_v27 = vadd.f32 %v913_v26, %v8139_v20  ;;  %v8321_v30 = vpop.f32.mrf.mxu1  ;;  %v8442_v26 = vld [vmem:[%s12611_s1 + $0x220] sm:$0xff] }
 0x154   : > { %v634_v32 = vpop.f32.mrf.mxu0 }
 0x155   : > { %12651 = vst [vmem:[#allocation13_spill] sm:$0xff] %v8319_v27 }
 0x156   : > { %6593 = vmatmul.msk.f32.gmra.mxu1 %vm529_vm1, %v6551_v59  ;;  %6629 = vmatmul.msk.f32.vlgmr.msra.gmra.mxu2 %vm529_vm1, %v6608_v31  ;;  %v8393_v59 = vld [vmem:[%s12611_s1 + $0x1b8] sm:$0xff] }
 0x157   : > { %6541 = vmatmul.msk.f32.gmra.mxu3 %vm529_vm1, %v466_v56  ;;  %6576 = vmatmul.msk.f32.gmra.mxu0 %vm529_vm1, %v6555_v35 }
 0x159   : > { %v848_v20 = vpop.f32.mrf.mxu2 }
 0x15a   : > { %v8333_v37 = vadd.f32 %v848_v20, %v625_v2  ;;  %v916_v38 = vpop.f32.mrf.mxu3 }
 0x15b   : > { %v8336_v39 = vadd.f32 %v916_v38, %v8166_v25  ;;  %v8338_v40 = vpop.f32.mrf.mxu1 }
 0x15c   : > { %v637_v42 = vpop.f32.mrf.mxu0 }
 0x15d   : > { %12652 = vst [vmem:[#allocation14_spill] sm:$0xff] %v8336_v39 }
 0x15e   : > { %6594 = vmatmul.msk.f32.gmra.mxu1 %vm529_vm1, %v6552_v4  ;;  %6630 = vmatmul.msk.f32.gmra.mxu2 %vm529_vm1, %v8343_v41  ;;  %v8411_v4 = vld [vmem:[%s12611_s1 + $0x218] sm:$0xff] }
 0x15f   : > { %6542 = vmatmul.msk.f32.gmra.mxu3 %vm529_vm1, %v467_v1  ;;  %6577 = vmatmul.msk.f32.gmra.mxu0 %vm529_vm1, %v6556_v43 }
 0x161   : > { %v851_v25 = vpop.f32.mrf.mxu2 }
 0x162   : > { %v8353_v44 = vadd.f32 %v851_v25, %v628_v13  ;;  %v919_v45 = vpop.f32.mrf.mxu3  ;;  %v1939_v13 = vld [vmem:[%s12612_s2 + $0x78] sm:$0xff]  ;;  %v7389_v25 = vpop.permute.xlu0 %7388 }
 0x163   : > { %v8356_v46 = vadd.f32 %v919_v45, %v8191_v29  ;;  %v8358_v47 = vpop.f32.mrf.mxu1  ;;  %2022 = vperm.xlu1 %7407, %v1939_v13  }
 0x164   : > { %v640_v49 = vpop.f32.mrf.mxu0 }
 0x165   : > { %12653 = vst [vmem:[#allocation15_spill] sm:$0xff] %v8356_v46  ;;  %v6623_v46 = vld [vmem:[%s12611_s1 + $0x270] sm:$0xff] }
 0x166   : > { %6595 = vmatmul.msk.f32.gmra.mxu1 %vm529_vm1, %v6553_v14  ;;  %6631 = vmatmul.msk.f32.gmra.mxu2 %vm529_vm1, %v8363_v48  ;;  %v8424_v14 = vld [vmem:[%s12611_s1 + $0x1c0] sm:$0xff] }
 0x167   : > { %6543 = vmatmul.msk.f32.gmra.mxu3 %vm529_vm1, %v468_v12  ;;  %6578 = vmatmul.msk.f32.gmra.mxu0 %vm529_vm1, %v8368_v50  ;;  %v1937_v12 = vld [vmem:[%s12612_s2 + $0x68] sm:$0xff] }
 0x168   : > { %2012 = vperm.xlu0 %7409, %v1937_v12   ;;  %v7394_v12 = vpop.permute.xlu1 %7393 }
 0x169   : > { %v854_v29 = vpop.f32.mrf.mxu2  ;;  %v7396_v13 = vunpack.i.h.bf16 %v7394_v12 }
 0x16a   : > { %v8376_v53 = vadd.f32 %v854_v29, %v631_v21  ;;  %v922_v54 = vpop.f32.mrf.mxu3 }
 0x16b   : > { %v8379_v56 = vadd.f32 %v922_v54, %v8215_v36  ;;  %v8381_v5 = vpop.f32.mrf.mxu1  ;;  %v7391_v54 = vunpack.i.h.bf16 %v7389_v25 }
 0x16c   : > { %v8388_v58 = vpop.f32.mrf.mxu0 }
 0x16d   : > { %12654 = vst [vmem:[#allocation16_spill] sm:$0xff] %v8379_v56  ;;  %1814 = vmatpush.msra.mxu1 %v7391_v54  ;;  %v6624_v56 = vld [vmem:[%s12611_s1 + $0x278] sm:$0xff] }
 0x16e   : > { %6596 = vmatmul.msk.f32.gmra.mxu1 %vm529_vm1, %v6554_v22  ;;  %6632 = vmatmul.msk.f32.gmra.mxu2 %vm529_vm1, %v8386_v57 }
 0x16f   : > { %6544 = vmatmul.msk.f32.gmra.mxu3 %vm529_vm1, %v469_v19  ;;  %6579 = vmatmul.msk.f32.gmra.mxu0 %vm529_vm1, %v8393_v59 }
 0x170   : > { %1815 = vmatpush.msra.mxu1 %v7396_v13 }
 0x171   : > { %v857_v36 = vpop.f32.mrf.mxu2 }
 0x172   : > { %v8401_v60 = vadd.f32 %v857_v36, %v634_v32  ;;  %v925_v61 = vpop.f32.mrf.mxu3  ;;  %v1932_v32 = vld [vmem:[%s12612_s2 + $0x40] sm:$0xff]  ;;  %v7390_v36 = vunpack.i.l.bf16 %v7389_v25 }
 0x173   : > { %v8404_v1 = vadd.f32 %v925_v61, %v8244_v55  ;;  %v8406_v2 = vpop.f32.mrf.mxu1  ;;  %1987 = vperm.xlu0 %7409, %v1932_v32  }
 0x174   : > { %v8419_v55 = vpop.f32.mrf.mxu0  ;;  %v1650_v6 = vsel %vm1646_vm4, %v7390_v36, %v7391_v54 }
 0x175   : > { %12655 = vst [vmem:[#allocation17_spill] sm:$0xff] %v8404_v1  ;;  %1734 = vmatpush.msra.mxu0 %v1650_v6  ;;  %v8523_v6 = vld [vmem:[%s12611_s1 + $0x1d8] sm:$0xff]  ;;  %v6625_v1 = vld [vmem:[%s12611_s1 + $0x280] sm:$0xff] }
 0x176   : > { %6597 = vmatmul.msk.f32.gmra.mxu1 %vm529_vm1, %v6555_v35  ;;  %6633 = vmatmul.msk.f32.gmra.mxu2 %vm529_vm1, %v8411_v4 }
 0x177   : > { %6580 = vmatmul.msk.f32.gmra.mxu0 %vm529_vm1, %v8424_v14  ;;  %6650 = vmatmul.msk.f32.vlgmr.msra.gmra.mxu3 %vm529_vm1, %v6608_v31  ;;  %v1936_v31 = vld [vmem:[%s12612_s2 + $0x60] sm:$0xff] }
 0x178   : > { %2007 = vperm.xlu1 %7407, %v1936_v31  }
 0x179   : > { %v860_v15 = vpop.f32.mrf.mxu2 }
 0x17a   : > { %v8432_v19 = vadd.f32 %v860_v15, %v637_v42  ;;  %v928_v21 = vpop.f32.mrf.mxu3  ;;  %v7395_v15 = vunpack.i.l.bf16 %v7394_v12 }
 0x17b   : > { %v8435_v22 = vadd.f32 %v928_v21, %v8264_v0  ;;  %v8437_v23 = vpop.f32.mrf.mxu1  ;;  %v8455_v0 = vld [vmem:[%s12611_s1 + $0x1c8] sm:$0xff] }
 0x17c   : > { %v8450_v35 = vpop.f32.mrf.mxu0  ;;  %v1649_v32 = vsel %vm1646_vm4, %v7395_v15, %v7396_v13 }
 0x17d   : > { %12656 = vst [vmem:[#allocation18_spill] sm:$0xff] %v8435_v22  ;;  %1735 = vmatpush.msra.mxu0 %v1649_v32 }
 0x17e   : > { %6598 = vmatmul.msk.f32.gmra.mxu1 %vm529_vm1, %v6556_v43  ;;  %6634 = vmatmul.msk.f32.gmra.mxu2 %vm529_vm1, %v8442_v26  ;;  %v8474_v43 = vld [vmem:[%s12611_s1 + $0x228] sm:$0xff] }
 0x17f   : > { %6581 = vmatmul.msk.f32.gmra.mxu0 %vm529_vm1, %v8455_v0  ;;  %6651 = vmatmul.msk.f32.gmra.mxu3 %vm529_vm1, %v8343_v41  ;;  %v1929_v41 = vld [vmem:[%s12612_s2 + $0x28] sm:$0xff] }
 0x180   : > { %1972 = vperm.xlu0 %7409, %v1929_v41   ;;  %v7404_v41 = vpop.permute.xlu0 %7403 }
 0x181   : > { %v863_v20 = vpop.f32.mrf.mxu2  ;;  %v7406_v12 = vunpack.i.h.bf16 %v7404_v41  ;;  %v7405_v13 = vunpack.i.l.bf16 %v7404_v41 }
 0x182   : > { %v8464_v38 = vadd.f32 %v863_v20, %v640_v49  ;;  %v931_v42 = vpop.f32.mrf.mxu3  ;;  %v1934_v49 = vld [vmem:[%s12612_s2 + $0x50] sm:$0xff]  ;;  %v7399_v20 = vpop.permute.xlu2 %7398 }
 0x183   : > { %v8467_v45 = vadd.f32 %v931_v42, %v8283_v9  ;;  %v8469_v29 = vpop.f32.mrf.mxu1  ;;  %v8487_v9 = vld [vmem:[%s12611_s1 + $0x1d0] sm:$0xff]  ;;  %1997 = vperm.xlu1 %7407, %v1934_v49   ;;  %v7401_v54 = vunpack.i.h.bf16 %v7399_v20  ;;  %v7400_v36 = vunpack.i.l.bf16 %v7399_v20  ;;  %v1931_v49 = vld [vmem:[%s12612_s2 + $0x38] sm:$0xff] }
 0x184   : > { %v8482_v61 = vpop.f32.mrf.mxu0 }
 0x185   : > { %12657 = vst [vmem:[#allocation19_spill] sm:$0xff] %v8467_v45  ;;  %1816 = vmatpush.msra.mxu1 %v7401_v54  ;;  %v1648_v15 = vsel %vm1646_vm4, %v7400_v36, %v7401_v54  ;;  %v8546_v36 = vld [vmem:[%s12611_s1 + $0x238] sm:$0xff] }
 0x186   : > { %12658 = vst [vmem:[#allocation20_spill] sm:$0xff] %v8482_v61  ;;  %6599 = vmatmul.msk.f32.gmra.mxu1 %vm529_vm1, %v8368_v50  ;;  %6635 = vmatmul.msk.f32.gmra.mxu2 %vm529_vm1, %v8474_v43 }
 0x187   : > { %6582 = vmatmul.msk.f32.gmra.mxu0 %vm529_vm1, %v8487_v9  ;;  %6652 = vmatmul.msk.f32.gmra.mxu3 %vm529_vm1, %v8363_v48  ;;  %v8510_v48 = vld [vmem:[%s12611_s1 + $0x230] sm:$0xff] }
 0x188   : > { %1736 = vmatpush.msra.mxu0 %v1648_v15  ;;  %1817 = vmatpush.msra.mxu1 %v7406_v12 }
 0x189   : > { %v866_v21 = vpop.f32.mrf.mxu2 }
 0x18a   : > { %v8500_v31 = vadd.f32 %v866_v21, %v8388_v58  ;;  %v934_v50 = vpop.f32.mrf.mxu3  ;;  %v1927_v58 = vld [vmem:[%s12612_s2 + $0x18] sm:$0xff]  ;;  %v1647_v21 = vsel %vm1646_vm4, %v7405_v13, %v7406_v12  ;;  %v8572_v13 = vld [vmem:[%s12611_s1 + $0x240] sm:$0xff] }
 0x18b   : > { %v8503_v42 = vadd.f32 %v934_v50, %v8302_v18  ;;  %v8505_v25 = vpop.f32.mrf.mxu1  ;;  %1962 = vperm.xlu0 %7409, %v1927_v58   ;;  %1982 = vperm.xlu1 %7407, %v1931_v49  }
 0x18c   : > { %v8518_v18 = vpop.f32.mrf.mxu0  ;;  %1737 = vmatpush.msra.mxu0 %v1647_v21  ;;  %v1924_v21 = vld [vmem:[%s12612_s2] sm:$0xff] }
 0x18d   : > { %12659 = vst [vmem:[#allocation21_spill] sm:$0xff] %v8503_v42  ;;  %v6680_v42 = vld [vmem:[%s12611_s1 + $0x2e8] sm:$0xff] }
 0x18e   : > { %12660 = vst [vmem:[#allocation22_spill] sm:$0xff] %v8518_v18  ;;  %6600 = vmatmul.msk.f32.gmra.mxu1 %vm529_vm1, %v8393_v59  ;;  %6636 = vmatmul.msk.f32.gmra.mxu2 %vm529_vm1, %v8510_v48 }
 0x18f   : > { %6583 = vmatmul.msk.f32.gmra.mxu0 %vm529_vm1, %v8523_v6  ;;  %6653 = vmatmul.msk.f32.gmra.mxu3 %vm529_vm1, %v8386_v57  ;;  %v1942_v57 = vld [vmem:[%s12612_s2 + $0x90] sm:$0xff] }
 0x191   : > { %v869_v32 = vpop.f32.mrf.mxu2 }
 0x192   : > { %v8536_v50 = vadd.f32 %v869_v32, %v8419_v55  ;;  %v937_v20 = vpop.f32.mrf.mxu3  ;;  %v1928_v55 = vld [vmem:[%s12612_s2 + $0x20] sm:$0xff] }
 0x193   : > { %v8539_v59 = vadd.f32 %v937_v20, %v8321_v30  ;;  %v8541_v54 = vpop.f32.mrf.mxu1  ;;  %v6563_v30 = vld [vmem:[%s12611_s1 + $0x1e0] sm:$0xff]  ;;  %2037 = vperm.xlu0 %7409, %v1942_v57   ;;  %1967 = vperm.xlu1 %7407, %v1928_v55  }
 0x194   : > { %v8554_v41 = vpop.f32.mrf.mxu0 }
 0x195   : > { %12661 = vst [vmem:[#allocation23_spill] sm:$0xff] %v8539_v59  ;;  %v6678_v59 = vld [vmem:[%s12611_s1 + $0x2d8] sm:$0xff] }
 0x196   : > { %12662 = vst [vmem:[#allocation24_spill] sm:$0xff] %v8554_v41  ;;  %6601 = vmatmul.msk.f32.gmra.mxu1 %vm529_vm1, %v8424_v14  ;;  %6637 = vmatmul.msk.f32.gmra.mxu2 %vm529_vm1, %v8546_v36 }
 0x197   : > { %6584 = vmatmul.msk.f32.gmra.mxu0 %vm529_vm1, %v6563_v30  ;;  %6654 = vmatmul.msk.f32.gmra.mxu3 %vm529_vm1, %v8411_v4  ;;  %v1938_v4 = vld [vmem:[%s12612_s2 + $0x70] sm:$0xff] }
 0x198   : > { %2017 = vperm.xlu2 %7408, %v1938_v4  }
 0x199   : > { %v872_v58 = vpop.f32.mrf.mxu2 }
 0x19a   : > { %v8567_v49 = vadd.f32 %v872_v58, %v8450_v35  ;;  %v940_v12 = vpop.f32.mrf.mxu3  ;;  %v1943_v35 = vld [vmem:[%s12612_s2 + $0x98] sm:$0xff]  ;;  %v6618_v58 = vld [vmem:[%s12611_s1 + $0x248] sm:$0xff] }
 0x19b   : > { %v8575_v14 = vadd.f32 %v940_v12, %v8338_v40  ;;  %v8577_v15 = vpop.f32.mrf.mxu1  ;;  %v6564_v40 = vld [vmem:[%s12611_s1 + $0x1e8] sm:$0xff]  ;;  %1947 = vperm.xlu0 %7409, %v1924_v21   ;;  %2042 = vperm.xlu1 %7407, %v1943_v35  }
 0x19c   : > { %v8588_v32 = vpop.f32.mrf.mxu0  ;;  %v1925_v12 = vld [vmem:[%s12612_s2 + $0x8] sm:$0xff] }
 0x19d   : > { %12663 = vst [vmem:[#allocation25_spill] sm:$0xff] %v8575_v14 }
 0x19e   : > { %12664 = vst [vmem:[#allocation26_spill] sm:$0xff] %v8588_v32  ;;  %6602 = vmatmul.msk.f32.gmra.mxu1 %vm529_vm1, %v8455_v0  ;;  %6638 = vmatmul.msk.f32.gmra.mxu2 %vm529_vm1, %v8572_v13  ;;  %v1935_v0 = vld [vmem:[%s12612_s2 + $0x58] sm:$0xff] }
 0x19f   : > { %6585 = vmatmul.msk.f32.gmra.mxu0 %vm529_vm1, %v6564_v40  ;;  %6655 = vmatmul.msk.f32.gmra.mxu3 %vm529_vm1, %v8442_v26 }
 0x1a0   : > { %2002 = vperm.xlu2 %7408, %v1935_v0  }
 0x1a2   : > { %v943_v20 = vpop.f32.mrf.mxu3 }
 0x1a3   : > { %v8601_v57 = vadd.f32 %v943_v20, %v8358_v47  ;;  %v8603_v55 = vpop.f32.mrf.mxu1  ;;  %v6565_v47 = vld [vmem:[%s12611_s1 + $0x1f0] sm:$0xff]  ;;  %1952 = vperm.xlu1 %7407, %v1925_v12  }
 0x1a4   : > { %12666 = vst [vmem:[#allocation28_spill] sm:$0xff] %v8603_v55  ;;  %v8614_v21 = vpop.f32.mrf.mxu0  ;;  %v6619_v20 = vld [vmem:[%s12611_s1 + $0x250] sm:$0xff] }
 0x1a5   : > { %12665 = vst [vmem:[#allocation27_spill] sm:$0xff] %v8601_v57 }
 0x1a6   : > { %6603 = vmatmul.msk.f32.gmra.mxu1 %vm529_vm1, %v8487_v9  ;;  %6639 = vmatmul.msk.f32.gmra.mxu2 %vm529_vm1, %v6618_v58  ;;  %v1933_v9 = vld [vmem:[%s12612_s2 + $0x48] sm:$0xff] }
 0x1a7   : > { %6586 = vmatmul.msk.f32.gmra.mxu0 %vm529_vm1, %v6565_v47  ;;  %6656 = vmatmul.msk.f32.gmra.mxu3 %vm529_vm1, %v8474_v43  ;;  %v6671_v43 = vld [vmem:[%s12611_s1 + $0x2a0] sm:$0xff] }
 0x1a8   : > { %1992 = vperm.xlu2 %7408, %v1933_v9   ;;  %v6620_v9 = vld [vmem:[%s12611_s1 + $0x258] sm:$0xff] }
 0x1aa   : > { %v946_v26 = vpop.f32.mrf.mxu3 }
 0x1ab   : > { %v8626_v4 = vadd.f32 %v946_v26, %v8381_v5  ;;  %v8628_v35 = vpop.f32.mrf.mxu1 }
 0x1ac   : > { %12668 = vst [vmem:[#allocation30_spill] sm:$0xff] %v8628_v35  ;;  %v8636_v0 = vpop.f32.mrf.mxu0  ;;  %v6622_v35 = vld [vmem:[%s12611_s1 + $0x268] sm:$0xff] }
 0x1ad   : > { %12667 = vst [vmem:[#allocation29_spill] sm:$0xff] %v8626_v4 }
 0x1ae   : > { %6604 = vmatmul.msk.f32.gmra.mxu1 %vm529_vm1, %v8523_v6  ;;  %6640 = vmatmul.msk.f32.gmra.mxu2 %vm529_vm1, %v6619_v20  ;;  %v1930_v6 = vld [vmem:[%s12612_s2 + $0x30] sm:$0xff] }
 0x1af   : > { %6657 = vmatmul.msk.f32.gmra.mxu3 %vm529_vm1, %v8510_v48  ;;  %6692 = vmatmul.msk.f32.vlgmr.msra.gmra.mxu0 %vm529_vm1, %v6671_v43  ;;  %v6672_v48 = vld [vmem:[%s12611_s1 + $0x2a8] sm:$0xff] }
 0x1b0   : > { %1977 = vperm.xlu2 %7408, %v1930_v6   ;;  %v6621_v6 = vld [vmem:[%s12611_s1 + $0x260] sm:$0xff] }
 0x1b2   : > { %v949_v5 = vpop.f32.mrf.mxu3 }
 0x1b3   : > { %v8648_v12 = vadd.f32 %v949_v5, %v8406_v2  ;;  %v8650_v26 = vpop.f32.mrf.mxu1  ;;  %v8668_v2 = vpop.f32.mrf.mxu2 }
 0x1b4   : > { %12670 = vst [vmem:[#allocation32_spill] sm:$0xff] %v8650_v26  ;;  %v8658_v3 = vpop.f32.mrf.mxu0 }
 0x1b5   : > { %12669 = vst [vmem:[#allocation31_spill] sm:$0xff] %v8648_v12 }
 0x1b6   : > { %6605 = vmatmul.msk.f32.gmra.mxu1 %vm529_vm1, %v6563_v30  ;;  %6641 = vmatmul.msk.f32.gmra.mxu2 %vm529_vm1, %v6620_v9  ;;  %v1944_v30 = vld [vmem:[%s12612_s2 + $0xa0] sm:$0xff] }
 0x1b7   : > { %6658 = vmatmul.msk.f32.gmra.mxu3 %vm529_vm1, %v8546_v36  ;;  %6693 = vmatmul.msk.f32.gmra.mxu0 %vm529_vm1, %v6672_v48  ;;  %v6673_v36 = vld [vmem:[%s12611_s1 + $0x2b0] sm:$0xff] }
 0x1b8   : > { %2047 = vperm.xlu2 %7408, %v1944_v30  }
 0x1ba   : > { %v952_v5 = vpop.f32.mrf.mxu3 }
 0x1bb   : > { %v8671_v33 = vadd.f32 %v952_v5, %v8437_v23  ;;  %v8673_v11 = vpop.f32.mrf.mxu1  ;;  %v8702_v30 = vpop.f32.mrf.mxu2 }
 0x1bc   : > { %12672 = vst [vmem:[#allocation34_spill] sm:$0xff] %v8673_v11  ;;  %v8681_v55 = vpop.f32.mrf.mxu0 }
 0x1bd   : > { %12671 = vst [vmem:[#allocation33_spill] sm:$0xff] %v8671_v33 }
 0x1be   : > { %6606 = vmatmul.msk.f32.gmra.mxu1 %vm529_vm1, %v6564_v40  ;;  %6642 = vmatmul.msk.f32.gmra.mxu2 %vm529_vm1, %v6621_v6  ;;  %v1926_v40 = vld [vmem:[%s12612_s2 + $0x10] sm:$0xff] }
 0x1bf   : > { %6659 = vmatmul.msk.f32.gmra.mxu3 %vm529_vm1, %v8572_v13  ;;  %6694 = vmatmul.msk.f32.gmra.mxu0 %vm529_vm1, %v6673_v36  ;;  %v6674_v13 = vld [vmem:[%s12611_s1 + $0x2b8] sm:$0xff] }
 0x1c0   : > { %1957 = vperm.xlu2 %7408, %v1926_v40  }
 0x1c2   : > { %v955_v23 = vpop.f32.mrf.mxu3 }
 0x1c3   : > { %v8692_v5 = vadd.f32 %v955_v23, %v8469_v29  ;;  %v8694_v27 = vpop.f32.mrf.mxu1  ;;  %v8726_v40 = vpop.f32.mrf.mxu2 }
 0x1c4   : > { %12674 = vst [vmem:[#allocation36_spill] sm:$0xff] %v8694_v27  ;;  %v8704_v39 = vpop.f32.mrf.mxu0 }
 0x1c5   : > { %12673 = vst [vmem:[#allocation35_spill] sm:$0xff] %v8692_v5 }
 0x1c6   : > { %6607 = vmatmul.msk.f32.gmra.mxu1 %vm529_vm1, %v6565_v47  ;;  %6643 = vmatmul.msk.f32.gmra.mxu2 %vm529_vm1, %v6622_v35  ;;  %v6675_v47 = vld [vmem:[%s12611_s1 + $0x2c0] sm:$0xff]  ;;  %12677 = vst [vmem:[#allocation39_spill] sm:$0xff] %v8726_v40 }
 0x1c7   : > { %6660 = vmatmul.msk.f32.gmra.mxu3 %vm529_vm1, %v6618_v58  ;;  %6695 = vmatmul.msk.f32.gmra.mxu0 %vm529_vm1, %v6674_v13 }
 0x1ca   : > { %v958_v29 = vpop.f32.mrf.mxu3 }
 0x1cb   : > { %v8714_v23 = vadd.f32 %v958_v29, %v8505_v25  ;;  %v8716_v26 = vpop.f32.mrf.mxu1 }
 0x1cc   : > { %12676 = vst [vmem:[#allocation38_spill] sm:$0xff] %v8716_v26  ;;  %v8721_v11 = vpop.f32.mrf.mxu0 }
 0x1cd   : > { %12675 = vst [vmem:[#allocation37_spill] sm:$0xff] %v8714_v23 }
 0x1ce   : > { %6644 = vmatmul.msk.f32.gmra.mxu2 %vm529_vm1, %v6623_v46  ;;  %6713 = vmatmul.msk.f32.vlgmr.msra.gmra.mxu1 %vm529_vm1, %v6671_v43  ;;  %v6676_v43 = vld [vmem:[%s12611_s1 + $0x2c8] sm:$0xff] }
 0x1cf   : > { %6661 = vmatmul.msk.f32.gmra.mxu3 %vm529_vm1, %v6619_v20  ;;  %6696 = vmatmul.msk.f32.gmra.mxu0 %vm529_vm1, %v6675_v47 }
 0x1d2   : > { %v961_v25 = vpop.f32.mrf.mxu3 }
 0x1d3   : > { %v8733_v58 = vadd.f32 %v961_v25, %v8541_v54  ;;  %v8735_v29 = vpop.f32.mrf.mxu1  ;;  %v8749_v54 = vpop.f32.mrf.mxu2 }
 0x1d4   : > { %12679 = vst [vmem:[#allocation41_spill] sm:$0xff] %v8735_v29  ;;  %v8740_v27 = vpop.f32.mrf.mxu0 }
 0x1d5   : > { %12678 = vst [vmem:[#allocation40_spill] sm:$0xff] %v8733_v58 }
 0x1d6   : > { %6645 = vmatmul.msk.f32.gmra.mxu2 %vm529_vm1, %v6624_v56  ;;  %6714 = vmatmul.msk.f32.gmra.mxu1 %vm529_vm1, %v6672_v48  ;;  %12680 = vst [vmem:[#allocation42_spill] sm:$0xff] %v8749_v54 }
 0x1d7   : > { %6662 = vmatmul.msk.f32.gmra.mxu3 %vm529_vm1, %v6620_v9  ;;  %6697 = vmatmul.msk.f32.gmra.mxu0 %vm529_vm1, %v6676_v43  ;;  %v6677_v9 = vld [vmem:[%s12611_s1 + $0x2d0] sm:$0xff] }
 0x1da   : > { %v964_v20 = vpop.f32.mrf.mxu3 }
 0x1db   : > { %v8752_v25 = vadd.f32 %v964_v20, %v8577_v15  ;;  %v8754_v58 = vpop.f32.mrf.mxu1  ;;  %v8768_v15 = vpop.f32.mrf.mxu2  ;;  %v6626_v20 = vld [vmem:[%s12611_s1 + $0x288] sm:$0xff] }
 0x1dc   : > { %12682 = vst [vmem:[#allocation44_spill] sm:$0xff] %v8754_v58  ;;  %v8759_v14 = vpop.f32.mrf.mxu0  ;;  %v6679_v58 = vld [vmem:[%s12611_s1 + $0x2e0] sm:$0xff] }
 0x1dd   : > { %12681 = vst [vmem:[#allocation43_spill] sm:$0xff] %v8752_v25 }
 0x1de   : > { %6646 = vmatmul.msk.f32.gmra.mxu2 %vm529_vm1, %v6625_v1  ;;  %6715 = vmatmul.msk.f32.gmra.mxu1 %vm529_vm1, %v6673_v36  ;;  %12683 = vst [vmem:[#allocation45_spill] sm:$0xff] %v8768_v15  ;;  %v6627_v36 = vld [vmem:[%s12611_s1 + $0x290] sm:$0xff] }
 0x1df   : > { %6663 = vmatmul.msk.f32.gmra.mxu3 %vm529_vm1, %v6621_v6  ;;  %6698 = vmatmul.msk.f32.gmra.mxu0 %vm529_vm1, %v6677_v9 }
 0x1e3   : > { %v8770_v48 = vpop.f32.mrf.mxu1 }
 0x1e4   : > { %12684 = vst [vmem:[#allocation46_spill] sm:$0xff] %v8770_v48  ;;  %v8775_v25 = vpop.f32.mrf.mxu0  ;;  %v8789_v48 = vpop.f32.mrf.mxu2 }
 0x1e5   : > { %12686 = vst [vmem:[#allocation48_spill] sm:$0xff] %v8789_v48 }
 0x1e6   : > { %6647 = vmatmul.msk.f32.gmra.mxu2 %vm529_vm1, %v6626_v20  ;;  %6716 = vmatmul.msk.f32.gmra.mxu1 %vm529_vm1, %v6674_v13  ;;  %v6628_v13 = vld [vmem:[%s12611_s1 + $0x298] sm:$0xff] }
 0x1e7   : > { %6664 = vmatmul.msk.f32.gmra.mxu3 %vm529_vm1, %v6622_v35  ;;  %6699 = vmatmul.msk.f32.gmra.mxu0 %vm529_vm1, %v6678_v59 }
 0x1eb   : > { %v8784_v6 = vpop.f32.mrf.mxu1 }
 0x1ec   : > { %12685 = vst [vmem:[#allocation47_spill] sm:$0xff] %v8784_v6  ;;  %v8791_v57 = vpop.f32.mrf.mxu0  ;;  %v8810_v29 = vpop.f32.mrf.mxu2 }
 0x1ed   : > { %12688 = vst [vmem:[#allocation50_spill] sm:$0xff] %v8810_v29 }
 0x1ee   : > { %6648 = vmatmul.msk.f32.gmra.mxu2 %vm529_vm1, %v6627_v36  ;;  %6717 = vmatmul.msk.f32.gmra.mxu1 %vm529_vm1, %v6675_v47 }
 0x1ef   : > { %6665 = vmatmul.msk.f32.gmra.mxu3 %vm529_vm1, %v6623_v46  ;;  %6700 = vmatmul.msk.f32.gmra.mxu0 %vm529_vm1, %v6679_v58 }
 0x1f3   : > { %v8800_v35 = vpop.f32.mrf.mxu1 }
 0x1f4   : > { %12687 = vst [vmem:[#allocation49_spill] sm:$0xff] %v8800_v35  ;;  %v8805_v6 = vpop.f32.mrf.mxu0  ;;  %v6681_v35 = vld [vmem:[%s12611_s1 + $0x2f0] sm:$0xff]  ;;  %v8826_v45 = vpop.f32.mrf.mxu2 }
 0x1f5   : > { %12690 = vst [vmem:[#allocation52_spill] sm:$0xff] %v8826_v45 }
 0x1f6   : > { %6649 = vmatmul.msk.f32.gmra.mxu2 %vm529_vm1, %v6628_v13  ;;  %6718 = vmatmul.msk.f32.gmra.mxu1 %vm529_vm1, %v6676_v43  ;;  %v8828_v43 = vpop.f32.mrf.mxu3 }
 0x1f7   : > { %6666 = vmatmul.msk.f32.gmra.mxu3 %vm529_vm1, %v6624_v56  ;;  %6701 = vmatmul.msk.f32.gmra.mxu0 %vm529_vm1, %v6680_v42  ;;  %12691 = vst [vmem:[#allocation53_spill] sm:$0xff] %v8828_v43  ;;  %v1940_v43 = vld [vmem:[%s12612_s2 + $0x80] sm:$0xff] }
 0x1f8   : > { %2027 = vperm.xlu1 %7407, %v1940_v43   ;;  %v6685_v43 = vld [vmem:[%s12611_s1 + $0x310] sm:$0xff] }
 0x1fb   : > { %v8816_v46 = vpop.f32.mrf.mxu1 }
 0x1fc   : > { %12689 = vst [vmem:[#allocation51_spill] sm:$0xff] %v8816_v46  ;;  %v8818_v47 = vpop.f32.mrf.mxu0  ;;  %v6682_v46 = vld [vmem:[%s12611_s1 + $0x2f8] sm:$0xff] }
 0x1fe   : > { %6719 = vmatmul.msk.f32.gmra.mxu1 %vm529_vm1, %v6677_v9  ;;  %v8842_v9 = vpop.f32.mrf.mxu3 }
 0x1ff   : > { %6667 = vmatmul.msk.f32.gmra.mxu3 %vm529_vm1, %v6625_v1  ;;  %6702 = vmatmul.msk.f32.gmra.mxu0 %vm529_vm1, %v6681_v35  ;;  %v8840_v1 = vpop.f32.mrf.mxu2  ;;  %12695 = vst [vmem:[#allocation57_spill] sm:$0xff] %v8842_v9 }
 0x200   : > { %12694 = vst [vmem:[#allocation56_spill] sm:$0xff] %v8840_v1 }
 0x203   : > { %v8830_v56 = vpop.f32.mrf.mxu1 }
 0x204   : > { %12692 = vst [vmem:[#allocation54_spill] sm:$0xff] %v8830_v56  ;;  %v8832_v4 = vpop.f32.mrf.mxu0 }
 0x205   : > { %12693 = vst [vmem:[#allocation55_spill] sm:$0xff] %v8832_v4 }
 0x206   : > { %6720 = vmatmul.msk.f32.gmra.mxu1 %vm529_vm1, %v6678_v59  ;;  %v6683_v59 = vld [vmem:[%s12611_s1 + $0x300] sm:$0xff]  ;;  %v8866_v26 = vpop.f32.mrf.mxu3 }
 0x207   : > { %6668 = vmatmul.msk.f32.gmra.mxu3 %vm529_vm1, %v6626_v20  ;;  %6703 = vmatmul.msk.f32.gmra.mxu0 %vm529_vm1, %v6682_v46  ;;  %v8859_v9 = vpop.f32.mrf.mxu2  ;;  %12701 = vst [vmem:[#allocation63_spill] sm:$0xff] %v8866_v26  ;;  %v6686_v26 = vld [vmem:[%s12611_s1 + $0x318] sm:$0xff] }
 0x208   : > { %12699 = vst [vmem:[#allocation61_spill] sm:$0xff] %v8859_v9 }
 0x20b   : > { %v8844_v29 = vpop.f32.mrf.mxu1 }
 0x20c   : > { %12696 = vst [vmem:[#allocation58_spill] sm:$0xff] %v8844_v29  ;;  %v8849_v4 = vpop.f32.mrf.mxu0 }
 0x20d   : > { %12697 = vst [vmem:[#allocation59_spill] sm:$0xff] %v8849_v4  ;;  %v6684_v4 = vld [vmem:[%s12611_s1 + $0x308] sm:$0xff] }
 0x20e   : > { %6721 = vmatmul.msk.f32.gmra.mxu1 %vm529_vm1, %v6679_v58  ;;  %v8881_v22 = vpop.f32.mrf.mxu3 }
 0x20f   : > { %6669 = vmatmul.msk.f32.gmra.mxu3 %vm529_vm1, %v6627_v36  ;;  %6704 = vmatmul.msk.f32.gmra.mxu0 %vm529_vm1, %v6683_v59  ;;  %12705 = vst [vmem:[#allocation67_spill] sm:$0xff] %v8881_v22 }
 0x213   : > { %v8857_v20 = vpop.f32.mrf.mxu1 }
 0x214   : > { %12698 = vst [vmem:[#allocation60_spill] sm:$0xff] %v8857_v20  ;;  %v8861_v17 = vpop.f32.mrf.mxu0 }
 0x215   : > { %12700 = vst [vmem:[#allocation62_spill] sm:$0xff] %v8861_v17  ;;  %v8878_v17 = vpop.f32.mrf.mxu2 }
 0x216   : > { %6722 = vmatmul.msk.f32.gmra.mxu1 %vm529_vm1, %v6680_v42  ;;  %12704 = vst [vmem:[#allocation66_spill] sm:$0xff] %v8878_v17  ;;  %v8895_v56 = vpop.f32.mrf.mxu3 }
 0x217   : > { %6670 = vmatmul.msk.f32.gmra.mxu3 %vm529_vm1, %v6628_v13  ;;  %6705 = vmatmul.msk.f32.gmra.mxu0 %vm529_vm1, %v6684_v4  ;;  %12709 = vst [vmem:[#allocation71_spill] sm:$0xff] %v8895_v56 }
 0x21b   : > { %v8871_v58 = vpop.f32.mrf.mxu1 }
 0x21c   : > { %12702 = vst [vmem:[#allocation64_spill] sm:$0xff] %v8871_v58  ;;  %v8873_v36 = vpop.f32.mrf.mxu0 }
 0x21d   : > { %12703 = vst [vmem:[#allocation65_spill] sm:$0xff] %v8873_v36  ;;  %v8893_v36 = vpop.f32.mrf.mxu2 }
 0x21e   : > { %6723 = vmatmul.msk.f32.gmra.mxu1 %vm529_vm1, %v6681_v35  ;;  %12708 = vst [vmem:[#allocation70_spill] sm:$0xff] %v8893_v36  ;;  %v1941_v35 = vld [vmem:[%s12612_s2 + $0x88] sm:$0xff]  ;;  %v8911_v56 = vpop.f32.mrf.mxu3 }
 0x21f   : > { %6706 = vmatmul.msk.f32.gmra.mxu0 %vm529_vm1, %v6685_v43  ;;  %2032 = vperm.xlu2 %7408, %v1941_v35   ;;  %12712 = vst [vmem:[#allocation74_spill] sm:$0xff] %v8911_v56  ;;  %v6688_v35 = vld [vmem:[%s12611_s1 + $0x328] sm:$0xff] }
 0x223   : > { %v8884_v42 = vpop.f32.mrf.mxu1 }
 0x224   : > { %12706 = vst [vmem:[#allocation68_spill] sm:$0xff] %v8884_v42  ;;  %v8886_v13 = vpop.f32.mrf.mxu0 }
 0x225   : > { %12707 = vst [vmem:[#allocation69_spill] sm:$0xff] %v8886_v13  ;;  %v6687_v13 = vld [vmem:[%s12611_s1 + $0x320] sm:$0xff] }
 0x226   : > { %6724 = vmatmul.msk.f32.gmra.mxu1 %vm529_vm1, %v6682_v46  ;;  %v8909_v46 = vpop.f32.mrf.mxu2  ;;  %v8931_v56 = vpop.f32.mrf.mxu3 }
 0x227   : > { %6707 = vmatmul.msk.f32.gmra.mxu0 %vm529_vm1, %v6686_v26  ;;  %12717 = vst [vmem:[#allocation79_spill] sm:$0xff] %v8931_v56 }
 0x22b   : > { %v8900_v42 = vpop.f32.mrf.mxu1 }
 0x22c   : > { %12710 = vst [vmem:[#allocation72_spill] sm:$0xff] %v8900_v42  ;;  %v8902_v22 = vpop.f32.mrf.mxu0 }
 0x22d   : > { %12711 = vst [vmem:[#allocation73_spill] sm:$0xff] %v8902_v22 }
 0x22e   : > { %6725 = vmatmul.msk.f32.gmra.mxu1 %vm529_vm1, %v6683_v59  ;;  %v8924_v59 = vpop.f32.mrf.mxu2  ;;  %v8945_v58 = vpop.f32.mrf.mxu3 }
 0x22f   : > { %6708 = vmatmul.msk.f32.gmra.mxu0 %vm529_vm1, %v6687_v13  ;;  %12720 = vst [vmem:[#allocation82_spill] sm:$0xff] %v8945_v58 }
 0x233   : > { %v8913_v12 = vpop.f32.mrf.mxu1 }
 0x234   : > { %12713 = vst [vmem:[#allocation75_spill] sm:$0xff] %v8913_v12  ;;  %v8915_v48 = vpop.f32.mrf.mxu0  ;;  %v6689_v12 = vld [vmem:[%s12611_s1 + $0x330] sm:$0xff] }
 0x235   : > { %12714 = vst [vmem:[#allocation76_spill] sm:$0xff] %v8915_v48 }
 0x236   : > { %6726 = vmatmul.msk.f32.gmra.mxu1 %vm529_vm1, %v6684_v4  ;;  %v8942_v63 = vpop.f32.mrf.mxu2  ;;  %v8959_v29 = vpop.f32.mrf.mxu3 }
 0x237   : > { %6709 = vmatmul.msk.f32.gmra.mxu0 %vm529_vm1, %v6688_v35  ;;  %12723 = vst [vmem:[#allocation85_spill] sm:$0xff] %v8959_v29 }
 0x23b   : > { %v8922_v42 = vpop.f32.mrf.mxu1 }
 0x23c   : > { %12715 = vst [vmem:[#allocation77_spill] sm:$0xff] %v8922_v42  ;;  %v8926_v8 = vpop.f32.mrf.mxu0  ;;  %v6690_v42 = vld [vmem:[%s12611_s1 + $0x338] sm:$0xff] }
 0x23d   : > { %12716 = vst [vmem:[#allocation78_spill] sm:$0xff] %v8926_v8  ;;  %v9005_v8 = vpop.permute.xlu2 %2017 }
 0x23e   : > { %6727 = vmatmul.msk.f32.gmra.mxu1 %vm529_vm1, %v6685_v43  ;;  %v8957_v23 = vpop.f32.mrf.mxu2  ;;  %v8968_v33 = vpop.f32.mrf.mxu3 }
 0x23f   : > { %6710 = vmatmul.msk.f32.gmra.mxu0 %vm529_vm1, %v6689_v12  ;;  %12726 = vst [vmem:[#allocation88_spill] sm:$0xff] %v8968_v33 }
 0x243   : > { %v8935_v15 = vpop.f32.mrf.mxu1 }
 0x244   : > { %12718 = vst [vmem:[#allocation80_spill] sm:$0xff] %v8935_v15  ;;  %v8937_v4 = vpop.f32.mrf.mxu0  ;;  %v6691_v15 = vld [vmem:[%s12611_s1 + $0x340] sm:$0xff] }
 0x245   : > { %12719 = vst [vmem:[#allocation81_spill] sm:$0xff] %v8937_v4  ;;  %v9017_v4 = vpop.permute.xlu2 %2002 }
 0x246   : > { %6728 = vmatmul.msk.f32.gmra.mxu1 %vm529_vm1, %v6686_v26 }
 0x247   : > { %6711 = vmatmul.msk.f32.gmra.mxu0 %vm529_vm1, %v6690_v42 }
 0x24b   : > { %v8948_v56 = vpop.f32.mrf.mxu1 }
 0x24c   : > { %12721 = vst [vmem:[#allocation83_spill] sm:$0xff] %v8948_v56  ;;  %v8950_v43 = vpop.f32.mrf.mxu0  ;;  %v8966_v56 = vpop.f32.mrf.mxu2 }
 0x24d   : > { %12722 = vst [vmem:[#allocation84_spill] sm:$0xff] %v8950_v43  ;;  %v9029_v17 = vpop.permute.xlu2 %1992 }
 0x24e   : > { %6729 = vmatmul.msk.f32.gmra.mxu1 %vm529_vm1, %v6687_v13 }
 0x24f   : > { %6712 = vmatmul.msk.f32.gmra.mxu0 %vm529_vm1, %v6691_v15 }
 0x253   : > { %v8961_v26 = vpop.f32.mrf.mxu1 }
 0x254   : > { %12724 = vst [vmem:[#allocation86_spill] sm:$0xff] %v8961_v26  ;;  %v8963_v58 = vpop.f32.mrf.mxu0  ;;  %v8977_v22 = vpop.f32.mrf.mxu2 }
 0x255   : > { %12725 = vst [vmem:[#allocation87_spill] sm:$0xff] %v8963_v58  ;;  %v8981_v26 = vpop.f32.mrf.mxu3 }
 0x256   : > { %6730 = vmatmul.msk.f32.gmra.mxu1 %vm529_vm1, %v6688_v35  ;;  %12729 = vst [vmem:[#allocation91_spill] sm:$0xff] %v8981_v26 }
 0x25b   : > { %v8970_v54 = vpop.f32.mrf.mxu1 }
 0x25c   : > { %12727 = vst [vmem:[#allocation89_spill] sm:$0xff] %v8970_v54  ;;  %v8972_v52 = vpop.f32.mrf.mxu0  ;;  %v1456_v33 = vpop.f32.mrf.mxu2 }
 0x25d   : > { %v8989_v54 = vpop.f32.mrf.mxu3 }
 0x25e   : > { %6731 = vmatmul.msk.f32.gmra.mxu1 %vm529_vm1, %v6689_v12  ;;  %12731 = vst [vmem:[#allocation93_spill] sm:$0xff] %v8989_v54 }
 0x263   : > { %v8975_v13 = vpop.f32.mrf.mxu1 }
 0x264   : > { %12728 = vst [vmem:[#allocation90_spill] sm:$0xff] %v8975_v13  ;;  %v8979_v29 = vpop.f32.mrf.mxu0  ;;  %v1459_v34 = vpop.f32.mrf.mxu2 }
 0x265   : > { %v8995_v20 = vpop.f32.mrf.mxu3 }
 0x266   : > { %6732 = vmatmul.msk.f32.gmra.mxu1 %vm529_vm1, %v6690_v42  ;;  %12733 = vst [vmem:[#allocation95_spill] sm:$0xff] %v8995_v20  ;;  %v8999_v42 = vpop.permute.xlu1 %2022 }
 0x26b   : > { %v8984_v35 = vpop.f32.mrf.mxu1 }
 0x26c   : > { %12730 = vst [vmem:[#allocation92_spill] sm:$0xff] %v8984_v35  ;;  %v8986_v40 = vpop.f32.mrf.mxu0  ;;  %v1462_v35 = vpop.f32.mrf.mxu2 }
 0x26d   : > { %v9001_v48 = vpop.f32.mrf.mxu3 }
 0x26e   : > { %6733 = vmatmul.msk.f32.gmra.mxu1 %vm529_vm1, %v6691_v15  ;;  %12735 = vst [vmem:[#allocation97_spill] sm:$0xff] %v9001_v48  ;;  %v9007_v54 = vpop.permute.xlu1 %2007 }
 0x273   : > { %v8991_v12 = vpop.f32.mrf.mxu1 }
 0x274   : > { %12732 = vst [vmem:[#allocation94_spill] sm:$0xff] %v8991_v12  ;;  %v8993_v13 = vpop.f32.mrf.mxu0  ;;  %v1465_v1 = vpop.f32.mrf.mxu2 }
 0x275   : > { %v9011_v20 = vpop.f32.mrf.mxu3 }
 0x276   : > { %12738 = vst [vmem:[#allocation100_spill] sm:$0xff] %v9011_v20  ;;  %v9019_v9 = vpop.permute.xlu1 %1997  ;;  %v876_v20 = vadd.f32 %v8668_v2, %v8164_v24  ;;  %v1274_v2 = vadd.f32 %v8775_v25, %v8536_v50  ;;  %v9057_v50 = vpop.permute.xlu2 %1977 }
 0x278   : > { %v1278_v41 = vadd.f32 %v8805_v6, %v876_v20 }
 0x27a   : > { %v1594_v36 = vadd.f32 %v1465_v1, %v1278_v41  ;;  %v1270_v41 = vadd.f32 %v8740_v27, %v8464_v38 }
 0x27b   : > { %v8997_v5 = vpop.f32.mrf.mxu1 }
 0x27c   : > { %12734 = vst [vmem:[#allocation96_spill] sm:$0xff] %v8997_v5  ;;  %v1769_v26 = vpop.f32.mrf.mxu0  ;;  %v9013_v5 = vpop.permute.xlu0 %2012 }
 0x27d   : > { %v9021_v18 = vpop.f32.mrf.mxu3 }
 0x27e   : > { %12740 = vst [vmem:[#allocation102_spill] sm:$0xff] %v9021_v18  ;;  %v9034_v7 = vpop.permute.xlu1 %1982  ;;  %v1276_v18 = vadd.f32 %v8791_v57, %v8567_v49  ;;  %v1590_v49 = vadd.f32 %v1459_v34, %v1274_v2  ;;  %v1586_v34 = vadd.f32 %v8977_v22, %v1270_v41 }
 0x27f   : > { %12742 = vst [vmem:[#allocation104_spill] sm:$0xff] %v9034_v7 }
 0x283   : > { %v9003_v45 = vpop.f32.mrf.mxu1 }
 0x284   : > { %12736 = vst [vmem:[#allocation98_spill] sm:$0xff] %v9003_v45  ;;  %v1772_v15 = vpop.f32.mrf.mxu0  ;;  %v1468_v45 = vpop.f32.mrf.mxu2 }
 0x285   : > { %v9023_v62 = vpop.permute.xlu0 %1987  ;;  %v9041_v32 = vpop.f32.mrf.mxu3 }
 0x286   : > { %12744 = vst [vmem:[#allocation106_spill] sm:$0xff] %v9041_v32  ;;  %v9059_v25 = vpop.permute.xlu1 %1967  ;;  %v12748_v41 = vld [vmem:[#allocation104_spill] sm:$0xff] }
 0x28b   : > { %v9009_v12 = vpop.f32.mrf.mxu1 }
 0x28c   : > { %12737 = vst [vmem:[#allocation99_spill] sm:$0xff] %v9009_v12  ;;  %v1775_v61 = vpop.f32.mrf.mxu0  ;;  %v9036_v58 = vpop.f32.mrf.mxu2 }
 0x28d   : > { %12743 = vst [vmem:[#allocation105_spill] sm:$0xff] %v9036_v58  ;;  %v9043_v24 = vpop.permute.xlu0 %1972  ;;  %v1272_v58 = vadd.f32 %v8759_v14, %v8500_v31  ;;  %v1906_v1 = vadd.f32 %v1775_v61, %v1590_v49  ;;  %v9068_v61 = vpop.f32.mrf.mxu3 }
 0x293   : > { %v9015_v51 = vpop.f32.mrf.mxu1 }
 0x294   : > { %12739 = vst [vmem:[#allocation101_spill] sm:$0xff] %v9015_v51  ;;  %v1778_v48 = vpop.f32.mrf.mxu0  ;;  %v879_v51 = vadd.f32 %v8702_v30, %v8189_v28  ;;  %v1592_v28 = vadd.f32 %v1462_v35, %v1276_v18  ;;  %v9065_v27 = vpop.f32.mrf.mxu2  ;;  %v1262_v35 = vadd.f32 %v8658_v3, %v8353_v44 }
 0x295   : > { %v9094_v44 = vpop.permute.xlu2 %2047 }
 0x296   : > { %v1908_v57 = vadd.f32 %v1778_v48, %v1592_v28  ;;  %v9097_v28 = vpop.permute.xlu1 %2042 }
 0x29b   : > { %v9025_v43 = vpop.f32.mrf.mxu1 }
 0x29c   : > { %12741 = vst [vmem:[#allocation103_spill] sm:$0xff] %v9025_v43  ;;  %v1781_v12 = vpop.f32.mrf.mxu0  ;;  %v1280_v43 = vadd.f32 %v8818_v47, %v879_v51  ;;  %v1588_v47 = vadd.f32 %v1456_v33, %v1272_v58  ;;  %v1266_v33 = vadd.f32 %v8704_v39, %v8401_v60  ;;  %v1264_v58 = vadd.f32 %v8681_v55, %v8376_v53  ;;  %v9105_v49 = vpop.f32.mrf.mxu2 }
 0x29d   : > { %v1910_v6 = vadd.f32 %v1781_v12, %v1594_v36  ;;  %v9075_v36 = vpop.permute.xlu0 %1962 }
 0x29e   : > { %v1596_v30 = vadd.f32 %v1468_v45, %v1280_v43  ;;  %v1268_v45 = vadd.f32 %v8721_v11, %v8432_v19  ;;  %v1904_v31 = vadd.f32 %v1772_v15, %v1588_v47  ;;  %v1902_v11 = vadd.f32 %v1769_v26, %v1586_v34  ;;  %v1548_v47 = vpop.f32.mrf.mxu3 }
 0x29f   : > { %v2078_v32 = vadd.f32 %v9005_v8, %v1910_v6  ;;  %v2074_v19 = vadd.f32 %v9007_v54, %v1906_v1  ;;  %v1582_v60 = vadd.f32 %v8957_v23, %v1266_v33  ;;  %v1260_v23 = vadd.f32 %v8636_v0, %v8333_v37 }
 0x2a0   : > { %v1584_v38 = vadd.f32 %v8966_v56, %v1268_v45  ;;  %v2072_v43 = vadd.f32 %v9017_v4, %v1904_v31  ;;  %v2070_v55 = vadd.f32 %v9019_v9, %v1902_v11  ;;  %v12750_v45 = vld [vmem:[#allocation24_spill] sm:$0xff] }
 0x2a1   : > { %v2120_v22 = vmax.f32 %v2078_v32, 0.0  ;;  %v1580_v32 = vadd.f32 %v8942_v63, %v1264_v58  ;;  %v1898_v53 = vadd.f32 %v8986_v40, %v1582_v60  ;;  %v2116_v12 = vmax.f32 %v2074_v19, 0.0  ;;  %v12753_v19 = vld [vmem:[#allocation8_spill] sm:$0xff]  ;;  %v12755_v60 = vld [vmem:[#allocation61_spill] sm:$0xff] }
 0x2a2   : > { %v1900_v56 = vadd.f32 %v8993_v13, %v1584_v38  ;;  %v1578_v13 = vadd.f32 %v8924_v59, %v1262_v35  ;;  %v2114_v3 = vmax.f32 %v2072_v43, 0.0  ;;  %v1258_v63 = vadd.f32 %v8614_v21, %v8316_v10  ;;  %v12746_v21 = vld [vmem:[#allocation70_spill] sm:$0xff]  ;;  %v12756_v43 = vld [vmem:[#allocation81_spill] sm:$0xff] }
 0x2a3   : > { %v9047_v20 = vpop.f32.mrf.mxu1  ;;  %v1896_v15 = vadd.f32 %v8979_v29, %v1580_v32  ;;  %v1576_v40 = vadd.f32 %v8909_v46, %v1260_v23  ;;  %v2066_v0 = vadd.f32 %v9023_v62, %v1898_v53  ;;  %v2112_v29 = vmax.f32 %v2070_v55, 0.0  ;;  %v12757_v53 = vld [vmem:[#allocation6_spill] sm:$0xff]  ;;  %v12758_v55 = vld [vmem:[#allocation20_spill] sm:$0xff] }
 0x2a4   : > { %v1784_v7 = vpop.f32.mrf.mxu0  ;;  %v2068_v2 = vadd.f32 %v9029_v17, %v1900_v56  ;;  %v1894_v37 = vadd.f32 %v8972_v52, %v1578_v13  ;;  %v1574_v46 = vadd.f32 %v12746_v21, %v1258_v63  ;;  %v12759_v23 = vld [vmem:[#allocation56_spill] sm:$0xff] }
 0x2a5   : > { %v1912_v51 = vadd.f32 %v1784_v7, %v1596_v30  ;;  %v2076_v7 = vadd.f32 %v9013_v5, %v1908_v57  ;;  %v12745_v30 = vld [vmem:[#allocation26_spill] sm:$0xff]  ;;  %v12747_v57 = vld [vmem:[#allocation87_spill] sm:$0xff]  ;;  %v2064_v52 = vadd.f32 %v12748_v41, %v1896_v15  ;;  %v9114_v31 = vpop.permute.xlu0 %2037  ;;  %v2108_v11 = vmax.f32 %v2066_v0, 0.0 }
 0x2a6   : > { %v1256_v6 = vadd.f32 %v12745_v30, %v8298_v16  ;;  %v2110_v1 = vmax.f32 %v2068_v2, 0.0  ;;  %v12751_v16 = vld [vmem:[#allocation66_spill] sm:$0xff]  ;;  %v2062_v38 = vadd.f32 %v9057_v50, %v1894_v37  ;;  %v9129_v37 = vpop.permute.xlu2 %1957 }
 0x2a7   : > { %v2080_v18 = vadd.f32 %v8999_v42, %v1912_v51  ;;  %v2118_v26 = vmax.f32 %v2076_v7, 0.0  ;;  %v1892_v51 = vadd.f32 %v12747_v57, %v1576_v40  ;;  %v2106_v32 = vmax.f32 %v2064_v52, 0.0  ;;  %v12760_v15 = vld [vmem:[#allocation78_spill] sm:$0xff]  ;;  %v12764_v52 = vld [vmem:[#allocation60_spill] sm:$0xff] }
 0x2a8   : > { %v1572_v7 = vadd.f32 %v12751_v16, %v1256_v6  ;;  %v2104_v40 = vmax.f32 %v2062_v38, 0.0  ;;  %v12762_v6 = vld [vmem:[#allocation76_spill] sm:$0xff]  ;;  %v12766_v16 = vld [vmem:[#allocation39_spill] sm:$0xff] }
 0x2a9   : > { %v2122_v14 = vmax.f32 %v2080_v18, 0.0  ;;  %v12749_v18 = vld [vmem:[#allocation10_spill] sm:$0xff]  ;;  %v2060_v35 = vadd.f32 %v9043_v24, %v1892_v51  ;;  %v12763_v51 = vld [vmem:[#allocation35_spill] sm:$0xff] }
 0x2aa   : > { %v1254_v34 = vadd.f32 %v12750_v45, %v12749_v18  ;;  %v9138_v18 = vpop.permute.xlu1 %1952  ;;  %v1480_v45 = vpop.f32.mrf.mxu2 }
 0x2ab   : > { %v9071_v48 = vpop.f32.mrf.mxu1  ;;  %2190 = vmatpush.msrb.mxu2 %v2122_v14  ;;  %2446 = vmatpush.msrb.mxu0 %v2122_v14  ;;  %v12752_v14 = vld [vmem:[#allocation84_spill] sm:$0xff]  ;;  %v2102_v57 = vmax.f32 %v2060_v35, 0.0  ;;  %v12772_v35 = vld [vmem:[#allocation37_spill] sm:$0xff] }
 0x2ac   : > { %v9077_v39 = vpop.f32.mrf.mxu0  ;;  %v1890_v33 = vadd.f32 %v12752_v14, %v1574_v46  ;;  %v1570_v56 = vadd.f32 %v12755_v60, %v1254_v34  ;;  %v12765_v34 = vld [vmem:[#allocation5_spill] sm:$0xff] }
 0x2ad   : > { %2191 = vmatpush.msrb.mxu2 %v2120_v22  ;;  %2447 = vmatpush.msrb.mxu0 %v2120_v22  ;;  %v12754_v22 = vld [vmem:[#allocation22_spill] sm:$0xff]  ;;  %v12767_v14 = vld [vmem:[#allocation73_spill] sm:$0xff] }
 0x2ae   : > { %v1252_v58 = vadd.f32 %v12754_v22, %v12753_v19  ;;  %v1886_v2 = vadd.f32 %v12760_v15, %v1570_v56  ;;  %v12768_v22 = vld [vmem:[#allocation7_spill] sm:$0xff]  ;;  %v12770_v56 = vld [vmem:[#allocation33_spill] sm:$0xff] }
 0x2af   : > { %2192 = vmatpush.msrb.mxu2 %v2118_v26  ;;  %2448 = vmatpush.msrb.mxu0 %v2118_v26  ;;  %v1888_v26 = vadd.f32 %v12756_v43, %v1572_v7  ;;  %v9142_v7 = vadd.f32 %v12766_v16, %v12765_v34  ;;  %v12771_v43 = vld [vmem:[#allocation58_spill] sm:$0xff] }
 0x2b0   : > { %v1568_v13 = vadd.f32 %v12759_v23, %v1252_v58  ;;  %v2054_v38 = vadd.f32 %v9129_v37, %v1886_v2  ;;  %v12769_v58 = vld [vmem:[#allocation42_spill] sm:$0xff]  ;;  %v12774_v23 = vld [vmem:[#allocation9_spill] sm:$0xff]  ;;  %v12776_v2 = vld [vmem:[#allocation11_spill] sm:$0xff] }
 0x2b1   : > { %2193 = vmatpush.msrb.mxu2 %v2116_v12  ;;  %2449 = vmatpush.msrb.mxu0 %v2116_v12  ;;  %v1250_v12 = vadd.f32 %v12758_v55, %v12757_v53  ;;  %v2056_v46 = vadd.f32 %v9075_v36, %v1888_v26  ;;  %v885_v60 = vadd.f32 %v12769_v58, %v12768_v22  ;;  %v9154_v55 = vpop.permute.xlu0 %1947  ;;  %v12781_v22 = vld [vmem:[#allocation18_spill] sm:$0xff]  ;;  %v12783_v58 = vld [vmem:[#allocation12_spill] sm:$0xff] }
 0x2b2   : > { %v1884_v21 = vadd.f32 %v12762_v6, %v1568_v13  ;;  %v1277_v26 = vadd.f32 %v12771_v43, %v12770_v56  ;;  %v12775_v13 = vld [vmem:[#allocation45_spill] sm:$0xff]  ;;  %v12778_v6 = vld [vmem:[#allocation31_spill] sm:$0xff]  ;;  %v12784_v56 = vld [vmem:[#allocation50_spill] sm:$0xff] }
 0x2b3   : > { %v9101_v59 = vpop.f32.mrf.mxu1  ;;  %2194 = vmatpush.msrb.mxu2 %v2114_v3  ;;  %2450 = vmatpush.msrb.mxu0 %v2114_v3  ;;  %v2058_v3 = vadd.f32 %v9059_v25, %v1890_v33  ;;  %v888_v15 = vadd.f32 %v12775_v13, %v12774_v23  ;;  %v894_v43 = vadd.f32 %v12784_v56, %v12783_v58  ;;  %v12787_v13 = vld [vmem:[#allocation102_spill] sm:$0xff] }
 0x2b4   : > { %v9107_v10 = vpop.f32.mrf.mxu0  ;;  %v12796_v56 = vld [vmem:[#allocation46_spill] sm:$0xff] }
 0x2b5   : > { %2195 = vmatpush.msrb.mxu2 %v2112_v29  ;;  %2451 = vmatpush.msrb.mxu0 %v2112_v29  ;;  %v12761_v29 = vld [vmem:[#allocation52_spill] sm:$0xff]  ;;  %v2100_v19 = vmax.f32 %v2058_v3, 0.0  ;;  %v2052_v3 = vadd.f32 %v9138_v18, %v1884_v21  ;;  %v2096_v21 = vmax.f32 %v2054_v38, 0.0  ;;  %v12793_v38 = vld [vmem:[#allocation49_spill] sm:$0xff] }
 0x2b6   : > { %v1566_v30 = vadd.f32 %v12761_v29, %v1250_v12 }
 0x2b7   : > { %2196 = vmatpush.msrb.mxu2 %v2110_v1  ;;  %2452 = vmatpush.msrb.mxu0 %v2110_v1  ;;  %v1279_v1 = vadd.f32 %v12764_v52, %v12763_v51  ;;  %v12780_v52 = vld [vmem:[#allocation106_spill] sm:$0xff] }
 0x2b8   : > { %v1882_v33 = vadd.f32 %v12767_v14, %v1566_v30  ;;  %v2098_v30 = vmax.f32 %v2056_v46, 0.0  ;;  %v1593_v34 = vadd.f32 %v12780_v52, %v1277_v26  ;;  %v12785_v46 = vld [vmem:[#allocation29_spill] sm:$0xff] }
 0x2b9   : > { %2197 = vmatpush.msrb.mxu2 %v2108_v11  ;;  %2453 = vmatpush.msrb.mxu0 %v2108_v11  ;;  %v9146_v11 = vpop.f32.mrf.mxu3  ;;  %v1595_v12 = vadd.f32 %v9068_v61, %v1279_v1  ;;  %v12782_v61 = vld [vmem:[#allocation38_spill] sm:$0xff] }
 0x2ba   : > { %v9167_v1 = vadd.f32 %v12782_v61, %v12781_v22  ;;  %v2094_v61 = vmax.f32 %v2052_v3, 0.0 }
 0x2bb   : > { %v1861_v63 = vpop.f32.mrf.mxu1  ;;  %2198 = vmatpush.msrb.mxu2 %v2106_v32  ;;  %2454 = vmatpush.msrb.mxu0 %v2106_v32  ;;  %v12773_v32 = vld [vmem:[#allocation64_spill] sm:$0xff] }
 0x2bc   : > { %v9131_v0 = vpop.f32.mrf.mxu0  ;;  %v1281_v53 = vadd.f32 %v12773_v32, %v12772_v35  ;;  %v1911_v14 = vadd.f32 %v1861_v63, %v1595_v12  ;;  %v2050_v35 = vadd.f32 %v9154_v55, %v1882_v33  ;;  %v12788_v12 = vld [vmem:[#allocation19_spill] sm:$0xff] }
 0x2bd   : > { %2199 = vmatpush.msrb.mxu2 %v2104_v40  ;;  %2455 = vmatpush.msrb.mxu0 %v2104_v40  ;;  %v12777_v40 = vld [vmem:[#allocation48_spill] sm:$0xff]  ;;  %v12792_v33 = vld [vmem:[#allocation27_spill] sm:$0xff] }
 0x2be   : > { %v891_v29 = vadd.f32 %v12777_v40, %v12776_v2  ;;  %v1597_v16 = vadd.f32 %v1548_v47, %v1281_v53  ;;  %v1909_v47 = vadd.f32 %v9101_v59, %v1593_v34  ;;  %v12789_v2 = vld [vmem:[#allocation41_spill] sm:$0xff]  ;;  %v1271_v22 = vadd.f32 %v12793_v38, %v12792_v33 }
 0x2bf   : > { %2200 = vmatpush.msrb.mxu2 %v2102_v57  ;;  %2456 = vmatpush.msrb.mxu0 %v2102_v57  ;;  %v12779_v57 = vld [vmem:[#allocation54_spill] sm:$0xff]  ;;  %v1263_v40 = vadd.f32 %v12789_v2, %v12788_v12  ;;  %v9185_v59 = vadd.f32 %v9005_v8, %v1911_v14  ;;  %v12799_v12 = vld [vmem:[#allocation65_spill] sm:$0xff]  ;;  %v2092_v2 = vmax.f32 %v2050_v35, 0.0 }
 0x2c0   : > { %v1275_v51 = vadd.f32 %v12779_v57, %v12778_v6  ;;  %v12790_v6 = vld [vmem:[#allocation21_spill] sm:$0xff]  ;;  %v12791_v57 = vld [vmem:[#allocation44_spill] sm:$0xff]  ;;  %v1288_v3 = vadd.f32 %v12799_v12, %v891_v29  ;;  %v9209_v29 = vld [vmem:[%s12613_s3] sm:$0xff] }
 0x2c1   : > { %2201 = vmatpush.msrb.mxu2 %v2100_v19  ;;  %2457 = vmatpush.msrb.mxu0 %v2100_v19  ;;  %v12786_v19 = vld [vmem:[#allocation51_spill] sm:$0xff]  ;;  %v1265_v52 = vadd.f32 %v12791_v57, %v12790_v6  ;;  %v12800_v8 = vld [vmem:[#allocation97_spill] sm:$0xff]  ;;  %v12801_v35 = vld [vmem:[#allocation62_spill] sm:$0xff]  ;;  %v9213_v38 = vpop.f32.mrf.mxu3 }
 0x2c2   : > { %v1273_v23 = vadd.f32 %v12786_v19, %v12785_v46  ;;  %v1591_v26 = vadd.f32 %v12787_v13, %v1275_v51  ;;  %v12797_v46 = vld [vmem:[#allocation25_spill] sm:$0xff]  ;;  %v12798_v19 = vld [vmem:[#allocation47_spill] sm:$0xff]  ;;  %v1587_v14 = vadd.f32 %v12800_v8, %v1271_v22  ;;  %v1604_v33 = vadd.f32 %v1480_v45, %v1288_v3 }
 0x2c3   : > { %v1864_v32 = vpop.f32.mrf.mxu1  ;;  %2202 = vmatpush.msrb.mxu2 %v2098_v30  ;;  %2458 = vmatpush.msrb.mxu0 %v2098_v30  ;;  %v12794_v30 = vld [vmem:[#allocation100_spill] sm:$0xff]  ;;  %v1269_v13 = vadd.f32 %v12798_v19, %v12797_v46  ;;  %v12802_v6 = vld [vmem:[#allocation69_spill] sm:$0xff] }
 0x2c4   : > { %v1913_v63 = vadd.f32 %v1864_v32, %v1597_v16  ;;  %v1796_v53 = vpop.f32.mrf.mxu0  ;;  %v1589_v58 = vadd.f32 %v12794_v30, %v1273_v23  ;;  %v1907_v51 = vadd.f32 %v9071_v48, %v1591_v26  ;;  %v12795_v16 = vld [vmem:[#allocation23_spill] sm:$0xff]  ;;  %v9198_v48 = vld [vmem:[%s12613_s3 + $0xb0] sm:$0xff]  ;;  %v9203_v23 = vadd.f32 %v9013_v5, %v1909_v47  ;;  %v12806_v46 = vld [vmem:[#allocation93_spill] sm:$0xff] }
 0x2c5   : > { %2203 = vmatpush.msrb.mxu2 %v2096_v21  ;;  %2459 = vmatpush.msrb.mxu0 %v2096_v21  ;;  %v1267_v32 = vadd.f32 %v12796_v56, %v12795_v16  ;;  %v1290_v57 = vadd.f32 %v12802_v6, %v894_v43  ;;  %v12804_v5 = vld [vmem:[#allocation103_spill] sm:$0xff]  ;;  %v2121_v30 = vmax.f32 %v9185_v59, 0.0  ;;  %v1920_v16 = vadd.f32 %v1796_v53, %v1604_v33  ;;  %v12813_v33 = vld [vmem:[#allocation98_spill] sm:$0xff] }
 0x2c6   : > { %v9188_v34 = vadd.f32 %v8999_v42, %v1913_v63  ;;  %v1483_v42 = vpop.f32.mrf.mxu2  ;;  %v1905_v21 = vadd.f32 %v9047_v20, %v1589_v58  ;;  %v1286_v63 = vadd.f32 %v12801_v35, %v888_v15  ;;  %v12803_v20 = vld [vmem:[#allocation95_spill] sm:$0xff]  ;;  %v1903_v47 = vadd.f32 %v12804_v5, %v1587_v14  ;;  %v12814_v5 = vld [vmem:[#allocation17_spill] sm:$0xff] }
 0x2c7   : > { %2204 = vmatpush.msrb.mxu2 %v2094_v61  ;;  %2460 = vmatpush.msrb.mxu0 %v2094_v61  ;;  %v1585_v22 = vadd.f32 %v12803_v20, %v1269_v13  ;;  %v9218_v61 = vadd.f32 %v9007_v54, %v1907_v51  ;;  %v12805_v15 = vld [vmem:[#allocation59_spill] sm:$0xff]  ;;  %v1606_v58 = vadd.f32 %v1483_v42, %v1290_v57  ;;  %v12807_v51 = vld [vmem:[#allocation101_spill] sm:$0xff] }
 0x2c8   : > { %v2123_v26 = vmax.f32 %v9188_v34, 0.0  ;;  %v1284_v45 = vadd.f32 %v12805_v15, %v885_v60  ;;  %v1602_v43 = vadd.f32 %v9105_v49, %v1286_v63  ;;  %v1583_v54 = vadd.f32 %v12806_v46, %v1267_v32  ;;  %v12808_v49 = vld [vmem:[#allocation55_spill] sm:$0xff]  ;;  %v12811_v63 = vld [vmem:[#allocation105_spill] sm:$0xff]  ;;  %v12817_v46 = vld [vmem:[#allocation96_spill] sm:$0xff] }
 0x2c9   : > { %2205 = vmatpush.msrb.mxu2 %v2092_v2  ;;  %2461 = vmatpush.msrb.mxu0 %v2092_v2  ;;  %v1901_v19 = vadd.f32 %v12807_v51, %v1585_v22  ;;  %v9232_v13 = vadd.f32 %v9017_v4, %v1905_v21  ;;  %v2119_v60 = vmax.f32 %v9203_v23, 0.0  ;;  %v1282_v53 = vadd.f32 %v12808_v49, %v9142_v7  ;;  %v12809_v32 = vld [vmem:[#allocation91_spill] sm:$0xff]  ;;  %v9276_v51 = vpop.permute.xlu2 %2032  ;;  %v9473_v23 = vld [vmem:[%s12613_s3 + $0x100] sm:$0xff] }
 0x2ca   : > { %2462 = vmatmul.f32.vlgmr.msrb.gmra.mxu0 %v9198_v48  ;;  %2206 = vmatmul.f32.vlgmr.msrb.gmra.mxu2 %v9209_v29  ;;  %v1600_v3 = vadd.f32 %v9065_v27, %v1284_v45  ;;  %v1918_v2 = vadd.f32 %v9131_v0, %v1602_v43  ;;  %v1581_v14 = vadd.f32 %v12809_v32, %v1265_v52  ;;  %v12810_v42 = vld [vmem:[#allocation99_spill] sm:$0xff]  ;;  %v2117_v21 = vmax.f32 %v9218_v61, 0.0  ;;  %v9256_v52 = vld [vmem:[%s12613_s3 + $0xc0] sm:$0xff] }
 0x2cb   : > { %2290 = vmatpush.msra.mxu2 %v2123_v26  ;;  %v9226_v56 = vpop.f32.mrf.mxu1  ;;  %v1899_v35 = vadd.f32 %v12810_v42, %v1583_v54  ;;  %v9244_v4 = vadd.f32 %v9019_v9, %v1903_v47  ;;  %v1598_v6 = vadd.f32 %v12811_v63, %v1282_v53  ;;  %v2088_v27 = vadd.f32 %v9097_v28, %v1920_v16  ;;  %v12812_v9 = vld [vmem:[#allocation88_spill] sm:$0xff]  ;;  %v9284_v53 = vpop.f32.mrf.mxu3  ;;  %v12821_v32 = vld [vmem:[#allocation94_spill] sm:$0xff] }
 0x2cc   : > { %v1799_v12 = vpop.f32.mrf.mxu0  ;;  %v1916_v7 = vadd.f32 %v9107_v10, %v1600_v3  ;;  %v1579_v57 = vadd.f32 %v12812_v9, %v1263_v40  ;;  %v1897_v20 = vadd.f32 %v12813_v33, %v1581_v14  ;;  %v9261_v22 = vadd.f32 %v9029_v17, %v1901_v19  ;;  %v12815_v47 = vld [vmem:[#allocation36_spill] sm:$0xff]  ;;  %v12816_v40 = vld [vmem:[#allocation85_spill] sm:$0xff] }
 0x2cd   : > { %2291 = vmatpush.msra.mxu2 %v2121_v30  ;;  %v1922_v8 = vadd.f32 %v1799_v12, %v1606_v58  ;;  %v2115_v10 = vmax.f32 %v9232_v13, 0.0  ;;  %v1259_v15 = vadd.f32 %v12815_v47, %v12814_v5  ;;  %v1914_v45 = vadd.f32 %v9077_v39, %v1598_v6  ;;  %v12818_v39 = vld [vmem:[#allocation16_spill] sm:$0xff]  ;;  %v12819_v12 = vld [vmem:[#allocation34_spill] sm:$0xff]  ;;  %v12822_v6 = vld [vmem:[#allocation15_spill] sm:$0xff] }
 0x2ce   : > { %v2086_v43 = vadd.f32 %v9114_v31, %v1918_v2  ;;  %v1577_v16 = vadd.f32 %v12816_v40, %v9167_v1  ;;  %v1895_v54 = vadd.f32 %v12817_v46, %v1579_v57  ;;  %v9274_v17 = vadd.f32 %v9023_v62, %v1899_v35  ;;  %v12820_v2 = vld [vmem:[#allocation82_spill] sm:$0xff]  ;;  %v9294_v35 = vpop.permute.xlu1 %2027  ;;  %v12824_v57 = vld [vmem:[#allocation79_spill] sm:$0xff]  ;;  %v12825_v5 = vld [vmem:[#allocation92_spill] sm:$0xff] }
 0x2cf   : > { %2292 = vmatpush.msra.mxu2 %v2119_v60  ;;  %v2090_v0 = vadd.f32 %v9094_v44, %v1922_v8  ;;  %v2113_v19 = vmax.f32 %v9244_v4, 0.0  ;;  %v1257_v49 = vadd.f32 %v12819_v12, %v12818_v39  ;;  %v2084_v1 = vadd.f32 %v9276_v51, %v1916_v7  ;;  %v12823_v7 = vld [vmem:[#allocation32_spill] sm:$0xff] }
 0x2d0   : > { %v2130_v62 = vmax.f32 %v2088_v27, 0.0  ;;  %v1575_v8 = vadd.f32 %v12820_v2, %v1259_v15  ;;  %v1893_v14 = vadd.f32 %v12821_v32, %v1577_v16  ;;  %v9292_v42 = vadd.f32 %v12748_v41, %v1897_v20  ;;  %v12826_v15 = vld [vmem:[#allocation14_spill] sm:$0xff]  ;;  %v12832_v32 = vld [vmem:[#allocation71_spill] sm:$0xff] }
 0x2d1   : > { %2293 = vmatpush.msra.mxu2 %v2117_v21  ;;  %v2132_v58 = vmax.f32 %v2090_v0, 0.0  ;;  %v2111_v63 = vmax.f32 %v9261_v22, 0.0  ;;  %v1255_v0 = vadd.f32 %v12823_v7, %v12822_v6  ;;  %v2082_v9 = vadd.f32 %v9294_v35, %v1914_v45  ;;  %v12828_v16 = vld [vmem:[#allocation74_spill] sm:$0xff] }
 0x2d2   : > { %2465 = vmatmul.f32.gmra.mxu0 %v9256_v52  ;;  %v2128_v27 = vmax.f32 %v2086_v43, 0.0  ;;  %v1573_v33 = vadd.f32 %v12824_v57, %v1257_v49  ;;  %v1891_v41 = vadd.f32 %v12825_v5, %v1575_v8  ;;  %v9305_v20 = vadd.f32 %v9057_v50, %v1895_v54  ;;  %v9315_v43 = vld [vmem:[%s12613_s3 + $0xd0] sm:$0xff]  ;;  %v12829_v50 = vld [vmem:[#allocation90_spill] sm:$0xff]  ;;  %v12830_v49 = vld [vmem:[#allocation13_spill] sm:$0xff] }
 0x2d3   : > { %2294 = vmatpush.msra.mxu2 %v2115_v10  ;;  %v9287_v3 = vpop.f32.mrf.mxu1  ;;  %2251 = vmatpush.msrb.mxu3 %v2132_v58  ;;  %v2109_v47 = vmax.f32 %v9274_v17, 0.0  ;;  %v2126_v45 = vmax.f32 %v2084_v1, 0.0  ;;  %v1571_v46 = vadd.f32 %v12828_v16, %v1255_v0  ;;  %v9320_v39 = vadd.f32 %v9043_v24, %v1893_v14  ;;  %v9330_v8 = vld [vmem:[%s12613_s3 + $0x8] sm:$0xff]  ;;  %v12833_v14 = vld [vmem:[#allocation89_spill] sm:$0xff]  ;;  %v12835_v5 = vld [vmem:[#allocation86_spill] sm:$0xff] }
 0x2d4   : > { %2507 = vmatpush.msrb.mxu1 %v2132_v58  ;;  %v12827_v58 = vld [vmem:[#allocation30_spill] sm:$0xff]  ;;  %v1889_v54 = vadd.f32 %v12829_v50, %v1573_v33  ;;  %v2107_v12 = vmax.f32 %v9292_v42, 0.0  ;;  %v2124_v2 = vmax.f32 %v2082_v9, 0.0  ;;  %v9335_v7 = vadd.f32 %v9059_v25, %v1891_v41  ;;  %v9343_v9 = vld [vmem:[%s12613_s3 + $0x10] sm:$0xff]  ;;  %v12834_v25 = vld [vmem:[#allocation67_spill] sm:$0xff] }
 0x2d5   : > { %2295 = vmatpush.msra.mxu2 %v2113_v19  ;;  %2252 = vmatpush.msrb.mxu3 %v2130_v62  ;;  %v1253_v40 = vadd.f32 %v12827_v58, %v12826_v15  ;;  %v1887_v6 = vadd.f32 %v12833_v14, %v1571_v46  ;;  %v12629_v0 = vmax.f32 %v9305_v20, 0.0  ;;  %v12628_v58 = vmax.f32 %v9320_v39, 0.0  ;;  %v9374_v50 = vld [vmem:[%s12613_s3 + $0xe0] sm:$0xff]  ;;  %v12838_v14 = vld [vmem:[#allocation57_spill] sm:$0xff] }
 0x2d6   : > { %2508 = vmatpush.msrb.mxu1 %v2130_v62  ;;  %v12831_v62 = vld [vmem:[#allocation28_spill] sm:$0xff]  ;;  %v9354_v15 = vadd.f32 %v9075_v36, %v1889_v54  ;;  %2209 = vmatmul.f32.gmra.mxu2 %v9343_v9  ;;  %v12627_v36 = vmax.f32 %v9335_v7, 0.0  ;;  %v12850_v17 = vmax.f32 %v9305_v20, 0.0  ;;  %v12851_v42 = vmax.f32 %v9320_v39, 0.0 }
 0x2d7   : > { %2296 = vmatpush.msra.mxu2 %v2111_v63  ;;  %2253 = vmatpush.msrb.mxu3 %v2128_v27  ;;  %v1251_v1 = vadd.f32 %v12831_v62, %v12830_v49  ;;  %v1569_v24 = vadd.f32 %v12832_v32, %v1253_v40  ;;  %v1560_v40 = vpop.f32.mrf.mxu3  ;;  %v9366_v46 = vadd.f32 %v9129_v37, %v1887_v6  ;;  %v9385_v37 = vld [vmem:[%s12613_s3 + $0x18] sm:$0xff] }
 0x2d8   : > { %2509 = vmatpush.msrb.mxu1 %v2128_v27  ;;  %v9348_v27 = vld [vmem:[%s12613_s3 + $0xb8] sm:$0xff]  ;;  %v12626_v49 = vmax.f32 %v9354_v15, 0.0  ;;  %v12853_v20 = vmax.f32 %v9354_v15, 0.0  ;;  %v9573_v15 = vld [vmem:[%s12613_s3 + $0x130] sm:$0xff] }
 0x2d9   : > { %2297 = vmatpush.msra.mxu2 %v2109_v47  ;;  %2254 = vmatpush.msrb.mxu3 %v2126_v45  ;;  %v1567_v33 = vadd.f32 %v12834_v25, %v1251_v1  ;;  %v1885_v41 = vadd.f32 %v12835_v5, %v1569_v24  ;;  %v12625_v1 = vmax.f32 %v9366_v46, 0.0  ;;  %v12837_v24 = vld [vmem:[#allocation3_spill] sm:$0xff]  ;;  %v12839_v25 = vld [vmem:[#allocation4_spill] sm:$0xff]  ;;  %v12854_v39 = vmax.f32 %v9366_v46, 0.0 }
 0x2da   : > { %2510 = vmatpush.msrb.mxu1 %v2126_v45  ;;  %2468 = vmatmul.f32.gmra.mxu0 %v9315_v43  ;;  %v12836_v45 = vld [vmem:[#allocation83_spill] sm:$0xff]  ;;  %v971_v6 = vadd.f32 %v12838_v14, %v12837_v24  ;;  %v9425_v24 = vld [vmem:[%s12613_s3 + $0xf0] sm:$0xff] }
 0x2db   : > { %2298 = vmatpush.msra.mxu2 %v2107_v12  ;;  %v1873_v57 = vpop.f32.mrf.mxu1  ;;  %2255 = vmatpush.msrb.mxu3 %v2124_v2  ;;  %v1883_v16 = vadd.f32 %v12836_v45, %v1567_v33  ;;  %v9377_v54 = vadd.f32 %v9138_v18, %v1885_v41  ;;  %v9396_v18 = vld [vmem:[%s12613_s3 + $0x20] sm:$0xff]  ;;  %v12840_v33 = vld [vmem:[#allocation63_spill] sm:$0xff]  ;;  %v12844_v14 = vld [vmem:[#allocation80_spill] sm:$0xff] }
 0x2dc   : > { %2511 = vmatpush.msrb.mxu1 %v2124_v2  ;;  %6734 = vmatmul.msk.f32.vlgmr.msrb.gmra.mxu3 %vm2156_vm5, %v9330_v8  ;;  %v9401_v2 = vld [vmem:[%s12613_s3 + $0xc8] sm:$0xff]  ;;  %v974_v5 = vadd.f32 %v12840_v33, %v12839_v25  ;;  %v12841_v45 = vld [vmem:[#allocation2_spill] sm:$0xff] }
 0x2dd   : > { %2299 = vmatpush.msra.mxu2 %v12629_v0  ;;  %6778 = vmatmul.msk.f32.vlgmr.msrb.gmra.mxu1 %vm2156_vm5, %v9348_v27  ;;  %v9388_v62 = vadd.f32 %v9154_v55, %v1883_v16  ;;  %v12630_v55 = vmax.f32 %v9377_v54, 0.0  ;;  %v12842_v16 = vld [vmem:[#allocation53_spill] sm:$0xff]  ;;  %v12845_v25 = vld [vmem:[#allocation75_spill] sm:$0xff] }
 0x2de   : > { %2212 = vmatmul.f32.gmra.mxu2 %v9396_v18  ;;  %v1291_v0 = vadd.f32 %v12844_v14, %v974_v5  ;;  %v12846_v5 = vld [vmem:[#allocation43_spill] sm:$0xff]  ;;  %v12849_v14 = vld [vmem:[#allocation68_spill] sm:$0xff] }
 0x2df   : > { %2300 = vmatpush.msra.mxu2 %v12628_v58  ;;  %v2093_v41 = vmax.f32 %v9388_v62, 0.0  ;;  %v1563_v58 = vpop.f32.mrf.mxu3  ;;  %v2147_v46 = vld [vmem:[%s12613_s3 + $0x68] sm:$0xff]  ;;  %v9585_v62 = vld [vmem:[%s12613_s3 + $0x118] sm:$0xff] }
 0x2e1   : > { %2301 = vmatpush.msra.mxu2 %v12627_v36 }
 0x2e2   : > { %2471 = vmatmul.f32.gmra.mxu0 %v9374_v50 }
 0x2e3   : > { %2302 = vmatpush.msra.mxu2 %v12626_v49  ;;  %v1876_v32 = vpop.f32.mrf.mxu1  ;;  %v12843_v49 = vld [vmem:[#allocation77_spill] sm:$0xff] }
 0x2e4   : > { %6735 = vmatmul.msk.f32.gmra.mxu3 %vm2156_vm5, %v9385_v37  ;;  %v1289_v36 = vadd.f32 %v12843_v49, %v971_v6  ;;  %v9436_v49 = vld [vmem:[%s12613_s3 + $0x28] sm:$0xff]  ;;  %v1607_v6 = vadd.f32 %v1563_v58, %v1291_v0  ;;  %v9452_v0 = vld [vmem:[%s12613_s3 + $0x30] sm:$0xff] }
 0x2e5   : > { %2303 = vmatpush.msra.mxu2 %v12625_v1  ;;  %6779 = vmatmul.msk.f32.gmra.mxu1 %vm2156_vm5, %v9401_v2  ;;  %v968_v1 = vadd.f32 %v12842_v16, %v12841_v45  ;;  %v9441_v45 = vld [vmem:[%s12613_s3 + $0xd8] sm:$0xff]  ;;  %v12847_v16 = vld [vmem:[#allocation72_spill] sm:$0xff] }
 0x2e6   : > { %2215 = vmatmul.f32.gmra.mxu2 %v9452_v0 }
 0x2e7   : > { %2304 = vmatpush.msra.mxu2 %v12630_v55  ;;  %v1287_v33 = vadd.f32 %v12845_v25, %v968_v1  ;;  %v1605_v55 = vadd.f32 %v1560_v40, %v1289_v36  ;;  %v1285_v1 = vadd.f32 %v12847_v16, %v12846_v5  ;;  %v12848_v36 = vld [vmem:[#allocation40_spill] sm:$0xff]  ;;  %v9605_v16 = vld [vmem:[%s12613_s3 + $0x128] sm:$0xff] }
 0x2e8   : > { %v1283_v25 = vadd.f32 %v12849_v14, %v12848_v36  ;;  %v2154_v36 = vld [vmem:[%s12613_s3 + $0xa0] sm:$0xf]  ;;  %v9639_v14 = vld [vmem:[%s12613_s3 + $0x148] sm:$0xff] }
 0x2e9   : > { %2305 = vmatpush.msra.mxu2 %v2093_v41  ;;  %v1603_v40 = vadd.f32 %v9284_v53, %v1287_v33  ;;  %v1921_v34 = vadd.f32 %v1876_v32, %v1605_v55  ;;  %v1601_v5 = vadd.f32 %v9213_v38, %v1285_v1  ;;  %v2149_v33 = vld [vmem:[%s12613_s3 + $0x78] sm:$0xff]  ;;  %v9613_v1 = vld [vmem:[%s12613_s3 + $0x150] sm:$0xf] }
 0x2ea   : > { %2474 = vmatmul.f32.gmra.mxu0 %v9425_v24 }
 0x2eb   : > { %2546 = vmatpush.msrb.mxu2 %v2123_v26  ;;  %v1879_v26 = vpop.f32.mrf.mxu1  ;;  %v1919_v53 = vadd.f32 %v1873_v57, %v1603_v40  ;;  %v1917_v32 = vadd.f32 %v9287_v3, %v1601_v5  ;;  %v2089_v55 = vadd.f32 %v9097_v28, %v1921_v34  ;;  %v9482_v28 = vld [vmem:[%s12613_s3 + $0x38] sm:$0xff]  ;;  %v12855_v57 = vmax.f32 %v9377_v54, 0.0  ;;  %v2148_v54 = vld [vmem:[%s12613_s3 + $0x70] sm:$0xff]  ;;  %v2151_v40 = vld [vmem:[%s12613_s3 + $0x88] sm:$0xff] }
 0x2ec   : > { %v1923_v58 = vadd.f32 %v1879_v26, %v1607_v6  ;;  %6736 = vmatmul.msk.f32.gmra.mxu3 %vm2156_vm5, %v9436_v49  ;;  %v9531_v3 = vld [vmem:[%s12613_s3 + $0xf8] sm:$0xff]  ;;  %v2150_v6 = vld [vmem:[%s12613_s3 + $0x80] sm:$0xff]  ;;  %v2152_v34 = vld [vmem:[%s12613_s3 + $0x90] sm:$0xff] }
 0x2ed   : > { %2547 = vmatpush.msrb.mxu2 %v2121_v30  ;;  %6780 = vmatmul.msk.f32.gmra.mxu1 %vm2156_vm5, %v9441_v45  ;;  %v1599_v30 = vadd.f32 %v9146_v11, %v1283_v25  ;;  %v2085_v11 = vadd.f32 %v9276_v51, %v1917_v32  ;;  %v2131_v61 = vmax.f32 %v2089_v55, 0.0  ;;  %v9518_v51 = vld [vmem:[%s12613_s3 + $0x48] sm:$0xff]  ;;  %v9625_v26 = vld [vmem:[%s12613_s3 + $0x138] sm:$0xff] }
 0x2ee   : > { %v2091_v59 = vadd.f32 %v9094_v44, %v1923_v58  ;;  %v2087_v44 = vadd.f32 %v9114_v31, %v1919_v53  ;;  %v9491_v31 = vld [vmem:[%s12613_s3 + $0x40] sm:$0xff]  ;;  %v2153_v58 = vld [vmem:[%s12613_s3 + $0x98] sm:$0xff]  ;;  %v2155_v25 = vld [vmem:[%s12613_s3 + $0xa8] sm:$0xf] }
 0x2ef   : > { %2548 = vmatpush.msrb.mxu2 %v2119_v60  ;;  %v1915_v60 = vadd.f32 %v9226_v56, %v1599_v30  ;;  %v9496_v56 = vld [vmem:[%s12613_s3 + $0xe8] sm:$0xff]  ;;  %v9650_v5 = vld [vmem:[%s12613_s3 + $0x158] sm:$0xf] }
 0x2f0   : > { %v2133_v38 = vmax.f32 %v2091_v59, 0.0  ;;  %v2129_v4 = vmax.f32 %v2087_v44, 0.0  ;;  %2218 = vmatmul.f32.gmra.mxu2 %v9491_v31 }
 0x2f1   : > { %2549 = vmatpush.msrb.mxu2 %v2117_v21  ;;  %v2083_v13 = vadd.f32 %v9294_v35, %v1915_v60  ;;  %v2127_v21 = vmax.f32 %v2085_v11, 0.0  ;;  %v12852_v35 = vmax.f32 %v9335_v7, 0.0  ;;  %v9561_v7 = vld [vmem:[%s12613_s3 + $0x108] sm:$0xff] }
 0x2f2   : > { %2351 = vmatpush.msra.mxu3 %v2133_v38  ;;  %2477 = vmatmul.f32.gmra.mxu0 %v9473_v23 }
 0x2f3   : > { %2550 = vmatpush.msrb.mxu2 %v2115_v10  ;;  %v9511_v10 = vld [vmem:[%s12613_s3 + $0x110] sm:$0xff]  ;;  %v2125_v22 = vmax.f32 %v2083_v13, 0.0 }
 0x2f4   : > { %6737 = vmatmul.msk.f32.gmra.mxu3 %vm2156_vm5, %v9482_v28 }
 0x2f5   : > { %2551 = vmatpush.msrb.mxu2 %v2113_v19  ;;  %2352 = vmatpush.msra.mxu3 %v2131_v61  ;;  %v9526_v19 = vld [vmem:[%s12613_s3 + $0x50] sm:$0xff] }
 0x2f6   : > { %6781 = vmatmul.msk.f32.gmra.mxu1 %vm2156_vm5, %v9496_v56 }
 0x2f7   : > { %2552 = vmatpush.msrb.mxu2 %v2111_v63  ;;  %2353 = vmatpush.msra.mxu3 %v2129_v4  ;;  %v9545_v63 = vld [vmem:[%s12613_s3 + $0x120] sm:$0xff] }
 0x2f8   : > { %2221 = vmatmul.f32.gmra.mxu2 %v9526_v19 }
 0x2f9   : > { %2553 = vmatpush.msrb.mxu2 %v2109_v47  ;;  %2354 = vmatpush.msra.mxu3 %v2127_v21  ;;  %v2145_v47 = vld [vmem:[%s12613_s3 + $0x58] sm:$0xff] }
 0x2fa   : > { %2480 = vmatmul.f32.gmra.mxu0 %v9511_v10 }
 0x2fb   : > { %2554 = vmatpush.msrb.mxu2 %v2107_v12  ;;  %2355 = vmatpush.msra.mxu3 %v2125_v22  ;;  %v2146_v12 = vld [vmem:[%s12613_s3 + $0x60] sm:$0xff] }
 0x2fc   : > { %6738 = vmatmul.msk.f32.gmra.mxu3 %vm2156_vm5, %v9518_v51 }
 0x2fd   : > { %2555 = vmatpush.msrb.mxu2 %v12850_v17  ;;  %2607 = vmatpush.msrb.mxu3 %v2133_v38 }
 0x2fe   : > { %6782 = vmatmul.msk.f32.gmra.mxu1 %vm2156_vm5, %v9531_v3 }
 0x2ff   : > { %2556 = vmatpush.msrb.mxu2 %v12851_v42  ;;  %2608 = vmatpush.msrb.mxu3 %v2131_v61 }
 0x300   : > { %2224 = vmatmul.f32.gmra.mxu2 %v2146_v12 }
 0x301   : > { %2557 = vmatpush.msrb.mxu2 %v12852_v35  ;;  %2609 = vmatpush.msrb.mxu3 %v2129_v4 }
 0x302   : > { %2483 = vmatmul.f32.gmra.mxu0 %v9545_v63 }
 0x303   : > { %2558 = vmatpush.msrb.mxu2 %v12853_v20  ;;  %2610 = vmatpush.msrb.mxu3 %v2127_v21 }
 0x304   : > { %6739 = vmatmul.msk.f32.gmra.mxu3 %vm2156_vm5, %v2145_v47 }
 0x305   : > { %2559 = vmatpush.msrb.mxu2 %v12854_v39  ;;  %2611 = vmatpush.msrb.mxu3 %v2125_v22 }
 0x306   : > { %6783 = vmatmul.msk.f32.gmra.mxu1 %vm2156_vm5, %v9561_v7 }
 0x307   : > { %2560 = vmatpush.msrb.mxu2 %v12855_v57 }
 0x308   : > { %2227 = vmatmul.f32.gmra.mxu2 %v2148_v54 }
 0x309   : > { %2561 = vmatpush.msrb.mxu2 %v2093_v41  ;;  %v9593_v41 = vld [vmem:[%s12613_s3 + $0x140] sm:$0xff] }
 0x30a   : > { %2486 = vmatmul.f32.gmra.mxu0 %v9573_v15 }
 0x30c   : > { %6740 = vmatmul.msk.f32.gmra.mxu3 %vm2156_vm5, %v2147_v46 }
 0x30e   : > { %6784 = vmatmul.msk.f32.gmra.mxu1 %vm2156_vm5, %v9585_v62 }
 0x310   : > { %2230 = vmatmul.f32.gmra.mxu2 %v2150_v6 }
 0x312   : > { %2489 = vmatmul.f32.gmra.mxu0 %v9593_v41 }
 0x314   : > { %6741 = vmatmul.msk.f32.gmra.mxu3 %vm2156_vm5, %v2149_v33 }
 0x316   : > { %6785 = vmatmul.msk.f32.gmra.mxu1 %vm2156_vm5, %v9605_v16 }
 0x318   : > { %2233 = vmatmul.f32.gmra.mxu2 %v2152_v34 }
 0x31a   : > { %2492 = vmatmul.f32.gmra.mxu0 %v9613_v1 }
 0x31c   : > { %6742 = vmatmul.msk.f32.gmra.mxu3 %vm2156_vm5, %v2151_v40 }
 0x31e   : > { %6786 = vmatmul.msk.f32.gmra.mxu1 %vm2156_vm5, %v9625_v26 }
 0x320   : > { %2236 = vmatmul.f32.gmra.mxu2 %v2154_v36 }
 0x324   : > { %6743 = vmatmul.msk.f32.gmra.mxu3 %vm2156_vm5, %v2153_v58 }
 0x326   : > { %6787 = vmatmul.msk.f32.gmra.mxu1 %vm2156_vm5, %v9639_v14 }
 0x328   : > { %2306 = vmatmul.f32.vlgmr.msra.gmra.mxu2 %v9209_v29 }
 0x32c   : > { %6744 = vmatmul.msk.f32.gmra.mxu3 %vm2156_vm5, %v2155_v25 }
 0x32e   : > { %6788 = vmatmul.msk.f32.gmra.mxu1 %vm2156_vm5, %v9650_v5 }
 0x330   : > { %2309 = vmatmul.f32.gmra.mxu2 %v9343_v9 }
 0x334   : > { %6745 = vmatmul.msk.f32.vlgmr.msra.gmra.mxu3 %vm2156_vm5, %v9330_v8 }
 0x338   : > { %2312 = vmatmul.f32.gmra.mxu2 %v9396_v18 }
 0x33c   : > { %6746 = vmatmul.msk.f32.gmra.mxu3 %vm2156_vm5, %v9385_v37 }
 0x340   : > { %2315 = vmatmul.f32.gmra.mxu2 %v9452_v0 }
 0x344   : > { %6747 = vmatmul.msk.f32.gmra.mxu3 %vm2156_vm5, %v9436_v49 }
 0x347   : > { %v9665_v53 = vpop.f32.mrf.mxu0 }
 0x348   : > { %12856 = vst [vmem:[#allocation26_spill] sm:$0xff] %v9665_v53  ;;  %2318 = vmatmul.f32.gmra.mxu2 %v9491_v31 }
 0x34c   : > { %6748 = vmatmul.msk.f32.gmra.mxu3 %vm2156_vm5, %v9482_v28 }
 0x34d   : > { %v2207_v8 = vpop.f32.mrf.mxu2 }
 0x34f   : > { %v9670_v29 = vpop.f32.mrf.mxu0 }
 0x350   : > { %12857 = vst [vmem:[#allocation70_spill] sm:$0xff] %v9670_v29  ;;  %2321 = vmatmul.f32.gmra.mxu2 %v9526_v19 }
 0x354   : > { %6749 = vmatmul.msk.f32.gmra.mxu3 %vm2156_vm5, %v9518_v51 }
 0x357   : > { %v9677_v37 = vpop.f32.mrf.mxu0 }
 0x358   : > { %2324 = vmatmul.f32.gmra.mxu2 %v2146_v12 }
 0x359   : > { %v2210_v0 = vpop.f32.mrf.mxu2 }
 0x35a   : > { %v9675_v9 = vpop.f32.mrf.mxu1 }
 0x35b   : > { %12858 = vst [vmem:[#allocation87_spill] sm:$0xff] %v9675_v9 }
 0x35c   : > { %6750 = vmatmul.msk.f32.gmra.mxu3 %vm2156_vm5, %v2145_v47 }
 0x35f   : > { %v2257_v18 = vpop.f32.mrf.mxu3  ;;  %v9685_v30 = vpop.f32.mrf.mxu0 }
 0x360   : > { %v9680_v49 = vadd.f32 %v2257_v18, %v2207_v8  ;;  %2327 = vmatmul.f32.gmra.mxu2 %v2148_v54 }
 0x361   : > { %v2213_v38 = vpop.f32.mrf.mxu2 }
 0x362   : > { %12859 = vst [vmem:[#allocation104_spill] sm:$0xff] %v9680_v49  ;;  %v9682_v59 = vpop.f32.mrf.mxu1 }
 0x363   : > { %12860 = vst [vmem:[#allocation10_spill] sm:$0xff] %v9682_v59 }
 0x364   : > { %6751 = vmatmul.msk.f32.gmra.mxu3 %vm2156_vm5, %v2147_v46 }
 0x367   : > { %v2260_v32 = vpop.f32.mrf.mxu3  ;;  %v9694_v11 = vpop.f32.mrf.mxu0 }
 0x368   : > { %v9687_v55 = vadd.f32 %v2260_v32, %v2210_v0  ;;  %2330 = vmatmul.f32.gmra.mxu2 %v2150_v6 }
 0x369   : > { %v2216_v61 = vpop.f32.mrf.mxu2 }
 0x36a   : > { %12861 = vst [vmem:[#allocation24_spill] sm:$0xff] %v9687_v55  ;;  %v9689_v60 = vpop.f32.mrf.mxu1 }
 0x36c   : > { %6752 = vmatmul.msk.f32.gmra.mxu3 %vm2156_vm5, %v2149_v33 }
 0x36f   : > { %v2263_v44 = vpop.f32.mrf.mxu3  ;;  %v9701_v22 = vpop.f32.mrf.mxu0 }
 0x370   : > { %v9692_v28 = vadd.f32 %v2263_v44, %v2213_v38  ;;  %2333 = vmatmul.f32.gmra.mxu2 %v2152_v34 }
 0x373   : > { %v9696_v31 = vpop.f32.mrf.mxu1  ;;  %v2219_v21 = vpop.f32.mrf.mxu2 }
 0x374   : > { %6753 = vmatmul.msk.f32.gmra.mxu3 %vm2156_vm5, %v2151_v40 }
 0x377   : > { %v2266_v13 = vpop.f32.mrf.mxu3  ;;  %v9710_v20 = vpop.f32.mrf.mxu0 }
 0x378   : > { %v9699_v4 = vadd.f32 %v2266_v13, %v2216_v61  ;;  %2336 = vmatmul.f32.gmra.mxu2 %v2154_v36 }
 0x37b   : > { %v9703_v51 = vpop.f32.mrf.mxu1  ;;  %v2222_v42 = vpop.f32.mrf.mxu2 }
 0x37c   : > { %6754 = vmatmul.msk.f32.gmra.mxu3 %vm2156_vm5, %v2153_v58 }
 0x37f   : > { %v2269_v17 = vpop.f32.mrf.mxu3  ;;  %v9721_v46 = vpop.f32.mrf.mxu0 }
 0x380   : > { %v9706_v19 = vadd.f32 %v2269_v17, %v2219_v21  ;;  %2562 = vmatmul.f32.vlgmr.msrb.gmra.mxu2 %v9198_v48 }
 0x382   : > { %12862 = vst [vmem:[#allocation66_spill] sm:$0xff] %v9706_v19 }
 0x383   : > { %v9708_v35 = vpop.f32.mrf.mxu1  ;;  %v2225_v12 = vpop.f32.mrf.mxu2 }
 0x384   : > { %6755 = vmatmul.msk.f32.gmra.mxu3 %vm2156_vm5, %v2155_v25 }
 0x387   : > { %v2272_v47 = vpop.f32.mrf.mxu3  ;;  %v9730_v34 = vpop.f32.mrf.mxu0 }
 0x388   : > { %v9714_v39 = vadd.f32 %v2272_v47, %v2222_v42  ;;  %2565 = vmatmul.f32.gmra.mxu2 %v9256_v52 }
 0x38b   : > { %v9716_v57 = vpop.f32.mrf.mxu1  ;;  %v2228_v6 = vpop.f32.mrf.mxu2 }
 0x38c   : > { %6789 = vmatmul.msk.f32.vlgmr.msrb.gmra.mxu3 %vm2156_vm5, %v9348_v27 }
 0x38f   : > { %v2275_v54 = vpop.f32.mrf.mxu3 }
 0x390   : > { %v9723_v33 = vadd.f32 %v2275_v54, %v2225_v12  ;;  %2568 = vmatmul.f32.gmra.mxu2 %v9315_v43 }
 0x393   : > { %v9725_v40 = vpop.f32.mrf.mxu1  ;;  %v2231_v27 = vpop.f32.mrf.mxu2 }
 0x394   : > { %6790 = vmatmul.msk.f32.gmra.mxu3 %vm2156_vm5, %v9401_v2  ;;  %v9743_v2 = vpop.f32.mrf.mxu0 }
 0x397   : > { %v2278_v48 = vpop.f32.mrf.mxu3 }
 0x398   : > { %v9732_v58 = vadd.f32 %v2278_v48, %v2228_v6  ;;  %2571 = vmatmul.f32.gmra.mxu2 %v9374_v50 }
 0x39b   : > { %v9734_v52 = vpop.f32.mrf.mxu1  ;;  %v9741_v8 = vpop.f32.mrf.mxu2 }
 0x39c   : > { %6791 = vmatmul.msk.f32.gmra.mxu3 %vm2156_vm5, %v9441_v45  ;;  %v2493_v45 = vpop.f32.mrf.mxu0 }
 0x39f   : > { %v2281_v36 = vpop.f32.mrf.mxu3 }
 0x3a0   : > { %v9739_v25 = vadd.f32 %v2281_v36, %v2231_v27  ;;  %2574 = vmatmul.f32.gmra.mxu2 %v9425_v24 }
 0x3a3   : > { %v9745_v43 = vpop.f32.mrf.mxu1  ;;  %v2237_v0 = vpop.f32.mrf.mxu2 }
 0x3a4   : > { %6792 = vmatmul.msk.f32.gmra.mxu3 %vm2156_vm5, %v9496_v56 }
 0x3a7   : > { %v9750_v18 = vpop.f32.mrf.mxu3 }
 0x3a8   : > { %2577 = vmatmul.f32.gmra.mxu2 %v9473_v23 }
 0x3ab   : > { %v2543_v32 = vpop.f32.mrf.mxu1  ;;  %v9755_v61 = vpop.f32.mrf.mxu2 }
 0x3ac   : > { %6793 = vmatmul.msk.f32.gmra.mxu3 %vm2156_vm5, %v9531_v3  ;;  %v2544_v50 = vadd.f32 %v2543_v32, %v2493_v45  ;;  %12863 = vst [vmem:[#allocation84_spill] sm:$0xff] %v9755_v61 }
 0x3af   : > { %v2287_v38 = vpop.f32.mrf.mxu3 }
 0x3b0   : > { %v2288_v44 = vadd.f32 %v2287_v38, %v2237_v0  ;;  %2580 = vmatmul.f32.gmra.mxu2 %v9511_v10 }
 0x3b2   : > { %v9757_v13 = vmax.f32 %v2288_v44, %v2544_v50 }
 0x3b3   : > { %v9766_v56 = vpop.f32.mrf.mxu2 }
 0x3b4   : > { %12864 = vst [vmem:[#allocation8_spill] sm:$0xff] %v9757_v13  ;;  %6794 = vmatmul.msk.f32.gmra.mxu3 %vm2156_vm5, %v9561_v7  ;;  %2730 = vrot.lane.b32.xlu2 %v9757_v13, %s7799_s14 }
 0x3b5   : > { %12866 = vst [vmem:[#allocation61_spill] sm:$0xff] %v9766_v56 }
 0x3b7   : > { %v9764_v24 = vpop.f32.mrf.mxu3 }
 0x3b8   : > { %12865 = vst [vmem:[#allocation22_spill] sm:$0xff] %v9764_v24  ;;  %2583 = vmatmul.f32.gmra.mxu2 %v9545_v63 }
 0x3bb   : > { %v9773_v3 = vpop.f32.mrf.mxu2 }
 0x3bc   : > { %6795 = vmatmul.msk.f32.gmra.mxu3 %vm2156_vm5, %v9585_v62 }
 0x3bf   : > { %v9771_v23 = vpop.f32.mrf.mxu3 }
 0x3c0   : > { %12867 = vst [vmem:[#allocation81_spill] sm:$0xff] %v9771_v23  ;;  %2586 = vmatmul.f32.gmra.mxu2 %v9573_v15 }
 0x3c3   : > { %v9780_v10 = vpop.f32.mrf.mxu2 }
 0x3c4   : > { %6796 = vmatmul.msk.f32.gmra.mxu3 %vm2156_vm5, %v9605_v16 }
 0x3c7   : > { %v9778_v7 = vpop.f32.mrf.mxu3 }
 0x3c8   : > { %2589 = vmatmul.f32.gmra.mxu2 %v9593_v41 }
 0x3cb   : > { %v9787_v63 = vpop.f32.mrf.mxu2 }
 0x3cc   : > { %6797 = vmatmul.msk.f32.gmra.mxu3 %vm2156_vm5, %v9625_v26  ;;  %12868 = vst [vmem:[#allocation6_spill] sm:$0xff] %v9787_v63  ;;  %v2285_v63 = vadd.f32 %v9750_v18, %v9741_v8  ;;  %v2520_v18 = vadd.f32 %v9689_v60, %v9677_v37 }
 0x3ce   : > { %v9854_v37 = vmax.f32 %v9692_v28, %v2520_v18 }
 0x3cf   : > { %v9785_v62 = vpop.f32.mrf.mxu3 }
 0x3d0   : > { %2592 = vmatmul.f32.gmra.mxu2 %v9613_v1 }
 0x3d3   : > { %v2322_v15 = vpop.f32.mrf.mxu2 }
 0x3d4   : > { %6798 = vmatmul.msk.f32.gmra.mxu3 %vm2156_vm5, %v9639_v14 }
 0x3d7   : > { %v9792_v16 = vpop.f32.mrf.mxu3 }
 0x3d8   : > { %12869 = vst [vmem:[#allocation20_spill] sm:$0xff] %v9792_v16  ;;  %v2529_v16 = vadd.f32 %v9708_v35, %v9701_v22 }
 0x3db   : > { %v2325_v17 = vpop.f32.mrf.mxu2 }
 0x3dc   : > { %6799 = vmatmul.msk.f32.gmra.mxu3 %vm2156_vm5, %v9650_v5 }
 0x3df   : > { %v2372_v21 = vpop.f32.mrf.mxu3 }
 0x3e3   : > { %v9796_v42 = vpop.f32.mrf.mxu2 }
 0x3e7   : > { %v2375_v26 = vpop.f32.mrf.mxu3 }
 0x3eb   : > { %v2331_v47 = vpop.f32.mrf.mxu2 }
 0x3ef   : > { %v9798_v41 = vpop.f32.mrf.mxu3 }
 0x3f3   : > { %v2334_v54 = vpop.f32.mrf.mxu2 }
 0x3f7   : > { %v2381_v12 = vpop.f32.mrf.mxu3 }
 0x3fb   : > { %v2337_v14 = vpop.f32.mrf.mxu2 }
 0x3ff   : > { %v2384_v6 = vpop.f32.mrf.mxu3 }
 0x403   : > { %v9800_v1 = vpop.f32.mrf.mxu2 }
 0x404   : > { %12870 = vst [vmem:[#allocation56_spill] sm:$0xff] %v9800_v1 }
 0x407   : > { %v2387_v48 = vpop.f32.mrf.mxu3 }
 0x40b   : > { %v9804_v36 = vpop.f32.mrf.mxu2 }
 0x40c   : > { %12872 = vst [vmem:[#allocation52_spill] sm:$0xff] %v9804_v36  ;;  %v2538_v36 = vadd.f32 %v9734_v52, %v9730_v34  ;;  %v2541_v34 = vadd.f32 %v9745_v43, %v9743_v2  ;;  %v2385_v52 = vadd.f32 %v2384_v6, %v2334_v54  ;;  %v12876_v54 = vld [vmem:[#allocation56_spill] sm:$0xff] }
 0x40e   : > { %v9815_v61 = vmax.f32 %v9739_v25, %v2538_v36  ;;  %v12881_v36 = vld [vmem:[#allocation22_spill] sm:$0xff] }
 0x40f   : > { %v9802_v27 = vpop.f32.mrf.mxu3 }
 0x410   : > { %12871 = vst [vmem:[#allocation78_spill] sm:$0xff] %v9802_v27 }
 0x413   : > { %v2569_v0 = vpop.f32.mrf.mxu2 }
 0x417   : > { %v9806_v5 = vpop.f32.mrf.mxu3 }
 0x418   : > { %12873 = vst [vmem:[#allocation76_spill] sm:$0xff] %v9806_v5  ;;  %v2382_v5 = vadd.f32 %v2381_v12, %v2331_v47 }
 0x41b   : > { %v2572_v32 = vpop.f32.mrf.mxu2 }
 0x41f   : > { %v2619_v45 = vpop.f32.mrf.mxu3 }
 0x420   : > { %v2620_v35 = vadd.f32 %v2619_v45, %v2569_v0 }
 0x423   : > { %v9808_v38 = vpop.f32.mrf.mxu2 }
 0x427   : > { %v2622_v50 = vpop.f32.mrf.mxu3 }
 0x42b   : > { %v2578_v13 = vpop.f32.mrf.mxu2 }
 0x42f   : > { %v9810_v44 = vpop.f32.mrf.mxu3 }
 0x433   : > { %v2581_v23 = vpop.f32.mrf.mxu2 }
 0x437   : > { %v2628_v55 = vpop.f32.mrf.mxu3 }
 0x438   : > { %v2629_v27 = vadd.f32 %v2628_v55, %v2578_v13  ;;  %v9831_v13 = vmax.f32 %v9714_v39, %v2529_v16  ;;  %v2364_v39 = vadd.f32 %v9778_v7, %v9773_v3  ;;  %v2535_v3 = vadd.f32 %v9725_v40, %v9721_v46 }
 0x439   : > { %v2379_v7 = vadd.f32 %v9798_v41, %v9796_v42  ;;  %v12875_v41 = vld [vmem:[#allocation20_spill] sm:$0xff] }
 0x43a   : > { %v9849_v16 = vmax.f32 %v2364_v39, %v2620_v35  ;;  %v9880_v40 = vmax.f32 %v9732_v58, %v2535_v3  ;;  %v12877_v58 = vld [vmem:[#allocation78_spill] sm:$0xff]  ;;  %v12888_v35 = vld [vmem:[#allocation61_spill] sm:$0xff] }
 0x43b   : > { %v2584_v59 = vpop.f32.mrf.mxu2  ;;  %v2614_v6 = vadd.f32 %v12877_v58, %v12876_v54 }
 0x43f   : > { %v2631_v56 = vpop.f32.mrf.mxu3 }
 0x440   : > { %v2632_v8 = vadd.f32 %v2631_v56, %v2581_v23  ;;  %v2388_v23 = vadd.f32 %v2387_v48, %v2337_v14  ;;  %v12878_v14 = vld [vmem:[#allocation26_spill] sm:$0xff]  ;;  %v12879_v48 = vld [vmem:[#allocation87_spill] sm:$0xff] }
 0x443   : > { %v2587_v49 = vpop.f32.mrf.mxu2 }
 0x447   : > { %v2634_v29 = vpop.f32.mrf.mxu3 }
 0x44b   : > { %v2590_v53 = vpop.f32.mrf.mxu2 }
 0x44f   : > { %v2637_v19 = vpop.f32.mrf.mxu3 }
 0x450   : > { %v2638_v24 = vadd.f32 %v2637_v19, %v2587_v49  ;;  %v2373_v49 = vadd.f32 %v2372_v21, %v2322_v15 }
 0x452   : > { %v9817_v9 = vmax.f32 %v2382_v5, %v2638_v24  ;;  %v9828_v25 = vmax.f32 %v2373_v49, %v2629_v27  ;;  %v9833_v24 = vmax.f32 %v2285_v63, %v2541_v34  ;;  %v2376_v63 = vadd.f32 %v2375_v26, %v2325_v17  ;;  %v12880_v27 = vld [vmem:[#allocation84_spill] sm:$0xff] }
 0x453   : > { %v2593_v15 = vpop.f32.mrf.mxu2  ;;  %v2623_v17 = vadd.f32 %v2622_v50, %v2572_v32  ;;  %v2358_v5 = vadd.f32 %v12881_v36, %v12880_v27  ;;  %v12883_v32 = vld [vmem:[#allocation104_spill] sm:$0xff] }
 0x454   : > { %v7410_v1 = vpack.i.bf16 %v9817_v9, %v9815_v61  ;;  %v7430_v43 = vpack.i.bf16 %v9828_v25, %v9831_v13  ;;  %v9851_v21 = vmax.f32 %v2376_v63, %v2632_v8  ;;  %v12889_v8 = vld [vmem:[#allocation81_spill] sm:$0xff]  ;;  %v2731_v63 = vpop.permute.xlu2 %2730  ;;  %v12891_v36 = vld [vmem:[#allocation8_spill] sm:$0xff] }
 0x455   : > { %v9910_v45 = vmax.f32 %v2358_v5, %v2614_v6 }
 0x456   : > { %7411 = vrot.lane.b32.xlu2 %v7410_v1, %s7799_s14  ;;  %v2514_v1 = vadd.f32 %v12879_v48, %v12878_v14 }
 0x457   : > { %v2640_v19 = vpop.f32.mrf.mxu3 }
 0x458   : > { %v2641_v55 = vadd.f32 %v2640_v19, %v2590_v53  ;;  %v2532_v53 = vadd.f32 %v9716_v57, %v9710_v20  ;;  %v2635_v20 = vadd.f32 %v2634_v29, %v2584_v59  ;;  %v2523_v29 = vadd.f32 %v9696_v31, %v9685_v30  ;;  %v12886_v19 = vld [vmem:[#allocation70_spill] sm:$0xff] }
 0x459   : > { %v2367_v59 = vadd.f32 %v9785_v62, %v9780_v10  ;;  %v2626_v30 = vadd.f32 %v9810_v44, %v9808_v38  ;;  %v2526_v10 = vadd.f32 %v9703_v51, %v9694_v11  ;;  %v12874_v62 = vld [vmem:[#allocation6_spill] sm:$0xff]  ;;  %v9913_v50 = vmax.f32 %v12883_v32, %v2514_v1  ;;  %v12884_v38 = vld [vmem:[#allocation52_spill] sm:$0xff] }
 0x45a   : > { %v9835_v22 = vmax.f32 %v2385_v52, %v2641_v55  ;;  %v9857_v60 = vmax.f32 %v9723_v33, %v2532_v53  ;;  %v7445_v33 = vpack.i.bf16 %v9849_v16, %v9854_v37  ;;  %v9875_v46 = vmax.f32 %v2379_v7, %v2635_v20  ;;  %v12882_v11 = vld [vmem:[#allocation66_spill] sm:$0xff]  ;;  %v12885_v44 = vld [vmem:[#allocation76_spill] sm:$0xff] }
 0x45b   : > { %v9882_v26 = vmax.f32 %v2367_v59, %v2623_v17  ;;  %v9885_v42 = vmax.f32 %v9699_v4, %v2523_v29  ;;  %v2370_v12 = vadd.f32 %v12875_v41, %v12874_v62  ;;  %v9908_v51 = vmax.f32 %v12882_v11, %v2526_v10  ;;  %v12887_v52 = vld [vmem:[#allocation10_spill] sm:$0xff] }
 0x45c   : > { %v7415_v2 = vpack.i.bf16 %v9835_v22, %v9833_v24  ;;  %v7425_v28 = vpack.i.bf16 %v9851_v21, %v9857_v60  ;;  %v7420_v31 = vpack.i.bf16 %v9875_v46, %v9880_v40  ;;  %v2617_v34 = vadd.f32 %v12885_v44, %v12884_v38 }
 0x45d   : > { %v7440_v4 = vpack.i.bf16 %v9882_v26, %v9885_v42  ;;  %v9904_v0 = vmax.f32 %v2370_v12, %v2626_v30  ;;  %v2517_v55 = vadd.f32 %v12887_v52, %v12886_v19 }
 0x45e   : > { %7416 = vrot.lane.b32.xlu1 %v7415_v2, %s7799_s14  ;;  %7431 = vrot.lane.b32.xlu2 %v7430_v43, %s7799_s14  ;;  %v2361_v2 = vadd.f32 %v12889_v8, %v12888_v35  ;;  %v7455_v43 = vpack.i.bf16 %v9910_v45, %v9913_v50 }
 0x45f   : > { %v2643_v56 = vpop.f32.mrf.mxu3  ;;  %v7435_v49 = vpack.i.bf16 %v9904_v0, %v9908_v51 }
 0x460   : > { %v2644_v47 = vadd.f32 %v2643_v56, %v2593_v15  ;;  %v9926_v18 = vmax.f32 %v2361_v2, %v2617_v34  ;;  %v12890_v15 = vld [vmem:[#allocation24_spill] sm:$0xff] }
 0x461   : > { %v9930_v53 = vmax.f32 %v12890_v15, %v2517_v55 }
 0x462   : > { %v9859_v57 = vmax.f32 %v2388_v23, %v2644_v47 }
 0x463   : > { %v7450_v39 = vpack.i.bf16 %v9926_v18, %v9930_v53 }
 0x464   : > { %2732 = vrot.lane.b32.xlu0 %v9859_v57, %s7799_s14 }
 0x466   : > { %7426 = vrot.lane.b32.xlu1 %v7425_v28, %s7799_s14  ;;  %7446 = vrot.lane.b32.xlu2 %v7445_v33, %s7799_s14 }
 0x46c   : > { %7421 = vrot.lane.b32.xlu0 %v7420_v31, %s7799_s14 }
 0x46e   : > { %7441 = vrot.lane.b32.xlu1 %v7440_v4, %s7799_s14 }
 0x474   : > { %7436 = vrot.lane.b32.xlu0 %v7435_v49, %s7799_s14 }
 0x476   : > { %7456 = vrot.lane.b32.xlu1 %v7455_v43, %s7799_s14 }
 0x47c   : > { %7451 = vrot.lane.b32.xlu0 %v7450_v39, %s7799_s14  ;;  %s7804_s14 = smov 80  }
 0x4b0   : > { %v7412_v56 = vpop.permute.xlu2 %7411 }
 0x4b1   : > { %v7414_v23 = vunpack.i.h.bf16 %v7412_v56  ;;  %v7413_v47 = vunpack.i.l.bf16 %v7412_v56 }
 0x4b3   : > { %v2784_v20 = vmax.f32 %v9817_v9, %v7414_v23  ;;  %v2742_v3 = vsel %vm516_vm0, %v7413_v47, %v7414_v23 }
 0x4b4   : > { %v2783_v7 = vmax.f32 %v9815_v61, %v2742_v3 }
 0x4b6   : > { %v9938_v17 = vpack.i.bf16 %v2784_v20, %v2783_v7 }
 0x4b8   : > { %v7432_v28 = vpop.permute.xlu2 %7431  ;;  %7461 = vrot.lane.b32.xlu2 %v9938_v17, %s7800_s15 }
 0x4b9   : > { %v7434_v33 = vunpack.i.h.bf16 %v7432_v28  ;;  %v7433_v29 = vunpack.i.l.bf16 %v7432_v28 }
 0x4bb   : > { %v2778_v59 = vmax.f32 %v9828_v25, %v7434_v33  ;;  %v2739_v30 = vsel %vm516_vm0, %v7433_v29, %v7434_v33 }
 0x4bc   : > { %v9945_v31 = vmax.f32 %v9831_v13, %v2739_v30 }
 0x4be   : > { %v9948_v9 = vpack.i.bf16 %v2778_v59, %v9945_v31 }
 0x4c0   : > { %v7447_v10 = vpop.permute.xlu2 %7446 }
 0x4c1   : > { %v7449_v61 = vunpack.i.h.bf16 %v7447_v10  ;;  %v7448_v62 = vunpack.i.l.bf16 %v7447_v10 }
 0x4c3   : > { %v9951_v41 = vmax.f32 %v9849_v16, %v7449_v61  ;;  %v2736_v12 = vsel %vm516_vm0, %v7448_v62, %v7449_v61  ;;  %v2789_v62 = vld [vmem:[%s12614_s4] sm:$0xff] }
 0x4c4   : > { %v9955_v54 = vmax.f32 %v9854_v37, %v2736_v12 }
 0x4c6   : > { %v9959_v25 = vpack.i.bf16 %v9951_v41, %v9955_v54 }
 0x4d0   : > { %v7417_v13 = vpop.permute.xlu1 %7416 }
 0x4d1   : > { %v7419_v58 = vunpack.i.h.bf16 %v7417_v13  ;;  %v7418_v6 = vunpack.i.l.bf16 %v7417_v13 }
 0x4d3   : > { %v2786_v4 = vmax.f32 %v9835_v22, %v7419_v58  ;;  %v2743_v14 = vsel %vm516_vm0, %v7418_v6, %v7419_v58 }
 0x4d4   : > { %v2785_v48 = vmax.f32 %v9833_v24, %v2743_v14 }
 0x4d6   : > { %v2733_v16 = vpop.permute.xlu0 %2732  ;;  %v9964_v1 = vpack.i.bf16 %v2786_v4, %v2785_v48 }
 0x4d7   : > { %v2744_v37 = vsel %vm516_vm0, %v2731_v63, %v2733_v16  ;;  %v9968_v27 = vmax.f32 %v9859_v57, %v2733_v16  ;;  %v2790_v16 = vld [vmem:[%s12614_s4 + $0x8] sm:$0xff] }
 0x4d8   : > { %v9971_v5 = vmax.f32 %v12891_v36, %v2744_v37  ;;  %v7427_v11 = vpop.permute.xlu1 %7426  ;;  %7466 = vrot.lane.b32.xlu1 %v9964_v1, %s7800_s15  ;;  %v4441_v36 = vld [vmem:[%s12615_s5 + $0x60] sm:$0xff] }
 0x4d9   : > { %v7429_v22 = vunpack.i.h.bf16 %v7427_v11  ;;  %v7428_v32 = vunpack.i.l.bf16 %v7427_v11  ;;  %2894 = vrot.lane.b32.xlu0 %v9968_v27, %s7800_s15  ;;  %6883 = vmatpush.msk.msra.mxu3 %vm2988_vm6, %v9968_v27 }
 0x4da   : > { %6862 = vmatpush.msk.msra.mxu2 %vm2988_vm6, %v9971_v5  ;;  %2892 = vrot.lane.b32.xlu2 %v9971_v5, %s7800_s15 }
 0x4db   : > { %v2780_v24 = vmax.f32 %v9851_v21, %v7429_v22  ;;  %v2740_v57 = vsel %vm516_vm0, %v7428_v32, %v7429_v22  ;;  %3294 = vmatpush.msra.mxu3 %v2786_v4 }
 0x4dc   : > { %v2779_v38 = vmax.f32 %v9857_v60, %v2740_v57  ;;  %3217 = vmatpush.msra.mxu2 %v2785_v48  ;;  %v2791_v57 = vld [vmem:[%s12614_s4 + $0x10] sm:$0xff] }
 0x4dd   : > { %3295 = vmatpush.msra.mxu3 %v2784_v20 }
 0x4de   : > { %v7422_v44 = vpop.permute.xlu0 %7421  ;;  %3218 = vmatpush.msra.mxu2 %v2783_v7  ;;  %v9986_v34 = vpack.i.bf16 %v2780_v24, %v2779_v38 }
 0x4df   : > { %v7424_v49 = vunpack.i.h.bf16 %v7422_v44  ;;  %v7423_v19 = vunpack.i.l.bf16 %v7422_v44 }
 0x4e0   : > { %v7442_v52 = vpop.permute.xlu1 %7441  ;;  %7476 = vrot.lane.b32.xlu1 %v9986_v34, %s7800_s15 }
 0x4e1   : > { %v2782_v55 = vmax.f32 %v9875_v46, %v7424_v49  ;;  %v2741_v21 = vsel %vm516_vm0, %v7423_v19, %v7424_v49  ;;  %v7444_v35 = vunpack.i.h.bf16 %v7442_v52  ;;  %v7443_v8 = vunpack.i.l.bf16 %v7442_v52  ;;  %v4443_v19 = vld [vmem:[%s12615_s5 + $0x70] sm:$0xff] }
 0x4e2   : > { %v2781_v60 = vmax.f32 %v9880_v40, %v2741_v21  ;;  %7481 = vrot.lane.b32.xlu2 %v9948_v9, %s7800_s15  ;;  %v4439_v21 = vld [vmem:[%s12615_s5 + $0x50] sm:$0xff] }
 0x4e3   : > { %v2774_v2 = vmax.f32 %v9882_v26, %v7444_v35  ;;  %v2737_v43 = vsel %vm516_vm0, %v7443_v8, %v7444_v35  ;;  %3296 = vmatpush.msra.mxu3 %v2782_v55  ;;  %v4438_v8 = vld [vmem:[%s12615_s5 + $0x48] sm:$0xff] }
 0x4e4   : > { %v2773_v15 = vmax.f32 %v9885_v42, %v2737_v43  ;;  %3219 = vmatpush.msra.mxu2 %v2781_v60  ;;  %v9998_v39 = vpack.i.bf16 %v2782_v55, %v2781_v60 }
 0x4e5   : > { %3297 = vmatpush.msra.mxu3 %v2780_v24 }
 0x4e6   : > { %v7437_v46 = vpop.permute.xlu0 %7436  ;;  %7471 = vrot.lane.b32.xlu0 %v9998_v39, %s7800_s15  ;;  %3220 = vmatpush.msra.mxu2 %v2779_v38  ;;  %v10002_v40 = vpack.i.bf16 %v2774_v2, %v2773_v15 }
 0x4e7   : > { %v7439_v63 = vunpack.i.h.bf16 %v7437_v46  ;;  %v7438_v56 = vunpack.i.l.bf16 %v7437_v46  ;;  %3298 = vmatpush.msra.mxu3 %v2778_v59  ;;  %v2792_v46 = vld [vmem:[%s12614_s4 + $0x18] sm:$0xff] }
 0x4e8   : > { %v7457_v26 = vpop.permute.xlu1 %7456  ;;  %7491 = vrot.lane.b32.xlu1 %v10002_v40, %s7800_s15  ;;  %3221 = vmatpush.msra.mxu2 %v9945_v31 }
 0x4e9   : > { %v2776_v42 = vmax.f32 %v9904_v0, %v7439_v63  ;;  %v2738_v23 = vsel %vm516_vm0, %v7438_v56, %v7439_v63  ;;  %v7459_v47 = vunpack.i.h.bf16 %v7457_v26  ;;  %v7458_v20 = vunpack.i.l.bf16 %v7457_v26 }
 0x4ea   : > { %v2775_v3 = vmax.f32 %v9908_v51, %v2738_v23  ;;  %7496 = vrot.lane.b32.xlu2 %v9959_v25, %s7800_s15 }
 0x4eb   : > { %v2768_v7 = vmax.f32 %v9910_v45, %v7459_v47  ;;  %v2734_v28 = vsel %vm516_vm0, %v7458_v20, %v7459_v47  ;;  %3299 = vmatpush.msra.mxu3 %v2776_v42  ;;  %v4436_v20 = vld [vmem:[%s12615_s5 + $0x38] sm:$0xff] }
 0x4ec   : > { %v2767_v33 = vmax.f32 %v9913_v50, %v2734_v28  ;;  %3222 = vmatpush.msra.mxu2 %v2775_v3  ;;  %v10015_v29 = vpack.i.bf16 %v2776_v42, %v2775_v3  ;;  %v4440_v42 = vld [vmem:[%s12615_s5 + $0x58] sm:$0xff] }
 0x4ed   : > { %3300 = vmatpush.msra.mxu3 %v2774_v2 }
 0x4ee   : > { %v7452_v0 = vpop.permute.xlu0 %7451  ;;  %7486 = vrot.lane.b32.xlu0 %v10015_v29, %s7800_s15  ;;  %3223 = vmatpush.msra.mxu2 %v2773_v15  ;;  %v10019_v51 = vpack.i.bf16 %v2768_v7, %v2767_v33 }
 0x4ef   : > { %v7454_v59 = vunpack.i.h.bf16 %v7452_v0  ;;  %v7453_v30 = vunpack.i.l.bf16 %v7452_v0  ;;  %3301 = vmatpush.msra.mxu3 %v9951_v41 }
 0x4f0   : > { %7506 = vrot.lane.b32.xlu1 %v10019_v51, %s7800_s15  ;;  %3224 = vmatpush.msra.mxu2 %v9955_v54 }
 0x4f1   : > { %v2770_v45 = vmax.f32 %v9926_v18, %v7454_v59  ;;  %v2735_v50 = vsel %vm516_vm0, %v7453_v30, %v7454_v59  ;;  %v2793_v59 = vld [vmem:[%s12614_s4 + $0x20] sm:$0xff] }
 0x4f2   : > { %v2769_v31 = vmax.f32 %v9930_v53, %v2735_v50  ;;  %7516 = vrot.lane.b32.xlu2 %v9938_v17, %s7802_s27  ;;  %v4437_v50 = vld [vmem:[%s12615_s5 + $0x40] sm:$0xff] }
 0x4f3   : > { %3302 = vmatpush.msra.mxu3 %v2770_v45 }
 0x4f4   : > { %3225 = vmatpush.msra.mxu2 %v2769_v31  ;;  %v10030_v10 = vpack.i.bf16 %v2770_v45, %v2769_v31 }
 0x4f5   : > { %3303 = vmatpush.msra.mxu3 %v2768_v7  ;;  %v4435_v7 = vld [vmem:[%s12615_s5 + $0x30] sm:$0xff] }
 0x4f6   : > { %7501 = vrot.lane.b32.xlu0 %v10030_v10, %s7800_s15  ;;  %3226 = vmatpush.msra.mxu2 %v2767_v33 }
 0x4f7   : > { %6884 = vmatmul.msk.f32.vlgmr.msra.gmra.mxu3 %vm2927_vm7, %v2789_v62  ;;  %6863 = vmatmul.msk.f32.vlgmr.msra.gmra.mxu2 %vm2927_vm7, %v2789_v62  ;;  %v4432_v62 = vld [vmem:[%s12615_s5 + $0x18] sm:$0xff] }
 0x4f8   : > { %7511 = vrot.lane.b32.xlu1 %v9964_v1, %s7802_s27 }
 0x4fa   : > { %3426 = vrot.lane.b32.xlu2 %v9971_v5, %s7802_s27 }
 0x4fe   : > { %3428 = vrot.lane.b32.xlu0 %v9968_v27, %s7802_s27 }
 0x4ff   : > { %6885 = vmatmul.msk.f32.gmra.mxu3 %vm2927_vm7, %v2790_v16  ;;  %6864 = vmatmul.msk.f32.gmra.mxu2 %vm2927_vm7, %v2790_v16  ;;  %v4431_v16 = vld [vmem:[%s12615_s5 + $0x10] sm:$0xff] }
 0x500   : > { %7526 = vrot.lane.b32.xlu1 %v9986_v34, %s7802_s27 }
 0x502   : > { %7531 = vrot.lane.b32.xlu2 %v9948_v9, %s7802_s27 }
 0x506   : > { %7521 = vrot.lane.b32.xlu0 %v9998_v39, %s7802_s27 }
 0x507   : > { %6886 = vmatmul.msk.f32.gmra.mxu3 %vm2927_vm7, %v2791_v57  ;;  %6865 = vmatmul.msk.f32.gmra.mxu2 %vm2927_vm7, %v2791_v57  ;;  %v4448_v57 = vld [vmem:[%s12615_s5 + $0x98] sm:$0xff] }
 0x508   : > { %7541 = vrot.lane.b32.xlu1 %v10002_v40, %s7802_s27 }
 0x50a   : > { %7546 = vrot.lane.b32.xlu2 %v9959_v25, %s7802_s27 }
 0x50e   : > { %7536 = vrot.lane.b32.xlu0 %v10015_v29, %s7802_s27 }
 0x50f   : > { %6887 = vmatmul.msk.f32.gmra.mxu3 %vm2927_vm7, %v2792_v46  ;;  %6866 = vmatmul.msk.f32.gmra.mxu2 %vm2927_vm7, %v2792_v46 }
 0x510   : > { %7556 = vrot.lane.b32.xlu1 %v10019_v51, %s7802_s27 }
 0x512   : > { %7566 = vrot.lane.b32.xlu2 %v9938_v17, %s7804_s14  ;;  %v7462_v18 = vpop.permute.xlu2 %7461 }
 0x513   : > { %v7464_v13 = vunpack.i.h.bf16 %v7462_v18  ;;  %v7463_v58 = vunpack.i.l.bf16 %v7462_v18 }
 0x515   : > { %v2904_v48 = vsel %vm1014_vm2, %v7463_v58, %v7464_v13 }
 0x516   : > { %7551 = vrot.lane.b32.xlu0 %v10030_v10, %s7802_s27 }
 0x517   : > { %6888 = vmatmul.msk.f32.gmra.mxu3 %vm2927_vm7, %v2793_v59  ;;  %6867 = vmatmul.msk.f32.gmra.mxu2 %vm2927_vm7, %v2793_v59  ;;  %v4445_v59 = vld [vmem:[%s12615_s5 + $0x80] sm:$0xff] }
 0x518   : > { %7561 = vrot.lane.b32.xlu1 %v9964_v1, %s7804_s14 }
 0x51a   : > { %7586 = vrot.lane.b32.xlu2 %v9964_v1, %s7805_s16 }
 0x51e   : > { %3782 = vrot.lane.b32.xlu0 %v9968_v27, %s7804_s14 }
 0x520   : > { %7576 = vrot.lane.b32.xlu1 %v9986_v34, %s7804_s14 }
 0x522   : > { %7601 = vrot.lane.b32.xlu2 %v10002_v40, %s7804_s14 }
 0x526   : > { %7571 = vrot.lane.b32.xlu0 %v9998_v39, %s7804_s14 }
 0x528   : > { %7581 = vrot.lane.b32.xlu1 %v9948_v9, %s7804_s14 }
 0x52a   : > { %7616 = vrot.lane.b32.xlu2 %v9986_v34, %s7805_s16 }
 0x52e   : > { %4137 = vrot.lane.b32.xlu0 %v9968_v27, %s7805_s16  ;;  %v4442_v27 = vld [vmem:[%s12615_s5 + $0x68] sm:$0xff] }
 0x530   : > { %7596 = vrot.lane.b32.xlu1 %v9938_v17, %s7805_s16 }
 0x532   : > { %3780 = vrot.lane.b32.xlu2 %v9971_v5, %s7804_s14 }
 0x534   : > { %v2893_v53 = vpop.permute.xlu2 %2892 }
 0x536   : > { %7591 = vrot.lane.b32.xlu0 %v10015_v29, %s7804_s14 }
 0x538   : > { %7611 = vrot.lane.b32.xlu1 %v9959_v25, %s7804_s14 }
 0x53a   : > { %4135 = vrot.lane.b32.xlu2 %v9971_v5, %s7805_s16 }
 0x53c   : > { %v10076_v61 = vpop.permute.xlu2 %7481 }
 0x53d   : > { %v7484_v44 = vunpack.i.h.bf16 %v10076_v61  ;;  %v7483_v34 = vunpack.i.l.bf16 %v10076_v61 }
 0x53e   : > { %7606 = vrot.lane.b32.xlu0 %v9998_v39, %s7805_s16 }
 0x53f   : > { %v2901_v35 = vsel %vm1014_vm2, %v7483_v34, %v7484_v44 }
 0x540   : > { %7626 = vrot.lane.b32.xlu1 %v9948_v9, %s7805_s16 }
 0x542   : > { %7631 = vrot.lane.b32.xlu2 %v10019_v51, %s7804_s14 }
 0x544   : > { %v10083_v17 = vpop.permute.xlu2 %7496 }
 0x545   : > { %v7499_v63 = vunpack.i.h.bf16 %v10083_v17  ;;  %v7498_v56 = vunpack.i.l.bf16 %v10083_v17 }
 0x546   : > { %7621 = vrot.lane.b32.xlu0 %v10030_v10, %s7804_s14 }
 0x547   : > { %v2898_v3 = vsel %vm1014_vm2, %v7498_v56, %v7499_v63  ;;  %v4430_v56 = vld [vmem:[%s12615_s5 + $0x8] sm:$0xff] }
 0x548   : > { %7641 = vrot.lane.b32.xlu1 %v10002_v40, %s7805_s16 }
 0x54a   : > { %v7467_v41 = vpop.permute.xlu1 %7466  ;;  %7646 = vrot.lane.b32.xlu2 %v9959_v25, %s7805_s16  ;;  %v4444_v25 = vld [vmem:[%s12615_s5 + $0x78] sm:$0xff] }
 0x54b   : > { %v7469_v9 = vunpack.i.h.bf16 %v7467_v41  ;;  %v7468_v12 = vunpack.i.l.bf16 %v7467_v41  ;;  %v2895_v54 = vpop.permute.xlu0 %2894 }
 0x54c   : > { %v2906_v6 = vsel %vm1014_vm2, %v2893_v53, %v2895_v54  ;;  %6841 = vmatpush.msk.msra.mxu1 %vm2988_vm6, %v2895_v54  ;;  %v10097_v4 = vpop.permute.xlu2 %7516  ;;  %v4433_v53 = vld [vmem:[%s12615_s5 + $0x20] sm:$0xff] }
 0x54d   : > { %6820 = vmatpush.msk.msra.mxu0 %vm2988_vm6, %v2906_v6  ;;  %v2905_v14 = vsel %vm1014_vm2, %v7468_v12, %v7469_v9  ;;  %v7518_v12 = vunpack.i.l.bf16 %v10097_v4 }
 0x54e   : > { %3076 = vmatpush.msra.mxu1 %v7469_v9  ;;  %7636 = vrot.lane.b32.xlu0 %v10015_v29, %s7805_s16  ;;  %v7519_v9 = vunpack.i.h.bf16 %v10097_v4  ;;  %v4434_v4 = vld [vmem:[%s12615_s5 + $0x28] sm:$0xff] }
 0x54f   : > { %2999 = vmatpush.msra.mxu0 %v2905_v14 }
 0x550   : > { %7656 = vrot.lane.b32.xlu1 %v10019_v51, %s7805_s16  ;;  %3077 = vmatpush.msra.mxu1 %v7464_v13  ;;  %v2794_v13 = vld [vmem:[%s12614_s4 + $0x28] sm:$0xff] }
 0x551   : > { %3000 = vmatpush.msra.mxu0 %v2904_v48  ;;  %6889 = vmatmul.msk.f32.gmra.mxu3 %vm2927_vm7, %v2794_v13  ;;  %v3438_v48 = vsel %vm1646_vm4, %v7518_v12, %v7519_v9 }
 0x552   : > { %v7477_v1 = vpop.permute.xlu1 %7476  ;;  %4526 = vperm.xlu2 %7408, %v4444_v25   ;;  %v6801_v25 = vld [vmem:[%s12614_s4 + $0xa8] sm:$0xff]  ;;  %6868 = vmatmul.msk.f32.gmra.mxu2 %vm2927_vm7, %v2794_v13 }
 0x553   : > { %v7479_v11 = vunpack.i.h.bf16 %v7477_v1  ;;  %v7478_v22 = vunpack.i.l.bf16 %v7477_v1  ;;  %v4447_v1 = vld [vmem:[%s12615_s5 + $0x90] sm:$0xff] }
 0x554   : > { %v10114_v37 = vpop.permute.xlu2 %3426 }
 0x555   : > { %v2902_v55 = vsel %vm1014_vm2, %v7478_v22, %v7479_v11  ;;  %v2795_v22 = vld [vmem:[%s12614_s4 + $0x30] sm:$0xff] }
 0x556   : > { %7651 = vrot.lane.b32.xlu0 %v10030_v10, %s7805_s16  ;;  %v6800_v10 = vld [vmem:[%s12614_s4 + $0xa0] sm:$0xff] }
 0x558   : > { %v7472_v5 = vpop.permute.xlu0 %7471  ;;  %4516 = vperm.xlu1 %7407, %v4442_v27  }
 0x559   : > { %v7474_v32 = vunpack.i.h.bf16 %v7472_v5  ;;  %v7473_v24 = vunpack.i.l.bf16 %v7472_v5  ;;  %6890 = vmatmul.msk.f32.gmra.mxu3 %vm2927_vm7, %v2795_v22 }
 0x55a   : > { %v7492_v38 = vpop.permute.xlu1 %7491  ;;  %4511 = vperm.xlu2 %7408, %v4441_v36   ;;  %6869 = vmatmul.msk.f32.gmra.mxu2 %vm2927_vm7, %v2795_v22 }
 0x55b   : > { %3078 = vmatpush.msra.mxu1 %v7474_v32  ;;  %v2903_v49 = vsel %vm1014_vm2, %v7473_v24, %v7474_v32  ;;  %v7494_v2 = vunpack.i.h.bf16 %v7492_v38  ;;  %v7493_v43 = vunpack.i.l.bf16 %v7492_v38 }
 0x55c   : > { %v10135_v52 = vpop.permute.xlu2 %7531  ;;  %3001 = vmatpush.msra.mxu0 %v2903_v49  ;;  %v6802_v49 = vld [vmem:[%s12614_s4 + $0xb0] sm:$0xff] }
 0x55d   : > { %3079 = vmatpush.msra.mxu1 %v7479_v11  ;;  %v2899_v47 = vsel %vm1014_vm2, %v7493_v43, %v7494_v2  ;;  %v7534_v38 = vunpack.i.h.bf16 %v10135_v52 }
 0x55e   : > { %4521 = vperm.xlu0 %7409, %v4443_v19   ;;  %3002 = vmatpush.msra.mxu0 %v2902_v55  ;;  %v4446_v55 = vld [vmem:[%s12615_s5 + $0x88] sm:$0xff] }
 0x55f   : > { %3080 = vmatpush.msra.mxu1 %v7484_v44  ;;  %v7533_v44 = vunpack.i.l.bf16 %v10135_v52  ;;  %v4429_v52 = vld [vmem:[%s12615_s5] sm:$0xff] }
 0x560   : > { %v7487_v60 = vpop.permute.xlu0 %7486  ;;  %4501 = vperm.xlu1 %7407, %v4439_v21   ;;  %3003 = vmatpush.msra.mxu0 %v2901_v35 }
 0x561   : > { %v7489_v15 = vunpack.i.h.bf16 %v7487_v60  ;;  %v7488_v39 = vunpack.i.l.bf16 %v7487_v60  ;;  %v3435_v35 = vsel %vm1646_vm4, %v7533_v44, %v7534_v38  ;;  %v2800_v44 = vld [vmem:[%s12614_s4 + $0x58] sm:$0xff] }
 0x562   : > { %v7507_v40 = vpop.permute.xlu1 %7506  ;;  %4496 = vperm.xlu2 %7408, %v4438_v8  }
 0x563   : > { %3081 = vmatpush.msra.mxu1 %v7489_v15  ;;  %v2900_v26 = vsel %vm1014_vm2, %v7488_v39, %v7489_v15  ;;  %v7509_v33 = vunpack.i.h.bf16 %v7507_v40  ;;  %v7508_v29 = vunpack.i.l.bf16 %v7507_v40  ;;  %v2796_v15 = vld [vmem:[%s12614_s4 + $0x38] sm:$0xff] }
 0x564   : > { %v10156_v23 = vpop.permute.xlu2 %7546  ;;  %3004 = vmatpush.msra.mxu0 %v2900_v26  ;;  %6891 = vmatmul.msk.f32.gmra.mxu3 %vm2927_vm7, %v2796_v15  ;;  %v6803_v26 = vld [vmem:[%s12614_s4 + $0xb8] sm:$0xff] }
 0x565   : > { %3082 = vmatpush.msra.mxu1 %v7494_v2  ;;  %v2896_v18 = vsel %vm1014_vm2, %v7508_v29, %v7509_v33  ;;  %v7549_v46 = vunpack.i.h.bf16 %v10156_v23  ;;  %v7548_v40 = vunpack.i.l.bf16 %v10156_v23  ;;  %6870 = vmatmul.msk.f32.gmra.mxu2 %vm2927_vm7, %v2796_v15  ;;  %v2797_v29 = vld [vmem:[%s12614_s4 + $0x40] sm:$0xff] }
 0x566   : > { %4506 = vperm.xlu0 %7409, %v4440_v42   ;;  %3005 = vmatpush.msra.mxu0 %v2899_v47  ;;  %v2801_v15 = vld [vmem:[%s12614_s4 + $0x60] sm:$0xff] }
 0x567   : > { %3083 = vmatpush.msra.mxu1 %v7499_v63  ;;  %v3432_v47 = vsel %vm1646_vm4, %v7548_v40, %v7549_v46 }
 0x568   : > { %v7502_v28 = vpop.permute.xlu0 %7501  ;;  %4486 = vperm.xlu1 %7407, %v4436_v20   ;;  %3006 = vmatpush.msra.mxu0 %v2898_v3 }
 0x569   : > { %v7504_v0 = vunpack.i.h.bf16 %v7502_v28  ;;  %v7503_v51 = vunpack.i.l.bf16 %v7502_v28 }
 0x56a   : > { %v7512_v30 = vpop.permute.xlu1 %7511  ;;  %4481 = vperm.xlu2 %7408, %v4435_v7  }
 0x56b   : > { %3084 = vmatpush.msra.mxu1 %v7504_v0  ;;  %v2897_v45 = vsel %vm1014_vm2, %v7503_v51, %v7504_v0  ;;  %v7514_v61 = vunpack.i.h.bf16 %v7512_v30  ;;  %v7513_v17 = vunpack.i.l.bf16 %v7512_v30  ;;  %v6804_v30 = vld [vmem:[%s12614_s4 + $0xc0] sm:$0xff] }
 0x56c   : > { %v10175_v31 = vpop.permute.xlu2 %7566  ;;  %3007 = vmatpush.msra.mxu0 %v2897_v45  ;;  %6892 = vmatmul.msk.f32.gmra.mxu3 %vm2927_vm7, %v2797_v29 }
 0x56d   : > { %3085 = vmatpush.msra.mxu1 %v7509_v33  ;;  %v3439_v6 = vsel %vm1646_vm4, %v7513_v17, %v7514_v61  ;;  %6871 = vmatmul.msk.f32.gmra.mxu2 %vm2927_vm7, %v2797_v29  ;;  %v7568_v17 = vunpack.i.l.bf16 %v10175_v31 }
 0x56e   : > { %4491 = vperm.xlu0 %7409, %v4437_v50   ;;  %3008 = vmatpush.msra.mxu0 %v2896_v18 }
 0x56f   : > { %6842 = vmatmul.msk.f32.vlgmr.msra.gmra.mxu1 %vm2927_vm7, %v6800_v10  ;;  %6821 = vmatmul.msk.f32.vlgmr.msra.gmra.mxu0 %vm2927_vm7, %v6800_v10 }
 0x570   : > { %v3429_v41 = vpop.permute.xlu0 %3428  ;;  %4471 = vperm.xlu1 %7407, %v4433_v53  }
 0x571   : > { %v3440_v54 = vsel %vm1646_vm4, %v10114_v37, %v3429_v41  ;;  %6945 = vmatpush.msk.msrb.mxu1 %vm2988_vm6, %v3429_v41  ;;  %v2798_v41 = vld [vmem:[%s12614_s4 + $0x48] sm:$0xff] }
 0x572   : > { %v7527_v58 = vpop.permute.xlu1 %7526  ;;  %4466 = vperm.xlu2 %7408, %v4432_v62   ;;  %6924 = vmatpush.msk.msrb.mxu0 %vm2988_vm6, %v3440_v54  ;;  %v6805_v54 = vld [vmem:[%s12614_s4 + $0xc8] sm:$0xff] }
 0x573   : > { %3608 = vmatpush.msrb.mxu1 %v7514_v61  ;;  %v7529_v27 = vunpack.i.h.bf16 %v7527_v58  ;;  %v7528_v36 = vunpack.i.l.bf16 %v7527_v58  ;;  %v7569_v61 = vunpack.i.h.bf16 %v10175_v31 }
 0x574   : > { %v10203_v14 = vpop.permute.xlu2 %7586  ;;  %3531 = vmatpush.msrb.mxu0 %v3439_v6  ;;  %6893 = vmatmul.msk.f32.gmra.mxu3 %vm2927_vm7, %v2798_v41 }
 0x575   : > { %3609 = vmatpush.msrb.mxu1 %v7519_v9  ;;  %v3436_v19 = vsel %vm1646_vm4, %v7528_v36, %v7529_v27  ;;  %v3793_v31 = vsel %vm3784_vm8, %v7568_v17, %v7569_v61  ;;  %6872 = vmatmul.msk.f32.gmra.mxu2 %vm2927_vm7, %v2798_v41  ;;  %v6806_v36 = vld [vmem:[%s12614_s4 + $0xd0] sm:$0xff]  ;;  %v7588_v22 = vunpack.i.l.bf16 %v10203_v14 }
 0x576   : > { %4476 = vperm.xlu0 %7409, %v4434_v4   ;;  %3532 = vmatpush.msrb.mxu0 %v3438_v48  ;;  %v2799_v48 = vld [vmem:[%s12614_s4 + $0x50] sm:$0xff] }
 0x577   : > { %6843 = vmatmul.msk.f32.gmra.mxu1 %vm2927_vm7, %v6801_v25  ;;  %6822 = vmatmul.msk.f32.gmra.mxu0 %vm2927_vm7, %v6801_v25  ;;  %v2803_v17 = vld [vmem:[%s12614_s4 + $0x70] sm:$0xff] }
 0x578   : > { %v7522_v37 = vpop.permute.xlu0 %7521  ;;  %4461 = vperm.xlu1 %7407, %v4431_v16  }
 0x579   : > { %v7524_v5 = vunpack.i.h.bf16 %v7522_v37  ;;  %v7523_v11 = vunpack.i.l.bf16 %v7522_v37 }
 0x57a   : > { %v7542_v32 = vpop.permute.xlu1 %7541  ;;  %4541 = vperm.xlu2 %7408, %v4447_v1  }
 0x57b   : > { %3610 = vmatpush.msrb.mxu1 %v7524_v5  ;;  %v3437_v24 = vsel %vm1646_vm4, %v7523_v11, %v7524_v5  ;;  %v7544_v8 = vunpack.i.h.bf16 %v7542_v32  ;;  %v7543_v60 = vunpack.i.l.bf16 %v7542_v32  ;;  %v7589_v11 = vunpack.i.h.bf16 %v10203_v14 }
 0x57c   : > { %v10228_v34 = vpop.permute.xlu2 %7601  ;;  %3533 = vmatpush.msrb.mxu0 %v3437_v24  ;;  %6894 = vmatmul.msk.f32.gmra.mxu3 %vm2927_vm7, %v2799_v48 }
 0x57d   : > { %3611 = vmatpush.msrb.mxu1 %v7529_v27  ;;  %v3433_v42 = vsel %vm1646_vm4, %v7543_v60, %v7544_v8  ;;  %6873 = vmatmul.msk.f32.gmra.mxu2 %vm2927_vm7, %v2799_v48  ;;  %v7603_v60 = vunpack.i.l.bf16 %v10228_v34 }
 0x57e   : > { %4546 = vperm.xlu0 %7409, %v4448_v57   ;;  %3534 = vmatpush.msrb.mxu0 %v3436_v19 }
 0x57f   : > { %6844 = vmatmul.msk.f32.gmra.mxu1 %vm2927_vm7, %v6802_v49  ;;  %6823 = vmatmul.msk.f32.gmra.mxu0 %vm2927_vm7, %v6802_v49 }
 0x580   : > { %3612 = vmatpush.msrb.mxu1 %v7534_v38  ;;  %v7537_v21 = vpop.permute.xlu0 %7536  ;;  %4536 = vperm.xlu1 %7407, %v4446_v55   ;;  %v4149_v55 = vsel %vm4139_vm9, %v7588_v22, %v7589_v11 }
 0x581   : > { %v7539_v2 = vunpack.i.h.bf16 %v7537_v21  ;;  %v7538_v43 = vunpack.i.l.bf16 %v7537_v21  ;;  %3535 = vmatpush.msrb.mxu0 %v3435_v35 }
 0x582   : > { %v7557_v39 = vpop.permute.xlu1 %7556  ;;  %4451 = vperm.xlu2 %7408, %v4429_v52   ;;  %v6807_v52 = vld [vmem:[%s12614_s4 + $0xd8] sm:$0xff] }
 0x583   : > { %3613 = vmatpush.msrb.mxu1 %v7539_v2  ;;  %v3434_v63 = vsel %vm1646_vm4, %v7538_v43, %v7539_v2  ;;  %v7559_v3 = vunpack.i.h.bf16 %v7557_v39  ;;  %v7558_v7 = vunpack.i.l.bf16 %v7557_v39 }
 0x584   : > { %3536 = vmatpush.msrb.mxu0 %v3434_v63  ;;  %v10259_v23 = vpop.permute.xlu2 %7616  ;;  %6895 = vmatmul.msk.f32.gmra.mxu3 %vm2927_vm7, %v2800_v44 }
 0x585   : > { %3614 = vmatpush.msrb.mxu1 %v7544_v8  ;;  %v3430_v45 = vsel %vm1646_vm4, %v7558_v7, %v7559_v3  ;;  %6874 = vmatmul.msk.f32.gmra.mxu2 %vm2927_vm7, %v2800_v44  ;;  %v7604_v8 = vunpack.i.h.bf16 %v10228_v34 }
 0x586   : > { %4456 = vperm.xlu0 %7409, %v4430_v56   ;;  %3537 = vmatpush.msrb.mxu0 %v3433_v42  ;;  %v6808_v56 = vld [vmem:[%s12614_s4 + $0xe0] sm:$0xff] }
 0x587   : > { %6845 = vmatmul.msk.f32.gmra.mxu1 %vm2927_vm7, %v6803_v26  ;;  %6824 = vmatmul.msk.f32.gmra.mxu0 %vm2927_vm7, %v6803_v26  ;;  %v3788_v34 = vsel %vm3784_vm8, %v7603_v60, %v7604_v8  ;;  %v6966_v60 = vld [vmem:[%s12614_s4 + $0x1e0] sm:$0xff] }
 0x588   : > { %3615 = vmatpush.msrb.mxu1 %v7549_v46  ;;  %v7552_v20 = vpop.permute.xlu0 %7551  ;;  %3538 = vmatpush.msrb.mxu0 %v3432_v47  ;;  %v7619_v47 = vunpack.i.h.bf16 %v10259_v23 }
 0x589   : > { %v7554_v28 = vunpack.i.h.bf16 %v7552_v20  ;;  %v7553_v33 = vunpack.i.l.bf16 %v7552_v20  ;;  %v7618_v20 = vunpack.i.l.bf16 %v10259_v23 }
 0x58a   : > { %v7562_v0 = vpop.permute.xlu1 %7561 }
 0x58b   : > { %3616 = vmatpush.msrb.mxu1 %v7554_v28  ;;  %v3431_v51 = vsel %vm1646_vm4, %v7553_v33, %v7554_v28  ;;  %v7564_v50 = vunpack.i.h.bf16 %v7562_v0  ;;  %v7563_v10 = vunpack.i.l.bf16 %v7562_v0  ;;  %v2802_v28 = vld [vmem:[%s12614_s4 + $0x68] sm:$0xff]  ;;  %v4146_v23 = vsel %vm4139_vm9, %v7618_v20, %v7619_v47 }
 0x58c   : > { %3539 = vmatpush.msrb.mxu0 %v3431_v51  ;;  %v3781_v18 = vpop.permute.xlu2 %3780  ;;  %6896 = vmatmul.msk.f32.gmra.mxu3 %vm2927_vm7, %v2801_v15 }
 0x58d   : > { %3617 = vmatpush.msrb.mxu1 %v7559_v3  ;;  %v3794_v12 = vsel %vm3784_vm8, %v7563_v10, %v7564_v50  ;;  %6875 = vmatmul.msk.f32.gmra.mxu2 %vm2927_vm7, %v2801_v15  ;;  %v6816_v15 = vld [vmem:[%s12614_s4 + $0x120] sm:$0xff] }
 0x58e   : > { %4531 = vperm.xlu0 %7409, %v4445_v59   ;;  %3540 = vmatpush.msrb.mxu0 %v3430_v45  ;;  %v6809_v59 = vld [vmem:[%s12614_s4 + $0xe8] sm:$0xff] }
 0x58f   : > { %6846 = vmatmul.msk.f32.gmra.mxu1 %vm2927_vm7, %v6804_v30  ;;  %6825 = vmatmul.msk.f32.gmra.mxu0 %vm2927_vm7, %v6804_v30 }
 0x590   : > { %v3783_v53 = vpop.permute.xlu0 %3782 }
 0x591   : > { %v3795_v62 = vsel %vm3784_vm8, %v3781_v18, %v3783_v53  ;;  %7007 = vmatpush.msk.msrb.mxu3 %vm2988_vm6, %v3783_v53 }
 0x592   : > { %v7577_v9 = vpop.permute.xlu1 %7576  ;;  %6986 = vmatpush.msk.msrb.mxu2 %vm2988_vm6, %v3795_v62 }
 0x593   : > { %3963 = vmatpush.msrb.mxu3 %v7564_v50  ;;  %v7579_v58 = vunpack.i.h.bf16 %v7577_v9  ;;  %v7578_v6 = vunpack.i.l.bf16 %v7577_v9  ;;  %v6810_v9 = vld [vmem:[%s12614_s4 + $0xf0] sm:$0xff] }
 0x594   : > { %3886 = vmatpush.msrb.mxu2 %v3794_v12  ;;  %v4136_v24 = vpop.permute.xlu2 %4135  ;;  %6897 = vmatmul.msk.f32.gmra.mxu3 %vm2927_vm7, %v2802_v28 }
 0x595   : > { %3964 = vmatpush.msrb.mxu3 %v7569_v61  ;;  %v3791_v5 = vsel %vm3784_vm8, %v7578_v6, %v7579_v58  ;;  %6876 = vmatmul.msk.f32.gmra.mxu2 %vm2927_vm7, %v2802_v28 }
 0x596   : > { %3887 = vmatpush.msrb.mxu2 %v3793_v31 }
 0x597   : > { %6847 = vmatmul.msk.f32.gmra.mxu1 %vm2927_vm7, %v6805_v54  ;;  %6826 = vmatmul.msk.f32.gmra.mxu0 %vm2927_vm7, %v6805_v54 }
 0x598   : > { %v7572_v13 = vpop.permute.xlu0 %7571 }
 0x599   : > { %v7574_v4 = vunpack.i.h.bf16 %v7572_v13  ;;  %v7573_v25 = vunpack.i.l.bf16 %v7572_v13 }
 0x59a   : > { %v7582_v16 = vpop.permute.xlu1 %7581 }
 0x59b   : > { %v7584_v1 = vunpack.i.h.bf16 %v7582_v16  ;;  %v7583_v37 = vunpack.i.l.bf16 %v7582_v16  ;;  %3965 = vmatpush.msrb.mxu3 %v7574_v4  ;;  %v3792_v27 = vsel %vm3784_vm8, %v7573_v25, %v7574_v4  ;;  %v2804_v25 = vld [vmem:[%s12614_s4 + $0x78] sm:$0xff] }
 0x59c   : > { %3888 = vmatpush.msrb.mxu2 %v3792_v27  ;;  %v7632_v30 = vpop.permute.xlu2 %7631  ;;  %6898 = vmatmul.msk.f32.gmra.mxu3 %vm2927_vm7, %v2803_v17 }
 0x59d   : > { %3966 = vmatpush.msrb.mxu3 %v7579_v58  ;;  %v3790_v32 = vsel %vm3784_vm8, %v7583_v37, %v7584_v1  ;;  %v7634_v10 = vunpack.i.h.bf16 %v7632_v30  ;;  %v7633_v18 = vunpack.i.l.bf16 %v7632_v30  ;;  %6877 = vmatmul.msk.f32.gmra.mxu2 %vm2927_vm7, %v2803_v17  ;;  %v6811_v37 = vld [vmem:[%s12614_s4 + $0xf8] sm:$0xff] }
 0x59e   : > { %3889 = vmatpush.msrb.mxu2 %v3791_v5 }
 0x59f   : > { %6848 = vmatmul.msk.f32.gmra.mxu1 %vm2927_vm7, %v6806_v36  ;;  %6827 = vmatmul.msk.f32.gmra.mxu0 %vm2927_vm7, %v6806_v36  ;;  %v3785_v12 = vsel %vm3784_vm8, %v7633_v18, %v7634_v10 }
 0x5a0   : > { %3967 = vmatpush.msrb.mxu3 %v7584_v1  ;;  %v4138_v57 = vpop.permute.xlu0 %4137  ;;  %3890 = vmatpush.msrb.mxu2 %v3790_v32 }
 0x5a1   : > { %v4150_v38 = vsel %vm4139_vm9, %v4136_v24, %v4138_v57  ;;  %7069 = vmatpush.msk.msra.mxu1 %vm2988_vm6, %v4138_v57 }
 0x5a2   : > { %v7597_v14 = vpop.permute.xlu1 %7596  ;;  %7048 = vmatpush.msk.msra.mxu0 %vm2988_vm6, %v4150_v38  ;;  %v2805_v38 = vld [vmem:[%s12614_s4 + $0x80] sm:$0xff] }
 0x5a3   : > { %v7599_v49 = vunpack.i.h.bf16 %v7597_v14  ;;  %v7598_v19 = vunpack.i.l.bf16 %v7597_v14  ;;  %4318 = vmatpush.msra.mxu1 %v7589_v11  ;;  %v6812_v14 = vld [vmem:[%s12614_s4 + $0x100] sm:$0xff] }
 0x5a4   : > { %4241 = vmatpush.msra.mxu0 %v4149_v55  ;;  %v7647_v54 = vpop.permute.xlu2 %7646  ;;  %6899 = vmatmul.msk.f32.gmra.mxu3 %vm2927_vm7, %v2804_v25  ;;  %v6813_v55 = vld [vmem:[%s12614_s4 + $0x108] sm:$0xff] }
 0x5a5   : > { %4319 = vmatpush.msra.mxu1 %v7599_v49  ;;  %v4148_v21 = vsel %vm4139_vm9, %v7598_v19, %v7599_v49  ;;  %v7649_v48 = vunpack.i.h.bf16 %v7647_v54  ;;  %v7648_v16 = vunpack.i.l.bf16 %v7647_v54  ;;  %6878 = vmatmul.msk.f32.gmra.mxu2 %vm2927_vm7, %v2804_v25  ;;  %v2806_v19 = vld [vmem:[%s12614_s4 + $0x88] sm:$0xff] }
 0x5a6   : > { %4242 = vmatpush.msra.mxu0 %v4148_v21  ;;  %v6814_v21 = vld [vmem:[%s12614_s4 + $0x110] sm:$0xff] }
 0x5a7   : > { %6849 = vmatmul.msk.f32.gmra.mxu1 %vm2927_vm7, %v6807_v52  ;;  %6828 = vmatmul.msk.f32.gmra.mxu0 %vm2927_vm7, %v6807_v52  ;;  %v4142_v5 = vsel %vm4139_vm9, %v7648_v16, %v7649_v48  ;;  %v2807_v52 = vld [vmem:[%s12614_s4 + $0x90] sm:$0xff]  ;;  %v6907_v16 = vld [vmem:[%s12614_s4 + $0x158] sm:$0xff] }
 0x5a8   : > { %v7592_v35 = vpop.permute.xlu0 %7591 }
 0x5a9   : > { %v7594_v2 = vunpack.i.h.bf16 %v7592_v35  ;;  %v7593_v43 = vunpack.i.l.bf16 %v7592_v35  ;;  %v2808_v35 = vld [vmem:[%s12614_s4 + $0x98] sm:$0xff] }
 0x5aa   : > { %v7612_v39 = vpop.permute.xlu1 %7611 }
 0x5ab   : > { %v7614_v46 = vunpack.i.h.bf16 %v7612_v39  ;;  %v7613_v40 = vunpack.i.l.bf16 %v7612_v39  ;;  %3968 = vmatpush.msrb.mxu3 %v7594_v2  ;;  %v3789_v63 = vsel %vm3784_vm8, %v7593_v43, %v7594_v2  ;;  %v10434_v39 = vpop.f32.mrf.mxu3 }
 0x5ac   : > { %3891 = vmatpush.msrb.mxu2 %v3789_v63  ;;  %6900 = vmatmul.msk.f32.gmra.mxu3 %vm2927_vm7, %v2805_v38  ;;  %12893 = vst [vmem:[#allocation60_spill] sm:$0xff] %v10434_v39  ;;  %v6983_v39 = vld [vmem:[%s12614_s4 + $0x268] sm:$0xff] }
 0x5ad   : > { %3969 = vmatpush.msrb.mxu3 %v7604_v8  ;;  %v3787_v26 = vsel %vm3784_vm8, %v7613_v40, %v7614_v46  ;;  %6879 = vmatmul.msk.f32.gmra.mxu2 %vm2927_vm7, %v2805_v38  ;;  %v6815_v8 = vld [vmem:[%s12614_s4 + $0x118] sm:$0xff]  ;;  %v6967_v40 = vld [vmem:[%s12614_s4 + $0x1e8] sm:$0xff] }
 0x5ae   : > { %3892 = vmatpush.msrb.mxu2 %v3788_v34  ;;  %v6817_v34 = vld [vmem:[%s12614_s4 + $0x128] sm:$0xff] }
 0x5af   : > { %6850 = vmatmul.msk.f32.gmra.mxu1 %vm2927_vm7, %v6808_v56  ;;  %6829 = vmatmul.msk.f32.gmra.mxu0 %vm2927_vm7, %v6808_v56  ;;  %v6909_v38 = vld [vmem:[%s12614_s4 + $0x168] sm:$0xff] }
 0x5b0   : > { %3970 = vmatpush.msrb.mxu3 %v7614_v46  ;;  %v7607_v42 = vpop.permute.xlu0 %7606  ;;  %3893 = vmatpush.msrb.mxu2 %v3787_v26  ;;  %v10438_v46 = vpop.f32.mrf.mxu2 }
 0x5b1   : > { %v7609_v3 = vunpack.i.h.bf16 %v7607_v42  ;;  %v7608_v7 = vunpack.i.l.bf16 %v7607_v42 }
 0x5b2   : > { %v7627_v33 = vpop.permute.xlu1 %7626 }
 0x5b3   : > { %v7629_v29 = vunpack.i.h.bf16 %v7627_v33  ;;  %v7628_v0 = vunpack.i.l.bf16 %v7627_v33  ;;  %4320 = vmatpush.msra.mxu1 %v7609_v3  ;;  %v4147_v51 = vsel %vm4139_vm9, %v7608_v7, %v7609_v3  ;;  %v10453_v26 = vpop.f32.mrf.mxu3  ;;  %v6818_v7 = vld [vmem:[%s12614_s4 + $0x130] sm:$0xff]  ;;  %v6969_v33 = vld [vmem:[%s12614_s4 + $0x1f8] sm:$0xff] }
 0x5b4   : > { %4243 = vmatpush.msra.mxu0 %v4147_v51  ;;  %6901 = vmatmul.msk.f32.gmra.mxu3 %vm2927_vm7, %v2806_v19  ;;  %12895 = vst [vmem:[#allocation39_spill] sm:$0xff] %v10453_v26 }
 0x5b5   : > { %4321 = vmatpush.msra.mxu1 %v7619_v47  ;;  %v4145_v45 = vsel %vm4139_vm9, %v7628_v0, %v7629_v29  ;;  %6880 = vmatmul.msk.f32.gmra.mxu2 %vm2927_vm7, %v2806_v19  ;;  %v6968_v47 = vld [vmem:[%s12614_s4 + $0x1f0] sm:$0xff] }
 0x5b6   : > { %4244 = vmatpush.msra.mxu0 %v4146_v23  ;;  %v6970_v23 = vld [vmem:[%s12614_s4 + $0x200] sm:$0xff] }
 0x5b7   : > { %6851 = vmatmul.msk.f32.gmra.mxu1 %vm2927_vm7, %v6809_v59  ;;  %6830 = vmatmul.msk.f32.gmra.mxu0 %vm2927_vm7, %v6809_v59  ;;  %v6819_v59 = vld [vmem:[%s12614_s4 + $0x138] sm:$0xff] }
 0x5b8   : > { %4322 = vmatpush.msra.mxu1 %v7629_v29  ;;  %v7622_v50 = vpop.permute.xlu0 %7621  ;;  %4245 = vmatpush.msra.mxu0 %v4145_v45  ;;  %v10457_v42 = vpop.f32.mrf.mxu2 }
 0x5b9   : > { %v7624_v53 = vunpack.i.h.bf16 %v7622_v50  ;;  %v7623_v61 = vunpack.i.l.bf16 %v7622_v50 }
 0x5ba   : > { %v7642_v41 = vpop.permute.xlu1 %7641 }
 0x5bb   : > { %3971 = vmatpush.msrb.mxu3 %v7624_v53  ;;  %v3786_v62 = vsel %vm3784_vm8, %v7623_v61, %v7624_v53  ;;  %v7644_v13 = vunpack.i.h.bf16 %v7642_v41  ;;  %v7643_v58 = vunpack.i.l.bf16 %v7642_v41  ;;  %v10473_v28 = vpop.f32.mrf.mxu3  ;;  %v6971_v53 = vld [vmem:[%s12614_s4 + $0x208] sm:$0xff] }
 0x5bc   : > { %3894 = vmatpush.msrb.mxu2 %v3786_v62  ;;  %6902 = vmatmul.msk.f32.gmra.mxu3 %vm2927_vm7, %v2807_v52  ;;  %v6905_v62 = vld [vmem:[%s12614_s4 + $0x148] sm:$0xff] }
 0x5bd   : > { %3972 = vmatpush.msrb.mxu3 %v7634_v10  ;;  %v4143_v27 = vsel %vm4139_vm9, %v7643_v58, %v7644_v13  ;;  %6881 = vmatmul.msk.f32.gmra.mxu2 %vm2927_vm7, %v2807_v52  ;;  %v6904_v10 = vld [vmem:[%s12614_s4 + $0x140] sm:$0xff] }
 0x5be   : > { %3895 = vmatpush.msrb.mxu2 %v3785_v12  ;;  %v6972_v12 = vld [vmem:[%s12614_s4 + $0x210] sm:$0xff] }
 0x5bf   : > { %6852 = vmatmul.msk.f32.gmra.mxu1 %vm2927_vm7, %v6810_v9  ;;  %6831 = vmatmul.msk.f32.gmra.mxu0 %vm2927_vm7, %v6810_v9 }
 0x5c0   : > { %v7637_v31 = vpop.permute.xlu0 %7636  ;;  %v10478_v29 = vpop.f32.mrf.mxu2 }
 0x5c1   : > { %v7639_v6 = vunpack.i.h.bf16 %v7637_v31  ;;  %v7638_v4 = vunpack.i.l.bf16 %v7637_v31 }
 0x5c2   : > { %v7657_v36 = vpop.permute.xlu1 %7656 }
 0x5c3   : > { %4323 = vmatpush.msra.mxu1 %v7639_v6  ;;  %v4144_v1 = vsel %vm4139_vm9, %v7638_v4, %v7639_v6  ;;  %v7659_v22 = vunpack.i.h.bf16 %v7657_v36  ;;  %v7658_v32 = vunpack.i.l.bf16 %v7657_v36  ;;  %v10494_v30 = vpop.f32.mrf.mxu3  ;;  %v6973_v4 = vld [vmem:[%s12614_s4 + $0x218] sm:$0xff] }
 0x5c4   : > { %4246 = vmatpush.msra.mxu0 %v4144_v1  ;;  %6903 = vmatmul.msk.f32.gmra.mxu3 %vm2927_vm7, %v2808_v35  ;;  %12897 = vst [vmem:[#allocation7_spill] sm:$0xff] %v10494_v30 }
 0x5c5   : > { %4324 = vmatpush.msra.mxu1 %v7644_v13  ;;  %v4140_v49 = vsel %vm4139_vm9, %v7658_v32, %v7659_v22  ;;  %6882 = vmatmul.msk.f32.gmra.mxu2 %vm2927_vm7, %v2808_v35  ;;  %v6906_v13 = vld [vmem:[%s12614_s4 + $0x150] sm:$0xff]  ;;  %v6977_v35 = vld [vmem:[%s12614_s4 + $0x238] sm:$0xff] }
 0x5c6   : > { %4247 = vmatpush.msra.mxu0 %v4143_v27 }
 0x5c7   : > { %6853 = vmatmul.msk.f32.gmra.mxu1 %vm2927_vm7, %v6811_v37  ;;  %6832 = vmatmul.msk.f32.gmra.mxu0 %vm2927_vm7, %v6811_v37  ;;  %v6974_v37 = vld [vmem:[%s12614_s4 + $0x220] sm:$0xff] }
 0x5c8   : > { %4325 = vmatpush.msra.mxu1 %v7649_v48  ;;  %v7652_v11 = vpop.permute.xlu0 %7651  ;;  %4248 = vmatpush.msra.mxu0 %v4142_v5  ;;  %v10504_v18 = vpop.f32.mrf.mxu2 }
 0x5c9   : > { %v7654_v24 = vunpack.i.h.bf16 %v7652_v11  ;;  %v7653_v57 = vunpack.i.l.bf16 %v7652_v11  ;;  %v6908_v11 = vld [vmem:[%s12614_s4 + $0x160] sm:$0xff] }
 0x5cb   : > { %4326 = vmatpush.msra.mxu1 %v7654_v24  ;;  %v4141_v44 = vsel %vm4139_vm9, %v7653_v57, %v7654_v24  ;;  %v10520_v41 = vpop.f32.mrf.mxu3 }
 0x5cc   : > { %4249 = vmatpush.msra.mxu0 %v4141_v44  ;;  %7008 = vmatmul.msk.f32.vlgmr.msrb.gmra.mxu3 %vm2927_vm7, %v6966_v60 }
 0x5cd   : > { %4327 = vmatpush.msra.mxu1 %v7659_v22  ;;  %6987 = vmatmul.msk.f32.vlgmr.msrb.gmra.mxu2 %vm2927_vm7, %v6966_v60  ;;  %v6975_v22 = vld [vmem:[%s12614_s4 + $0x228] sm:$0xff] }
 0x5ce   : > { %4250 = vmatpush.msra.mxu0 %v4140_v49 }
 0x5cf   : > { %6854 = vmatmul.msk.f32.gmra.mxu1 %vm2927_vm7, %v6812_v14  ;;  %6833 = vmatmul.msk.f32.gmra.mxu0 %vm2927_vm7, %v6812_v14  ;;  %v6976_v14 = vld [vmem:[%s12614_s4 + $0x230] sm:$0xff] }
 0x5d0   : > { %v10523_v9 = vpop.f32.mrf.mxu2 }
 0x5d4   : > { %7009 = vmatmul.msk.f32.gmra.mxu3 %vm2927_vm7, %v6967_v40  ;;  %v10539_v58 = vpop.f32.mrf.mxu3 }
 0x5d5   : > { %6988 = vmatmul.msk.f32.gmra.mxu2 %vm2927_vm7, %v6967_v40  ;;  %12901 = vst [vmem:[#allocation37_spill] sm:$0xff] %v10539_v58 }
 0x5d7   : > { %6855 = vmatmul.msk.f32.gmra.mxu1 %vm2927_vm7, %v6813_v55  ;;  %6834 = vmatmul.msk.f32.gmra.mxu0 %vm2927_vm7, %v6813_v55  ;;  %v6910_v55 = vld [vmem:[%s12614_s4 + $0x170] sm:$0xff] }
 0x5d8   : > { %v10543_v6 = vpop.f32.mrf.mxu2 }
 0x5d9   : > { %12902 = vst [vmem:[#allocation64_spill] sm:$0xff] %v10543_v6 }
 0x5dc   : > { %7010 = vmatmul.msk.f32.gmra.mxu3 %vm2927_vm7, %v6968_v47  ;;  %v10559_v1 = vpop.f32.mrf.mxu3 }
 0x5dd   : > { %6989 = vmatmul.msk.f32.gmra.mxu2 %vm2927_vm7, %v6968_v47  ;;  %12904 = vst [vmem:[#allocation45_spill] sm:$0xff] %v10559_v1  ;;  %v6978_v47 = vld [vmem:[%s12614_s4 + $0x240] sm:$0xff]  ;;  %v11083_v1 = vpop.permute.xlu0 %4521 }
 0x5df   : > { %6856 = vmatmul.msk.f32.gmra.mxu1 %vm2927_vm7, %v6814_v21  ;;  %6835 = vmatmul.msk.f32.gmra.mxu0 %vm2927_vm7, %v6814_v21 }
 0x5e0   : > { %v10564_v27 = vpop.f32.mrf.mxu2 }
 0x5e4   : > { %7011 = vmatmul.msk.f32.gmra.mxu3 %vm2927_vm7, %v6969_v33 }
 0x5e5   : > { %6990 = vmatmul.msk.f32.gmra.mxu2 %vm2927_vm7, %v6969_v33 }
 0x5e7   : > { %6857 = vmatmul.msk.f32.gmra.mxu1 %vm2927_vm7, %v6815_v8  ;;  %6836 = vmatmul.msk.f32.gmra.mxu0 %vm2927_vm7, %v6815_v8  ;;  %v10580_v32 = vpop.f32.mrf.mxu3 }
 0x5e8   : > { %12906 = vst [vmem:[#allocation48_spill] sm:$0xff] %v10580_v32  ;;  %v10590_v44 = vpop.f32.mrf.mxu2 }
 0x5ec   : > { %v10426_v2 = vpop.f32.mrf.mxu1  ;;  %v10428_v43 = vpop.f32.mrf.mxu0  ;;  %7012 = vmatmul.msk.f32.gmra.mxu3 %vm2927_vm7, %v6970_v23 }
 0x5ed   : > { %12892 = vst [vmem:[#allocation35_spill] sm:$0xff] %v10426_v2  ;;  %6991 = vmatmul.msk.f32.gmra.mxu2 %vm2927_vm7, %v6970_v23 }
 0x5ef   : > { %6858 = vmatmul.msk.f32.gmra.mxu1 %vm2927_vm7, %v6816_v15  ;;  %6837 = vmatmul.msk.f32.gmra.mxu0 %vm2927_vm7, %v6816_v15  ;;  %v10606_v52 = vpop.f32.mrf.mxu3  ;;  %v6911_v15 = vld [vmem:[%s12614_s4 + $0x178] sm:$0xff] }
 0x5f0   : > { %12909 = vst [vmem:[#allocation106_spill] sm:$0xff] %v10606_v52  ;;  %v10609_v21 = vpop.f32.mrf.mxu2 }
 0x5f4   : > { %v10444_v63 = vpop.f32.mrf.mxu1  ;;  %v10446_v56 = vpop.f32.mrf.mxu0  ;;  %7013 = vmatmul.msk.f32.gmra.mxu3 %vm2927_vm7, %v6971_v53 }
 0x5f5   : > { %12894 = vst [vmem:[#allocation5_spill] sm:$0xff] %v10444_v63  ;;  %6992 = vmatmul.msk.f32.gmra.mxu2 %vm2927_vm7, %v6971_v53  ;;  %v6984_v63 = vld [vmem:[%s12614_s4 + $0x270] sm:$0xff] }
 0x5f7   : > { %6859 = vmatmul.msk.f32.gmra.mxu1 %vm2927_vm7, %v6817_v34  ;;  %6838 = vmatmul.msk.f32.gmra.mxu0 %vm2927_vm7, %v6817_v34  ;;  %v10625_v40 = vpop.f32.mrf.mxu3 }
 0x5f8   : > { %12911 = vst [vmem:[#allocation38_spill] sm:$0xff] %v10625_v40  ;;  %v10629_v34 = vpop.f32.mrf.mxu2 }
 0x5fc   : > { %v10462_v20 = vpop.f32.mrf.mxu1  ;;  %v10464_v3 = vpop.f32.mrf.mxu0  ;;  %7014 = vmatmul.msk.f32.gmra.mxu3 %vm2927_vm7, %v6972_v12 }
 0x5fd   : > { %6993 = vmatmul.msk.f32.gmra.mxu2 %vm2927_vm7, %v6972_v12 }
 0x5ff   : > { %6860 = vmatmul.msk.f32.gmra.mxu1 %vm2927_vm7, %v6818_v7  ;;  %6839 = vmatmul.msk.f32.gmra.mxu0 %vm2927_vm7, %v6818_v7  ;;  %v10645_v23 = vpop.f32.mrf.mxu3 }
 0x600   : > { %12913 = vst [vmem:[#allocation50_spill] sm:$0xff] %v10645_v23  ;;  %v10650_v53 = vpop.f32.mrf.mxu2 }
 0x604   : > { %v10480_v0 = vpop.f32.mrf.mxu1  ;;  %v10482_v51 = vpop.f32.mrf.mxu0  ;;  %7015 = vmatmul.msk.f32.gmra.mxu3 %vm2927_vm7, %v6973_v4 }
 0x605   : > { %12896 = vst [vmem:[#allocation73_spill] sm:$0xff] %v10480_v0  ;;  %6994 = vmatmul.msk.f32.gmra.mxu2 %vm2927_vm7, %v6973_v4  ;;  %v6980_v4 = vld [vmem:[%s12614_s4 + $0x250] sm:$0xff] }
 0x607   : > { %6861 = vmatmul.msk.f32.gmra.mxu1 %vm2927_vm7, %v6819_v59  ;;  %6840 = vmatmul.msk.f32.gmra.mxu0 %vm2927_vm7, %v6819_v59  ;;  %v6912_v59 = vld [vmem:[%s12614_s4 + $0x180] sm:$0xff] }
 0x60c   : > { %v10496_v45 = vpop.f32.mrf.mxu1  ;;  %v10498_v50 = vpop.f32.mrf.mxu0  ;;  %7016 = vmatmul.msk.f32.gmra.mxu3 %vm2927_vm7, %v6974_v37 }
 0x60d   : > { %6995 = vmatmul.msk.f32.gmra.mxu2 %vm2927_vm7, %v6974_v37 }
 0x60f   : > { %6946 = vmatmul.msk.f32.vlgmr.msrb.gmra.mxu1 %vm2927_vm7, %v6904_v10  ;;  %6925 = vmatmul.msk.f32.vlgmr.msrb.gmra.mxu0 %vm2927_vm7, %v6904_v10  ;;  %v6979_v10 = vld [vmem:[%s12614_s4 + $0x248] sm:$0xff] }
 0x614   : > { %v10512_v61 = vpop.f32.mrf.mxu1  ;;  %v10514_v17 = vpop.f32.mrf.mxu0  ;;  %7017 = vmatmul.msk.f32.gmra.mxu3 %vm2927_vm7, %v6975_v22 }
 0x615   : > { %12898 = vst [vmem:[#allocation42_spill] sm:$0xff] %v10512_v61  ;;  %6996 = vmatmul.msk.f32.gmra.mxu2 %vm2927_vm7, %v6975_v22  ;;  %v6914_v22 = vld [vmem:[%s12614_s4 + $0x190] sm:$0xff] }
 0x616   : > { %12899 = vst [vmem:[#allocation33_spill] sm:$0xff] %v10514_v17  ;;  %v11091_v17 = vpop.permute.xlu1 %4516 }
 0x617   : > { %6947 = vmatmul.msk.f32.gmra.mxu1 %vm2927_vm7, %v6905_v62  ;;  %6926 = vmatmul.msk.f32.gmra.mxu0 %vm2927_vm7, %v6905_v62 }
 0x61c   : > { %v10530_v54 = vpop.f32.mrf.mxu1  ;;  %v10532_v31 = vpop.f32.mrf.mxu0  ;;  %7018 = vmatmul.msk.f32.gmra.mxu3 %vm2927_vm7, %v6976_v14 }
 0x61d   : > { %12900 = vst [vmem:[#allocation58_spill] sm:$0xff] %v10530_v54  ;;  %6997 = vmatmul.msk.f32.gmra.mxu2 %vm2927_vm7, %v6976_v14  ;;  %v6981_v14 = vld [vmem:[%s12614_s4 + $0x258] sm:$0xff] }
 0x61f   : > { %6948 = vmatmul.msk.f32.gmra.mxu1 %vm2927_vm7, %v6906_v13  ;;  %6927 = vmatmul.msk.f32.gmra.mxu0 %vm2927_vm7, %v6906_v13  ;;  %v6913_v13 = vld [vmem:[%s12614_s4 + $0x188] sm:$0xff] }
 0x624   : > { %v10548_v25 = vpop.f32.mrf.mxu1  ;;  %v10550_v48 = vpop.f32.mrf.mxu0  ;;  %7019 = vmatmul.msk.f32.gmra.mxu3 %vm2927_vm7, %v6977_v35 }
 0x625   : > { %12903 = vst [vmem:[#allocation9_spill] sm:$0xff] %v10548_v25  ;;  %6998 = vmatmul.msk.f32.gmra.mxu2 %vm2927_vm7, %v6977_v35 }
 0x627   : > { %6949 = vmatmul.msk.f32.gmra.mxu1 %vm2927_vm7, %v6907_v16  ;;  %6928 = vmatmul.msk.f32.gmra.mxu0 %vm2927_vm7, %v6907_v16  ;;  %v10666_v16 = vpop.f32.mrf.mxu3 }
 0x628   : > { %12915 = vst [vmem:[#allocation51_spill] sm:$0xff] %v10666_v16 }
 0x62c   : > { %v10566_v36 = vpop.f32.mrf.mxu1  ;;  %v10568_v5 = vpop.f32.mrf.mxu0  ;;  %7020 = vmatmul.msk.f32.gmra.mxu3 %vm2927_vm7, %v6978_v47 }
 0x62d   : > { %12905 = vst [vmem:[#allocation11_spill] sm:$0xff] %v10566_v36  ;;  %6999 = vmatmul.msk.f32.gmra.mxu2 %vm2927_vm7, %v6978_v47 }
 0x62f   : > { %6950 = vmatmul.msk.f32.gmra.mxu1 %vm2927_vm7, %v6908_v11  ;;  %6929 = vmatmul.msk.f32.gmra.mxu0 %vm2927_vm7, %v6908_v11  ;;  %v10692_v47 = vpop.f32.mrf.mxu3 }
 0x630   : > { %12918 = vst [vmem:[#allocation41_spill] sm:$0xff] %v10692_v47 }
 0x634   : > { %v10582_v24 = vpop.f32.mrf.mxu1  ;;  %v10584_v57 = vpop.f32.mrf.mxu0  ;;  %7021 = vmatmul.msk.f32.gmra.mxu3 %vm2927_vm7, %v6979_v10 }
 0x635   : > { %12907 = vst [vmem:[#allocation31_spill] sm:$0xff] %v10582_v24  ;;  %7000 = vmatmul.msk.f32.gmra.mxu2 %vm2927_vm7, %v6979_v10  ;;  %v6982_v10 = vld [vmem:[%s12614_s4 + $0x260] sm:$0xff] }
 0x637   : > { %6951 = vmatmul.msk.f32.gmra.mxu1 %vm2927_vm7, %v6909_v38  ;;  %6930 = vmatmul.msk.f32.gmra.mxu0 %vm2927_vm7, %v6909_v38  ;;  %v10676_v38 = vpop.f32.mrf.mxu2 }
 0x63c   : > { %v10598_v49 = vpop.f32.mrf.mxu1  ;;  %v10600_v19 = vpop.f32.mrf.mxu0  ;;  %7022 = vmatmul.msk.f32.gmra.mxu3 %vm2927_vm7, %v6980_v4 }
 0x63d   : > { %12908 = vst [vmem:[#allocation54_spill] sm:$0xff] %v10598_v49  ;;  %7001 = vmatmul.msk.f32.gmra.mxu2 %vm2927_vm7, %v6980_v4 }
 0x63f   : > { %6952 = vmatmul.msk.f32.gmra.mxu1 %vm2927_vm7, %v6910_v55  ;;  %6931 = vmatmul.msk.f32.gmra.mxu0 %vm2927_vm7, %v6910_v55 }
 0x644   : > { %v10616_v8 = vpop.f32.mrf.mxu1  ;;  %v10618_v60 = vpop.f32.mrf.mxu0  ;;  %7023 = vmatmul.msk.f32.gmra.mxu3 %vm2927_vm7, %v6981_v14 }
 0x645   : > { %12910 = vst [vmem:[#allocation18_spill] sm:$0xff] %v10616_v8  ;;  %7002 = vmatmul.msk.f32.gmra.mxu2 %vm2927_vm7, %v6981_v14  ;;  %v10711_v14 = vpop.f32.mrf.mxu3 }
 0x646   : > { %12921 = vst [vmem:[#allocation27_spill] sm:$0xff] %v10711_v14 }
 0x647   : > { %6953 = vmatmul.msk.f32.gmra.mxu1 %vm2927_vm7, %v6911_v15  ;;  %6932 = vmatmul.msk.f32.gmra.mxu0 %vm2927_vm7, %v6911_v15  ;;  %v6915_v15 = vld [vmem:[%s12614_s4 + $0x198] sm:$0xff] }
 0x64c   : > { %v10634_v7 = vpop.f32.mrf.mxu1  ;;  %v10636_v33 = vpop.f32.mrf.mxu0  ;;  %7024 = vmatmul.msk.f32.gmra.mxu3 %vm2927_vm7, %v6982_v10 }
 0x64d   : > { %12912 = vst [vmem:[#allocation12_spill] sm:$0xff] %v10634_v7 }
 0x64f   : > { %6954 = vmatmul.msk.f32.gmra.mxu1 %vm2927_vm7, %v6912_v59  ;;  %6933 = vmatmul.msk.f32.gmra.mxu0 %vm2927_vm7, %v6912_v59  ;;  %v10695_v59 = vpop.f32.mrf.mxu2 }
 0x650   : > { %7003 = vmatmul.msk.f32.gmra.mxu2 %vm2927_vm7, %v6982_v10  ;;  %v6917_v10 = vld [vmem:[%s12614_s4 + $0x1a8] sm:$0xff] }
 0x654   : > { %v10652_v62 = vpop.f32.mrf.mxu1  ;;  %v10654_v12 = vpop.f32.mrf.mxu0  ;;  %7025 = vmatmul.msk.f32.gmra.mxu3 %vm2927_vm7, %v6983_v39 }
 0x655   : > { %12914 = vst [vmem:[#allocation29_spill] sm:$0xff] %v10652_v62 }
 0x657   : > { %6955 = vmatmul.msk.f32.gmra.mxu1 %vm2927_vm7, %v6913_v13  ;;  %6934 = vmatmul.msk.f32.gmra.mxu0 %vm2927_vm7, %v6913_v13 }
 0x65c   : > { %v10668_v37 = vpop.f32.mrf.mxu1  ;;  %v10670_v11 = vpop.f32.mrf.mxu0 }
 0x65d   : > { %12916 = vst [vmem:[#allocation102_spill] sm:$0xff] %v10668_v37 }
 0x65f   : > { %6956 = vmatmul.msk.f32.gmra.mxu1 %vm2927_vm7, %v6914_v22  ;;  %6935 = vmatmul.msk.f32.gmra.mxu0 %vm2927_vm7, %v6914_v22  ;;  %v6916_v22 = vld [vmem:[%s12614_s4 + $0x1a0] sm:$0xff] }
 0x664   : > { %v10684_v55 = vpop.f32.mrf.mxu1  ;;  %v10686_v35 = vpop.f32.mrf.mxu0 }
 0x665   : > { %12917 = vst [vmem:[#allocation19_spill] sm:$0xff] %v10684_v55 }
 0x667   : > { %6957 = vmatmul.msk.f32.gmra.mxu1 %vm2927_vm7, %v6915_v15  ;;  %6936 = vmatmul.msk.f32.gmra.mxu0 %vm2927_vm7, %v6915_v15  ;;  %v10715_v15 = vpop.f32.mrf.mxu2 }
 0x668   : > { %7004 = vmatmul.msk.f32.gmra.mxu2 %vm2927_vm7, %v6983_v39  ;;  %v6918_v39 = vld [vmem:[%s12614_s4 + $0x1b0] sm:$0xff] }
 0x66c   : > { %v10702_v13 = vpop.f32.mrf.mxu1  ;;  %v10704_v4 = vpop.f32.mrf.mxu0 }
 0x66d   : > { %12919 = vst [vmem:[#allocation21_spill] sm:$0xff] %v10702_v13 }
 0x66e   : > { %12920 = vst [vmem:[#allocation44_spill] sm:$0xff] %v10704_v4  ;;  %v6919_v4 = vld [vmem:[%s12614_s4 + $0x1b8] sm:$0xff] }
 0x66f   : > { %6958 = vmatmul.msk.f32.gmra.mxu1 %vm2927_vm7, %v6916_v22  ;;  %6937 = vmatmul.msk.f32.gmra.mxu0 %vm2927_vm7, %v6916_v22  ;;  %v10731_v22 = vpop.f32.mrf.mxu3  ;;  %v10736_v30 = vpop.f32.mrf.mxu2 }
 0x670   : > { %12924 = vst [vmem:[#allocation23_spill] sm:$0xff] %v10731_v22  ;;  %7026 = vmatmul.msk.f32.gmra.mxu3 %vm2927_vm7, %v6984_v63  ;;  %7005 = vmatmul.msk.f32.gmra.mxu2 %vm2927_vm7, %v6984_v63 }
 0x674   : > { %v10720_v2 = vpop.f32.mrf.mxu1  ;;  %v10722_v26 = vpop.f32.mrf.mxu0 }
 0x675   : > { %12922 = vst [vmem:[#allocation49_spill] sm:$0xff] %v10720_v2 }
 0x676   : > { %12923 = vst [vmem:[#allocation100_spill] sm:$0xff] %v10722_v26 }
 0x677   : > { %6959 = vmatmul.msk.f32.gmra.mxu1 %vm2927_vm7, %v6917_v10  ;;  %6938 = vmatmul.msk.f32.gmra.mxu0 %vm2927_vm7, %v6917_v10  ;;  %v6985_v10 = vld [vmem:[%s12614_s4 + $0x278] sm:$0xff]  ;;  %v10752_v2 = vpop.f32.mrf.mxu3  ;;  %v10762_v63 = vpop.f32.mrf.mxu2 }
 0x678   : > { %12927 = vst [vmem:[#allocation47_spill] sm:$0xff] %v10752_v2  ;;  %7027 = vmatmul.msk.f32.gmra.mxu3 %vm2927_vm7, %v6985_v10  ;;  %7006 = vmatmul.msk.f32.gmra.mxu2 %vm2927_vm7, %v6985_v10 }
 0x67c   : > { %v10738_v0 = vpop.f32.mrf.mxu1  ;;  %v10740_v26 = vpop.f32.mrf.mxu0 }
 0x67d   : > { %12925 = vst [vmem:[#allocation46_spill] sm:$0xff] %v10738_v0 }
 0x67e   : > { %12926 = vst [vmem:[#allocation25_spill] sm:$0xff] %v10740_v26 }
 0x67f   : > { %6960 = vmatmul.msk.f32.gmra.mxu1 %vm2927_vm7, %v6918_v39  ;;  %6939 = vmatmul.msk.f32.gmra.mxu0 %vm2927_vm7, %v6918_v39 }
 0x684   : > { %v10754_v0 = vpop.f32.mrf.mxu1  ;;  %v10756_v26 = vpop.f32.mrf.mxu0 }
 0x685   : > { %12928 = vst [vmem:[#allocation65_spill] sm:$0xff] %v10754_v0 }
 0x686   : > { %12929 = vst [vmem:[#allocation97_spill] sm:$0xff] %v10756_v26  ;;  %v6920_v26 = vld [vmem:[%s12614_s4 + $0x1c0] sm:$0xff] }
 0x687   : > { %6961 = vmatmul.msk.f32.gmra.mxu1 %vm2927_vm7, %v6919_v4  ;;  %6940 = vmatmul.msk.f32.gmra.mxu0 %vm2927_vm7, %v6919_v4  ;;  %v6921_v4 = vld [vmem:[%s12614_s4 + $0x1c8] sm:$0xff] }
 0x68c   : > { %v10767_v39 = vpop.f32.mrf.mxu1  ;;  %v10769_v13 = vpop.f32.mrf.mxu0 }
 0x68d   : > { %12930 = vst [vmem:[#allocation62_spill] sm:$0xff] %v10767_v39 }
 0x68e   : > { %12931 = vst [vmem:[#allocation69_spill] sm:$0xff] %v10769_v13 }
 0x68f   : > { %6962 = vmatmul.msk.f32.gmra.mxu1 %vm2927_vm7, %v6920_v26  ;;  %6941 = vmatmul.msk.f32.gmra.mxu0 %vm2927_vm7, %v6920_v26  ;;  %v6922_v26 = vld [vmem:[%s12614_s4 + $0x1d0] sm:$0xff] }
 0x694   : > { %v10776_v0 = vpop.f32.mrf.mxu1  ;;  %v10778_v2 = vpop.f32.mrf.mxu0 }
 0x695   : > { %12932 = vst [vmem:[#allocation95_spill] sm:$0xff] %v10776_v0 }
 0x696   : > { %12933 = vst [vmem:[#allocation103_spill] sm:$0xff] %v10778_v2 }
 0x697   : > { %6963 = vmatmul.msk.f32.gmra.mxu1 %vm2927_vm7, %v6921_v4  ;;  %6942 = vmatmul.msk.f32.gmra.mxu0 %vm2927_vm7, %v6921_v4  ;;  %v6923_v4 = vld [vmem:[%s12614_s4 + $0x1d8] sm:$0xff] }
 0x69c   : > { %v10785_v10 = vpop.f32.mrf.mxu1  ;;  %v10787_v39 = vpop.f32.mrf.mxu0 }
 0x69d   : > { %12934 = vst [vmem:[#allocation59_spill] sm:$0xff] %v10785_v10 }
 0x69e   : > { %12935 = vst [vmem:[#allocation93_spill] sm:$0xff] %v10787_v39 }
 0x69f   : > { %6964 = vmatmul.msk.f32.gmra.mxu1 %vm2927_vm7, %v6922_v26  ;;  %6943 = vmatmul.msk.f32.gmra.mxu0 %vm2927_vm7, %v6922_v26  ;;  %v7028_v26 = vld [vmem:[%s12614_s4 + $0x280] sm:$0xff] }
 0x6a4   : > { %v10794_v0 = vpop.f32.mrf.mxu1  ;;  %v10796_v2 = vpop.f32.mrf.mxu0 }
 0x6a5   : > { %12936 = vst [vmem:[#allocation101_spill] sm:$0xff] %v10794_v0 }
 0x6a6   : > { %12937 = vst [vmem:[#allocation55_spill] sm:$0xff] %v10796_v2 }
 0x6a7   : > { %6965 = vmatmul.msk.f32.gmra.mxu1 %vm2927_vm7, %v6923_v4  ;;  %6944 = vmatmul.msk.f32.gmra.mxu0 %vm2927_vm7, %v6923_v4  ;;  %v7029_v4 = vld [vmem:[%s12614_s4 + $0x288] sm:$0xff] }
 0x6ac   : > { %v10803_v10 = vpop.f32.mrf.mxu1  ;;  %v10805_v39 = vpop.f32.mrf.mxu0 }
 0x6ad   : > { %12938 = vst [vmem:[#allocation91_spill] sm:$0xff] %v10803_v10 }
 0x6ae   : > { %12939 = vst [vmem:[#allocation99_spill] sm:$0xff] %v10805_v39 }
 0x6af   : > { %7070 = vmatmul.msk.f32.vlgmr.msra.gmra.mxu1 %vm2927_vm7, %v7028_v26  ;;  %7049 = vmatmul.msk.f32.vlgmr.msra.gmra.mxu0 %vm2927_vm7, %v7028_v26  ;;  %v7030_v26 = vld [vmem:[%s12614_s4 + $0x290] sm:$0xff] }
 0x6b4   : > { %v10812_v0 = vpop.f32.mrf.mxu1  ;;  %v10814_v13 = vpop.f32.mrf.mxu0 }
 0x6b5   : > { %12940 = vst [vmem:[#allocation105_spill] sm:$0xff] %v10812_v0 }
 0x6b6   : > { %12941 = vst [vmem:[#allocation88_spill] sm:$0xff] %v10814_v13 }
 0x6b7   : > { %7071 = vmatmul.msk.f32.gmra.mxu1 %vm2927_vm7, %v7029_v4  ;;  %7050 = vmatmul.msk.f32.gmra.mxu0 %vm2927_vm7, %v7029_v4  ;;  %v7031_v4 = vld [vmem:[%s12614_s4 + $0x298] sm:$0xff] }
 0x6bc   : > { %v10821_v10 = vpop.f32.mrf.mxu1  ;;  %v10823_v2 = vpop.f32.mrf.mxu0 }
 0x6bd   : > { %12942 = vst [vmem:[#allocation98_spill] sm:$0xff] %v10821_v10 }
 0x6be   : > { %12943 = vst [vmem:[#allocation17_spill] sm:$0xff] %v10823_v2  ;;  %v11077_v2 = vpop.permute.xlu2 %4526 }
 0x6bf   : > { %7072 = vmatmul.msk.f32.gmra.mxu1 %vm2927_vm7, %v7030_v26  ;;  %7051 = vmatmul.msk.f32.gmra.mxu0 %vm2927_vm7, %v7030_v26  ;;  %v7032_v26 = vld [vmem:[%s12614_s4 + $0x2a0] sm:$0xff] }
 0x6c4   : > { %v10830_v0 = vpop.f32.mrf.mxu1  ;;  %v10832_v55 = vpop.f32.mrf.mxu0 }
 0x6c5   : > { %12944 = vst [vmem:[#allocation36_spill] sm:$0xff] %v10830_v0 }
 0x6c6   : > { %v11085_v54 = vpop.permute.xlu2 %4511 }
 0x6c7   : > { %7073 = vmatmul.msk.f32.gmra.mxu1 %vm2927_vm7, %v7031_v4  ;;  %7052 = vmatmul.msk.f32.gmra.mxu0 %vm2927_vm7, %v7031_v4  ;;  %v7033_v4 = vld [vmem:[%s12614_s4 + $0x2a8] sm:$0xff]  ;;  %13017 = vst [vmem:[#allocation127_spill] sm:$0xff] %v11085_v54 }
 0x6cc   : > { %v10839_v10 = vpop.f32.mrf.mxu1  ;;  %v10841_v22 = vpop.f32.mrf.mxu0 }
 0x6cd   : > { %12945 = vst [vmem:[#allocation85_spill] sm:$0xff] %v10839_v10  ;;  %v10857_v10 = vpop.f32.mrf.mxu2 }
 0x6ce   : > { %12947 = vst [vmem:[#allocation16_spill] sm:$0xff] %v10857_v10  ;;  %v11095_v61 = vpop.permute.xlu2 %4496 }
 0x6cf   : > { %7074 = vmatmul.msk.f32.gmra.mxu1 %vm2927_vm7, %v7032_v26  ;;  %7053 = vmatmul.msk.f32.gmra.mxu0 %vm2927_vm7, %v7032_v26  ;;  %v7034_v26 = vld [vmem:[%s12614_s4 + $0x2b0] sm:$0xff]  ;;  %13021 = vst [vmem:[#allocation131_spill] sm:$0xff] %v11095_v61  ;;  %v3265_v61 = vadd.f32 %v10695_v59, %v10636_v33  ;;  %v11128_v59 = vadd.f32 %v10438_v46, %v10428_v43 }
 0x6d0   : > { %v11143_v43 = vadd.f32 %v10473_v28, %v10462_v20  ;;  %v3253_v46 = vadd.f32 %v10609_v21, %v10568_v5 }
 0x6d2   : > { %13026 = vst [vmem:[#allocation136_spill] sm:$0xff] %v11143_v43  ;;  %v3695_v20 = vadd.f32 %v10841_v22, %v3253_v46  ;;  %v13045_v46 = vld [vmem:[#allocation11_spill] sm:$0xff] }
 0x6d4   : > { %v10848_v0 = vpop.f32.mrf.mxu1  ;;  %v10850_v37 = vpop.f32.mrf.mxu0 }
 0x6d5   : > { %12946 = vst [vmem:[#allocation96_spill] sm:$0xff] %v10848_v0  ;;  %v10866_v0 = vpop.f32.mrf.mxu3 }
 0x6d6   : > { %12949 = vst [vmem:[#allocation82_spill] sm:$0xff] %v10866_v0 }
 0x6d7   : > { %7075 = vmatmul.msk.f32.gmra.mxu1 %vm2927_vm7, %v7033_v4  ;;  %7054 = vmatmul.msk.f32.gmra.mxu0 %vm2927_vm7, %v7033_v4  ;;  %v7035_v4 = vld [vmem:[%s12614_s4 + $0x2b8] sm:$0xff] }
 0x6dc   : > { %v10859_v14 = vpop.f32.mrf.mxu1  ;;  %v10861_v62 = vpop.f32.mrf.mxu0 }
 0x6dd   : > { %12948 = vst [vmem:[#allocation34_spill] sm:$0xff] %v10859_v14  ;;  %v10877_v14 = vpop.f32.mrf.mxu2  ;;  %v10879_v10 = vpop.f32.mrf.mxu3 }
 0x6de   : > { %12951 = vst [vmem:[#allocation15_spill] sm:$0xff] %v10877_v14 }
 0x6df   : > { %7076 = vmatmul.msk.f32.gmra.mxu1 %vm2927_vm7, %v7034_v26  ;;  %7055 = vmatmul.msk.f32.gmra.mxu0 %vm2927_vm7, %v7034_v26  ;;  %12952 = vst [vmem:[#allocation32_spill] sm:$0xff] %v10879_v10  ;;  %v7036_v26 = vld [vmem:[%s12614_s4 + $0x2c0] sm:$0xff] }
 0x6e4   : > { %v10870_v39 = vpop.f32.mrf.mxu1  ;;  %v10872_v47 = vpop.f32.mrf.mxu0 }
 0x6e5   : > { %12950 = vst [vmem:[#allocation94_spill] sm:$0xff] %v10870_v39  ;;  %v10890_v39 = vpop.f32.mrf.mxu2  ;;  %v10894_v14 = vpop.f32.mrf.mxu3 }
 0x6e6   : > { %12954 = vst [vmem:[#allocation92_spill] sm:$0xff] %v10890_v39 }
 0x6e7   : > { %7077 = vmatmul.msk.f32.gmra.mxu1 %vm2927_vm7, %v7035_v4  ;;  %7056 = vmatmul.msk.f32.gmra.mxu0 %vm2927_vm7, %v7035_v4  ;;  %12955 = vst [vmem:[#allocation14_spill] sm:$0xff] %v10894_v14  ;;  %v7037_v4 = vld [vmem:[%s12614_s4 + $0x2c8] sm:$0xff] }
 0x6ec   : > { %v10883_v0 = vpop.f32.mrf.mxu1  ;;  %v10885_v7 = vpop.f32.mrf.mxu0 }
 0x6ed   : > { %12953 = vst [vmem:[#allocation79_spill] sm:$0xff] %v10883_v0  ;;  %v10905_v0 = vpop.f32.mrf.mxu2  ;;  %v10907_v39 = vpop.f32.mrf.mxu3 }
 0x6ee   : > { %12957 = vst [vmem:[#allocation74_spill] sm:$0xff] %v10905_v0 }
 0x6ef   : > { %7078 = vmatmul.msk.f32.gmra.mxu1 %vm2927_vm7, %v7036_v26  ;;  %7057 = vmatmul.msk.f32.gmra.mxu0 %vm2927_vm7, %v7036_v26  ;;  %12958 = vst [vmem:[#allocation90_spill] sm:$0xff] %v10907_v39 }
 0x6f4   : > { %v10896_v10 = vpop.f32.mrf.mxu1  ;;  %v10898_v16 = vpop.f32.mrf.mxu0 }
 0x6f5   : > { %12956 = vst [vmem:[#allocation30_spill] sm:$0xff] %v10896_v10  ;;  %v7038_v10 = vld [vmem:[%s12614_s4 + $0x2d0] sm:$0xff]  ;;  %v10918_v14 = vpop.f32.mrf.mxu2  ;;  %v10927_v0 = vpop.f32.mrf.mxu3 }
 0x6f6   : > { %12960 = vst [vmem:[#allocation28_spill] sm:$0xff] %v10918_v14 }
 0x6f7   : > { %7079 = vmatmul.msk.f32.gmra.mxu1 %vm2927_vm7, %v7037_v4  ;;  %7058 = vmatmul.msk.f32.gmra.mxu0 %vm2927_vm7, %v7037_v4  ;;  %12962 = vst [vmem:[#allocation89_spill] sm:$0xff] %v10927_v0 }
 0x6fc   : > { %v10909_v8 = vpop.f32.mrf.mxu1  ;;  %v10911_v26 = vpop.f32.mrf.mxu0 }
 0x6fd   : > { %12959 = vst [vmem:[#allocation13_spill] sm:$0xff] %v10909_v8  ;;  %v7039_v8 = vld [vmem:[%s12614_s4 + $0x2d8] sm:$0xff]  ;;  %v10931_v39 = vpop.f32.mrf.mxu2  ;;  %v10940_v14 = vpop.f32.mrf.mxu3 }
 0x6fe   : > { %12963 = vst [vmem:[#allocation67_spill] sm:$0xff] %v10931_v39 }
 0x6ff   : > { %7080 = vmatmul.msk.f32.gmra.mxu1 %vm2927_vm7, %v7038_v10  ;;  %7059 = vmatmul.msk.f32.gmra.mxu0 %vm2927_vm7, %v7038_v10  ;;  %12966 = vst [vmem:[#allocation3_spill] sm:$0xff] %v10940_v14 }
 0x704   : > { %v10920_v23 = vpop.f32.mrf.mxu1  ;;  %v10922_v4 = vpop.f32.mrf.mxu0 }
 0x705   : > { %12961 = vst [vmem:[#allocation71_spill] sm:$0xff] %v10920_v23  ;;  %v7040_v23 = vld [vmem:[%s12614_s4 + $0x2e0] sm:$0xff] }
 0x707   : > { %7081 = vmatmul.msk.f32.gmra.mxu1 %vm2927_vm7, %v7039_v8  ;;  %7060 = vmatmul.msk.f32.gmra.mxu0 %vm2927_vm7, %v7039_v8  ;;  %v7041_v8 = vld [vmem:[%s12614_s4 + $0x2e8] sm:$0xff] }
 0x70c   : > { %v10933_v49 = vpop.f32.mrf.mxu1  ;;  %v10935_v10 = vpop.f32.mrf.mxu0 }
 0x70d   : > { %12964 = vst [vmem:[#allocation86_spill] sm:$0xff] %v10933_v49  ;;  %v10951_v49 = vpop.f32.mrf.mxu2 }
 0x70e   : > { %12965 = vst [vmem:[#allocation83_spill] sm:$0xff] %v10935_v10  ;;  %v10955_v10 = vpop.f32.mrf.mxu3 }
 0x70f   : > { %7082 = vmatmul.msk.f32.gmra.mxu1 %vm2927_vm7, %v7040_v23  ;;  %7061 = vmatmul.msk.f32.gmra.mxu0 %vm2927_vm7, %v7040_v23  ;;  %12969 = vst [vmem:[#allocation63_spill] sm:$0xff] %v10951_v49  ;;  %v7042_v23 = vld [vmem:[%s12614_s4 + $0x2f0] sm:$0xff] }
 0x710   : > { %12970 = vst [vmem:[#allocation2_spill] sm:$0xff] %v10955_v10  ;;  %v7043_v10 = vld [vmem:[%s12614_s4 + $0x2f8] sm:$0xff] }
 0x714   : > { %v10944_v0 = vpop.f32.mrf.mxu1  ;;  %v10946_v13 = vpop.f32.mrf.mxu0 }
 0x715   : > { %12967 = vst [vmem:[#allocation57_spill] sm:$0xff] %v10944_v0  ;;  %v10964_v0 = vpop.f32.mrf.mxu2 }
 0x716   : > { %12968 = vst [vmem:[#allocation4_spill] sm:$0xff] %v10946_v13  ;;  %v10968_v13 = vpop.f32.mrf.mxu3 }
 0x717   : > { %7083 = vmatmul.msk.f32.gmra.mxu1 %vm2927_vm7, %v7041_v8  ;;  %7062 = vmatmul.msk.f32.gmra.mxu0 %vm2927_vm7, %v7041_v8  ;;  %12973 = vst [vmem:[#allocation80_spill] sm:$0xff] %v10964_v0 }
 0x718   : > { %12974 = vst [vmem:[#allocation75_spill] sm:$0xff] %v10968_v13 }
 0x71c   : > { %v10957_v14 = vpop.f32.mrf.mxu1  ;;  %v10959_v39 = vpop.f32.mrf.mxu0 }
 0x71d   : > { %12971 = vst [vmem:[#allocation53_spill] sm:$0xff] %v10957_v14  ;;  %v10979_v14 = vpop.f32.mrf.mxu2 }
 0x71e   : > { %12972 = vst [vmem:[#allocation77_spill] sm:$0xff] %v10959_v39  ;;  %v10988_v13 = vpop.f32.mrf.mxu3 }
 0x71f   : > { %7084 = vmatmul.msk.f32.gmra.mxu1 %vm2927_vm7, %v7042_v23  ;;  %7063 = vmatmul.msk.f32.gmra.mxu0 %vm2927_vm7, %v7042_v23  ;;  %12977 = vst [vmem:[#allocation40_spill] sm:$0xff] %v10979_v14  ;;  %v7044_v23 = vld [vmem:[%s12614_s4 + $0x300] sm:$0xff] }
 0x720   : > { %12980 = vst [vmem:[#allocation20_spill] sm:$0xff] %v10988_v13 }
 0x724   : > { %v10970_v49 = vpop.f32.mrf.mxu1  ;;  %v10972_v8 = vpop.f32.mrf.mxu0 }
 0x725   : > { %12975 = vst [vmem:[#allocation43_spill] sm:$0xff] %v10970_v49  ;;  %v10992_v49 = vpop.f32.mrf.mxu2 }
 0x726   : > { %12976 = vst [vmem:[#allocation72_spill] sm:$0xff] %v10972_v8 }
 0x727   : > { %7085 = vmatmul.msk.f32.gmra.mxu1 %vm2927_vm7, %v7043_v10  ;;  %7064 = vmatmul.msk.f32.gmra.mxu0 %vm2927_vm7, %v7043_v10  ;;  %12981 = vst [vmem:[#allocation56_spill] sm:$0xff] %v10992_v49 }
 0x72c   : > { %v10981_v39 = vpop.f32.mrf.mxu1  ;;  %v10983_v0 = vpop.f32.mrf.mxu0 }
 0x72d   : > { %12978 = vst [vmem:[#allocation68_spill] sm:$0xff] %v10981_v39  ;;  %v7045_v39 = vld [vmem:[%s12614_s4 + $0x308] sm:$0xff] }
 0x72e   : > { %12979 = vst [vmem:[#allocation6_spill] sm:$0xff] %v10983_v0  ;;  %v11001_v0 = vpop.f32.mrf.mxu3 }
 0x72f   : > { %7086 = vmatmul.msk.f32.gmra.mxu1 %vm2927_vm7, %v7044_v23  ;;  %7065 = vmatmul.msk.f32.gmra.mxu0 %vm2927_vm7, %v7044_v23  ;;  %12984 = vst [vmem:[#allocation87_spill] sm:$0xff] %v11001_v0  ;;  %v7046_v23 = vld [vmem:[%s12614_s4 + $0x310] sm:$0xff] }
 0x734   : > { %v10994_v8 = vpop.f32.mrf.mxu1  ;;  %v10996_v10 = vpop.f32.mrf.mxu0 }
 0x735   : > { %12982 = vst [vmem:[#allocation78_spill] sm:$0xff] %v10994_v8  ;;  %v11012_v8 = vpop.f32.mrf.mxu2 }
 0x736   : > { %12983 = vst [vmem:[#allocation26_spill] sm:$0xff] %v10996_v10  ;;  %v11016_v10 = vpop.f32.mrf.mxu3 }
 0x737   : > { %7087 = vmatmul.msk.f32.gmra.mxu1 %vm2927_vm7, %v7045_v39  ;;  %7066 = vmatmul.msk.f32.gmra.mxu0 %vm2927_vm7, %v7045_v39  ;;  %12987 = vst [vmem:[#allocation66_spill] sm:$0xff] %v11012_v8  ;;  %v7047_v39 = vld [vmem:[%s12614_s4 + $0x318] sm:$0xff] }
 0x738   : > { %12988 = vst [vmem:[#allocation104_spill] sm:$0xff] %v11016_v10 }
 0x73c   : > { %v11005_v13 = vpop.f32.mrf.mxu1  ;;  %v11007_v14 = vpop.f32.mrf.mxu0 }
 0x73d   : > { %12985 = vst [vmem:[#allocation84_spill] sm:$0xff] %v11005_v13  ;;  %v11025_v13 = vpop.f32.mrf.mxu2 }
 0x73e   : > { %12986 = vst [vmem:[#allocation22_spill] sm:$0xff] %v11007_v14  ;;  %v11029_v14 = vpop.f32.mrf.mxu3 }
 0x73f   : > { %7088 = vmatmul.msk.f32.gmra.mxu1 %vm2927_vm7, %v7046_v23  ;;  %7067 = vmatmul.msk.f32.gmra.mxu0 %vm2927_vm7, %v7046_v23  ;;  %12991 = vst [vmem:[#allocation70_spill] sm:$0xff] %v11025_v13 }
 0x740   : > { %12992 = vst [vmem:[#allocation10_spill] sm:$0xff] %v11029_v14 }
 0x744   : > { %v11018_v0 = vpop.f32.mrf.mxu1  ;;  %v11020_v49 = vpop.f32.mrf.mxu0 }
 0x745   : > { %12989 = vst [vmem:[#allocation52_spill] sm:$0xff] %v11018_v0  ;;  %v11035_v10 = vpop.f32.mrf.mxu2 }
 0x746   : > { %12990 = vst [vmem:[#allocation76_spill] sm:$0xff] %v11020_v49  ;;  %v11041_v40 = vpop.f32.mrf.mxu3 }
 0x747   : > { %7089 = vmatmul.msk.f32.gmra.mxu1 %vm2927_vm7, %v7047_v39  ;;  %7068 = vmatmul.msk.f32.gmra.mxu0 %vm2927_vm7, %v7047_v39  ;;  %12995 = vst [vmem:[#allocation24_spill] sm:$0xff] %v11035_v10 }
 0x748   : > { %12998 = vst [vmem:[#allocation108_spill] sm:$0xff] %v11041_v40 }
 0x74c   : > { %v11031_v8 = vpop.f32.mrf.mxu1  ;;  %v11033_v23 = vpop.f32.mrf.mxu0 }
 0x74d   : > { %12993 = vst [vmem:[#allocation61_spill] sm:$0xff] %v11031_v8  ;;  %v11043_v24 = vpop.f32.mrf.mxu2 }
 0x74e   : > { %12994 = vst [vmem:[#allocation81_spill] sm:$0xff] %v11033_v23  ;;  %v11049_v39 = vpop.f32.mrf.mxu3 }
 0x74f   : > { %12999 = vst [vmem:[#allocation109_spill] sm:$0xff] %v11043_v24 }
 0x750   : > { %13002 = vst [vmem:[#allocation112_spill] sm:$0xff] %v11049_v39 }
 0x754   : > { %v11037_v0 = vpop.f32.mrf.mxu1  ;;  %v11039_v49 = vpop.f32.mrf.mxu0 }
 0x755   : > { %12996 = vst [vmem:[#allocation8_spill] sm:$0xff] %v11037_v0  ;;  %v11055_v23 = vpop.f32.mrf.mxu2 }
 0x756   : > { %12997 = vst [vmem:[#allocation107_spill] sm:$0xff] %v11039_v49  ;;  %v11057_v36 = vpop.f32.mrf.mxu3 }
 0x757   : > { %13005 = vst [vmem:[#allocation115_spill] sm:$0xff] %v11057_v36 }
 0x75c   : > { %v11045_v13 = vpop.f32.mrf.mxu1  ;;  %v11047_v52 = vpop.f32.mrf.mxu0 }
 0x75d   : > { %13000 = vst [vmem:[#allocation110_spill] sm:$0xff] %v11045_v13  ;;  %v3930_v40 = vpop.f32.mrf.mxu2 }
 0x75e   : > { %13001 = vst [vmem:[#allocation111_spill] sm:$0xff] %v11047_v52  ;;  %v11063_v32 = vpop.f32.mrf.mxu3 }
 0x75f   : > { %13008 = vst [vmem:[#allocation118_spill] sm:$0xff] %v11063_v32 }
 0x764   : > { %v11051_v14 = vpop.f32.mrf.mxu1  ;;  %v11053_v8 = vpop.f32.mrf.mxu0 }
 0x765   : > { %13003 = vst [vmem:[#allocation113_spill] sm:$0xff] %v11051_v14  ;;  %v3933_v39 = vpop.f32.mrf.mxu2 }
 0x766   : > { %13004 = vst [vmem:[#allocation114_spill] sm:$0xff] %v11053_v8  ;;  %v11073_v8 = vpop.f32.mrf.mxu3 }
 0x767   : > { %13013 = vst [vmem:[#allocation123_spill] sm:$0xff] %v11073_v8 }
 0x76c   : > { %v11059_v0 = vpop.f32.mrf.mxu1  ;;  %v11061_v49 = vpop.f32.mrf.mxu0 }
 0x76d   : > { %13006 = vst [vmem:[#allocation116_spill] sm:$0xff] %v11059_v0  ;;  %v3936_v10 = vpop.f32.mrf.mxu2 }
 0x76e   : > { %13007 = vst [vmem:[#allocation117_spill] sm:$0xff] %v11061_v49  ;;  %v11079_v49 = vpop.f32.mrf.mxu3 }
 0x76f   : > { %13015 = vst [vmem:[#allocation125_spill] sm:$0xff] %v11079_v49 }
 0x774   : > { %v11065_v13 = vpop.f32.mrf.mxu1  ;;  %v11067_v52 = vpop.f32.mrf.mxu0 }
 0x775   : > { %13009 = vst [vmem:[#allocation119_spill] sm:$0xff] %v11065_v13 }
 0x776   : > { %13010 = vst [vmem:[#allocation120_spill] sm:$0xff] %v11067_v52  ;;  %v3939_v52 = vpop.f32.mrf.mxu2 }
 0x77c   : > { %v11069_v25 = vpop.f32.mrf.mxu1  ;;  %v11071_v14 = vpop.f32.mrf.mxu0 }
 0x77d   : > { %13011 = vst [vmem:[#allocation121_spill] sm:$0xff] %v11069_v25  ;;  %v11087_v25 = vpop.f32.mrf.mxu3 }
 0x77e   : > { %13012 = vst [vmem:[#allocation122_spill] sm:$0xff] %v11071_v14  ;;  %v3942_v58 = vpop.f32.mrf.mxu2 }
 0x77f   : > { %13018 = vst [vmem:[#allocation128_spill] sm:$0xff] %v11087_v25  ;;  %v3268_v25 = vadd.f32 %v10715_v15, %v10654_v12  ;;  %v3703_v12 = vadd.f32 %v10885_v7, %v3265_v61  ;;  %v3256_v61 = vadd.f32 %v10629_v34, %v10584_v57 }
 0x784   : > { %v11075_v36 = vpop.f32.mrf.mxu1  ;;  %v4285_v0 = vpop.f32.mrf.mxu0 }
 0x785   : > { %13014 = vst [vmem:[#allocation124_spill] sm:$0xff] %v11075_v36  ;;  %v11093_v36 = vpop.permute.xlu0 %4506  ;;  %v11099_v49 = vpop.f32.mrf.mxu3  ;;  %v13030_v22 = vld [vmem:[#allocation122_spill] sm:$0xff] }
 0x786   : > { %13020 = vst [vmem:[#allocation130_spill] sm:$0xff] %v11093_v36  ;;  %v11108_v36 = vpop.permute.xlu1 %4501 }
 0x787   : > { %13022 = vst [vmem:[#allocation132_spill] sm:$0xff] %v11099_v49 }
 0x78c   : > { %v11081_v32 = vpop.f32.mrf.mxu1  ;;  %v4288_v13 = vpop.f32.mrf.mxu0 }
 0x78d   : > { %13016 = vst [vmem:[#allocation126_spill] sm:$0xff] %v11081_v32  ;;  %v3271_v32 = vadd.f32 %v10736_v30, %v10670_v11  ;;  %v3705_v30 = vadd.f32 %v10898_v16, %v3268_v25  ;;  %v11114_v49 = vpop.permute.xlu0 %4491  ;;  %v11135_v7 = vpop.f32.mrf.mxu3 }
 0x78e   : > { %13024 = vst [vmem:[#allocation134_spill] sm:$0xff] %v11114_v49  ;;  %v11159_v28 = vpop.permute.xlu1 %4486 }
 0x78f   : > { %v3707_v24 = vadd.f32 %v10911_v26, %v3271_v32  ;;  %v3259_v32 = vadd.f32 %v10650_v53, %v10600_v19  ;;  %v4060_v25 = vadd.f32 %v3936_v10, %v3705_v30  ;;  %v4058_v19 = vadd.f32 %v3933_v39, %v3703_v12  ;;  %13027 = vst [vmem:[#allocation137_spill] sm:$0xff] %v11159_v28  ;;  %v13036_v10 = vld [vmem:[#allocation58_spill] sm:$0xff]  ;;  %v13038_v30 = vld [vmem:[#allocation17_spill] sm:$0xff] }
 0x791   : > { %v4062_v15 = vadd.f32 %v3939_v52, %v3707_v24  ;;  %v4413_v34 = vadd.f32 %v4288_v13, %v4058_v19  ;;  %v13043_v19 = vld [vmem:[#allocation9_spill] sm:$0xff] }
 0x794   : > { %v11089_v6 = vpop.f32.mrf.mxu1  ;;  %v4291_v8 = vpop.f32.mrf.mxu0 }
 0x795   : > { %13019 = vst [vmem:[#allocation129_spill] sm:$0xff] %v11089_v6  ;;  %v3274_v6 = vadd.f32 %v10762_v63, %v10686_v35  ;;  %v11119_v35 = vpop.f32.mrf.mxu2  ;;  %v11123_v63 = vpop.permute.xlu2 %4481  ;;  %v4415_v53 = vadd.f32 %v4291_v8, %v4060_v25  ;;  %v13040_v25 = vld [vmem:[#allocation120_spill] sm:$0xff] }
 0x796   : > { %13025 = vst [vmem:[#allocation135_spill] sm:$0xff] %v11123_v63 }
 0x797   : > { %v3709_v11 = vadd.f32 %v10922_v4, %v3274_v6  ;;  %v13031_v4 = vld [vmem:[#allocation127_spill] sm:$0xff] }
 0x798   : > { %v4573_v8 = vadd.f32 %v13031_v4, %v4413_v34  ;;  %v13047_v34 = vld [vmem:[#allocation31_spill] sm:$0xff] }
 0x799   : > { %v4064_v16 = vadd.f32 %v3942_v58, %v3709_v11  ;;  %v3697_v58 = vadd.f32 %v10850_v37, %v3256_v61 }
 0x79c   : > { %v11101_v14 = vpop.f32.mrf.mxu1  ;;  %v4294_v54 = vpop.f32.mrf.mxu0 }
 0x79d   : > { %13023 = vst [vmem:[#allocation133_spill] sm:$0xff] %v11101_v14  ;;  %v3262_v14 = vadd.f32 %v10676_v38, %v10618_v60  ;;  %v4417_v6 = vadd.f32 %v4294_v54, %v4062_v15  ;;  %v3699_v60 = vadd.f32 %v10861_v62, %v3259_v32  ;;  %v11139_v54 = vadd.f32 %v10457_v42, %v10446_v56  ;;  %v13039_v32 = vld [vmem:[#allocation24_spill] sm:$0xff] }
 0x79e   : > { %v3238_v56 = vadd.f32 %v10504_v18, %v10482_v51  ;;  %v3250_v42 = vadd.f32 %v10590_v44, %v10550_v48  ;;  %v3247_v51 = vadd.f32 %v10564_v27, %v10532_v31  ;;  %v11172_v48 = vpop.permute.xlu0 %4476  ;;  %v13029_v44 = vld [vmem:[#allocation109_spill] sm:$0xff]  ;;  %v13035_v27 = vld [vmem:[#allocation64_spill] sm:$0xff] }
 0x79f   : > { %v3701_v33 = vadd.f32 %v10872_v47, %v3262_v14  ;;  %v4577_v62 = vadd.f32 %v11083_v1, %v4417_v6  ;;  %v11152_v14 = vadd.f32 %v10478_v29, %v10464_v3  ;;  %v4054_v5 = vadd.f32 %v11055_v23, %v3699_v60  ;;  %v13034_v31 = vld [vmem:[#allocation33_spill] sm:$0xff]  ;;  %v13041_v6 = vld [vmem:[#allocation130_spill] sm:$0xff]  ;;  %v11197_v60 = vpop.permute.xlu2 %4466 }
 0x7a0   : > { %v11165_v3 = vadd.f32 %v10520_v41, %v10496_v45  ;;  %v3241_v29 = vadd.f32 %v10523_v9, %v10498_v50  ;;  %v3693_v18 = vadd.f32 %v10832_v55, %v3250_v42  ;;  %v4052_v13 = vadd.f32 %v13029_v44, %v3697_v58  ;;  %v13032_v41 = vld [vmem:[#allocation42_spill] sm:$0xff]  ;;  %v13033_v50 = vld [vmem:[#allocation37_spill] sm:$0xff]  ;;  %13042 = vst [vmem:[#allocation109_spill] sm:$0xff] %v11197_v60  ;;  %v13049_v42 = vld [vmem:[#allocation88_spill] sm:$0xff] }
 0x7a1   : > { %v4056_v57 = vadd.f32 %v3930_v40, %v3701_v33  ;;  %v4575_v40 = vadd.f32 %v11091_v17, %v4415_v53  ;;  %v4409_v26 = vadd.f32 %v13030_v22, %v4054_v5  ;;  %v4617_v45 = vmax.f32 %v4577_v62, 0.0  ;;  %v13037_v23 = vld [vmem:[#allocation45_spill] sm:$0xff]  ;;  %v13044_v53 = vld [vmem:[#allocation48_spill] sm:$0xff]  ;;  %v13046_v58 = vld [vmem:[#allocation106_spill] sm:$0xff] }
 0x7a2   : > { %13028 = vst [vmem:[#allocation138_spill] sm:$0xff] %v11165_v3  ;;  %v11181_v9 = vadd.f32 %v13033_v50, %v13032_v41  ;;  %v3244_v55 = vadd.f32 %v13035_v27, %v13034_v31  ;;  %v11187_v39 = vadd.f32 %v13037_v23, %v13036_v10  ;;  %v3691_v11 = vadd.f32 %v13038_v30, %v3247_v51  ;;  %v13048_v62 = vld [vmem:[#allocation38_spill] sm:$0xff]  ;;  %v13055_v31 = vld [vmem:[#allocation51_spill] sm:$0xff]  ;;  %v13056_v10 = vld [vmem:[#allocation12_spill] sm:$0xff] }
 0x7a3   : > { %v4411_v21 = vadd.f32 %v4285_v0, %v4056_v57  ;;  %v11175_v0 = vpop.f32.mrf.mxu2  ;;  %v4050_v33 = vadd.f32 %v13039_v32, %v3695_v20  ;;  %v11205_v57 = vadd.f32 %v13046_v58, %v13045_v46  ;;  %v13050_v5 = vld [vmem:[#allocation70_spill] sm:$0xff]  ;;  %v4569_v44 = vadd.f32 %v11108_v36, %v4409_v26  ;;  %v13063_v46 = vld [vmem:[#allocation27_spill] sm:$0xff]  ;;  %v13095_v3 = vld [vmem:[#allocation28_spill] sm:$0xff] }
 0x7a4   : > { %v11132_v24 = vpop.f32.mrf.mxu1  ;;  %v4297_v52 = vpop.f32.mrf.mxu0  ;;  %v3689_v20 = vadd.f32 %v13049_v42, %v3244_v55  ;;  %v13052_v22 = vld [vmem:[#allocation54_spill] sm:$0xff]  ;;  %v13057_v55 = vld [vmem:[#allocation41_spill] sm:$0xff] }
 0x7a5   : > { %v4419_v38 = vadd.f32 %v4297_v52, %v4064_v16  ;;  %v4407_v16 = vadd.f32 %v13040_v25, %v4052_v13  ;;  %v4571_v61 = vadd.f32 %v13041_v6, %v4411_v21  ;;  %v4615_v52 = vmax.f32 %v4575_v40, 0.0  ;;  %v13051_v40 = vld [vmem:[#allocation117_spill] sm:$0xff]  ;;  %v13054_v50 = vld [vmem:[#allocation18_spill] sm:$0xff] }
 0x7a6   : > { %v4048_v21 = vadd.f32 %v13050_v5, %v3693_v18  ;;  %v4405_v51 = vadd.f32 %v13051_v40, %v4050_v33  ;;  %v4613_v13 = vmax.f32 %v4573_v8, 0.0  ;;  %v11221_v27 = vadd.f32 %v13055_v31, %v13054_v50  ;;  %v13058_v18 = vld [vmem:[#allocation99_spill] sm:$0xff]  ;;  %v13059_v32 = vld [vmem:[#allocation66_spill] sm:$0xff] }
 0x7a7   : > { %v4579_v47 = vadd.f32 %v11077_v2, %v4419_v38  ;;  %v11201_v38 = vadd.f32 %v13044_v53, %v13043_v19  ;;  %v11225_v23 = vadd.f32 %v13057_v55, %v13056_v10  ;;  %v3687_v30 = vadd.f32 %v13058_v18, %v3241_v29  ;;  %v13060_v25 = vld [vmem:[#allocation114_spill] sm:$0xff]  ;;  %v13061_v19 = vld [vmem:[#allocation131_spill] sm:$0xff]  ;;  %v13062_v53 = vld [vmem:[#allocation29_spill] sm:$0xff] }
 0x7a8   : > { %v4046_v33 = vadd.f32 %v13059_v32, %v3691_v11  ;;  %v4403_v26 = vadd.f32 %v13060_v25, %v4048_v21  ;;  %v4611_v8 = vmax.f32 %v4571_v61, 0.0  ;;  %v11233_v58 = vadd.f32 %v13063_v46, %v13062_v53  ;;  %v13066_v5 = vld [vmem:[#allocation19_spill] sm:$0xff]  ;;  %v11240_v11 = vpop.permute.xlu1 %4471  ;;  %v13070_v21 = vld [vmem:[#allocation56_spill] sm:$0xff]  ;;  %v13072_v10 = vld [vmem:[#allocation21_spill] sm:$0xff] }
 0x7a9   : > { %v4619_v37 = vmax.f32 %v4579_v47, 0.0  ;;  %v11209_v47 = vadd.f32 %v13048_v62, %v13047_v34  ;;  %v13064_v34 = vld [vmem:[#allocation102_spill] sm:$0xff]  ;;  %v13065_v62 = vld [vmem:[#allocation23_spill] sm:$0xff]  ;;  %13069 = vst [vmem:[#allocation122_spill] sm:$0xff] %v11240_v11  ;;  %v4044_v50 = vadd.f32 %v13070_v21, %v3689_v20  ;;  %v4565_v61 = vadd.f32 %v11114_v49, %v4405_v51  ;;  %v13074_v32 = vld [vmem:[#allocation44_spill] sm:$0xff]  ;;  %v11264_v21 = vpop.permute.xlu0 %4546 }
 0x7aa   : > { %v3348_v42 = vadd.f32 %v13065_v62, %v13064_v34  ;;  %v13067_v40 = vld [vmem:[#allocation47_spill] sm:$0xff]  ;;  %v13073_v55 = vld [vmem:[#allocation82_spill] sm:$0xff]  ;;  %v13075_v25 = vld [vmem:[#allocation16_spill] sm:$0xff] }
 0x7ab   : > { %4679 = vmatpush.msra.mxu2 %v4619_v37  ;;  %4918 = vmatpush.msrb.mxu0 %v4619_v37  ;;  %v11213_v37 = vpop.f32.mrf.mxu3  ;;  %v13068_v29 = vld [vmem:[#allocation55_spill] sm:$0xff]  ;;  %v11247_v18 = vadd.f32 %v13073_v55, %v13072_v10  ;;  %v11251_v53 = vadd.f32 %v13075_v25, %v13074_v32  ;;  %v13077_v20 = vld [vmem:[#allocation93_spill] sm:$0xff]  ;;  %v13084_v25 = vld [vmem:[#allocation46_spill] sm:$0xff] }
 0x7ac   : > { %v11190_v12 = vpop.f32.mrf.mxu1  ;;  %v11192_v15 = vpop.f32.mrf.mxu0  ;;  %v3683_v34 = vadd.f32 %v13077_v20, %v11152_v14  ;;  %v13079_v62 = vld [vmem:[#allocation107_spill] sm:$0xff]  ;;  %v13082_v14 = vld [vmem:[#allocation100_spill] sm:$0xff] }
 0x7ad   : > { %4680 = vmatpush.msra.mxu2 %v4617_v45  ;;  %4919 = vmatpush.msrb.mxu0 %v4617_v45  ;;  %v13053_v45 = vld [vmem:[#allocation50_spill] sm:$0xff]  ;;  %v13083_v55 = vld [vmem:[#allocation15_spill] sm:$0xff] }
 0x7ae   : > { %v3336_v41 = vadd.f32 %v13053_v45, %v13052_v22  ;;  %v3351_v22 = vadd.f32 %v13067_v40, %v13066_v5  ;;  %v3685_v45 = vadd.f32 %v13068_v29, %v3238_v56  ;;  %v13076_v56 = vld [vmem:[#allocation69_spill] sm:$0xff]  ;;  %v4399_v5 = vadd.f32 %v13079_v62, %v4044_v50 }
 0x7af   : > { %4681 = vmatpush.msra.mxu2 %v4615_v52  ;;  %4920 = vmatpush.msrb.mxu0 %v4615_v52  ;;  %v4567_v52 = vadd.f32 %v13061_v19, %v4407_v16  ;;  %v13071_v16 = vld [vmem:[#allocation111_spill] sm:$0xff]  ;;  %v3679_v46 = vadd.f32 %v13076_v56, %v11128_v59  ;;  %v4563_v40 = vadd.f32 %v11159_v28, %v4403_v26  ;;  %v13081_v59 = vld [vmem:[#allocation32_spill] sm:$0xff]  ;;  %v13085_v56 = vld [vmem:[#allocation14_spill] sm:$0xff]  ;;  %v3951_v26 = vpop.f32.mrf.mxu2 }
 0x7b0   : > { %v4401_v31 = vadd.f32 %v13071_v16, %v4046_v33  ;;  %v13080_v16 = vld [vmem:[#allocation49_spill] sm:$0xff]  ;;  %v3280_v32 = vadd.f32 %v13083_v55, %v13082_v14  ;;  %v11274_v20 = vadd.f32 %v13085_v56, %v13084_v25  ;;  %v13090_v55 = vld [vmem:[#allocation92_spill] sm:$0xff]  ;;  %v13092_v56 = vld [vmem:[#allocation90_spill] sm:$0xff] }
 0x7b1   : > { %4682 = vmatpush.msra.mxu2 %v4613_v13  ;;  %4921 = vmatpush.msrb.mxu0 %v4613_v13  ;;  %v4609_v13 = vmax.f32 %v4569_v44, 0.0  ;;  %v4607_v29 = vmax.f32 %v4567_v52, 0.0  ;;  %v11268_v10 = vadd.f32 %v13081_v59, %v13080_v16  ;;  %v13088_v52 = vld [vmem:[#allocation81_spill] sm:$0xff]  ;;  %v4605_v16 = vmax.f32 %v4565_v61, 0.0  ;;  %v11281_v59 = vpop.permute.xlu2 %4541 }
 0x7b2   : > { %v4561_v28 = vadd.f32 %v11123_v63, %v4401_v31  ;;  %v13089_v14 = vld [vmem:[#allocation25_spill] sm:$0xff]  ;;  %v13097_v31 = vld [vmem:[#allocation76_spill] sm:$0xff]  ;;  %v4559_v61 = vadd.f32 %v11172_v48, %v4399_v5  ;;  %v4603_v63 = vmax.f32 %v4563_v40, 0.0 }
 0x7b3   : > { %4683 = vmatpush.msra.mxu2 %v4611_v8  ;;  %4922 = vmatpush.msrb.mxu0 %v4611_v8  ;;  %v13078_v8 = vld [vmem:[#allocation40_spill] sm:$0xff]  ;;  %v3283_v43 = vadd.f32 %v13090_v55, %v13089_v14  ;;  %v13091_v25 = vld [vmem:[#allocation65_spill] sm:$0xff]  ;;  %v13098_v14 = vld [vmem:[#allocation67_spill] sm:$0xff] }
 0x7b4   : > { %v11257_v33 = vpop.f32.mrf.mxu1  ;;  %v11259_v51 = vpop.f32.mrf.mxu0  ;;  %v4042_v44 = vadd.f32 %v13078_v8, %v3687_v30  ;;  %v13086_v30 = vld [vmem:[#allocation103_spill] sm:$0xff]  ;;  %v13087_v8 = vld [vmem:[#allocation80_spill] sm:$0xff]  ;;  %v3363_v49 = vadd.f32 %v13092_v56, %v13091_v25  ;;  %v13093_v19 = vld [vmem:[#allocation97_spill] sm:$0xff]  ;;  %v4601_v40 = vmax.f32 %v4561_v28, 0.0 }
 0x7b5   : > { %4684 = vmatpush.msra.mxu2 %v4609_v13  ;;  %4923 = vmatpush.msrb.mxu0 %v4609_v13  ;;  %v3681_v50 = vadd.f32 %v13086_v30, %v11139_v54  ;;  %v4040_v13 = vadd.f32 %v13087_v8, %v3685_v45  ;;  %v13094_v54 = vld [vmem:[#allocation74_spill] sm:$0xff]  ;;  %v4034_v45 = vadd.f32 %v13095_v3, %v3679_v46  ;;  %v13096_v8 = vld [vmem:[#allocation63_spill] sm:$0xff] }
 0x7b6   : > { %v4397_v62 = vadd.f32 %v13088_v52, %v4042_v44  ;;  %v3286_v30 = vadd.f32 %v13094_v54, %v13093_v19  ;;  %v4038_v44 = vadd.f32 %v13096_v8, %v3683_v34  ;;  %v11291_v52 = vpop.f32.mrf.mxu3  ;;  %v13099_v25 = vld [vmem:[#allocation98_spill] sm:$0xff]  ;;  %v13101_v3 = vld [vmem:[#allocation71_spill] sm:$0xff]  ;;  %v13102_v34 = vld [vmem:[#allocation36_spill] sm:$0xff] }
 0x7b7   : > { %4685 = vmatpush.msra.mxu2 %v4607_v29  ;;  %4924 = vmatpush.msrb.mxu0 %v4607_v29  ;;  %v4395_v29 = vadd.f32 %v13097_v31, %v4040_v13  ;;  %v4036_v55 = vadd.f32 %v13098_v14, %v3681_v50  ;;  %v11298_v56 = vadd.f32 %v13099_v25, %v11187_v39  ;;  %v13100_v19 = vld [vmem:[#allocation34_spill] sm:$0xff]  ;;  %v13104_v50 = vld [vmem:[#allocation85_spill] sm:$0xff]  ;;  %v13105_v39 = vld [vmem:[#allocation96_spill] sm:$0xff] }
 0x7b8   : > { %v3700_v54 = vadd.f32 %v13100_v19, %v3336_v41  ;;  %v3710_v46 = vadd.f32 %v13101_v3, %v3351_v22  ;;  %v11304_v8 = vadd.f32 %v13102_v34, %v11201_v38  ;;  %v13103_v13 = vld [vmem:[#allocation22_spill] sm:$0xff]  ;;  %v4557_v5 = vadd.f32 %v11240_v11, %v4397_v62  ;;  %v13107_v38 = vld [vmem:[#allocation13_spill] sm:$0xff] }
 0x7b9   : > { %4686 = vmatpush.msra.mxu2 %v4605_v16  ;;  %4925 = vmatpush.msrb.mxu0 %v4605_v16  ;;  %v4393_v31 = vadd.f32 %v13103_v13, %v4038_v44  ;;  %v11310_v16 = vadd.f32 %v13104_v50, %v11205_v57  ;;  %v11314_v41 = vadd.f32 %v13105_v39, %v11209_v47  ;;  %v13106_v22 = vld [vmem:[#allocation94_spill] sm:$0xff]  ;;  %v13108_v62 = vld [vmem:[#allocation77_spill] sm:$0xff]  ;;  %v4599_v57 = vmax.f32 %v4559_v61, 0.0  ;;  %v11324_v13 = vpop.permute.xlu1 %4461  ;;  %v13110_v47 = vld [vmem:[#allocation115_spill] sm:$0xff] }
 0x7ba   : > { %v3702_v14 = vadd.f32 %v13106_v22, %v11221_v27  ;;  %v3708_v25 = vadd.f32 %v13107_v38, %v3348_v42  ;;  %v3715_v3 = vadd.f32 %v13108_v62, %v3283_v43  ;;  %v4555_v34 = vadd.f32 %v11197_v60, %v4395_v29  ;;  %v13111_v27 = vld [vmem:[#allocation30_spill] sm:$0xff]  ;;  %v13112_v39 = vld [vmem:[#allocation132_spill] sm:$0xff]  ;;  %v13117_v60 = vld [vmem:[#allocation79_spill] sm:$0xff] }
 0x7bb   : > { %4687 = vmatpush.msra.mxu2 %v4603_v63  ;;  %4926 = vmatpush.msrb.mxu0 %v4603_v63  ;;  %v13109_v63 = vld [vmem:[#allocation26_spill] sm:$0xff]  ;;  %v11327_v50 = vadd.f32 %v13110_v47, %v3700_v54  ;;  %v3706_v42 = vadd.f32 %v13111_v27, %v11233_v58  ;;  %v4065_v22 = vadd.f32 %v13112_v39, %v3710_v46  ;;  %v13113_v38 = vld [vmem:[#allocation4_spill] sm:$0xff]  ;;  %v4597_v61 = vmax.f32 %v4557_v5, 0.0  ;;  %v3954_v39 = vpop.f32.mrf.mxu2 }
 0x7bc   : > { %v11319_v19 = vpop.f32.mrf.mxu1  ;;  %v4306_v44 = vpop.f32.mrf.mxu0  ;;  %v4391_v28 = vadd.f32 %v13109_v63, %v4036_v55  ;;  %v3713_v11 = vadd.f32 %v13113_v38, %v3280_v32  ;;  %v13114_v43 = vld [vmem:[#allocation72_spill] sm:$0xff]  ;;  %v13115_v55 = vld [vmem:[#allocation6_spill] sm:$0xff]  ;;  %v4553_v29 = vadd.f32 %v11324_v13, %v4393_v31  ;;  %v3704_v58 = vadd.f32 %v13117_v60, %v11225_v23  ;;  %v13121_v23 = vld [vmem:[#allocation43_spill] sm:$0xff] }
 0x7bd   : > { %4688 = vmatpush.msra.mxu2 %v4601_v40  ;;  %4927 = vmatpush.msrb.mxu0 %v4601_v40  ;;  %v3717_v62 = vadd.f32 %v13114_v43, %v3286_v30  ;;  %v4389_v63 = vadd.f32 %v13115_v55, %v4034_v45  ;;  %v11336_v40 = vpop.permute.xlu0 %4456  ;;  %v13116_v54 = vld [vmem:[#allocation118_spill] sm:$0xff]  ;;  %v13118_v27 = vld [vmem:[#allocation128_spill] sm:$0xff]  ;;  %v4420_v32 = vadd.f32 %v11132_v24, %v4065_v22  ;;  %v13119_v30 = vld [vmem:[#allocation83_spill] sm:$0xff]  ;;  %v4595_v5 = vmax.f32 %v4555_v34, 0.0 }
 0x7be   : > { %v4057_v47 = vadd.f32 %v13116_v54, %v3702_v14  ;;  %v4063_v46 = vadd.f32 %v13118_v27, %v3708_v25  ;;  %v3711_v45 = vadd.f32 %v13119_v30, %v11251_v53  ;;  %v4070_v38 = vadd.f32 %v3951_v26, %v3715_v3  ;;  %v13120_v14 = vld [vmem:[#allocation125_spill] sm:$0xff]  ;;  %v4031_v24 = vpop.f32.mrf.mxu3 }
 0x7bf   : > { %4689 = vmatpush.msra.mxu2 %v4599_v57  ;;  %4928 = vmatpush.msrb.mxu0 %v4599_v57  ;;  %v4551_v31 = vadd.f32 %v11336_v40, %v4391_v28  ;;  %v11346_v57 = vpop.permute.xlu2 %4451  ;;  %v4061_v43 = vadd.f32 %v13120_v14, %v3706_v42  ;;  %v4068_v60 = vadd.f32 %v11175_v0, %v3713_v11  ;;  %v13122_v55 = vld [vmem:[#allocation133_spill] sm:$0xff]  ;;  %v4593_v3 = vmax.f32 %v4553_v29, 0.0  ;;  %v13123_v28 = vld [vmem:[#allocation123_spill] sm:$0xff] }
 0x7c0   : > { %v3718_v25 = vadd.f32 %v13121_v23, %v3363_v49  ;;  %v4418_v54 = vadd.f32 %v13122_v55, %v4063_v46  ;;  %v4072_v22 = vadd.f32 %v3954_v39, %v3717_v62  ;;  %v4549_v53 = vadd.f32 %v11346_v57, %v4389_v63  ;;  %v13125_v42 = vld [vmem:[#allocation129_spill] sm:$0xff]  ;;  %v13127_v39 = vld [vmem:[#allocation126_spill] sm:$0xff] }
 0x7c1   : > { %4690 = vmatpush.msra.mxu2 %v4597_v61  ;;  %4929 = vmatpush.msrb.mxu0 %v4597_v61  ;;  %v4425_v26 = vadd.f32 %v4306_v44, %v4070_v38  ;;  %v4059_v34 = vadd.f32 %v13123_v28, %v3704_v58  ;;  %v13124_v61 = vld [vmem:[#allocation53_spill] sm:$0xff]  ;;  %v4416_v30 = vadd.f32 %v13125_v42, %v4061_v43  ;;  %v4591_v44 = vmax.f32 %v4551_v31, 0.0  ;;  %v4537_v31 = vpop.permute.xlu1 %4536 }
 0x7c2   : > { %v3716_v27 = vadd.f32 %v13124_v61, %v11274_v20  ;;  %v11358_v0 = vadd.f32 %v11077_v2, %v4420_v32  ;;  %v4066_v11 = vadd.f32 %v11119_v35, %v3711_v45  ;;  %v4423_v62 = vadd.f32 %v11259_v51, %v4068_v60  ;;  %v13126_v29 = vld [vmem:[#allocation57_spill] sm:$0xff]  ;;  %v13129_v60 = vld [vmem:[#allocation124_spill] sm:$0xff]  ;;  %v13133_v61 = vld [vmem:[#allocation119_spill] sm:$0xff] }
 0x7c3   : > { %4691 = vmatpush.msra.mxu2 %v4595_v5  ;;  %4930 = vmatpush.msrb.mxu0 %v4595_v5  ;;  %v3714_v58 = vadd.f32 %v13126_v29, %v11268_v10  ;;  %v4073_v46 = vadd.f32 %v4031_v24, %v3718_v25  ;;  %v4414_v20 = vadd.f32 %v13127_v39, %v4059_v34  ;;  %v4589_v45 = vmax.f32 %v4549_v53, 0.0  ;;  %v11374_v10 = vld [vmem:[%s12616_s6 + $0xa0] sm:$0xff] }
 0x7c4   : > { %v4309_v49 = vpop.f32.mrf.mxu0  ;;  %v11366_v38 = vadd.f32 %v11083_v1, %v4418_v54  ;;  %v4386_v2 = vpop.f32.mrf.mxu1  ;;  %v4421_v32 = vadd.f32 %v11192_v15, %v4066_v11  ;;  %v4585_v35 = vadd.f32 %v11281_v59, %v4425_v26  ;;  %v13128_v5 = vld [vmem:[#allocation86_spill] sm:$0xff]  ;;  %v4071_v14 = vadd.f32 %v11291_v52, %v3716_v27 }
 0x7c5   : > { %v4427_v63 = vadd.f32 %v4309_v49, %v4072_v22  ;;  %4692 = vmatpush.msra.mxu2 %v4593_v3  ;;  %4931 = vmatpush.msrb.mxu0 %v4593_v3  ;;  %v3712_v1 = vadd.f32 %v13128_v5, %v11247_v18  ;;  %v11380_v15 = vadd.f32 %v11091_v17, %v4416_v30  ;;  %v4620_v43 = vmax.f32 %v11358_v0, 0.0  ;;  %v4532_v24 = vpop.permute.xlu0 %4531  ;;  %v13130_v22 = vld [vmem:[#allocation112_spill] sm:$0xff]  ;;  %v13135_v11 = vld [vmem:[#allocation10_spill] sm:$0xff] }
 0x7c6   : > { %v4412_v23 = vadd.f32 %v13129_v60, %v4057_v47  ;;  %v4583_v25 = vadd.f32 %v4537_v31, %v4423_v62  ;;  %v4428_v55 = vadd.f32 %v4386_v2, %v4073_v46  ;;  %v4053_v53 = vadd.f32 %v13130_v22, %v11314_v41  ;;  %v13131_v47 = vld [vmem:[#allocation121_spill] sm:$0xff]  ;;  %v13138_v46 = vld [vmem:[#allocation7_spill] sm:$0xff]  ;;  %v13141_v2 = vld [vmem:[#allocation104_spill] sm:$0xff] }
 0x7c7   : > { %v4587_v51 = vadd.f32 %v11264_v21, %v4427_v63  ;;  %4693 = vmatpush.msra.mxu2 %v4591_v44  ;;  %4932 = vmatpush.msrb.mxu0 %v4591_v44  ;;  %v4069_v18 = vadd.f32 %v11213_v37, %v3714_v58  ;;  %v11388_v52 = vadd.f32 %v13031_v4, %v4414_v20  ;;  %v4618_v17 = vmax.f32 %v11366_v38, 0.0  ;;  %v13132_v37 = vld [vmem:[#allocation108_spill] sm:$0xff]  ;;  %v11434_v58 = vld [vmem:[%s12616_s6 + $0x8] sm:$0xff]  ;;  %v13146_v22 = vld [vmem:[#allocation110_spill] sm:$0xff] }
 0x7c8   : > { %v4410_v26 = vadd.f32 %v13131_v47, %v11327_v50  ;;  %v4581_v3 = vadd.f32 %v4532_v24, %v4421_v32  ;;  %v4426_v28 = vadd.f32 %v11319_v19, %v4071_v14  ;;  %v4625_v41 = vmax.f32 %v4585_v35, 0.0  ;;  %v13136_v63 = vld [vmem:[#allocation116_spill] sm:$0xff]  ;;  %v13140_v20 = vld [vmem:[#allocation91_spill] sm:$0xff]  ;;  %v13142_v35 = vld [vmem:[#allocation113_spill] sm:$0xff] }
 0x7c9   : > { %v4627_v54 = vmax.f32 %v4587_v51, 0.0  ;;  %4694 = vmatpush.msra.mxu2 %v4589_v45  ;;  %4933 = vmatpush.msrb.mxu0 %v4589_v45  ;;  %v4051_v4 = vadd.f32 %v13132_v37, %v11310_v16  ;;  %v4067_v34 = vadd.f32 %v11135_v7, %v3712_v1  ;;  %v4408_v27 = vadd.f32 %v13133_v61, %v4053_v53  ;;  %v13134_v7 = vld [vmem:[#allocation105_spill] sm:$0xff]  ;;  %v13143_v45 = vld [vmem:[#allocation131_spill] sm:$0xff]  ;;  %v11628_v0 = vld [vmem:[%s12616_s6 + $0x40] sm:$0xff] }
 0x7ca   : > { %4934 = vmatmul.f32.vlgmr.msrb.gmra.mxu0 %v11374_v10  ;;  %v4616_v42 = vmax.f32 %v11380_v15, 0.0  ;;  %v11405_v50 = vadd.f32 %v13041_v6, %v4412_v23  ;;  %v4424_v19 = vadd.f32 %v11257_v33, %v4069_v18  ;;  %v11409_v30 = vadd.f32 %v11264_v21, %v4428_v55  ;;  %v11460_v23 = vld [vmem:[%s12616_s6 + $0xb0] sm:$0xff]  ;;  %v13147_v18 = vld [vmem:[#allocation134_spill] sm:$0xff]  ;;  %v13149_v37 = vld [vmem:[#allocation39_spill] sm:$0xff] }
 0x7cb   : > { %4773 = vmatpush.msrb.mxu2 %v4620_v43  ;;  %4738 = vmatpush.msra.mxu3 %v4627_v54  ;;  %v4623_v16 = vmax.f32 %v4583_v25, 0.0  ;;  %v3690_v49 = vadd.f32 %v13134_v7, %v11181_v9  ;;  %v4049_v62 = vadd.f32 %v13135_v11, %v11304_v8  ;;  %v4406_v44 = vadd.f32 %v13136_v63, %v4051_v4  ;;  %v11429_v8 = vld [vmem:[%s12616_s6] sm:$0xff]  ;;  %v13144_v25 = vld [vmem:[#allocation101_spill] sm:$0xff]  ;;  %v13151_v61 = vld [vmem:[#allocation59_spill] sm:$0xff] }
 0x7cc   : > { %4977 = vmatpush.msrb.mxu1 %v4627_v54  ;;  %v4614_v6 = vmax.f32 %v11388_v52, 0.0  ;;  %v11420_v33 = vadd.f32 %v11108_v36, %v4410_v26  ;;  %v4422_v21 = vadd.f32 %v11190_v12, %v4067_v34  ;;  %v11424_v29 = vadd.f32 %v11281_v59, %v4426_v28  ;;  %v13137_v36 = vld [vmem:[#allocation73_spill] sm:$0xff]  ;;  %v13139_v12 = vld [vmem:[#allocation138_spill] sm:$0xff]  ;;  %4695 = vmatmul.f32.vlgmr.msra.gmra.mxu2 %v11429_v8  ;;  %v13150_v34 = vld [vmem:[#allocation136_spill] sm:$0xff] }
 0x7cd   : > { %4774 = vmatpush.msrb.mxu2 %v4618_v17  ;;  %4739 = vmatpush.msra.mxu3 %v4625_v41  ;;  %v4621_v9 = vmax.f32 %v4581_v3, 0.0  ;;  %v3315_v39 = vadd.f32 %v13138_v46, %v13137_v36  ;;  %v3688_v59 = vadd.f32 %v13140_v20, %v13139_v12  ;;  %v4047_v32 = vadd.f32 %v13141_v2, %v11298_v56  ;;  %v11455_v56 = vld [vmem:[%s12616_s6 + $0xa8] sm:$0xff]  ;;  %v13154_v7 = vld [vmem:[#allocation137_spill] sm:$0xff]  ;;  %v11645_v15 = vld [vmem:[%s12616_s6 + $0xf0] sm:$0xff] }
 0x7ce   : > { %4978 = vmatpush.msrb.mxu1 %v4625_v41  ;;  %v4404_v51 = vadd.f32 %v13142_v35, %v4049_v62  ;;  %v11446_v5 = vadd.f32 %v13143_v45, %v4408_v27  ;;  %v11448_v1 = vadd.f32 %v4537_v31, %v4424_v19  ;;  %v4628_v14 = vmax.f32 %v11409_v30, 0.0  ;;  %v13145_v31 = vld [vmem:[#allocation87_spill] sm:$0xff]  ;;  %v13148_v41 = vld [vmem:[#allocation5_spill] sm:$0xff]  ;;  %v13152_v19 = vld [vmem:[#allocation20_spill] sm:$0xff] }
 0x7cf   : > { %4775 = vmatpush.msrb.mxu2 %v4616_v42  ;;  %4740 = vmatpush.msra.mxu3 %v4623_v16  ;;  %v4612_v60 = vmax.f32 %v11405_v50, 0.0  ;;  %v3686_v55 = vadd.f32 %v13144_v25, %v3315_v39  ;;  %v4045_v54 = vadd.f32 %v13145_v31, %v3690_v49  ;;  %v4402_v53 = vadd.f32 %v13146_v22, %v4047_v32  ;;  %v13155_v63 = vld [vmem:[#allocation35_spill] sm:$0xff]  ;;  %v13159_v39 = vld [vmem:[#allocation61_spill] sm:$0xff]  ;;  %v11505_v35 = vld [vmem:[%s12616_s6 + $0x10] sm:$0xff] }
 0x7d0   : > { %4979 = vmatpush.msrb.mxu1 %v4623_v16  ;;  %v11469_v47 = vadd.f32 %v13147_v18, %v4406_v44  ;;  %v4582_v26 = vadd.f32 %v4532_v24, %v4422_v21  ;;  %v4610_v3 = vmax.f32 %v11420_v33, 0.0  ;;  %v4626_v28 = vmax.f32 %v11424_v29, 0.0  ;;  %v13153_v24 = vld [vmem:[#allocation8_spill] sm:$0xff]  ;;  %v13157_v29 = vld [vmem:[#allocation95_spill] sm:$0xff]  ;;  %v13162_v25 = vld [vmem:[#allocation2_spill] sm:$0xff] }
 0x7d1   : > { %4776 = vmatpush.msrb.mxu2 %v4614_v6  ;;  %4741 = vmatpush.msra.mxu3 %v4621_v9  ;;  %v3309_v4 = vadd.f32 %v13149_v37, %v13148_v41  ;;  %v3684_v27 = vadd.f32 %v13151_v61, %v13150_v34  ;;  %v4043_v30 = vadd.f32 %v13152_v19, %v3688_v59  ;;  %v4608_v11 = vmax.f32 %v11446_v5, 0.0  ;;  %v13156_v44 = vld [vmem:[#allocation60_spill] sm:$0xff]  ;;  %v13158_v36 = vld [vmem:[#allocation75_spill] sm:$0xff]  ;;  %v11524_v18 = vld [vmem:[%s12616_s6 + $0xb8] sm:$0xff] }
 0x7d2   : > { %4980 = vmatpush.msrb.mxu1 %v4621_v9  ;;  %7090 = vmatmul.msk.f32.vlgmr.msra.gmra.mxu3 %vm529_vm1, %v11434_v58  ;;  %v4400_v16 = vadd.f32 %v13153_v24, %v4045_v54  ;;  %v11485_v49 = vadd.f32 %v13154_v7, %v4404_v51  ;;  %v4624_v62 = vmax.f32 %v11448_v1, 0.0  ;;  %v3306_v21 = vadd.f32 %v13156_v44, %v13155_v63  ;;  %v13160_v20 = vld [vmem:[#allocation135_spill] sm:$0xff]  ;;  %v13161_v51 = vld [vmem:[#allocation62_spill] sm:$0xff]  ;;  %v11511_v1 = vld [vmem:[%s12616_s6 + $0x18] sm:$0xff] }
 0x7d3   : > { %4777 = vmatpush.msrb.mxu2 %v4612_v60  ;;  %4832 = vmatpush.msrb.mxu3 %v4628_v14  ;;  %v3682_v9 = vadd.f32 %v13157_v29, %v3309_v4  ;;  %v4041_v46 = vadd.f32 %v13158_v36, %v3686_v55  ;;  %v4398_v12 = vadd.f32 %v13159_v39, %v4043_v30  ;;  %v4606_v2 = vmax.f32 %v11469_v47, 0.0  ;;  %v13163_v31 = vld [vmem:[#allocation52_spill] sm:$0xff]  ;;  %v13166_v34 = vld [vmem:[#allocation122_spill] sm:$0xff]  ;;  %v11566_v36 = vld [vmem:[%s12616_s6 + $0x28] sm:$0xff] }
 0x7d4   : > { %7130 = vmatmul.msk.f32.vlgmr.msrb.gmra.mxu1 %vm529_vm1, %v11455_v56  ;;  %4937 = vmatmul.f32.gmra.mxu0 %v11460_v23  ;;  %v11497_v59 = vadd.f32 %v13160_v20, %v4402_v53  ;;  %v4622_v32 = vmax.f32 %v4582_v26, 0.0  ;;  %v3680_v45 = vadd.f32 %v13161_v51, %v3306_v21  ;;  %v4039_v55 = vadd.f32 %v13162_v25, %v3684_v27  ;;  %v11530_v26 = vld [vmem:[%s12616_s6 + $0xc0] sm:$0xff]  ;;  %v13165_v37 = vld [vmem:[#allocation84_spill] sm:$0xff]  ;;  %v13167_v27 = vld [vmem:[#allocation89_spill] sm:$0xff] }
 0x7d5   : > { %4778 = vmatpush.msrb.mxu2 %v4610_v3  ;;  %4833 = vmatpush.msrb.mxu3 %v4626_v28  ;;  %v4396_v54 = vadd.f32 %v13163_v31, %v4041_v46  ;;  %v11516_v22 = vadd.f32 %v11172_v48, %v4400_v16  ;;  %v4604_v53 = vmax.f32 %v11485_v49, 0.0  ;;  %v13164_v48 = vld [vmem:[#allocation3_spill] sm:$0xff]  ;;  %v11535_v61 = vadd.f32 %v13166_v34, %v4398_v12  ;;  %v13168_v30 = vld [vmem:[#allocation78_spill] sm:$0xff]  ;;  %v13169_v16 = vld [vmem:[#allocation109_spill] sm:$0xff] }
 0x7d6   : > { %4698 = vmatmul.f32.gmra.mxu2 %v11505_v35  ;;  %v4037_v41 = vadd.f32 %v13164_v48, %v3682_v9  ;;  %v4394_v4 = vadd.f32 %v13165_v37, %v4039_v55  ;;  %v4035_v19 = vadd.f32 %v13167_v27, %v3680_v45  ;;  %v13170_v44 = vld [vmem:[#allocation68_spill] sm:$0xff]  ;;  %v11561_v9 = vld [vmem:[%s12616_s6 + $0x20] sm:$0xff]  ;;  %v11575_v46 = vld [vmem:[%s12616_s6 + $0xc8] sm:$0xff] }
 0x7d7   : > { %4779 = vmatpush.msrb.mxu2 %v4608_v11  ;;  %4834 = vmatpush.msrb.mxu3 %v4624_v62  ;;  %v11547_v7 = vadd.f32 %v13169_v16, %v4396_v54  ;;  %v4600_v63 = vmax.f32 %v11516_v22, 0.0  ;;  %v4598_v29 = vmax.f32 %v11535_v61, 0.0  ;;  %v11581_v39 = vld [vmem:[%s12616_s6 + $0xd0] sm:$0xff]  ;;  %v11599_v51 = vld [vmem:[%s12616_s6 + $0x38] sm:$0xff]  ;;  %v11611_v25 = vld [vmem:[%s12616_s6 + $0xe0] sm:$0xff] }
 0x7d8   : > { %v4392_v24 = vadd.f32 %v13168_v30, %v4037_v41  ;;  %v11555_v21 = vadd.f32 %v11324_v13, %v4394_v4  ;;  %v11604_v45 = vld [vmem:[%s12616_s6 + $0xd8] sm:$0xff]  ;;  %v11633_v38 = vld [vmem:[%s12616_s6 + $0x48] sm:$0xff]  ;;  %v4639_v52 = vld [vmem:[%s12616_s6 + $0x50] sm:$0xff] }
 0x7d9   : > { %4780 = vmatpush.msrb.mxu2 %v4606_v2  ;;  %4835 = vmatpush.msrb.mxu3 %v4622_v32  ;;  %v4596_v13 = vmax.f32 %v11547_v7, 0.0  ;;  %v11675_v50 = vld [vmem:[%s12616_s6 + $0x100] sm:$0xff]  ;;  %v4642_v33 = vld [vmem:[%s12616_s6 + $0x68] sm:$0xff]  ;;  %v4643_v47 = vld [vmem:[%s12616_s6 + $0x70] sm:$0xff] }
 0x7da   : > { %7091 = vmatmul.msk.f32.gmra.mxu3 %vm529_vm1, %v11511_v1  ;;  %v11692_v5 = vld [vmem:[%s12616_s6 + $0x108] sm:$0xff]  ;;  %v11712_v49 = vld [vmem:[%s12616_s6 + $0x118] sm:$0xff]  ;;  %v11737_v31 = vld [vmem:[%s12616_s6 + $0x130] sm:$0xff] }
 0x7db   : > { %5071 = vmatpush.msra.mxu3 %v4628_v14  ;;  %4781 = vmatpush.msrb.mxu2 %v4604_v53  ;;  %v4602_v14 = vmax.f32 %v11497_v59, 0.0  ;;  %v4645_v59 = vld [vmem:[%s12616_s6 + $0x80] sm:$0xff]  ;;  %v11732_v55 = vld [vmem:[%s12616_s6 + $0x128] sm:$0xff]  ;;  %v4647_v54 = vld [vmem:[%s12616_s6 + $0x90] sm:$0xff] }
 0x7dc   : > { %7131 = vmatmul.msk.f32.gmra.mxu1 %vm529_vm1, %v11524_v18  ;;  %4940 = vmatmul.f32.gmra.mxu0 %v11530_v26  ;;  %v4648_v22 = vld [vmem:[%s12616_s6 + $0x98] sm:$0xff] }
 0x7dd   : > { %5072 = vmatpush.msra.mxu3 %v4626_v28  ;;  %4782 = vmatpush.msrb.mxu2 %v4602_v14  ;;  %v4390_v28 = vadd.f32 %v13170_v44, %v4035_v19 }
 0x7de   : > { %4701 = vmatmul.f32.gmra.mxu2 %v11561_v9 }
 0x7df   : > { %5073 = vmatpush.msra.mxu3 %v4624_v62  ;;  %4783 = vmatpush.msrb.mxu2 %v4600_v63  ;;  %v11569_v62 = vadd.f32 %v11336_v40, %v4392_v24  ;;  %v4550_v12 = vadd.f32 %v11346_v57, %v4390_v28  ;;  %v4594_v40 = vmax.f32 %v11555_v21, 0.0  ;;  %v11594_v57 = vld [vmem:[%s12616_s6 + $0x30] sm:$0xff] }
 0x7e1   : > { %5074 = vmatpush.msra.mxu3 %v4622_v32  ;;  %4784 = vmatpush.msrb.mxu2 %v4598_v29  ;;  %v4592_v20 = vmax.f32 %v11569_v62, 0.0  ;;  %v4590_v32 = vmax.f32 %v4550_v12, 0.0 }
 0x7e2   : > { %7092 = vmatmul.msk.f32.gmra.mxu3 %vm529_vm1, %v11566_v36 }
 0x7e3   : > { %4785 = vmatpush.msrb.mxu2 %v4596_v13 }
 0x7e4   : > { %7132 = vmatmul.msk.f32.gmra.mxu1 %vm529_vm1, %v11575_v46  ;;  %4943 = vmatmul.f32.gmra.mxu0 %v11581_v39 }
 0x7e5   : > { %4786 = vmatpush.msrb.mxu2 %v4594_v40 }
 0x7e6   : > { %4704 = vmatmul.f32.gmra.mxu2 %v11594_v57 }
 0x7e7   : > { %4787 = vmatpush.msrb.mxu2 %v4592_v20 }
 0x7e9   : > { %4788 = vmatpush.msrb.mxu2 %v4590_v32 }
 0x7ea   : > { %7093 = vmatmul.msk.f32.gmra.mxu3 %vm529_vm1, %v11599_v51 }
 0x7eb   : > { %5012 = vmatpush.msra.mxu2 %v4620_v43  ;;  %v11638_v43 = vld [vmem:[%s12616_s6 + $0xe8] sm:$0xff] }
 0x7ec   : > { %7133 = vmatmul.msk.f32.gmra.mxu1 %vm529_vm1, %v11604_v45  ;;  %4946 = vmatmul.f32.gmra.mxu0 %v11611_v25 }
 0x7ed   : > { %5013 = vmatpush.msra.mxu2 %v4618_v17  ;;  %v4640_v17 = vld [vmem:[%s12616_s6 + $0x58] sm:$0xff] }
 0x7ee   : > { %4707 = vmatmul.f32.gmra.mxu2 %v11628_v0 }
 0x7ef   : > { %5014 = vmatpush.msra.mxu2 %v4616_v42  ;;  %v11668_v42 = vld [vmem:[%s12616_s6 + $0xf8] sm:$0xff] }
 0x7f1   : > { %5015 = vmatpush.msra.mxu2 %v4614_v6  ;;  %v4641_v6 = vld [vmem:[%s12616_s6 + $0x60] sm:$0xff] }
 0x7f2   : > { %7094 = vmatmul.msk.f32.gmra.mxu3 %vm529_vm1, %v11633_v38 }
 0x7f3   : > { %5016 = vmatpush.msra.mxu2 %v4612_v60  ;;  %v11697_v60 = vld [vmem:[%s12616_s6 + $0x110] sm:$0xff] }
 0x7f4   : > { %7134 = vmatmul.msk.f32.gmra.mxu1 %vm529_vm1, %v11638_v43  ;;  %4949 = vmatmul.f32.gmra.mxu0 %v11645_v15 }
 0x7f5   : > { %5017 = vmatpush.msra.mxu2 %v4610_v3  ;;  %v4644_v3 = vld [vmem:[%s12616_s6 + $0x78] sm:$0xff] }
 0x7f6   : > { %4710 = vmatmul.f32.gmra.mxu2 %v4639_v52 }
 0x7f7   : > { %5018 = vmatpush.msra.mxu2 %v4608_v11  ;;  %v11717_v11 = vld [vmem:[%s12616_s6 + $0x120] sm:$0xff] }
 0x7f9   : > { %5019 = vmatpush.msra.mxu2 %v4606_v2  ;;  %v4646_v2 = vld [vmem:[%s12616_s6 + $0x88] sm:$0xff] }
 0x7fa   : > { %7095 = vmatmul.msk.f32.gmra.mxu3 %vm529_vm1, %v4640_v17 }
 0x7fb   : > { %5020 = vmatpush.msra.mxu2 %v4604_v53  ;;  %v11752_v53 = vld [vmem:[%s12616_s6 + $0x138] sm:$0xff] }
 0x7fc   : > { %7135 = vmatmul.msk.f32.gmra.mxu1 %vm529_vm1, %v11668_v42  ;;  %4952 = vmatmul.f32.gmra.mxu0 %v11675_v50 }
 0x7fd   : > { %5021 = vmatpush.msra.mxu2 %v4602_v14 }
 0x7fe   : > { %4713 = vmatmul.f32.gmra.mxu2 %v4641_v6 }
 0x7ff   : > { %5022 = vmatpush.msra.mxu2 %v4600_v63 }
 0x801   : > { %5023 = vmatpush.msra.mxu2 %v4598_v29 }
 0x802   : > { %7096 = vmatmul.msk.f32.gmra.mxu3 %vm529_vm1, %v4642_v33 }
 0x803   : > { %5024 = vmatpush.msra.mxu2 %v4596_v13 }
 0x804   : > { %7136 = vmatmul.msk.f32.gmra.mxu1 %vm529_vm1, %v11692_v5  ;;  %4955 = vmatmul.f32.gmra.mxu0 %v11697_v60 }
 0x805   : > { %5025 = vmatpush.msra.mxu2 %v4594_v40 }
 0x806   : > { %4716 = vmatmul.f32.gmra.mxu2 %v4643_v47 }
 0x807   : > { %5026 = vmatpush.msra.mxu2 %v4592_v20 }
 0x809   : > { %5027 = vmatpush.msra.mxu2 %v4590_v32 }
 0x80a   : > { %7097 = vmatmul.msk.f32.gmra.mxu3 %vm529_vm1, %v4644_v3 }
 0x80c   : > { %7137 = vmatmul.msk.f32.gmra.mxu1 %vm529_vm1, %v11712_v49  ;;  %4958 = vmatmul.f32.gmra.mxu0 %v11717_v11 }
 0x80e   : > { %4719 = vmatmul.f32.gmra.mxu2 %v4645_v59 }
 0x812   : > { %7098 = vmatmul.msk.f32.gmra.mxu3 %vm529_vm1, %v4646_v2 }
 0x814   : > { %7138 = vmatmul.msk.f32.gmra.mxu1 %vm529_vm1, %v11732_v55  ;;  %4961 = vmatmul.f32.gmra.mxu0 %v11737_v31 }
 0x816   : > { %4722 = vmatmul.f32.gmra.mxu2 %v4647_v54 }
 0x81a   : > { %7099 = vmatmul.msk.f32.gmra.mxu3 %vm529_vm1, %v4648_v22 }
 0x81c   : > { %7139 = vmatmul.msk.f32.gmra.mxu1 %vm529_vm1, %v11752_v53 }
 0x81e   : > { %4789 = vmatmul.f32.vlgmr.msrb.gmra.mxu2 %v11429_v8 }
 0x822   : > { %7100 = vmatmul.msk.f32.vlgmr.msrb.gmra.mxu3 %vm529_vm1, %v11434_v58 }
 0x826   : > { %4792 = vmatmul.f32.gmra.mxu2 %v11505_v35 }
 0x82a   : > { %7101 = vmatmul.msk.f32.gmra.mxu3 %vm529_vm1, %v11511_v1 }
 0x82e   : > { %4795 = vmatmul.f32.gmra.mxu2 %v11561_v9 }
 0x832   : > { %7102 = vmatmul.msk.f32.gmra.mxu3 %vm529_vm1, %v11566_v36 }
 0x836   : > { %4798 = vmatmul.f32.gmra.mxu2 %v11594_v57 }
 0x83a   : > { %7103 = vmatmul.msk.f32.gmra.mxu3 %vm529_vm1, %v11599_v51 }
 0x83e   : > { %4801 = vmatmul.f32.gmra.mxu2 %v11628_v0 }
 0x842   : > { %7104 = vmatmul.msk.f32.gmra.mxu3 %vm529_vm1, %v11633_v38 }
 0x846   : > { %4804 = vmatmul.f32.gmra.mxu2 %v4639_v52 }
 0x847   : > { %v11859_v38 = vpop.f32.mrf.mxu0 }
 0x848   : > { %13177 = vst [vmem:[#allocation45_spill] sm:$0xff] %v11859_v38 }
 0x84a   : > { %7105 = vmatmul.msk.f32.gmra.mxu3 %vm529_vm1, %v4640_v17 }
 0x84e   : > { %4807 = vmatmul.f32.gmra.mxu2 %v4641_v6 }
 0x84f   : > { %v4696_v8 = vpop.f32.mrf.mxu2 }
 0x851   : > { %v4938_v17 = vpop.f32.mrf.mxu0 }
 0x852   : > { %7106 = vmatmul.msk.f32.gmra.mxu3 %vm529_vm1, %v4642_v33 }
 0x855   : > { %v4743_v58 = vpop.f32.mrf.mxu3 }
 0x856   : > { %v11774_v35 = vadd.f32 %v4743_v58, %v4696_v8  ;;  %4810 = vmatmul.f32.gmra.mxu2 %v4643_v47 }
 0x858   : > { %13171 = vst [vmem:[#allocation127_spill] sm:$0xff] %v11774_v35 }
 0x859   : > { %v4699_v1 = vpop.f32.mrf.mxu2  ;;  %v11867_v33 = vpop.f32.mrf.mxu0 }
 0x85a   : > { %7107 = vmatmul.msk.f32.gmra.mxu3 %vm529_vm1, %v4644_v3 }
 0x85d   : > { %v4746_v48 = vpop.f32.mrf.mxu3 }
 0x85e   : > { %v11777_v41 = vadd.f32 %v4746_v48, %v4699_v1  ;;  %4813 = vmatmul.f32.gmra.mxu2 %v4645_v59 }
 0x861   : > { %v4702_v37 = vpop.f32.mrf.mxu2  ;;  %v11875_v3 = vpop.f32.mrf.mxu0 }
 0x862   : > { %7108 = vmatmul.msk.f32.gmra.mxu3 %vm529_vm1, %v4646_v2  ;;  %13181 = vst [vmem:[#allocation130_spill] sm:$0xff] %v11875_v3 }
 0x865   : > { %v4749_v4 = vpop.f32.mrf.mxu3 }
 0x866   : > { %v11780_v34 = vadd.f32 %v4749_v4, %v4702_v37  ;;  %4816 = vmatmul.f32.gmra.mxu2 %v4647_v54 }
 0x869   : > { %v4705_v61 = vpop.f32.mrf.mxu2 }
 0x86a   : > { %7109 = vmatmul.msk.f32.gmra.mxu3 %vm529_vm1, %v4648_v22 }
 0x86d   : > { %v4752_v14 = vpop.f32.mrf.mxu3 }
 0x86e   : > { %v11783_v27 = vadd.f32 %v4752_v14, %v4705_v61  ;;  %5028 = vmatmul.f32.vlgmr.msra.gmra.mxu2 %v11374_v10 }
 0x870   : > { %13172 = vst [vmem:[#allocation42_spill] sm:$0xff] %v11783_v27 }
 0x871   : > { %v4708_v19 = vpop.f32.mrf.mxu2 }
 0x872   : > { %7140 = vmatmul.msk.f32.vlgmr.msra.gmra.mxu3 %vm529_vm1, %v11455_v56 }
 0x875   : > { %v4755_v30 = vpop.f32.mrf.mxu3 }
 0x876   : > { %v11788_v24 = vadd.f32 %v4755_v30, %v4708_v19  ;;  %5031 = vmatmul.f32.gmra.mxu2 %v11460_v23 }
 0x879   : > { %v4711_v16 = vpop.f32.mrf.mxu2 }
 0x87a   : > { %7141 = vmatmul.msk.f32.gmra.mxu3 %vm529_vm1, %v11524_v18 }
 0x87d   : > { %v4758_v7 = vpop.f32.mrf.mxu3 }
 0x87e   : > { %v11793_v63 = vadd.f32 %v4758_v7, %v4711_v16  ;;  %5034 = vmatmul.f32.gmra.mxu2 %v11530_v26 }
 0x881   : > { %v11798_v10 = vpop.f32.mrf.mxu2 }
 0x882   : > { %7142 = vmatmul.msk.f32.gmra.mxu3 %vm529_vm1, %v11575_v46 }
 0x885   : > { %v11800_v56 = vpop.f32.mrf.mxu3 }
 0x886   : > { %5037 = vmatmul.f32.gmra.mxu2 %v11581_v39 }
 0x889   : > { %v11805_v23 = vpop.f32.mrf.mxu2 }
 0x88a   : > { %7143 = vmatmul.msk.f32.gmra.mxu3 %vm529_vm1, %v11604_v45 }
 0x88d   : > { %v11807_v18 = vpop.f32.mrf.mxu3 }
 0x88e   : > { %5040 = vmatmul.f32.gmra.mxu2 %v11611_v25 }
 0x891   : > { %v11812_v26 = vpop.f32.mrf.mxu2 }
 0x892   : > { %7144 = vmatmul.msk.f32.gmra.mxu3 %vm529_vm1, %v11638_v43  ;;  %v11861_v43 = vpop.f32.mrf.mxu1 }
 0x893   : > { %13178 = vst [vmem:[#allocation17_spill] sm:$0xff] %v11861_v43 }
 0x895   : > { %v11814_v44 = vpop.f32.mrf.mxu3 }
 0x896   : > { %5043 = vmatmul.f32.gmra.mxu2 %v11645_v15 }
 0x899   : > { %v11819_v28 = vpop.f32.mrf.mxu2 }
 0x89a   : > { %7145 = vmatmul.msk.f32.gmra.mxu3 %vm529_vm1, %v11668_v42  ;;  %v4985_v42 = vpop.f32.mrf.mxu1 }
 0x89d   : > { %v11821_v21 = vpop.f32.mrf.mxu3 }
 0x89e   : > { %5046 = vmatmul.f32.gmra.mxu2 %v11675_v50 }
 0x8a1   : > { %v11826_v29 = vpop.f32.mrf.mxu2 }
 0x8a2   : > { %7146 = vmatmul.msk.f32.gmra.mxu3 %vm529_vm1, %v11692_v5  ;;  %13173 = vst [vmem:[#allocation37_spill] sm:$0xff] %v11826_v29  ;;  %v11869_v5 = vpop.f32.mrf.mxu1 }
 0x8a5   : > { %v11828_v9 = vpop.f32.mrf.mxu3 }
 0x8a6   : > { %13174 = vst [vmem:[#allocation33_spill] sm:$0xff] %v11828_v9  ;;  %5049 = vmatmul.f32.gmra.mxu2 %v11697_v60  ;;  %v4765_v9 = vadd.f32 %v11807_v18, %v11805_v23 }
 0x8a9   : > { %v11833_v36 = vpop.f32.mrf.mxu2 }
 0x8aa   : > { %7147 = vmatmul.msk.f32.gmra.mxu3 %vm529_vm1, %v11712_v49  ;;  %v11877_v49 = vpop.f32.mrf.mxu1 }
 0x8ab   : > { %13182 = vst [vmem:[#allocation9_spill] sm:$0xff] %v11877_v49  ;;  %v4768_v49 = vadd.f32 %v11814_v44, %v11812_v26 }
 0x8ad   : > { %v11835_v62 = vpop.f32.mrf.mxu3 }
 0x8ae   : > { %5052 = vmatmul.f32.gmra.mxu2 %v11717_v11 }
 0x8b1   : > { %v11840_v13 = vpop.f32.mrf.mxu2 }
 0x8b2   : > { %7148 = vmatmul.msk.f32.gmra.mxu3 %vm529_vm1, %v11732_v55  ;;  %v4994_v54 = vpop.f32.mrf.mxu1 }
 0x8b5   : > { %v11842_v46 = vpop.f32.mrf.mxu3 }
 0x8b6   : > { %5055 = vmatmul.f32.gmra.mxu2 %v11737_v31  ;;  %v4947_v31 = vpop.f32.mrf.mxu0 }
 0x8b7   : > { %v4995_v3 = vadd.f32 %v4994_v54, %v4947_v31  ;;  %v13185_v54 = vld [vmem:[#allocation9_spill] sm:$0xff] }
 0x8b9   : > { %v11847_v39 = vpop.f32.mrf.mxu2 }
 0x8ba   : > { %7149 = vmatmul.msk.f32.gmra.mxu3 %vm529_vm1, %v11752_v53  ;;  %13175 = vst [vmem:[#allocation64_spill] sm:$0xff] %v11847_v39  ;;  %v4997_v1 = vpop.f32.mrf.mxu1 }
 0x8bd   : > { %v11849_v12 = vpop.f32.mrf.mxu3 }
 0x8be   : > { %13176 = vst [vmem:[#allocation58_spill] sm:$0xff] %v11849_v12  ;;  %v4950_v58 = vpop.f32.mrf.mxu0 }
 0x8c1   : > { %v4802_v40 = vpop.f32.mrf.mxu2 }
 0x8c2   : > { %v11887_v61 = vpop.f32.mrf.mxu1 }
 0x8c5   : > { %v4849_v20 = vpop.f32.mrf.mxu3 }
 0x8c6   : > { %v11885_v4 = vpop.f32.mrf.mxu0  ;;  %v4850_v23 = vadd.f32 %v4849_v20, %v4802_v40  ;;  %v4998_v20 = vadd.f32 %v4997_v1, %v4950_v58  ;;  %v13187_v58 = vld [vmem:[#allocation58_spill] sm:$0xff] }
 0x8c9   : > { %v11851_v32 = vpop.f32.mrf.mxu2 }
 0x8ca   : > { %v5003_v16 = vpop.f32.mrf.mxu1 }
 0x8cd   : > { %v11853_v57 = vpop.f32.mrf.mxu3 }
 0x8ce   : > { %v4956_v30 = vpop.f32.mrf.mxu0 }
 0x8cf   : > { %v5004_v29 = vadd.f32 %v5003_v16, %v4956_v30 }
 0x8d1   : > { %v11855_v51 = vpop.f32.mrf.mxu2  ;;  %v11891_v27 = vmax.f32 %v4765_v9, %v5004_v29  ;;  %v11903_v9 = vmax.f32 %v11788_v24, %v4995_v3  ;;  %v4771_v24 = vadd.f32 %v11821_v21, %v11819_v28 }
 0x8d2   : > { %v5006_v38 = vpop.f32.mrf.mxu1 }
 0x8d5   : > { %v11857_v45 = vpop.f32.mrf.mxu3 }
 0x8d6   : > { %v4959_v43 = vpop.f32.mrf.mxu0  ;;  %v4856_v31 = vadd.f32 %v11857_v45, %v11855_v51  ;;  %v13186_v45 = vld [vmem:[#allocation64_spill] sm:$0xff] }
 0x8d7   : > { %v5007_v18 = vadd.f32 %v5006_v38, %v4959_v43  ;;  %v4841_v43 = vadd.f32 %v11835_v62, %v11833_v36  ;;  %v5116_v36 = vmax.f32 %v11793_v63, %v4998_v20  ;;  %v4844_v63 = vadd.f32 %v11842_v46, %v11840_v13 }
 0x8d8   : > { %v4847_v1 = vadd.f32 %v13187_v58, %v13186_v45 }
 0x8d9   : > { %v4811_v25 = vpop.f32.mrf.mxu2 }
 0x8dd   : > { %v4858_v0 = vpop.f32.mrf.mxu3 }
 0x8e1   : > { %v4814_v15 = vpop.f32.mrf.mxu2 }
 0x8e5   : > { %v4861_v52 = vpop.f32.mrf.mxu3 }
 0x8e9   : > { %v11863_v50 = vpop.f32.mrf.mxu2 }
 0x8ed   : > { %v11865_v6 = vpop.f32.mrf.mxu3 }
 0x8f1   : > { %v11871_v60 = vpop.f32.mrf.mxu2 }
 0x8f2   : > { %13179 = vst [vmem:[#allocation24_spill] sm:$0xff] %v11871_v60 }
 0x8f5   : > { %v11873_v47 = vpop.f32.mrf.mxu3 }
 0x8f6   : > { %13180 = vst [vmem:[#allocation120_spill] sm:$0xff] %v11873_v47  ;;  %v4859_v47 = vadd.f32 %v4858_v0, %v4811_v25  ;;  %v4862_v25 = vadd.f32 %v4861_v52, %v4814_v15  ;;  %v4853_v15 = vadd.f32 %v11853_v57, %v11851_v32 }
 0x8f9   : > { %v5032_v11 = vpop.f32.mrf.mxu2 }
 0x8fd   : > { %v5079_v59 = vpop.f32.mrf.mxu3 }
 0x8fe   : > { %v5080_v26 = vadd.f32 %v5079_v59, %v5032_v11 }
 0x901   : > { %v11879_v2 = vpop.f32.mrf.mxu2 }
 0x905   : > { %v11881_v55 = vpop.f32.mrf.mxu3 }
 0x906   : > { %v5083_v57 = vadd.f32 %v11881_v55, %v11879_v2  ;;  %v4762_v2 = vadd.f32 %v11800_v56, %v11798_v10  ;;  %v5001_v55 = vadd.f32 %v11887_v61, %v11885_v4  ;;  %v13184_v56 = vld [vmem:[#allocation130_spill] sm:$0xff] }
 0x907   : > { %v4992_v51 = vadd.f32 %v13185_v54, %v13184_v56 }
 0x908   : > { %v5118_v46 = vmax.f32 %v4762_v2, %v5001_v55 }
 0x909   : > { %v5038_v22 = vpop.f32.mrf.mxu2 }
 0x90d   : > { %v5085_v53 = vpop.f32.mrf.mxu3 }
 0x90e   : > { %v11883_v8 = vadd.f32 %v5085_v53, %v5038_v22 }
 0x910   : > { %13183 = vst [vmem:[#allocation48_spill] sm:$0xff] %v11883_v8 }
 0x911   : > { %v5041_v48 = vpop.f32.mrf.mxu2 }
 0x915   : > { %v5088_v37 = vpop.f32.mrf.mxu3 }
 0x916   : > { %v5089_v12 = vadd.f32 %v5088_v37, %v5041_v48  ;;  %v5009_v48 = vpop.f32.mrf.mxu1 }
 0x917   : > { %v13188_v4 = vld [vmem:[#allocation48_spill] sm:$0xff] }
 0x918   : > { %v11900_v0 = vmax.f32 %v4850_v23, %v5089_v12  ;;  %v4986_v12 = vadd.f32 %v4985_v42, %v4938_v17  ;;  %v4865_v17 = vadd.f32 %v11865_v6, %v11863_v50  ;;  %v11923_v42 = vmax.f32 %v4841_v43, %v5080_v26  ;;  %v13192_v23 = vld [vmem:[#allocation45_spill] sm:$0xff] }
 0x919   : > { %v5044_v14 = vpop.f32.mrf.mxu2  ;;  %v11969_v61 = vmax.f32 %v4847_v1, %v13188_v4 }
 0x91a   : > { %v11928_v21 = vmax.f32 %v11777_v41, %v4986_v12  ;;  %v4989_v41 = vadd.f32 %v11869_v5, %v11867_v33 }
 0x91c   : > { %v7700_v11 = vpack.i.bf16 %v11923_v42, %v11928_v21  ;;  %v11957_v13 = vmax.f32 %v11780_v34, %v4989_v41  ;;  %v13189_v34 = vld [vmem:[#allocation42_spill] sm:$0xff] }
 0x91d   : > { %v5091_v19 = vpop.f32.mrf.mxu3 }
 0x91e   : > { %v5092_v44 = vadd.f32 %v5091_v19, %v5044_v14  ;;  %v11972_v14 = vmax.f32 %v13189_v34, %v4992_v51  ;;  %v13190_v19 = vld [vmem:[#allocation24_spill] sm:$0xff] }
 0x921   : > { %v5047_v7 = vpop.f32.mrf.mxu2 }
 0x925   : > { %v5094_v35 = vpop.f32.mrf.mxu3 }
 0x926   : > { %v5095_v59 = vadd.f32 %v5094_v35, %v5047_v7  ;;  %v11952_v35 = vmax.f32 %v4844_v63, %v5083_v57  ;;  %v13191_v7 = vld [vmem:[#allocation120_spill] sm:$0xff] }
 0x928   : > { %v11954_v33 = vmax.f32 %v4856_v31, %v5095_v59  ;;  %v7695_v5 = vpack.i.bf16 %v11952_v35, %v11957_v13 }
 0x929   : > { %v5050_v22 = vpop.f32.mrf.mxu2 }
 0x92a   : > { %v7675_v10 = vpack.i.bf16 %v11954_v33, %v5118_v46 }
 0x92d   : > { %v5097_v53 = vpop.f32.mrf.mxu3 }
 0x92e   : > { %v5098_v60 = vadd.f32 %v5097_v53, %v5050_v22  ;;  %v5077_v22 = vadd.f32 %v13191_v7, %v13190_v19  ;;  %v7690_v53 = vpack.i.bf16 %v11969_v61, %v11972_v14 }
 0x930   : > { %v11893_v8 = vmax.f32 %v4859_v47, %v5098_v60  ;;  %v11905_v60 = vmax.f32 %v4768_v49, %v5007_v18  ;;  %v4962_v47 = vpop.f32.mrf.mxu0  ;;  %v11925_v49 = vmax.f32 %v4853_v15, %v5092_v44  ;;  %v13193_v18 = vld [vmem:[#allocation17_spill] sm:$0xff] }
 0x931   : > { %v5053_v30 = vpop.f32.mrf.mxu2  ;;  %v5010_v38 = vadd.f32 %v5009_v48, %v4962_v47  ;;  %v13196_v48 = vld [vmem:[#allocation127_spill] sm:$0xff] }
 0x932   : > { %v7660_v39 = vpack.i.bf16 %v11893_v8, %v11891_v27  ;;  %v7680_v50 = vpack.i.bf16 %v11925_v49, %v5116_v36 }
 0x933   : > { %v5124_v62 = vmax.f32 %v4771_v24, %v5010_v38 }
 0x934   : > { %7661 = vrot.lane.b32.xlu0 %v7660_v39, %s7800_s15  ;;  %v7685_v39 = vpack.i.bf16 %v11900_v0, %v11903_v9 }
 0x935   : > { %v5100_v16 = vpop.f32.mrf.mxu3 }
 0x936   : > { %v5101_v29 = vadd.f32 %v5100_v16, %v5053_v30  ;;  %v4983_v30 = vadd.f32 %v13193_v18, %v13192_v23  ;;  %v13194_v16 = vld [vmem:[#allocation37_spill] sm:$0xff] }
 0x938   : > { %v11907_v37 = vmax.f32 %v4862_v25, %v5101_v29  ;;  %v13195_v25 = vld [vmem:[#allocation33_spill] sm:$0xff]  ;;  %v11986_v26 = vmax.f32 %v13196_v48, %v4983_v30 }
 0x939   : > { %v5056_v52 = vpop.f32.mrf.mxu2  ;;  %v4838_v29 = vadd.f32 %v13195_v25, %v13194_v16 }
 0x93a   : > { %v7665_v40 = vpack.i.bf16 %v11907_v37, %v11905_v60 }
 0x93b   : > { %v11983_v47 = vmax.f32 %v4838_v29, %v5077_v22 }
 0x93c   : > { %7686 = vrot.lane.b32.xlu0 %v7685_v39, %s7800_s15  ;;  %7666 = vrot.lane.b32.xlu2 %v7665_v40, %s7800_s15 }
 0x93d   : > { %v5103_v3 = vpop.f32.mrf.mxu3  ;;  %v7705_v44 = vpack.i.bf16 %v11983_v47, %v11986_v26 }
 0x93e   : > { %v5104_v28 = vadd.f32 %v5103_v3, %v5056_v52 }
 0x940   : > { %v11931_v32 = vmax.f32 %v4865_v17, %v5104_v28 }
 0x942   : > { %v7670_v6 = vpack.i.bf16 %v11931_v32, %v5124_v62 }
 0x944   : > { %7701 = vrot.lane.b32.xlu0 %v7700_v11, %s7800_s15  ;;  %7681 = vrot.lane.b32.xlu2 %v7680_v50, %s7800_s15 }
 0x945   : > { %7671 = vrot.lane.b32.xlu1 %v7670_v6, %s7800_s15 }
 0x94c   : > { %7696 = vrot.lane.b32.xlu2 %v7695_v5, %s7800_s15 }
 0x94d   : > { %7676 = vrot.lane.b32.xlu1 %v7675_v10, %s7800_s15 }
 0x955   : > { %7691 = vrot.lane.b32.xlu1 %v7690_v53, %s7800_s15 }
 0x95d   : > { %7706 = vrot.lane.b32.xlu1 %v7705_v44, %s7800_s15  ;;  %s7806_s15 = smov 32  }
 0x996   : > { %v11991_v39 = vpop.permute.xlu2 %7666 }
 0x997   : > { %v7669_v57 = vunpack.i.h.bf16 %v11991_v39  ;;  %v7668_v11 = vunpack.i.l.bf16 %v11991_v39 }
 0x999   : > { %v5194_v59 = vsel %vm1014_vm2, %v7668_v11, %v7669_v57  ;;  %v5998_v11 = vld [vmem:[%s12618_s8 + $0x18] sm:$0xff] }
 0x99a   : > { %v5232_v55 = vmax.f32 %v11905_v60, %v5194_v59  ;;  %v6005_v59 = vld [vmem:[%s12618_s8 + $0x50] sm:$0xff] }
 0x99e   : > { %v11995_v12 = vpop.permute.xlu2 %7681 }
 0x99f   : > { %v7684_v20 = vunpack.i.h.bf16 %v11995_v12  ;;  %v7683_v38 = vunpack.i.l.bf16 %v11995_v12 }
 0x9a1   : > { %v5191_v43 = vsel %vm1014_vm2, %v7683_v38, %v7684_v20  ;;  %v5227_v39 = vmax.f32 %v11925_v49, %v7684_v20 }
 0x9a2   : > { %v5226_v17 = vmax.f32 %v5116_v36, %v5191_v43 }
 0x9a6   : > { %v11993_v40 = vpop.permute.xlu0 %7661  ;;  %v12039_v60 = vpop.permute.xlu2 %7696 }
 0x9a7   : > { %v7663_v63 = vunpack.i.l.bf16 %v11993_v40  ;;  %v7699_v1 = vunpack.i.h.bf16 %v12039_v60  ;;  %v7698_v4 = vunpack.i.l.bf16 %v12039_v60 }
 0x9a9   : > { %v5188_v7 = vsel %vm1014_vm2, %v7698_v4, %v7699_v1 }
 0x9aa   : > { %v5220_v30 = vmax.f32 %v11957_v13, %v5188_v7 }
 0x9ae   : > { %v11999_v24 = vpop.permute.xlu0 %7686 }
 0x9af   : > { %v7689_v15 = vunpack.i.h.bf16 %v11999_v24  ;;  %v7688_v52 = vunpack.i.l.bf16 %v11999_v24  ;;  %v5221_v24 = vmax.f32 %v11952_v35, %v7699_v1  ;;  %v5242_v35 = vld [vmem:[%s12617_s7 + $0x30] sm:$0xff] }
 0x9b1   : > { %v5190_v3 = vsel %vm1014_vm2, %v7688_v52, %v7689_v15 }
 0x9b2   : > { %v5224_v28 = vmax.f32 %v11903_v9, %v5190_v3  ;;  %v7664_v9 = vunpack.i.h.bf16 %v11993_v40  ;;  %v6001_v3 = vld [vmem:[%s12618_s8 + $0x30] sm:$0xff] }
 0x9b4   : > { %v12012_v50 = vpack.i.bf16 %v5224_v28, %v5226_v17  ;;  %v5193_v5 = vsel %vm1014_vm2, %v7663_v63, %v7664_v9  ;;  %v6003_v63 = vld [vmem:[%s12618_s8 + $0x40] sm:$0xff] }
 0x9b5   : > { %v5230_v54 = vmax.f32 %v11891_v27, %v5193_v5  ;;  %v5999_v5 = vld [vmem:[%s12618_s8 + $0x20] sm:$0xff] }
 0x9b6   : > { %7721 = vrot.lane.b32.xlu1 %v12012_v50, %s7802_s27  ;;  %v12046_v27 = vpop.permute.xlu0 %7701 }
 0x9b7   : > { %v12016_v6 = vpop.permute.xlu1 %7671  ;;  %v7704_v53 = vunpack.i.h.bf16 %v12046_v27  ;;  %v7703_v23 = vunpack.i.l.bf16 %v12046_v27 }
 0x9b8   : > { %v7674_v41 = vunpack.i.h.bf16 %v12016_v6  ;;  %v7673_v36 = vunpack.i.l.bf16 %v12016_v6  ;;  %v5231_v6 = vmax.f32 %v11893_v8, %v7664_v9 }
 0x9b9   : > { %v5187_v25 = vsel %vm1014_vm2, %v7703_v23, %v7704_v53  ;;  %v6288_v23 = vld [vmem:[%s12622_s12] sm:$0xff] }
 0x9ba   : > { %v5195_v2 = vsel %vm1014_vm2, %v7673_v36, %v7674_v41  ;;  %v5218_v44 = vmax.f32 %v11928_v21, %v5187_v25  ;;  %v6007_v21 = vld [vmem:[%s12618_s8 + $0x60] sm:$0xff] }
 0x9bb   : > { %v5234_v31 = vmax.f32 %v5124_v62, %v5195_v2  ;;  %v5995_v36 = vld [vmem:[%s12618_s8] sm:$0xff]  ;;  %v6002_v2 = vld [vmem:[%s12618_s8 + $0x38] sm:$0xff] }
 0x9bd   : > { %5465 = vmatpush.msra.mxu1 %v5234_v31  ;;  %v7740_v10 = vpack.i.bf16 %v5232_v55, %v5234_v31  ;;  %v6000_v31 = vld [vmem:[%s12618_s8 + $0x28] sm:$0xff] }
 0x9bf   : > { %v12032_v56 = vpop.permute.xlu1 %7676  ;;  %7741 = vrot.lane.b32.xlu1 %v7740_v10, %s7805_s16  ;;  %7711 = vrot.lane.b32.xlu2 %v7740_v10, %s7802_s27 }
 0x9c0   : > { %v7679_v51 = vunpack.i.h.bf16 %v12032_v56  ;;  %v7678_v45 = vunpack.i.l.bf16 %v12032_v56  ;;  %5466 = vmatpush.msra.mxu1 %v5232_v55  ;;  %v6134_v55 = vld [vmem:[%s12620_s10 + $0x40] sm:$0xff] }
 0x9c2   : > { %v5192_v62 = vsel %vm1014_vm2, %v7678_v45, %v7679_v51  ;;  %5467 = vmatpush.msra.mxu1 %v5230_v54  ;;  %v5996_v45 = vld [vmem:[%s12618_s8 + $0x8] sm:$0xff] }
 0x9c3   : > { %v5228_v58 = vmax.f32 %v5118_v46, %v5192_v62  ;;  %v6128_v62 = vld [vmem:[%s12620_s10 + $0x10] sm:$0xff] }
 0x9c5   : > { %5468 = vmatpush.msra.mxu1 %v5228_v58  ;;  %v7715_v34 = vpack.i.bf16 %v5228_v58, %v5230_v54  ;;  %v5997_v54 = vld [vmem:[%s12618_s8 + $0x10] sm:$0xff] }
 0x9c6   : > { %v6136_v58 = vld [vmem:[%s12620_s10 + $0x50] sm:$0xf] }
 0x9c7   : > { %v12048_v19 = vpop.permute.xlu1 %7691  ;;  %7716 = vrot.lane.b32.xlu0 %v7715_v34, %s7802_s27  ;;  %7746 = vrot.lane.b32.xlu1 %v7715_v34, %s7806_s15 }
 0x9c8   : > { %v7694_v46 = vunpack.i.h.bf16 %v12048_v19  ;;  %v7693_v22 = vunpack.i.l.bf16 %v12048_v19  ;;  %5469 = vmatpush.msra.mxu1 %v5226_v17  ;;  %v6009_v17 = vld [vmem:[%s12618_s8 + $0x70] sm:$0xff] }
 0x9ca   : > { %v5189_v18 = vsel %vm1014_vm2, %v7693_v22, %v7694_v46  ;;  %5470 = vmatpush.msra.mxu1 %v5224_v28  ;;  %v6008_v28 = vld [vmem:[%s12618_s8 + $0x68] sm:$0xff]  ;;  %v5223_v49 = vmax.f32 %v11969_v61, %v7694_v46  ;;  %v5219_v61 = vmax.f32 %v11923_v42, %v7704_v53 }
 0x9cb   : > { %v5222_v16 = vmax.f32 %v11972_v14, %v5189_v18  ;;  %v6135_v22 = vld [vmem:[%s12620_s10 + $0x48] sm:$0xff]  ;;  %v6133_v18 = vld [vmem:[%s12620_s10 + $0x38] sm:$0xff] }
 0x9cd   : > { %5471 = vmatpush.msra.mxu1 %v5222_v16  ;;  %v7765_v29 = vpack.i.bf16 %v5220_v30, %v5222_v16  ;;  %v6130_v16 = vld [vmem:[%s12620_s10 + $0x20] sm:$0xff] }
 0x9cf   : > { %v12067_v48 = vpop.permute.xlu1 %7706  ;;  %7766 = vrot.lane.b32.xlu1 %v7765_v29, %s7805_s16  ;;  %7726 = vrot.lane.b32.xlu2 %v7765_v29, %s7802_s27 }
 0x9d0   : > { %v7709_v38 = vunpack.i.h.bf16 %v12067_v48  ;;  %v7708_v13 = vunpack.i.l.bf16 %v12067_v48  ;;  %5472 = vmatpush.msra.mxu1 %v5220_v30  ;;  %v6132_v30 = vld [vmem:[%s12620_s10 + $0x30] sm:$0xff] }
 0x9d2   : > { %v5186_v14 = vsel %vm1014_vm2, %v7708_v13, %v7709_v38  ;;  %5473 = vmatpush.msra.mxu1 %v5218_v44  ;;  %v6127_v13 = vld [vmem:[%s12620_s10 + $0x8] sm:$0xff]  ;;  %v5217_v60 = vmax.f32 %v11983_v47, %v7709_v38  ;;  %v7195_v47 = vld [vmem:[%s12617_s7 + $0xf0] sm:$0xff] }
 0x9d3   : > { %v5216_v43 = vmax.f32 %v11986_v26, %v5186_v14  ;;  %v6004_v26 = vld [vmem:[%s12618_s8 + $0x48] sm:$0xff]  ;;  %v5236_v14 = vld [vmem:[%s12617_s7] sm:$0xff] }
 0x9d4   : > { %v7225_v38 = vld [vmem:[%s12617_s7 + $0x168] sm:$0xff] }
 0x9d5   : > { %5474 = vmatpush.msra.mxu1 %v5216_v43  ;;  %v7730_v52 = vpack.i.bf16 %v5216_v43, %v5218_v44  ;;  %v6129_v44 = vld [vmem:[%s12620_s10 + $0x18] sm:$0xff] }
 0x9d6   : > { %7180 = vmatmul.msk.f32.vlgmr.msra.gmra.mxu1 %vm3784_vm8, %v5236_v14  ;;  %v7153_v14 = vld [vmem:[%s12617_s7 + $0x90] sm:$0xff] }
 0x9d7   : > { %7731 = vrot.lane.b32.xlu0 %v7730_v52, %s7802_s27  ;;  %7781 = vrot.lane.b32.xlu1 %v7730_v52, %s7806_s15 }
 0x9d8   : > { %7751 = vrot.lane.b32.xlu2 %v7740_v10, %s7806_s15  ;;  %v6131_v10 = vld [vmem:[%s12620_s10 + $0x28] sm:$0xff] }
 0x9df   : > { %7736 = vrot.lane.b32.xlu0 %v7715_v34, %s7805_s16  ;;  %6072 = vperm.xlu1 %7407, %v6007_v21  }
 0x9e0   : > { %7756 = vrot.lane.b32.xlu2 %v12012_v50, %s7805_s16 }
 0x9e7   : > { %7761 = vrot.lane.b32.xlu0 %v12012_v50, %s7806_s15  ;;  %6057 = vperm.xlu1 %7407, %v6004_v26   ;;  %v6006_v50 = vld [vmem:[%s12618_s8 + $0x58] sm:$0xff] }
 0x9e8   : > { %7771 = vrot.lane.b32.xlu2 %v7765_v29, %s7806_s15 }
 0x9ef   : > { %7776 = vrot.lane.b32.xlu0 %v7730_v52, %s7805_s16  ;;  %6042 = vperm.xlu1 %7407, %v6001_v3  }
 0x9f0   : > { %6082 = vperm.xlu2 %7408, %v6009_v17   ;;  %v6126_v17 = vld [vmem:[%s12620_s10] sm:$0xff] }
 0x9f7   : > { %6077 = vperm.xlu0 %7409, %v6008_v28   ;;  %6027 = vperm.xlu1 %7407, %v5998_v11   ;;  %v6289_v11 = vld [vmem:[%s12622_s12 + $0x8] sm:$0x3] }
 0x9f8   : > { %6067 = vperm.xlu2 %7408, %v6006_v50   ;;  %v5237_v50 = vld [vmem:[%s12617_s7 + $0x8] sm:$0xff] }
 0x9f9   : > { %7181 = vmatmul.msk.f32.gmra.mxu1 %vm3784_vm8, %v5237_v50  ;;  %v5245_v50 = vld [vmem:[%s12617_s7 + $0x48] sm:$0xff] }
 0x9ff   : > { %6062 = vperm.xlu0 %7409, %v6005_v59   ;;  %6012 = vperm.xlu1 %7407, %v5995_v36  }
 0xa00   : > { %6052 = vperm.xlu2 %7408, %v6003_v63  }
 0xa07   : > { %6047 = vperm.xlu0 %7409, %v6002_v2   ;;  %6179 = vperm.xlu1 %7407, %v6134_v55  }
 0xa08   : > { %6037 = vperm.xlu2 %7408, %v6000_v31  }
 0xa0f   : > { %6032 = vperm.xlu0 %7409, %v5999_v5   ;;  %6164 = vperm.xlu1 %7407, %v6131_v10   ;;  %v5238_v10 = vld [vmem:[%s12617_s7 + $0x10] sm:$0xff] }
 0xa10   : > { %6022 = vperm.xlu2 %7408, %v5997_v54   ;;  %7182 = vmatmul.msk.f32.gmra.mxu1 %vm3784_vm8, %v5238_v10  ;;  %v5247_v10 = vld [vmem:[%s12617_s7 + $0x58] sm:$0xff] }
 0xa17   : > { %6017 = vperm.xlu0 %7409, %v5996_v45   ;;  %6149 = vperm.xlu1 %7407, %v6128_v62  }
 0xa18   : > { %6189 = vperm.xlu2 %7408, %v6136_v58   ;;  %v5239_v58 = vld [vmem:[%s12617_s7 + $0x18] sm:$0xff] }
 0xa19   : > { %v7712_v4 = vpop.permute.xlu2 %7711  ;;  %7183 = vmatmul.msk.f32.gmra.mxu1 %vm3784_vm8, %v5239_v58  ;;  %v5248_v58 = vld [vmem:[%s12617_s7 + $0x60] sm:$0xff] }
 0xa1a   : > { %v7713_v34 = vunpack.i.l.bf16 %v7712_v4  ;;  %v7714_v7 = vunpack.i.h.bf16 %v7712_v4 }
 0xa1c   : > { %5358 = vmatpush.msra.mxu0 %v7713_v34 }
 0xa1e   : > { %5359 = vmatpush.msra.mxu0 %v7714_v7 }
 0xa1f   : > { %6184 = vperm.xlu0 %7409, %v6135_v22   ;;  %6292 = vperm.xlu1 %7407, %v6288_v23   ;;  %v7150_v22 = vld [vmem:[%s12617_s7 + $0x78] sm:$0xff]  ;;  %v5235_v23 = vmax.f32 %v11931_v32, %v7674_v41 }
 0xa20   : > { %6174 = vperm.xlu2 %7408, %v6133_v18   ;;  %v5240_v18 = vld [vmem:[%s12617_s7 + $0x20] sm:$0xff] }
 0xa21   : > { %7184 = vmatmul.msk.f32.gmra.mxu1 %vm3784_vm8, %v5240_v18  ;;  %v7202_v18 = vld [vmem:[%s12617_s7 + $0x128] sm:$0xff] }
 0xa27   : > { %6169 = vperm.xlu0 %7409, %v6132_v30   ;;  %v5233_v30 = vmax.f32 %v11907_v37, %v7669_v57  ;;  %v7151_v37 = vld [vmem:[%s12617_s7 + $0x80] sm:$0xff]  ;;  %v5225_v57 = vmax.f32 %v11900_v0, %v7689_v15  ;;  %v7152_v15 = vld [vmem:[%s12617_s7 + $0x88] sm:$0xff] }
 0xa28   : > { %6159 = vperm.xlu2 %7408, %v6130_v16   ;;  %v7722_v25 = vpop.permute.xlu1 %7721 }
 0xa29   : > { %v7727_v29 = vpop.permute.xlu2 %7726  ;;  %v7723_v5 = vunpack.i.l.bf16 %v7722_v25  ;;  %v7724_v54 = vunpack.i.h.bf16 %v7722_v25  ;;  %v5229_v25 = vmax.f32 %v11954_v33, %v7679_v51  ;;  %v5241_v33 = vld [vmem:[%s12617_s7 + $0x28] sm:$0xff] }
 0xa2a   : > { %v7728_v45 = vunpack.i.l.bf16 %v7727_v29  ;;  %v7729_v62 = vunpack.i.h.bf16 %v7727_v29  ;;  %7185 = vmatmul.msk.f32.gmra.mxu1 %vm3784_vm8, %v5241_v33  ;;  %v7164_v33 = vld [vmem:[%s12617_s7 + $0xe8] sm:$0xff] }
 0xa2f   : > { %6154 = vperm.xlu0 %7409, %v6129_v44  }
 0xa30   : > { %6144 = vperm.xlu2 %7408, %v6127_v13  }
 0xa31   : > { %v7742_v43 = vpop.permute.xlu1 %7741 }
 0xa32   : > { %v7743_v52 = vunpack.i.l.bf16 %v7742_v43  ;;  %v7752_v21 = vpop.permute.xlu2 %7751  ;;  %v7744_v3 = vunpack.i.h.bf16 %v7742_v43  ;;  %7186 = vmatmul.msk.f32.gmra.mxu1 %vm3784_vm8, %v5242_v35  ;;  %v5243_v43 = vld [vmem:[%s12617_s7 + $0x38] sm:$0xff]  ;;  %v7257_v35 = vld [vmem:[%s12617_s7 + $0x1f0] sm:$0xff] }
 0xa33   : > { %v7753_v26 = vunpack.i.l.bf16 %v7752_v21  ;;  %v7754_v28 = vunpack.i.h.bf16 %v7752_v21  ;;  %v7196_v21 = vld [vmem:[%s12617_s7 + $0xf8] sm:$0xff] }
 0xa34   : > { %5618 = vmatpush.msrb.mxu2 %v7743_v52  ;;  %v7154_v52 = vld [vmem:[%s12617_s7 + $0x98] sm:$0xff] }
 0xa35   : > { %5786 = vmatpush.msrb.mxu3 %v7753_v26  ;;  %v7226_v26 = vld [vmem:[%s12617_s7 + $0x170] sm:$0xff] }
 0xa36   : > { %5619 = vmatpush.msrb.mxu2 %v7744_v3  ;;  %v5244_v3 = vld [vmem:[%s12617_s7 + $0x40] sm:$0xff] }
 0xa37   : > { %5787 = vmatpush.msrb.mxu3 %v7754_v28  ;;  %6139 = vperm.xlu0 %7409, %v6126_v17   ;;  %v7155_v17 = vld [vmem:[%s12617_s7 + $0xa0] sm:$0xff] }
 0xa38   : > { %6297 = vperm.xlu2 %7408, %v6289_v11   ;;  %v7197_v28 = vld [vmem:[%s12617_s7 + $0x100] sm:$0xff]  ;;  %v7227_v11 = vld [vmem:[%s12617_s7 + $0x178] sm:$0xff] }
 0xa39   : > { %v7717_v59 = vpop.permute.xlu0 %7716  ;;  %v7747_v36 = vpop.permute.xlu1 %7746 }
 0xa3a   : > { %v7718_v63 = vunpack.i.l.bf16 %v7717_v59  ;;  %v7748_v2 = vunpack.i.l.bf16 %v7747_v36  ;;  %v7719_v55 = vunpack.i.h.bf16 %v7717_v59  ;;  %v7749_v31 = vunpack.i.h.bf16 %v7747_v36  ;;  %v7757_v32 = vpop.permute.xlu2 %7756  ;;  %7187 = vmatmul.msk.f32.gmra.mxu1 %vm3784_vm8, %v5243_v43  ;;  %v7156_v59 = vld [vmem:[%s12617_s7 + $0xa8] sm:$0xff] }
 0xa3b   : > { %v7758_v40 = vunpack.i.l.bf16 %v7757_v32  ;;  %v7759_v9 = vunpack.i.h.bf16 %v7757_v32  ;;  %v7198_v36 = vld [vmem:[%s12617_s7 + $0x108] sm:$0xff]  ;;  %v7203_v32 = vld [vmem:[%s12617_s7 + $0x130] sm:$0xff] }
 0xa3c   : > { %5360 = vmatpush.msra.mxu0 %v7718_v63  ;;  %5788 = vmatpush.msrb.mxu3 %v7748_v2  ;;  %v7228_v63 = vld [vmem:[%s12617_s7 + $0x180] sm:$0xff]  ;;  %v5246_v2 = vld [vmem:[%s12617_s7 + $0x50] sm:$0xff] }
 0xa3e   : > { %5361 = vmatpush.msra.mxu0 %v7719_v55  ;;  %5789 = vmatpush.msrb.mxu3 %v7749_v31  ;;  %v7157_v55 = vld [vmem:[%s12617_s7 + $0xb0] sm:$0xff] }
 0xa3f   : > { %v7199_v31 = vld [vmem:[%s12617_s7 + $0x110] sm:$0xff] }
 0xa40   : > { %5362 = vmatpush.msra.mxu0 %v7723_v5  ;;  %v7229_v5 = vld [vmem:[%s12617_s7 + $0x188] sm:$0xff] }
 0xa41   : > { %v7767_v8 = vpop.permute.xlu1 %7766 }
 0xa42   : > { %5363 = vmatpush.msra.mxu0 %v7724_v54  ;;  %v7768_v20 = vunpack.i.l.bf16 %v7767_v8  ;;  %v7769_v51 = vunpack.i.h.bf16 %v7767_v8  ;;  %v7772_v0 = vpop.permute.xlu2 %7771  ;;  %7188 = vmatmul.msk.f32.gmra.mxu1 %vm3784_vm8, %v5244_v3  ;;  %v7158_v54 = vld [vmem:[%s12617_s7 + $0xb8] sm:$0xff] }
 0xa43   : > { %v7773_v19 = vunpack.i.l.bf16 %v7772_v0  ;;  %v7774_v46 = vunpack.i.h.bf16 %v7772_v0  ;;  %v7235_v8 = vld [vmem:[%s12617_s7 + $0x1b8] sm:$0xff]  ;;  %v7256_v0 = vld [vmem:[%s12617_s7 + $0x1e8] sm:$0xff] }
 0xa44   : > { %5364 = vmatpush.msra.mxu0 %v7728_v45  ;;  %v7200_v45 = vld [vmem:[%s12617_s7 + $0x118] sm:$0xff] }
 0xa46   : > { %5365 = vmatpush.msra.mxu0 %v7729_v62  ;;  %v7230_v62 = vld [vmem:[%s12617_s7 + $0x190] sm:$0xff] }
 0xa49   : > { %v7732_v4 = vpop.permute.xlu0 %7731  ;;  %v7782_v1 = vpop.permute.xlu1 %7781 }
 0xa4a   : > { %v7733_v34 = vunpack.i.l.bf16 %v7732_v4  ;;  %v7734_v7 = vunpack.i.h.bf16 %v7732_v4  ;;  %v7783_v53 = vunpack.i.l.bf16 %v7782_v1  ;;  %v7784_v48 = vunpack.i.h.bf16 %v7782_v1  ;;  %7189 = vmatmul.msk.f32.gmra.mxu1 %vm3784_vm8, %v5245_v50  ;;  %v7159_v4 = vld [vmem:[%s12617_s7 + $0xc0] sm:$0xff]  ;;  %v7239_v1 = vld [vmem:[%s12617_s7 + $0x1d8] sm:$0xff] }
 0xa4c   : > { %5366 = vmatpush.msra.mxu0 %v7733_v34  ;;  %v7201_v34 = vld [vmem:[%s12617_s7 + $0x120] sm:$0xff] }
 0xa4e   : > { %5367 = vmatpush.msra.mxu0 %v7734_v7  ;;  %v7231_v7 = vld [vmem:[%s12617_s7 + $0x198] sm:$0xff] }
 0xa4f   : > { %7165 = vmatmul.msk.f32.vlgmr.msra.gmra.mxu0 %vm3784_vm8, %v7150_v22  ;;  %v5249_v22 = vld [vmem:[%s12617_s7 + $0x68] sm:$0xff] }
 0xa50   : > { %5924 = vmatpush.msrb.mxu0 %v5235_v23  ;;  %v7160_v23 = vld [vmem:[%s12617_s7 + $0xc8] sm:$0xff] }
 0xa51   : > { %v7737_v16 = vpop.permute.xlu0 %7736 }
 0xa52   : > { %v7738_v41 = vunpack.i.l.bf16 %v7737_v16  ;;  %5925 = vmatpush.msrb.mxu0 %v5233_v30  ;;  %v7739_v29 = vunpack.i.h.bf16 %v7737_v16  ;;  %7190 = vmatmul.msk.f32.gmra.mxu1 %vm3784_vm8, %v5246_v2  ;;  %v7232_v30 = vld [vmem:[%s12617_s7 + $0x1a0] sm:$0xff]  ;;  %v5250_v16 = vld [vmem:[%s12617_s7 + $0x70] sm:$0xff] }
 0xa54   : > { %5926 = vmatpush.msrb.mxu0 %v5231_v6  ;;  %5620 = vmatpush.msrb.mxu2 %v7738_v41  ;;  %v7161_v6 = vld [vmem:[%s12617_s7 + $0xd0] sm:$0xff]  ;;  %v7233_v41 = vld [vmem:[%s12617_s7 + $0x1a8] sm:$0xff] }
 0xa56   : > { %5927 = vmatpush.msrb.mxu0 %v5229_v25  ;;  %5621 = vmatpush.msrb.mxu2 %v7739_v29  ;;  %v7162_v25 = vld [vmem:[%s12617_s7 + $0xd8] sm:$0xff] }
 0xa57   : > { %7166 = vmatmul.msk.f32.gmra.mxu0 %vm3784_vm8, %v7151_v37  ;;  %v7204_v29 = vld [vmem:[%s12617_s7 + $0x138] sm:$0xff]  ;;  %v7234_v37 = vld [vmem:[%s12617_s7 + $0x1b0] sm:$0xff] }
 0xa58   : > { %5928 = vmatpush.msrb.mxu0 %v5227_v39  ;;  %5622 = vmatpush.msrb.mxu2 %v7758_v40  ;;  %v7163_v39 = vld [vmem:[%s12617_s7 + $0xe0] sm:$0xff] }
 0xa59   : > { %v7762_v12 = vpop.permute.xlu0 %7761  ;;  %v7205_v40 = vld [vmem:[%s12617_s7 + $0x140] sm:$0xff] }
 0xa5a   : > { %v7763_v56 = vunpack.i.l.bf16 %v7762_v12  ;;  %5929 = vmatpush.msrb.mxu0 %v5225_v57  ;;  %5623 = vmatpush.msrb.mxu2 %v7759_v9  ;;  %v7764_v44 = vunpack.i.h.bf16 %v7762_v12  ;;  %v5476_v57 = vpop.f32.mrf.mxu1  ;;  %v7206_v9 = vld [vmem:[%s12617_s7 + $0x148] sm:$0xff]  ;;  %v7236_v12 = vld [vmem:[%s12617_s7 + $0x1c0] sm:$0xff] }
 0xa5b   : > { %7191 = vmatmul.msk.f32.gmra.mxu1 %vm3784_vm8, %v5247_v10 }
 0xa5c   : > { %5930 = vmatpush.msrb.mxu0 %v5223_v49  ;;  %5624 = vmatpush.msrb.mxu2 %v7768_v20  ;;  %v7255_v49 = vld [vmem:[%s12617_s7 + $0x1e0] sm:$0xff]  ;;  %v7207_v20 = vld [vmem:[%s12617_s7 + $0x150] sm:$0xff] }
 0xa5d   : > { %5790 = vmatpush.msrb.mxu3 %v7763_v56  ;;  %v7237_v56 = vld [vmem:[%s12617_s7 + $0x1c8] sm:$0xff] }
 0xa5e   : > { %5931 = vmatpush.msrb.mxu0 %v5221_v24  ;;  %5625 = vmatpush.msrb.mxu2 %v7769_v51 }
 0xa5f   : > { %5791 = vmatpush.msrb.mxu3 %v7764_v44  ;;  %7167 = vmatmul.msk.f32.gmra.mxu0 %vm3784_vm8, %v7152_v15  ;;  %v7208_v15 = vld [vmem:[%s12617_s7 + $0x158] sm:$0xff]  ;;  %v7238_v44 = vld [vmem:[%s12617_s7 + $0x1d0] sm:$0xff] }
 0xa60   : > { %5932 = vmatpush.msrb.mxu0 %v5219_v61 }
 0xa61   : > { %5792 = vmatpush.msrb.mxu3 %v7773_v19  ;;  %v7777_v27 = vpop.permute.xlu0 %7776 }
 0xa62   : > { %v7778_v42 = vunpack.i.l.bf16 %v7777_v27  ;;  %5933 = vmatpush.msrb.mxu0 %v5217_v60  ;;  %v7779_v13 = vunpack.i.h.bf16 %v7777_v27  ;;  %v7209_v60 = vld [vmem:[%s12617_s7 + $0x160] sm:$0xff] }
 0xa63   : > { %5793 = vmatpush.msrb.mxu3 %v7774_v46  ;;  %7192 = vmatmul.msk.f32.gmra.mxu1 %vm3784_vm8, %v5248_v58 }
 0xa64   : > { %5626 = vmatpush.msrb.mxu2 %v7778_v42  ;;  %v7258_v42 = vld [vmem:[%s12617_s7 + $0x1f8] sm:$0xff] }
 0xa65   : > { %5794 = vmatpush.msrb.mxu3 %v7783_v53 }
 0xa66   : > { %5627 = vmatpush.msrb.mxu2 %v7779_v13  ;;  %v7259_v13 = vld [vmem:[%s12617_s7 + $0x200] sm:$0xff] }
 0xa67   : > { %5795 = vmatpush.msrb.mxu3 %v7784_v48  ;;  %7168 = vmatmul.msk.f32.gmra.mxu0 %vm3784_vm8, %v7153_v14 }
 0xa68   : > { %7210 = vmatmul.msk.f32.vlgmr.msrb.gmra.mxu2 %vm3784_vm8, %v7195_v47  ;;  %7240 = vmatmul.msk.f32.vlgmr.msrb.gmra.mxu3 %vm3784_vm8, %v7225_v38 }
 0xa6b   : > { %7193 = vmatmul.msk.f32.gmra.mxu1 %vm3784_vm8, %v5249_v22 }
 0xa6f   : > { %7169 = vmatmul.msk.f32.gmra.mxu0 %vm3784_vm8, %v7154_v52  ;;  %v7260_v52 = vld [vmem:[%s12617_s7 + $0x208] sm:$0xff] }
 0xa70   : > { %7211 = vmatmul.msk.f32.gmra.mxu2 %vm3784_vm8, %v7196_v21  ;;  %7241 = vmatmul.msk.f32.gmra.mxu3 %vm3784_vm8, %v7226_v26 }
 0xa73   : > { %7194 = vmatmul.msk.f32.gmra.mxu1 %vm3784_vm8, %v5250_v16 }
 0xa76   : > { %v5479_v24 = vpop.f32.mrf.mxu1 }
 0xa77   : > { %7170 = vmatmul.msk.f32.gmra.mxu0 %vm3784_vm8, %v7155_v17 }
 0xa78   : > { %7212 = vmatmul.msk.f32.gmra.mxu2 %vm3784_vm8, %v7197_v28  ;;  %7242 = vmatmul.msk.f32.gmra.mxu3 %vm3784_vm8, %v7227_v11 }
 0xa7f   : > { %7171 = vmatmul.msk.f32.gmra.mxu0 %vm3784_vm8, %v7156_v59  ;;  %v7261_v59 = vld [vmem:[%s12617_s7 + $0x210] sm:$0xff] }
 0xa80   : > { %7213 = vmatmul.msk.f32.gmra.mxu2 %vm3784_vm8, %v7198_v36  ;;  %7243 = vmatmul.msk.f32.gmra.mxu3 %vm3784_vm8, %v7228_v63 }
 0xa87   : > { %7172 = vmatmul.msk.f32.gmra.mxu0 %vm3784_vm8, %v7157_v55 }
 0xa88   : > { %7214 = vmatmul.msk.f32.gmra.mxu2 %vm3784_vm8, %v7199_v31  ;;  %7244 = vmatmul.msk.f32.gmra.mxu3 %vm3784_vm8, %v7229_v5 }
 0xa8d   : > { %v5482_v61 = vpop.f32.mrf.mxu1 }
 0xa8f   : > { %7173 = vmatmul.msk.f32.gmra.mxu0 %vm3784_vm8, %v7158_v54  ;;  %v7262_v54 = vld [vmem:[%s12617_s7 + $0x218] sm:$0xff] }
 0xa90   : > { %7215 = vmatmul.msk.f32.gmra.mxu2 %vm3784_vm8, %v7200_v45  ;;  %7245 = vmatmul.msk.f32.gmra.mxu3 %vm3784_vm8, %v7230_v62 }
 0xa96   : > { %v5485_v46 = vpop.f32.mrf.mxu1 }
 0xa97   : > { %7174 = vmatmul.msk.f32.gmra.mxu0 %vm3784_vm8, %v7159_v4 }
 0xa98   : > { %7216 = vmatmul.msk.f32.gmra.mxu2 %vm3784_vm8, %v7201_v34  ;;  %7246 = vmatmul.msk.f32.gmra.mxu3 %vm3784_vm8, %v7231_v7 }
 0xa9e   : > { %v5488_v14 = vpop.f32.mrf.mxu1 }
 0xa9f   : > { %7175 = vmatmul.msk.f32.gmra.mxu0 %vm3784_vm8, %v7160_v23 }
 0xaa0   : > { %7217 = vmatmul.msk.f32.gmra.mxu2 %vm3784_vm8, %v7202_v18  ;;  %7247 = vmatmul.msk.f32.gmra.mxu3 %vm3784_vm8, %v7232_v30  ;;  %v7263_v18 = vld [vmem:[%s12617_s7 + $0x220] sm:$0xff] }
 0xaa7   : > { %7176 = vmatmul.msk.f32.gmra.mxu0 %vm3784_vm8, %v7161_v6  ;;  %v5491_v3 = vpop.f32.mrf.mxu1 }
 0xaa8   : > { %7218 = vmatmul.msk.f32.gmra.mxu2 %vm3784_vm8, %v7203_v32  ;;  %7248 = vmatmul.msk.f32.gmra.mxu3 %vm3784_vm8, %v7233_v41 }
 0xaaf   : > { %7177 = vmatmul.msk.f32.gmra.mxu0 %vm3784_vm8, %v7162_v25  ;;  %v5494_v2 = vpop.f32.mrf.mxu1 }
 0xab0   : > { %7219 = vmatmul.msk.f32.gmra.mxu2 %vm3784_vm8, %v7204_v29  ;;  %7249 = vmatmul.msk.f32.gmra.mxu3 %vm3784_vm8, %v7234_v37  ;;  %v7264_v37 = vld [vmem:[%s12617_s7 + $0x228] sm:$0xff] }
 0xab7   : > { %7178 = vmatmul.msk.f32.gmra.mxu0 %vm3784_vm8, %v7163_v39  ;;  %v5497_v34 = vpop.f32.mrf.mxu1 }
 0xab8   : > { %7220 = vmatmul.msk.f32.gmra.mxu2 %vm3784_vm8, %v7205_v40  ;;  %7250 = vmatmul.msk.f32.gmra.mxu3 %vm3784_vm8, %v7235_v8 }
 0xabf   : > { %7179 = vmatmul.msk.f32.gmra.mxu0 %vm3784_vm8, %v7164_v33 }
 0xac0   : > { %7221 = vmatmul.msk.f32.gmra.mxu2 %vm3784_vm8, %v7206_v9  ;;  %7251 = vmatmul.msk.f32.gmra.mxu3 %vm3784_vm8, %v7236_v12  ;;  %v7265_v12 = vld [vmem:[%s12617_s7 + $0x230] sm:$0xff] }
 0xac7   : > { %7270 = vmatmul.msk.f32.vlgmr.msrb.gmra.mxu0 %vm3784_vm8, %v7255_v49 }
 0xac8   : > { %7222 = vmatmul.msk.f32.gmra.mxu2 %vm3784_vm8, %v7207_v20  ;;  %7252 = vmatmul.msk.f32.gmra.mxu3 %vm3784_vm8, %v7237_v56 }
 0xacc   : > { %v5369_v51 = vpop.f32.mrf.mxu0 }
 0xacd   : > { %v5477_v48 = vadd.f32 %v5476_v57, %v5369_v51 }
 0xacf   : > { %7271 = vmatmul.msk.f32.gmra.mxu0 %vm3784_vm8, %v7256_v0  ;;  %v7266_v0 = vld [vmem:[%s12617_s7 + $0x238] sm:$0xff] }
 0xad0   : > { %7223 = vmatmul.msk.f32.gmra.mxu2 %vm3784_vm8, %v7208_v15  ;;  %7253 = vmatmul.msk.f32.gmra.mxu3 %vm3784_vm8, %v7238_v44 }
 0xad4   : > { %v5372_v19 = vpop.f32.mrf.mxu0 }
 0xad5   : > { %v5480_v17 = vadd.f32 %v5479_v24, %v5372_v19 }
 0xad7   : > { %7272 = vmatmul.msk.f32.gmra.mxu0 %vm3784_vm8, %v7257_v35 }
 0xad8   : > { %7224 = vmatmul.msk.f32.gmra.mxu2 %vm3784_vm8, %v7209_v60  ;;  %7254 = vmatmul.msk.f32.gmra.mxu3 %vm3784_vm8, %v7239_v1  ;;  %v7267_v60 = vld [vmem:[%s12617_s7 + $0x240] sm:$0xff] }
 0xadc   : > { %v5375_v27 = vpop.f32.mrf.mxu0 }
 0xadd   : > { %v5483_v55 = vadd.f32 %v5482_v61, %v5375_v27 }
 0xadf   : > { %7273 = vmatmul.msk.f32.gmra.mxu0 %vm3784_vm8, %v7258_v42  ;;  %v7268_v42 = vld [vmem:[%s12617_s7 + $0x248] sm:$0xff] }
 0xae4   : > { %v5378_v53 = vpop.f32.mrf.mxu0 }
 0xae5   : > { %v5486_v4 = vadd.f32 %v5485_v46, %v5378_v53 }
 0xae7   : > { %7274 = vmatmul.msk.f32.gmra.mxu0 %vm3784_vm8, %v7259_v13  ;;  %v7269_v13 = vld [vmem:[%s12617_s7 + $0x250] sm:$0xff] }
 0xaeb   : > { %v5629_v47 = vpop.f32.mrf.mxu2  ;;  %v5797_v38 = vpop.f32.mrf.mxu3 }
 0xaec   : > { %v5381_v43 = vpop.f32.mrf.mxu0  ;;  %v5674_v21 = vadd.f32 %v5629_v47, %v5477_v48 }
 0xaed   : > { %v5489_v32 = vadd.f32 %v5488_v14, %v5381_v43 }
 0xaee   : > { %v12465_v26 = vadd.f32 %v5797_v38, %v5674_v21 }
 0xaef   : > { %7275 = vmatmul.msk.f32.gmra.mxu0 %vm3784_vm8, %v7260_v52 }
 0xaf3   : > { %v5632_v28 = vpop.f32.mrf.mxu2  ;;  %v5800_v11 = vpop.f32.mrf.mxu3 }
 0xaf4   : > { %v5384_v50 = vpop.f32.mrf.mxu0  ;;  %v5675_v36 = vadd.f32 %v5632_v28, %v5480_v17 }
 0xaf5   : > { %v5492_v8 = vadd.f32 %v5491_v3, %v5384_v50 }
 0xaf6   : > { %v5843_v63 = vadd.f32 %v5800_v11, %v5675_v36  ;;  %v5500_v36 = vpop.f32.mrf.mxu1 }
 0xaf7   : > { %7276 = vmatmul.msk.f32.gmra.mxu0 %vm3784_vm8, %v7261_v59 }
 0xafb   : > { %v5635_v31 = vpop.f32.mrf.mxu2  ;;  %v5803_v5 = vpop.f32.mrf.mxu3 }
 0xafc   : > { %v5387_v10 = vpop.f32.mrf.mxu0  ;;  %v5676_v45 = vadd.f32 %v5635_v31, %v5483_v55 }
 0xafd   : > { %v5495_v62 = vadd.f32 %v5494_v2, %v5387_v10 }
 0xafe   : > { %v5844_v58 = vadd.f32 %v5803_v5, %v5676_v45 }
 0xaff   : > { %7277 = vmatmul.msk.f32.gmra.mxu0 %vm3784_vm8, %v7262_v54 }
 0xb03   : > { %v5638_v7 = vpop.f32.mrf.mxu2  ;;  %v5806_v22 = vpop.f32.mrf.mxu3 }
 0xb04   : > { %v5390_v23 = vpop.f32.mrf.mxu0  ;;  %v5677_v30 = vadd.f32 %v5638_v7, %v5486_v4 }
 0xb05   : > { %v5498_v16 = vadd.f32 %v5497_v34, %v5390_v23 }
 0xb06   : > { %v5845_v6 = vadd.f32 %v5806_v22, %v5677_v30 }
 0xb07   : > { %7278 = vmatmul.msk.f32.gmra.mxu0 %vm3784_vm8, %v7263_v18 }
 0xb0b   : > { %v5641_v41 = vpop.f32.mrf.mxu2  ;;  %v5809_v25 = vpop.f32.mrf.mxu3 }
 0xb0c   : > { %v12480_v29 = vpop.f32.mrf.mxu0  ;;  %v5678_v39 = vadd.f32 %v5641_v41, %v5489_v32 }
 0xb0e   : > { %v5846_v40 = vadd.f32 %v5809_v25, %v5678_v39  ;;  %v6083_v39 = vpop.permute.xlu2 %6082 }
 0xb0f   : > { %7279 = vmatmul.msk.f32.gmra.mxu0 %vm3784_vm8, %v7264_v37 }
 0xb13   : > { %v5644_v33 = vpop.f32.mrf.mxu2  ;;  %v5812_v57 = vpop.f32.mrf.mxu3 }
 0xb14   : > { %v12486_v9 = vpop.f32.mrf.mxu0  ;;  %v5679_v49 = vadd.f32 %v5644_v33, %v5492_v8  ;;  %v6078_v8 = vpop.permute.xlu0 %6077 }
 0xb16   : > { %v5847_v20 = vadd.f32 %v5812_v57, %v5679_v49  ;;  %v6073_v57 = vpop.permute.xlu1 %6072 }
 0xb17   : > { %7280 = vmatmul.msk.f32.gmra.mxu0 %vm3784_vm8, %v7265_v12 }
 0xb1b   : > { %v5647_v56 = vpop.f32.mrf.mxu2  ;;  %v5815_v24 = vpop.f32.mrf.mxu3 }
 0xb1c   : > { %v12492_v51 = vpop.f32.mrf.mxu0  ;;  %v5680_v15 = vadd.f32 %v5647_v56, %v5495_v62 }
 0xb1e   : > { %v5848_v44 = vadd.f32 %v5815_v24, %v5680_v15 }
 0xb1f   : > { %7281 = vmatmul.msk.f32.gmra.mxu0 %vm3784_vm8, %v7266_v0 }
 0xb23   : > { %v5650_v61 = vpop.f32.mrf.mxu2  ;;  %v5818_v19 = vpop.f32.mrf.mxu3 }
 0xb24   : > { %v5402_v35 = vpop.f32.mrf.mxu0  ;;  %v5681_v1 = vadd.f32 %v5650_v61, %v5498_v16 }
 0xb26   : > { %v5849_v46 = vadd.f32 %v5818_v19, %v5681_v1  ;;  %v6063_v1 = vpop.permute.xlu0 %6062 }
 0xb27   : > { %7282 = vmatmul.msk.f32.gmra.mxu0 %vm3784_vm8, %v7267_v60 }
 0xb2b   : > { %v5653_v2 = vpop.f32.mrf.mxu2  ;;  %v12523_v55 = vpop.f32.mrf.mxu3 }
 0xb2c   : > { %v5405_v27 = vpop.f32.mrf.mxu0 }
 0xb2f   : > { %7283 = vmatmul.msk.f32.gmra.mxu0 %vm3784_vm8, %v7268_v42 }
 0xb33   : > { %v5656_v5 = vpop.f32.mrf.mxu2  ;;  %v5824_v45 = vpop.f32.mrf.mxu3 }
 0xb34   : > { %v5408_v53 = vpop.f32.mrf.mxu0 }
 0xb37   : > { %7284 = vmatmul.msk.f32.gmra.mxu0 %vm3784_vm8, %v7269_v13 }
 0xb3b   : > { %v5827_v34 = vpop.f32.mrf.mxu3 }
 0xb3c   : > { %v5411_v14 = vpop.f32.mrf.mxu0 }
 0xb43   : > { %v5830_v18 = vpop.f32.mrf.mxu3 }
 0xb44   : > { %v5935_v48 = vpop.f32.mrf.mxu0 }
 0xb45   : > { %v12511_v47 = vadd.f32 %v5935_v48, %v12465_v26 }
 0xb4b   : > { %v5833_v32 = vpop.f32.mrf.mxu3 }
 0xb4c   : > { %v5938_v38 = vpop.f32.mrf.mxu0 }
 0xb4d   : > { %v12513_v43 = vadd.f32 %v5938_v38, %v5843_v63  ;;  %v5503_v63 = vpop.f32.mrf.mxu1  ;;  %v6058_v38 = vpop.permute.xlu1 %6057 }
 0xb53   : > { %v5836_v33 = vpop.f32.mrf.mxu3 }
 0xb54   : > { %v5941_v52 = vpop.f32.mrf.mxu0 }
 0xb55   : > { %v12515_v21 = vadd.f32 %v5941_v52, %v5844_v58  ;;  %v5506_v62 = vpop.f32.mrf.mxu1  ;;  %v5659_v58 = vpop.f32.mrf.mxu2  ;;  %v5504_v52 = vadd.f32 %v5503_v63, %v12486_v9 }
 0xb56   : > { %v5507_v42 = vadd.f32 %v5506_v62, %v12492_v51 }
 0xb5c   : > { %v5944_v3 = vpop.f32.mrf.mxu0 }
 0xb5d   : > { %v12517_v17 = vadd.f32 %v5944_v3, %v5845_v6  ;;  %v5509_v7 = vpop.f32.mrf.mxu1  ;;  %v5662_v23 = vpop.f32.mrf.mxu2  ;;  %v5684_v3 = vadd.f32 %v5659_v58, %v5507_v42 }
 0xb5e   : > { %v5510_v61 = vadd.f32 %v5509_v7, %v5402_v35  ;;  %v6048_v58 = vpop.permute.xlu0 %6047 }
 0xb60   : > { %v5685_v13 = vadd.f32 %v5662_v23, %v5510_v61 }
 0xb62   : > { %v5853_v35 = vadd.f32 %v5830_v18, %v5685_v13  ;;  %v6118_v13 = vld [vmem:[%s12619_s9 + $0x18] sm:$0xff] }
 0xb64   : > { %v5947_v28 = vpop.f32.mrf.mxu0 }
 0xb65   : > { %v12519_v11 = vadd.f32 %v5947_v28, %v5846_v40  ;;  %v5512_v16 = vpop.f32.mrf.mxu1  ;;  %v5665_v6 = vpop.f32.mrf.mxu2 }
 0xb66   : > { %v5513_v24 = vadd.f32 %v5512_v16, %v5405_v27  ;;  %v5501_v27 = vadd.f32 %v5500_v36, %v12480_v29 }
 0xb68   : > { %v5686_v19 = vadd.f32 %v5665_v6, %v5513_v24  ;;  %v5682_v16 = vadd.f32 %v5653_v2, %v5501_v27  ;;  %v5852_v6 = vadd.f32 %v5827_v34, %v5684_v3  ;;  %v6122_v3 = vld [vmem:[%s12619_s9 + $0x38] sm:$0xff] }
 0xb6c   : > { %v5950_v50 = vpop.f32.mrf.mxu0 }
 0xb6d   : > { %v12521_v59 = vadd.f32 %v5950_v50, %v5847_v20  ;;  %v5515_v25 = vpop.f32.mrf.mxu1  ;;  %v5668_v37 = vpop.f32.mrf.mxu2 }
 0xb6e   : > { %v5516_v49 = vadd.f32 %v5515_v25, %v5408_v53  ;;  %v5854_v53 = vadd.f32 %v5833_v32, %v5686_v19  ;;  %v5850_v32 = vadd.f32 %v12523_v55, %v5682_v16 }
 0xb70   : > { %v5687_v0 = vadd.f32 %v5668_v37, %v5516_v49 }
 0xb72   : > { %v5855_v48 = vadd.f32 %v5836_v33, %v5687_v0 }
 0xb74   : > { %v5953_v26 = vpop.f32.mrf.mxu0 }
 0xb75   : > { %v12525_v31 = vadd.f32 %v5953_v26, %v5848_v44  ;;  %v5518_v12 = vpop.f32.mrf.mxu1  ;;  %v5671_v20 = vpop.f32.mrf.mxu2  ;;  %v5683_v26 = vadd.f32 %v5656_v5, %v5504_v52  ;;  %v6121_v52 = vld [vmem:[%s12619_s9 + $0x30] sm:$0xff] }
 0xb76   : > { %v5519_v15 = vadd.f32 %v5518_v12, %v5411_v14  ;;  %v6068_v44 = vpop.permute.xlu2 %6067  ;;  %v6043_v5 = vpop.permute.xlu1 %6042 }
 0xb77   : > { %v5851_v37 = vadd.f32 %v5824_v45, %v5683_v26 }
 0xb78   : > { %v5688_v60 = vadd.f32 %v5671_v20, %v5519_v15 }
 0xb7c   : > { %v5956_v10 = vpop.f32.mrf.mxu0 }
 0xb7d   : > { %v12527_v54 = vadd.f32 %v5956_v10, %v5849_v46  ;;  %v5839_v46 = vpop.f32.mrf.mxu3 }
 0xb7e   : > { %v5856_v28 = vadd.f32 %v5839_v46, %v5688_v60  ;;  %v6053_v23 = vpop.permute.xlu2 %6052 }
 0xb84   : > { %v12529_v4 = vpop.f32.mrf.mxu0 }
 0xb85   : > { %v5988_v18 = vadd.f32 %v12529_v4, %v5850_v32  ;;  %v6028_v4 = vpop.permute.xlu1 %6027 }
 0xb86   : > { %v6088_v15 = vadd.f32 %v6028_v4, %v12517_v17 }
 0xb87   : > { %v6093_v45 = vadd.f32 %v6053_v23, %v5988_v18 }
 0xb89   : > { %v6108_v49 = vmax.f32 %v6093_v45, 0.0 }
 0xb8c   : > { %v5962_v22 = vpop.f32.mrf.mxu0 }
 0xb8d   : > { %v5989_v12 = vadd.f32 %v5962_v22, %v5851_v37  ;;  %v6033_v22 = vpop.permute.xlu0 %6032 }
 0xb8e   : > { %v6089_v24 = vadd.f32 %v6033_v22, %v12519_v11 }
 0xb90   : > { %v6104_v19 = vmax.f32 %v6089_v24, 0.0 }
 0xb94   : > { %v5965_v30 = vpop.f32.mrf.mxu0 }
 0xb95   : > { %v5990_v33 = vadd.f32 %v5965_v30, %v5852_v6 }
 0xb97   : > { %v6095_v2 = vadd.f32 %v6063_v1, %v5990_v33  ;;  %v6103_v1 = vmax.f32 %v6088_v15, 0.0 }
 0xb99   : > { %v6110_v30 = vmax.f32 %v6095_v2, 0.0 }
 0xb9c   : > { %v5968_v41 = vpop.f32.mrf.mxu0 }
 0xb9d   : > { %v5991_v25 = vadd.f32 %v5968_v41, %v5853_v35  ;;  %v6094_v41 = vadd.f32 %v6058_v38, %v5989_v12  ;;  %v6120_v38 = vld [vmem:[%s12619_s9 + $0x28] sm:$0xff] }
 0xb9f   : > { %v6096_v29 = vadd.f32 %v6068_v44, %v5991_v25  ;;  %v6109_v55 = vmax.f32 %v6094_v41, 0.0 }
 0xba4   : > { %v5971_v40 = vpop.f32.mrf.mxu0 }
 0xba5   : > { %v5992_v10 = vadd.f32 %v5971_v40, %v5854_v53  ;;  %v6038_v40 = vpop.permute.xlu2 %6037  ;;  %v6123_v53 = vld [vmem:[%s12619_s9 + $0x40] sm:$0xff] }
 0xba6   : > { %v6090_v20 = vadd.f32 %v6038_v40, %v12521_v59  ;;  %v6013_v59 = vpop.permute.xlu1 %6012 }
 0xba7   : > { %v6097_v9 = vadd.f32 %v6073_v57, %v5992_v10  ;;  %v6091_v57 = vadd.f32 %v6043_v5, %v12525_v31  ;;  %v6018_v31 = vpop.permute.xlu0 %6017  ;;  %v6085_v46 = vadd.f32 %v6013_v59, %v12511_v47  ;;  %v6117_v47 = vld [vmem:[%s12619_s9 + $0x10] sm:$0xff] }
 0xba8   : > { %v6105_v44 = vmax.f32 %v6090_v20, 0.0  ;;  %v6086_v60 = vadd.f32 %v6018_v31, %v12513_v43  ;;  %v6116_v43 = vld [vmem:[%s12619_s9 + $0x8] sm:$0xff] }
 0xba9   : > { %v6112_v34 = vmax.f32 %v6097_v9, 0.0  ;;  %v6106_v0 = vmax.f32 %v6091_v57, 0.0  ;;  %v6100_v17 = vmax.f32 %v6085_v46, 0.0  ;;  %v6287_v31 = vld [vmem:[%s12621_s11 + $0x8] sm:$0x3] }
 0xbaa   : > { %v6101_v42 = vmax.f32 %v6086_v60, 0.0 }
 0xbac   : > { %v5974_v56 = vpop.f32.mrf.mxu0 }
 0xbad   : > { %v5993_v50 = vadd.f32 %v5974_v56, %v5855_v48  ;;  %v6119_v48 = vld [vmem:[%s12619_s9 + $0x20] sm:$0xff] }
 0xbae   : > { %v6180_v37 = vpop.permute.xlu1 %6179 }
 0xbaf   : > { %v6098_v51 = vadd.f32 %v6078_v8, %v5993_v50  ;;  %v6092_v8 = vadd.f32 %v6048_v58, %v12527_v54  ;;  %v6023_v54 = vpop.permute.xlu2 %6022  ;;  %v6125_v50 = vld [vmem:[%s12619_s9 + $0x50] sm:$0xf] }
 0xbb0   : > { %v6087_v61 = vadd.f32 %v6023_v54, %v12515_v21  ;;  %v6115_v21 = vld [vmem:[%s12619_s9] sm:$0xff] }
 0xbb1   : > { %v6113_v36 = vmax.f32 %v6098_v51, 0.0  ;;  %v6107_v56 = vmax.f32 %v6092_v8, 0.0 }
 0xbb2   : > { %v6102_v11 = vmax.f32 %v6087_v61, 0.0 }
 0xbb4   : > { %v5977_v14 = vpop.f32.mrf.mxu0 }
 0xbb5   : > { %v5994_v7 = vadd.f32 %v5977_v14, %v5856_v28  ;;  %v6124_v28 = vld [vmem:[%s12619_s9 + $0x48] sm:$0xff] }
 0xbb7   : > { %v6099_v62 = vadd.f32 %v6083_v39, %v5994_v7  ;;  %v6111_v39 = vmax.f32 %v6096_v29, 0.0  ;;  %v6190_v51 = vpop.permute.xlu2 %6189 }
 0xbb9   : > { %v6114_v63 = vmax.f32 %v6099_v62, 0.0  ;;  %v6185_v62 = vpop.permute.xlu0 %6184 }
 0xbbb   : > { %6226 = vmatpush.msrb.mxu1 %v6114_v63 }
 0xbbd   : > { %6227 = vmatpush.msrb.mxu1 %v6113_v36  ;;  %v6165_v36 = vpop.permute.xlu1 %6164 }
 0xbbf   : > { %6228 = vmatpush.msrb.mxu1 %v6112_v34  ;;  %v6175_v33 = vpop.permute.xlu2 %6174 }
 0xbc1   : > { %6229 = vmatpush.msrb.mxu1 %v6111_v39  ;;  %v6170_v9 = vpop.permute.xlu0 %6169 }
 0xbc3   : > { %6230 = vmatpush.msrb.mxu1 %v6110_v30 }
 0xbc5   : > { %6231 = vmatpush.msrb.mxu1 %v6109_v55  ;;  %v6150_v57 = vpop.permute.xlu1 %6149 }
 0xbc7   : > { %6232 = vmatpush.msrb.mxu1 %v6108_v49  ;;  %v6160_v2 = vpop.permute.xlu2 %6159 }
 0xbc9   : > { %6233 = vmatpush.msrb.mxu1 %v6107_v56  ;;  %v6155_v39 = vpop.permute.xlu0 %6154 }
 0xbcb   : > { %6234 = vmatpush.msrb.mxu1 %v6106_v0 }
 0xbcd   : > { %6235 = vmatpush.msrb.mxu1 %v6105_v44 }
 0xbcf   : > { %6236 = vmatpush.msrb.mxu1 %v6104_v19  ;;  %v6145_v20 = vpop.permute.xlu2 %6144  ;;  %v6286_v19 = vld [vmem:[%s12621_s11] sm:$0xff] }
 0xbd1   : > { %6237 = vmatpush.msrb.mxu1 %v6103_v1  ;;  %v6140_v0 = vpop.permute.xlu0 %6139  ;;  %v6293_v1 = vpop.permute.xlu1 %6292 }
 0xbd3   : > { %6238 = vmatpush.msrb.mxu1 %v6102_v11 }
 0xbd5   : > { %6239 = vmatpush.msrb.mxu1 %v6101_v42 }
 0xbd7   : > { %6240 = vmatpush.msrb.mxu1 %v6100_v17  ;;  %v6298_v46 = vpop.permute.xlu2 %6297 }
 0xbd8   : > { %7285 = vmatmul.msk.f32.vlgmr.msrb.gmra.mxu1 %vm516_vm0, %v6115_v21 }
 0xbe0   : > { %7286 = vmatmul.msk.f32.gmra.mxu1 %vm516_vm0, %v6116_v43 }
 0xbe8   : > { %7287 = vmatmul.msk.f32.gmra.mxu1 %vm516_vm0, %v6117_v47 }
 0xbf0   : > { %7288 = vmatmul.msk.f32.gmra.mxu1 %vm516_vm0, %v6118_v13 }
 0xbf8   : > { %7289 = vmatmul.msk.f32.gmra.mxu1 %vm516_vm0, %v6119_v48 }
 0xc00   : > { %7290 = vmatmul.msk.f32.gmra.mxu1 %vm516_vm0, %v6120_v38 }
 0xc08   : > { %7291 = vmatmul.msk.f32.gmra.mxu1 %vm516_vm0, %v6121_v52 }
 0xc10   : > { %7292 = vmatmul.msk.f32.gmra.mxu1 %vm516_vm0, %v6122_v3 }
 0xc18   : > { %7293 = vmatmul.msk.f32.gmra.mxu1 %vm516_vm0, %v6123_v53 }
 0xc20   : > { %7294 = vmatmul.msk.f32.gmra.mxu1 %vm516_vm0, %v6124_v28 }
 0xc28   : > { %7295 = vmatmul.msk.f32.gmra.mxu1 %vm516_vm0, %v6125_v50 }
 0xc55   : > { %v6242_v27 = vpop.f32.mrf.mxu1 }
 0xc56   : > { %v6243_v15 = vadd.f32 %v6242_v27, %v6140_v0 }
 0xc58   : > { %v6275_v61 = vmax.f32 %v6243_v15, 0.0 }
 0xc5d   : > { %v6245_v14 = vpop.f32.mrf.mxu1 }
 0xc5e   : > { %v6246_v56 = vadd.f32 %v6245_v14, %v6145_v20 }
 0xc60   : > { %v6276_v54 = vmax.f32 %v6246_v56, 0.0 }
 0xc65   : > { %v6248_v26 = vpop.f32.mrf.mxu1 }
 0xc66   : > { %v6249_v49 = vadd.f32 %v6248_v26, %v6150_v57 }
 0xc68   : > { %v6277_v44 = vmax.f32 %v6249_v49, 0.0 }
 0xc6d   : > { %v6251_v35 = vpop.f32.mrf.mxu1 }
 0xc6e   : > { %v6252_v55 = vadd.f32 %v6251_v35, %v6155_v39 }
 0xc70   : > { %v6278_v24 = vmax.f32 %v6252_v55, 0.0 }
 0xc75   : > { %v6254_v10 = vpop.f32.mrf.mxu1 }
 0xc76   : > { %v6255_v40 = vadd.f32 %v6254_v10, %v6160_v2 }
 0xc78   : > { %v6279_v4 = vmax.f32 %v6255_v40, 0.0 }
 0xc7d   : > { %v6257_v7 = vpop.f32.mrf.mxu1 }
 0xc7e   : > { %v6258_v45 = vadd.f32 %v6257_v7, %v6165_v36 }
 0xc80   : > { %v6280_v22 = vmax.f32 %v6258_v45, 0.0 }
 0xc85   : > { %v6260_v16 = vpop.f32.mrf.mxu1 }
 0xc86   : > { %v6261_v34 = vadd.f32 %v6260_v16, %v6170_v9 }
 0xc88   : > { %v6281_v8 = vmax.f32 %v6261_v34, 0.0 }
 0xc8d   : > { %v6263_v6 = vpop.f32.mrf.mxu1 }
 0xc8e   : > { %v6264_v5 = vadd.f32 %v6263_v6, %v6175_v33 }
 0xc90   : > { %v6282_v30 = vmax.f32 %v6264_v5, 0.0 }
 0xc95   : > { %v6266_v25 = vpop.f32.mrf.mxu1 }
 0xc96   : > { %v6267_v12 = vadd.f32 %v6266_v25, %v6180_v37 }
 0xc98   : > { %v6283_v41 = vmax.f32 %v6267_v12, 0.0 }
 0xc9d   : > { %v6269_v23 = vpop.f32.mrf.mxu1 }
 0xc9e   : > { %v6270_v58 = vadd.f32 %v6269_v23, %v6185_v62 }
 0xca0   : > { %v6284_v18 = vmax.f32 %v6270_v58, 0.0 }
 0xca5   : > { %v6272_v63 = vpop.f32.mrf.mxu1 }
 0xca6   : > { %v6273_v32 = vadd.f32 %v6272_v63, %v6190_v51 }
 0xca8   : > { %v6285_v29 = vmax.f32 %v6273_v32, 0.0 }
 0xcaa   : > { %7296 = vmatpush.msk.msra.mxu2 %vm2988_vm6, %v6285_v29 }
 0xcac   : > { %6315 = vmatpush.msra.mxu2 %v6284_v18 }
 0xcae   : > { %6316 = vmatpush.msra.mxu2 %v6283_v41 }
 0xcb0   : > { %6317 = vmatpush.msra.mxu2 %v6282_v30 }
 0xcb2   : > { %6318 = vmatpush.msra.mxu2 %v6281_v8 }
 0xcb4   : > { %6319 = vmatpush.msra.mxu2 %v6280_v22 }
 0xcb6   : > { %6320 = vmatpush.msra.mxu2 %v6279_v4 }
 0xcb8   : > { %6321 = vmatpush.msra.mxu2 %v6278_v24 }
 0xcba   : > { %6322 = vmatpush.msra.mxu2 %v6277_v44 }
 0xcbc   : > { %6323 = vmatpush.msra.mxu2 %v6276_v54 }
 0xcbe   : > { %6324 = vmatpush.msra.mxu2 %v6275_v61 }
 0xcbf   : > { %7297 = vmatmul.msk.f32.vlgmr.msra.gmra.mxu2 %vm2927_vm7, %v6286_v19 }
 0xcc7   : > { %7298 = vmatmul.msk.f32.gmra.mxu2 %vm2927_vm7, %v6287_v31 }
 0xd42   : > { %v6326_v60 = vpop.f32.mrf.mxu2 }
 0xd43   : > { %v6327_v59 = vadd.f32 %v6326_v60, %v6293_v1 }
 0xd45   : > { %v6333_v17 = vsel %vm6332_vm10, %v6327_v59, -inf }
 0xd4a   : > { %v6329_v11 = vpop.f32.mrf.mxu2 }
 0xd4b   : > { %v6330_v42 = vadd.f32 %v6329_v11, %v6298_v46 }
 0xd4d   : > { %v6335_v21 = vsel %vm6334_vm11, %v6330_v42, -inf }
 0xd4e   : > { %v6336_v43 = vmax.f32 %v6333_v17, %v6335_v21 }
 0xd50   : > { %v6337_v47 = vrot.slane %v6336_v43, 4 }
 0xd52   : > { %v6338_v13 = vmax.f32 %v6336_v43, %v6337_v47 }
 0xd54   : > { %v6339_v48 = vrot.slane %v6338_v13, 2 }
 0xd56   : > { %v6340_v38 = vmax.f32 %v6338_v13, %v6339_v48 }
 0xd58   : > { %v6341_v52 = vrot.slane %v6340_v38, 1 }
 0xd5a   : > { %v6342_v3 = vmax.f32 %v6340_v38, %v6341_v52 }
 0xd5c   : > { %v6343_v53 = vsub.f32 %v6327_v59, %v6342_v3  ;;  %v6344_v28 = vsub.f32 %v6330_v42, %v6342_v3 }
 0xd5e   : > { %v6345_v50 = vmul.f32 1.442695, %v6343_v53  ;;  %v6347_v27 = vmul.f32 1.442695, %v6344_v28 }
 0xd60   : > { %7785 = vpow2.f32 %v6345_v50 }
 0xd61   : > { %7787 = vpow2.f32 %v6347_v27 }
 0xd66   : > { %v7786_v14 = vpop.eup %7785 }
 0xd67   : > { %v7788_v26 = vpop.eup %7787  ;;  %v6349_v35 = vsel %vm6332_vm10, %v7786_v14, 0.0 }
 0xd68   : > { %v6350_v10 = vsel %vm6334_vm11, %v7788_v26, 0.0 }
 0xd69   : > { %v6351_v7 = vadd.f32 %v6350_v10, %v6349_v35 }
 0xd6b   : > { %v6352_v16 = vrot.slane %v6351_v7, 4 }
 0xd6d   : > { %v6353_v6 = vadd.f32 %v6352_v16, %v6351_v7 }
 0xd6f   : > { %v6354_v25 = vrot.slane %v6353_v6, 2 }
 0xd71   : > { %v6355_v51 = vadd.f32 %v6354_v25, %v6353_v6 }
 0xd73   : > { %v6356_v62 = vrot.slane %v6355_v51, 1 }
 0xd75   : > { %v6357_v23 = vadd.f32 %v6356_v62, %v6355_v51 }
 0xd77   : > { %7789 = vrcp.f32 %v6357_v23  ;;  %v6369_v63 = vand.u32 2147483648, %v6357_v23  ;;  %v6367_v32 = vand.u32 2147483647, %v6357_v23  ;;  %vm6363_vm13 = vweird.f32 %v6357_v23 }
 0xd79   : > { %v6370_v29 = vor.u32 1.1754944e-38, %v6369_v63  ;;  %vm6368_vm15 = vcmp.eq.f32.partialorder %v6367_v32, 8.507059e+37 }
 0xd7d   : > { %v7790_v37 = vpop.eup %7789 }
 0xd7e   : > { %v6359_v33 = vmul.f32 %v7790_v37, %v6357_v23  ;;  %vm6364_vm12 = vweird.f32 %v7790_v37 }
 0xd7f   : > { %vm6365_vm14 = vmor %vm6363_vm13, %vm6364_vm12 }
 0xd80   : > { %v6360_v9 = vsub.f32 1.0, %v6359_v33 }
 0xd82   : > { %v6361_v58 = vmul.f32 %v7790_v37, %v6360_v9 }
 0xd84   : > { %v6362_v12 = vadd.f32 %v7790_v37, %v6361_v58 }
 0xd86   : > { %v6366_v36 = vsel %vm6365_vm14, %v7790_v37, %v6362_v12 }
 0xd87   : > { %v6371_v5 = vsel %vm6368_vm15, %v6370_v29, %v6366_v36 }
 0xd88   : > { %v6372_v18 = vmul.f32 %v7786_v14, %v6371_v5  ;;  %v6373_v2 = vmul.f32 %v7788_v26, %v6371_v5 }
 0xd8a   : > { %6374 = vst.msk [vmem:[%s440_s23] sm:$0xff] %vm6332_vm10, %v6372_v18 }
 0xd8b   : > { %6375 = vst.msk [vmem:[%s440_s23 + $0x8] sm:$0x3] %vm6334_vm11, %v6373_v2 }
 0xd8c PF: > { %s23_s25 = sadd.s32 1, %s7797_s25  }
 0xd8d   : > { %p20_p4 = scmp.ge.s32.totalorder %s23_s25, 4  }
 0xd8f   :  { %22 = sbr.rel (!%p20_p4) target bundleno = 1 (0x1), region = 116 }

</bundles_post_ra>
